<compile_context>
chip_gen: v7x
topology: tpu7x:2x2x1
jax: 0.10.0
libtpu: 0.0.40
codegen_flags: <defaults>
</compile_context>

<pallas_src>
import jax
import jax.numpy as jnp
from jax.experimental import pallas as pl
from jax.experimental.pallas import tpu as pltpu


def my_cnn_forward(x, params):
    """Pallas implementation of myCNN.forward. x: (B, S, H, W) NCHW float32."""
    w1, b1, w2, b2, wfc, bfc = params
    B, S, H, W = x.shape
    K1, C1 = w1.shape[0], w1.shape[3]
    K2, C2 = w2.shape[0], w2.shape[3]
    P1, P2 = K1 // 2, K2 // 2
    H1, W1 = H // 2, W // 2          # spatial size after maxpool (conv2 domain)
    H2, W2 = H1 // 2, W1 // 2        # spatial size after avgpool
    N = wfc.shape[1]
    NP = 128                         # lane-dense padded FC output width
    f32 = jnp.float32

    # ---------------- host-side prep (tiny, weight/constant-only + 4 KiB pad) ----------
    # Transpose spatial axes once (pipeline runs x-major) and pre-pad conv1 halo.
    x_tp = jnp.pad(jnp.transpose(x, (0, 1, 3, 2)),
                   ((0, 0), (0, 0), (P1, P1), (P1, P1)))        # (B, S, W+2P1, H+2P1)
    w1_flat = w1.reshape(-1)
    w2_flat = w2.reshape(-1)
    wfc_pad = jnp.zeros((wfc.shape[0], NP), f32).at[:, :N].set(wfc)
    bfc_pad = jnp.zeros((1, NP), f32).at[0, :N].set(bfc)
    # Fold the 2x2 avg-pool into the FC weights:
    #   out[n] = sum_{c,r,j} sig2[c,r,j] * 0.25 * wfc[c*H2*W2 + (r//2)*W2 + (j//2), n]
    flat_idx = (jnp.arange(C2)[None, :, None] * (H2 * W2)
                + (jnp.arange(H1)[None, None, :] // 2) * W2
                + (jnp.arange(W1)[:, None, None] // 2))          # (W1, C2, H1)
    wexp = 0.25 * wfc_pad[flat_idx]                              # (W1, C2, H1, NP)
    # One-hot matrices for the lane (image-row) half of the 2x2 maxpool (hoisted).
    vi = jnp.arange(H)[:, None]
    bj = jnp.arange(H1)[None, :]
    sel_cols = jnp.stack([(vi == 2 * bj).astype(f32),
                          (vi == 2 * bj + 1).astype(f32)], axis=0)   # (2, H, H1)

    def kernel(x_ref, w1_ref, b1_ref, w2_ref, b2_ref, sel_ref, wexp_ref, bfc_ref,
               o_ref, s1_ref, y1p_ref):
        # ---- conv1 (K1xK1 'same') + ReLU, transposed layout: sublane = image x ----
        acc1 = [jnp.zeros((W, H), f32) + b1_ref[c] for c in range(C1)]
        for ci in range(S):
            for dv in range(K1):                      # lane tap  == original kh
                blk = x_ref[0, ci, :, dv:dv + H]      # one VMEM load per (ci, dv)
                for du in range(K1):                  # sublane tap == original kw
                    tap = blk[du:du + W, :]           # register slice, no extra vld
                    for c in range(C1):
                        wv = w1_ref[((dv * K1 + du) * S + ci) * C1 + c]
                        acc1[c] = acc1[c] + tap * wv
        for c in range(C1):
            s1_ref[c * W:(c + 1) * W, :] = jnp.maximum(acc1[c], 0.0)

        # ---- 2x2 maxpool: stride-2 sublane reads (x half) + one-hot matmul (y half) ----
        even = s1_ref[pl.ds(0, C1 * W1, stride=2), :]
        odd = s1_ref[pl.ds(1, C1 * W1, stride=2), :]
        rmax = jnp.maximum(even, odd)                              # (C1*W1, H)
        p_e = jnp.dot(rmax, sel_ref[0], preferred_element_type=f32)
        p_o = jnp.dot(rmax, sel_ref[1], preferred_element_type=f32)
        pooled = jnp.maximum(p_e, p_o)                             # (C1*W1, H1)

        # ---- conv2 input: small zero-halo scratch (~4 vregs), interior overwritten ----
        y1p_ref[...] = jnp.zeros_like(y1p_ref)
        for c in range(C1):
            y1p_ref[c, P2:P2 + W1, P2:P2 + H1] = pooled[c * W1:(c + 1) * W1, :]

        # ---- conv2 (K2xK2 'same') + sigmoid ----
        acc2 = [jnp.zeros((W1, H1), f32) + b2_ref[c] for c in range(C2)]
        for ci in range(C1):
            for dv in range(K2):
                blk = y1p_ref[ci, :, dv:dv + H1]      # one VMEM load per (ci, dv)
                for du in range(K2):
                    tap = blk[du:du + W1, :]
                    for c in range(C2):
                        wv = w2_ref[((dv * K2 + du) * C1 + ci) * C2 + c]
                        acc2[c] = acc2[c] + tap * wv
        sig = []
        for c in range(C2):
            # sigmoid via EUP exp + approx reciprocal + one Newton step (no VALU divide)
            d = 1.0 + jnp.exp(-acc2[c])
            r = pl.reciprocal(d, approx=True)
            sig.append(r * (2.0 - d * r))             # (W1, H1): sublane=col j, lane=row r

        # ---- avg-pool + FC (avg-pool folded into wexp): 32 tiny MXU matmuls ----
        fc = bfc_ref[...]                             # (1, NP) lane-dense accumulator
        for c in range(C2):
            for j in range(W1):
                fc = fc + jnp.dot(sig[c][j:j + 1, :], wexp_ref[j, c],
                                  preferred_element_type=f32)
        o_ref[0] = fc

    smem = pltpu.MemorySpace.SMEM
    out = pl.pallas_call(
        kernel,
        out_shape=jax.ShapeDtypeStruct((B, 1, NP), f32),
        grid=(B,),
        in_specs=[
            pl.BlockSpec((1, S, W + 2 * P1, H + 2 * P1), lambda b: (b, 0, 0, 0)),
            pl.BlockSpec((w1_flat.shape[0],), lambda b: (0,), memory_space=smem),
            pl.BlockSpec((C1,), lambda b: (0,), memory_space=smem),
            pl.BlockSpec((w2_flat.shape[0],), lambda b: (0,), memory_space=smem),
            pl.BlockSpec((C2,), lambda b: (0,), memory_space=smem),
            pl.BlockSpec((2, H, H1), lambda b: (0, 0, 0)),
            pl.BlockSpec((W1, C2, H1, NP), lambda b: (0, 0, 0, 0)),
            pl.BlockSpec((1, NP), lambda b: (0, 0)),
        ],
        out_specs=pl.BlockSpec((1, 1, NP), lambda b: (b, 0, 0)),
        scratch_shapes=[
            pltpu.VMEM((C1 * W, H), f32),                          # stacked relu1
            pltpu.VMEM((C1, W1 + 2 * P2, H1 + 2 * P2), f32),       # padded pooled1
        ],
        compiler_params=pltpu.CompilerParams(dimension_semantics=("parallel",)),
    )(x_tp, w1_flat, b1, w2_flat, b2, sel_cols, wexp, bfc_pad)
    return out[:, 0, :N]


def reference_forward(x, params):
    """Pure-JAX/XLA reference with the same semantics as the PyTorch module."""
    w1, b1, w2, b2, wfc, bfc = params
    dn = ("NCHW", "OIHW", "NCHW")
    y = jax.lax.conv_general_dilated(
        x, jnp.transpose(w1, (3, 2, 0, 1)), (1, 1), "SAME", dimension_numbers=dn
    ) + b1[None, :, None, None]
    y = jnp.maximum(y, 0.0)
    y = jax.lax.reduce_window(y, -jnp.inf, jax.lax.max, (1, 1, 2, 2), (1, 1, 2, 2), "VALID")
    y = jax.lax.conv_general_dilated(
        y, jnp.transpose(w2, (3, 2, 0, 1)), (1, 1), "SAME", dimension_numbers=dn
    ) + b2[None, :, None, None]
    y = 1.0 / (1.0 + jnp.exp(-y))
    y = jax.lax.reduce_window(y, 0.0, jax.lax.add, (1, 1, 2, 2), (1, 1, 2, 2), "VALID") / 4.0
    feat = y.reshape(x.shape[0], -1)
    return feat @ wfc + bfc[None, :]


if __name__ == "__main__":
    # myCNN(W=16, H=16, S=4, N=10); x is NCHW: (batch, S, H, W); FC: W*H//4 = 64 -> N
    B, S, H, W, N = 2, 4, 16, 16, 10
    keys = jax.random.split(jax.random.PRNGKey(0), 7)
    x = jax.random.normal(keys[0], (B, S, H, W), jnp.float32)
    params = (
        0.1 * jax.random.normal(keys[1], (3, 3, S, 2), jnp.float32),      # conv1 weight (HWIO)
        0.1 * jax.random.normal(keys[2], (2,), jnp.float32),              # conv1 bias
        0.1 * jax.random.normal(keys[3], (5, 5, 2, 4), jnp.float32),      # conv2 weight (HWIO)
        0.1 * jax.random.normal(keys[4], (4,), jnp.float32),              # conv2 bias
        0.1 * jax.random.normal(keys[5], (W * H // 4, N), jnp.float32),   # FC weight (in, out)
        0.1 * jax.random.normal(keys[6], (N,), jnp.float32),              # FC bias
    )

    out = jax.jit(my_cnn_forward)(x, params)
    out = jax.block_until_ready(out)
    ref = reference_forward(x, params)
    assert out.shape == (B, N), out.shape
    max_err = float(jnp.max(jnp.abs(out - ref)))
    assert max_err < 1e-3, f"max abs error {max_err}"
    print("KERNEL_OK")
</pallas_src>

<mosaic_0001>
module attributes {stable_mosaic.version = 11 : i64} {
  func.func @kernel(%arg0: i32, %arg1: memref<1x4x18x18xf32, #tpu.memory_space<vmem>>, %arg2: memref<72xf32, #tpu.memory_space<smem>>, %arg3: memref<2xf32, #tpu.memory_space<smem>>, %arg4: memref<200xf32, #tpu.memory_space<smem>>, %arg5: memref<4xf32, #tpu.memory_space<smem>>, %arg6: memref<2x16x8xf32, #tpu.memory_space<vmem>>, %arg7: memref<8x4x8x128xf32, #tpu.memory_space<vmem>>, %arg8: memref<1x128xf32, #tpu.memory_space<vmem>>, %arg9: memref<1x1x128xf32, #tpu.memory_space<vmem>>, %arg10: memref<32x16xf32, #tpu.memory_space<vmem>>, %arg11: memref<2x12x12xf32, #tpu.memory_space<vmem>>) attributes {dimension_semantics = [#tpu.dimension_semantics<parallel>], iteration_bounds = array<i64: 2>, scalar_prefetch = 0 : i64, scratch_operands = 2 : i64, tpu.core_type = #tpu.core_type<tc>, window_params = [{transform_indices = @transform_0, window_bounds = array<i64: 1, 4, 18, 18>}, {transform_indices = @transform_1, window_bounds = array<i64: 72>}, {transform_indices = @transform_2, window_bounds = array<i64: 2>}, {transform_indices = @transform_3, window_bounds = array<i64: 200>}, {transform_indices = @transform_4, window_bounds = array<i64: 4>}, {pipeline_mode = #tpu.pipeline_mode<synchronous>, transform_indices = @transform_5, window_bounds = array<i64: 2, 16, 8>}, {pipeline_mode = #tpu.pipeline_mode<synchronous>, transform_indices = @transform_6, window_bounds = array<i64: 8, 4, 8, 128>}, {pipeline_mode = #tpu.pipeline_mode<synchronous>, transform_indices = @transform_7, window_bounds = array<i64: 1, 128>}, {transform_indices = @transform_8, window_bounds = array<i64: 1, 1, 128>}]} {
    %cst = arith.constant 0.000000e+00 : f32
    %0 = vector.broadcast %cst : f32 to vector<16x16xf32>
    %c0 = arith.constant 0 : index
    %1 = memref.load %arg3[%c0] : memref<2xf32, #tpu.memory_space<smem>>
    %2 = vector.broadcast %1 : f32 to vector<16x16xf32>
    %3 = arith.addf %0, %2 : vector<16x16xf32>
    %cst_0 = arith.constant 0.000000e+00 : f32
    %4 = vector.broadcast %cst_0 : f32 to vector<16x16xf32>
    %c1 = arith.constant 1 : index
    %5 = memref.load %arg3[%c1] : memref<2xf32, #tpu.memory_space<smem>>
    %6 = vector.broadcast %5 : f32 to vector<16x16xf32>
    %7 = arith.addf %4, %6 : vector<16x16xf32>
    %c0_1 = arith.constant 0 : index
    %c0_2 = arith.constant 0 : index
    %c0_3 = arith.constant 0 : index
    %c0_4 = arith.constant 0 : index
    %8 = vector.load %arg1[%c0_1, %c0_2, %c0_3, %c0_4] : memref<1x4x18x18xf32, #tpu.memory_space<vmem>>, vector<1x1x18x16xf32>
    %9 = vector.shape_cast %8 : vector<1x1x18x16xf32> to vector<18x16xf32>
    %10 = vector.extract_strided_slice %9 {offsets = [0, 0], sizes = [16, 16], strides = [1, 1]} : vector<18x16xf32> to vector<16x16xf32>
    %c0_5 = arith.constant 0 : index
    %11 = memref.load %arg2[%c0_5] : memref<72xf32, #tpu.memory_space<smem>>
    %12 = vector.broadcast %11 : f32 to vector<16x16xf32>
    %13 = arith.mulf %10, %12 : vector<16x16xf32>
    %14 = arith.addf %3, %13 : vector<16x16xf32>
    %c1_6 = arith.constant 1 : index
    %15 = memref.load %arg2[%c1_6] : memref<72xf32, #tpu.memory_space<smem>>
    %16 = vector.broadcast %15 : f32 to vector<16x16xf32>
    %17 = arith.mulf %10, %16 : vector<16x16xf32>
    %18 = arith.addf %7, %17 : vector<16x16xf32>
    %19 = vector.extract_strided_slice %9 {offsets = [1, 0], sizes = [16, 16], strides = [1, 1]} : vector<18x16xf32> to vector<16x16xf32>
    %c8 = arith.constant 8 : index
    %20 = memref.load %arg2[%c8] : memref<72xf32, #tpu.memory_space<smem>>
    %21 = vector.broadcast %20 : f32 to vector<16x16xf32>
    %22 = arith.mulf %19, %21 : vector<16x16xf32>
    %23 = arith.addf %14, %22 : vector<16x16xf32>
    %c9 = arith.constant 9 : index
    %24 = memref.load %arg2[%c9] : memref<72xf32, #tpu.memory_space<smem>>
    %25 = vector.broadcast %24 : f32 to vector<16x16xf32>
    %26 = arith.mulf %19, %25 : vector<16x16xf32>
    %27 = arith.addf %18, %26 : vector<16x16xf32>
    %28 = vector.extract_strided_slice %9 {offsets = [2, 0], sizes = [16, 16], strides = [1, 1]} : vector<18x16xf32> to vector<16x16xf32>
    %c16 = arith.constant 16 : index
    %29 = memref.load %arg2[%c16] : memref<72xf32, #tpu.memory_space<smem>>
    %30 = vector.broadcast %29 : f32 to vector<16x16xf32>
    %31 = arith.mulf %28, %30 : vector<16x16xf32>
    %32 = arith.addf %23, %31 : vector<16x16xf32>
    %c17 = arith.constant 17 : index
    %33 = memref.load %arg2[%c17] : memref<72xf32, #tpu.memory_space<smem>>
    %34 = vector.broadcast %33 : f32 to vector<16x16xf32>
    %35 = arith.mulf %28, %34 : vector<16x16xf32>
    %36 = arith.addf %27, %35 : vector<16x16xf32>
    %c0_7 = arith.constant 0 : index
    %c0_8 = arith.constant 0 : index
    %c0_9 = arith.constant 0 : index
    %c1_10 = arith.constant 1 : index
    %37 = vector.load %arg1[%c0_7, %c0_8, %c0_9, %c1_10] : memref<1x4x18x18xf32, #tpu.memory_space<vmem>>, vector<1x1x18x16xf32>
    %38 = vector.shape_cast %37 : vector<1x1x18x16xf32> to vector<18x16xf32>
    %39 = vector.extract_strided_slice %38 {offsets = [0, 0], sizes = [16, 16], strides = [1, 1]} : vector<18x16xf32> to vector<16x16xf32>
    %c24 = arith.constant 24 : index
    %40 = memref.load %arg2[%c24] : memref<72xf32, #tpu.memory_space<smem>>
    %41 = vector.broadcast %40 : f32 to vector<16x16xf32>
    %42 = arith.mulf %39, %41 : vector<16x16xf32>
    %43 = arith.addf %32, %42 : vector<16x16xf32>
    %c25 = arith.constant 25 : index
    %44 = memref.load %arg2[%c25] : memref<72xf32, #tpu.memory_space<smem>>
    %45 = vector.broadcast %44 : f32 to vector<16x16xf32>
    %46 = arith.mulf %39, %45 : vector<16x16xf32>
    %47 = arith.addf %36, %46 : vector<16x16xf32>
    %48 = vector.extract_strided_slice %38 {offsets = [1, 0], sizes = [16, 16], strides = [1, 1]} : vector<18x16xf32> to vector<16x16xf32>
    %c32 = arith.constant 32 : index
    %49 = memref.load %arg2[%c32] : memref<72xf32, #tpu.memory_space<smem>>
    %50 = vector.broadcast %49 : f32 to vector<16x16xf32>
    %51 = arith.mulf %48, %50 : vector<16x16xf32>
    %52 = arith.addf %43, %51 : vector<16x16xf32>
    %c33 = arith.constant 33 : index
    %53 = memref.load %arg2[%c33] : memref<72xf32, #tpu.memory_space<smem>>
    %54 = vector.broadcast %53 : f32 to vector<16x16xf32>
    %55 = arith.mulf %48, %54 : vector<16x16xf32>
    %56 = arith.addf %47, %55 : vector<16x16xf32>
    %57 = vector.extract_strided_slice %38 {offsets = [2, 0], sizes = [16, 16], strides = [1, 1]} : vector<18x16xf32> to vector<16x16xf32>
    %c40 = arith.constant 40 : index
    %58 = memref.load %arg2[%c40] : memref<72xf32, #tpu.memory_space<smem>>
    %59 = vector.broadcast %58 : f32 to vector<16x16xf32>
    %60 = arith.mulf %57, %59 : vector<16x16xf32>
    %61 = arith.addf %52, %60 : vector<16x16xf32>
    %c41 = arith.constant 41 : index
    %62 = memref.load %arg2[%c41] : memref<72xf32, #tpu.memory_space<smem>>
    %63 = vector.broadcast %62 : f32 to vector<16x16xf32>
    %64 = arith.mulf %57, %63 : vector<16x16xf32>
    %65 = arith.addf %56, %64 : vector<16x16xf32>
    %c0_11 = arith.constant 0 : index
    %c0_12 = arith.constant 0 : index
    %c0_13 = arith.constant 0 : index
    %c2 = arith.constant 2 : index
    %66 = vector.load %arg1[%c0_11, %c0_12, %c0_13, %c2] : memref<1x4x18x18xf32, #tpu.memory_space<vmem>>, vector<1x1x18x16xf32>
    %67 = vector.shape_cast %66 : vector<1x1x18x16xf32> to vector<18x16xf32>
    %68 = vector.extract_strided_slice %67 {offsets = [0, 0], sizes = [16, 16], strides = [1, 1]} : vector<18x16xf32> to vector<16x16xf32>
    %c48 = arith.constant 48 : index
    %69 = memref.load %arg2[%c48] : memref<72xf32, #tpu.memory_space<smem>>
    %70 = vector.broadcast %69 : f32 to vector<16x16xf32>
    %71 = arith.mulf %68, %70 : vector<16x16xf32>
    %72 = arith.addf %61, %71 : vector<16x16xf32>
    %c49 = arith.constant 49 : index
    %73 = memref.load %arg2[%c49] : memref<72xf32, #tpu.memory_space<smem>>
    %74 = vector.broadcast %73 : f32 to vector<16x16xf32>
    %75 = arith.mulf %68, %74 : vector<16x16xf32>
    %76 = arith.addf %65, %75 : vector<16x16xf32>
    %77 = vector.extract_strided_slice %67 {offsets = [1, 0], sizes = [16, 16], strides = [1, 1]} : vector<18x16xf32> to vector<16x16xf32>
    %c56 = arith.constant 56 : index
    %78 = memref.load %arg2[%c56] : memref<72xf32, #tpu.memory_space<smem>>
    %79 = vector.broadcast %78 : f32 to vector<16x16xf32>
    %80 = arith.mulf %77, %79 : vector<16x16xf32>
    %81 = arith.addf %72, %80 : vector<16x16xf32>
    %c57 = arith.constant 57 : index
    %82 = memref.load %arg2[%c57] : memref<72xf32, #tpu.memory_space<smem>>
    %83 = vector.broadcast %82 : f32 to vector<16x16xf32>
    %84 = arith.mulf %77, %83 : vector<16x16xf32>
    %85 = arith.addf %76, %84 : vector<16x16xf32>
    %86 = vector.extract_strided_slice %67 {offsets = [2, 0], sizes = [16, 16], strides = [1, 1]} : vector<18x16xf32> to vector<16x16xf32>
    %c64 = arith.constant 64 : index
    %87 = memref.load %arg2[%c64] : memref<72xf32, #tpu.memory_space<smem>>
    %88 = vector.broadcast %87 : f32 to vector<16x16xf32>
    %89 = arith.mulf %86, %88 : vector<16x16xf32>
    %90 = arith.addf %81, %89 : vector<16x16xf32>
    %c65 = arith.constant 65 : index
    %91 = memref.load %arg2[%c65] : memref<72xf32, #tpu.memory_space<smem>>
    %92 = vector.broadcast %91 : f32 to vector<16x16xf32>
    %93 = arith.mulf %86, %92 : vector<16x16xf32>
    %94 = arith.addf %85, %93 : vector<16x16xf32>
    %c0_14 = arith.constant 0 : index
    %c1_15 = arith.constant 1 : index
    %c0_16 = arith.constant 0 : index
    %c0_17 = arith.constant 0 : index
    %95 = vector.load %arg1[%c0_14, %c1_15, %c0_16, %c0_17] : memref<1x4x18x18xf32, #tpu.memory_space<vmem>>, vector<1x1x18x16xf32>
    %96 = vector.shape_cast %95 : vector<1x1x18x16xf32> to vector<18x16xf32>
    %97 = vector.extract_strided_slice %96 {offsets = [0, 0], sizes = [16, 16], strides = [1, 1]} : vector<18x16xf32> to vector<16x16xf32>
    %c2_18 = arith.constant 2 : index
    %98 = memref.load %arg2[%c2_18] : memref<72xf32, #tpu.memory_space<smem>>
    %99 = vector.broadcast %98 : f32 to vector<16x16xf32>
    %100 = arith.mulf %97, %99 : vector<16x16xf32>
    %101 = arith.addf %90, %100 : vector<16x16xf32>
    %c3 = arith.constant 3 : index
    %102 = memref.load %arg2[%c3] : memref<72xf32, #tpu.memory_space<smem>>
    %103 = vector.broadcast %102 : f32 to vector<16x16xf32>
    %104 = arith.mulf %97, %103 : vector<16x16xf32>
    %105 = arith.addf %94, %104 : vector<16x16xf32>
    %106 = vector.extract_strided_slice %96 {offsets = [1, 0], sizes = [16, 16], strides = [1, 1]} : vector<18x16xf32> to vector<16x16xf32>
    %c10 = arith.constant 10 : index
    %107 = memref.load %arg2[%c10] : memref<72xf32, #tpu.memory_space<smem>>
    %108 = vector.broadcast %107 : f32 to vector<16x16xf32>
    %109 = arith.mulf %106, %108 : vector<16x16xf32>
    %110 = arith.addf %101, %109 : vector<16x16xf32>
    %c11 = arith.constant 11 : index
    %111 = memref.load %arg2[%c11] : memref<72xf32, #tpu.memory_space<smem>>
    %112 = vector.broadcast %111 : f32 to vector<16x16xf32>
    %113 = arith.mulf %106, %112 : vector<16x16xf32>
    %114 = arith.addf %105, %113 : vector<16x16xf32>
    %115 = vector.extract_strided_slice %96 {offsets = [2, 0], sizes = [16, 16], strides = [1, 1]} : vector<18x16xf32> to vector<16x16xf32>
    %c18 = arith.constant 18 : index
    %116 = memref.load %arg2[%c18] : memref<72xf32, #tpu.memory_space<smem>>
    %117 = vector.broadcast %116 : f32 to vector<16x16xf32>
    %118 = arith.mulf %115, %117 : vector<16x16xf32>
    %119 = arith.addf %110, %118 : vector<16x16xf32>
    %c19 = arith.constant 19 : index
    %120 = memref.load %arg2[%c19] : memref<72xf32, #tpu.memory_space<smem>>
    %121 = vector.broadcast %120 : f32 to vector<16x16xf32>
    %122 = arith.mulf %115, %121 : vector<16x16xf32>
    %123 = arith.addf %114, %122 : vector<16x16xf32>
    %c0_19 = arith.constant 0 : index
    %c1_20 = arith.constant 1 : index
    %c0_21 = arith.constant 0 : index
    %c1_22 = arith.constant 1 : index
    %124 = vector.load %arg1[%c0_19, %c1_20, %c0_21, %c1_22] : memref<1x4x18x18xf32, #tpu.memory_space<vmem>>, vector<1x1x18x16xf32>
    %125 = vector.shape_cast %124 : vector<1x1x18x16xf32> to vector<18x16xf32>
    %126 = vector.extract_strided_slice %125 {offsets = [0, 0], sizes = [16, 16], strides = [1, 1]} : vector<18x16xf32> to vector<16x16xf32>
    %c26 = arith.constant 26 : index
    %127 = memref.load %arg2[%c26] : memref<72xf32, #tpu.memory_space<smem>>
    %128 = vector.broadcast %127 : f32 to vector<16x16xf32>
    %129 = arith.mulf %126, %128 : vector<16x16xf32>
    %130 = arith.addf %119, %129 : vector<16x16xf32>
    %c27 = arith.constant 27 : index
    %131 = memref.load %arg2[%c27] : memref<72xf32, #tpu.memory_space<smem>>
    %132 = vector.broadcast %131 : f32 to vector<16x16xf32>
    %133 = arith.mulf %126, %132 : vector<16x16xf32>
    %134 = arith.addf %123, %133 : vector<16x16xf32>
    %135 = vector.extract_strided_slice %125 {offsets = [1, 0], sizes = [16, 16], strides = [1, 1]} : vector<18x16xf32> to vector<16x16xf32>
    %c34 = arith.constant 34 : index
    %136 = memref.load %arg2[%c34] : memref<72xf32, #tpu.memory_space<smem>>
    %137 = vector.broadcast %136 : f32 to vector<16x16xf32>
    %138 = arith.mulf %135, %137 : vector<16x16xf32>
    %139 = arith.addf %130, %138 : vector<16x16xf32>
    %c35 = arith.constant 35 : index
    %140 = memref.load %arg2[%c35] : memref<72xf32, #tpu.memory_space<smem>>
    %141 = vector.broadcast %140 : f32 to vector<16x16xf32>
    %142 = arith.mulf %135, %141 : vector<16x16xf32>
    %143 = arith.addf %134, %142 : vector<16x16xf32>
    %144 = vector.extract_strided_slice %125 {offsets = [2, 0], sizes = [16, 16], strides = [1, 1]} : vector<18x16xf32> to vector<16x16xf32>
    %c42 = arith.constant 42 : index
    %145 = memref.load %arg2[%c42] : memref<72xf32, #tpu.memory_space<smem>>
    %146 = vector.broadcast %145 : f32 to vector<16x16xf32>
    %147 = arith.mulf %144, %146 : vector<16x16xf32>
    %148 = arith.addf %139, %147 : vector<16x16xf32>
    %c43 = arith.constant 43 : index
    %149 = memref.load %arg2[%c43] : memref<72xf32, #tpu.memory_space<smem>>
    %150 = vector.broadcast %149 : f32 to vector<16x16xf32>
    %151 = arith.mulf %144, %150 : vector<16x16xf32>
    %152 = arith.addf %143, %151 : vector<16x16xf32>
    %c0_23 = arith.constant 0 : index
    %c1_24 = arith.constant 1 : index
    %c0_25 = arith.constant 0 : index
    %c2_26 = arith.constant 2 : index
    %153 = vector.load %arg1[%c0_23, %c1_24, %c0_25, %c2_26] : memref<1x4x18x18xf32, #tpu.memory_space<vmem>>, vector<1x1x18x16xf32>
    %154 = vector.shape_cast %153 : vector<1x1x18x16xf32> to vector<18x16xf32>
    %155 = vector.extract_strided_slice %154 {offsets = [0, 0], sizes = [16, 16], strides = [1, 1]} : vector<18x16xf32> to vector<16x16xf32>
    %c50 = arith.constant 50 : index
    %156 = memref.load %arg2[%c50] : memref<72xf32, #tpu.memory_space<smem>>
    %157 = vector.broadcast %156 : f32 to vector<16x16xf32>
    %158 = arith.mulf %155, %157 : vector<16x16xf32>
    %159 = arith.addf %148, %158 : vector<16x16xf32>
    %c51 = arith.constant 51 : index
    %160 = memref.load %arg2[%c51] : memref<72xf32, #tpu.memory_space<smem>>
    %161 = vector.broadcast %160 : f32 to vector<16x16xf32>
    %162 = arith.mulf %155, %161 : vector<16x16xf32>
    %163 = arith.addf %152, %162 : vector<16x16xf32>
    %164 = vector.extract_strided_slice %154 {offsets = [1, 0], sizes = [16, 16], strides = [1, 1]} : vector<18x16xf32> to vector<16x16xf32>
    %c58 = arith.constant 58 : index
    %165 = memref.load %arg2[%c58] : memref<72xf32, #tpu.memory_space<smem>>
    %166 = vector.broadcast %165 : f32 to vector<16x16xf32>
    %167 = arith.mulf %164, %166 : vector<16x16xf32>
    %168 = arith.addf %159, %167 : vector<16x16xf32>
    %c59 = arith.constant 59 : index
    %169 = memref.load %arg2[%c59] : memref<72xf32, #tpu.memory_space<smem>>
    %170 = vector.broadcast %169 : f32 to vector<16x16xf32>
    %171 = arith.mulf %164, %170 : vector<16x16xf32>
    %172 = arith.addf %163, %171 : vector<16x16xf32>
    %173 = vector.extract_strided_slice %154 {offsets = [2, 0], sizes = [16, 16], strides = [1, 1]} : vector<18x16xf32> to vector<16x16xf32>
    %c66 = arith.constant 66 : index
    %174 = memref.load %arg2[%c66] : memref<72xf32, #tpu.memory_space<smem>>
    %175 = vector.broadcast %174 : f32 to vector<16x16xf32>
    %176 = arith.mulf %173, %175 : vector<16x16xf32>
    %177 = arith.addf %168, %176 : vector<16x16xf32>
    %c67 = arith.constant 67 : index
    %178 = memref.load %arg2[%c67] : memref<72xf32, #tpu.memory_space<smem>>
    %179 = vector.broadcast %178 : f32 to vector<16x16xf32>
    %180 = arith.mulf %173, %179 : vector<16x16xf32>
    %181 = arith.addf %172, %180 : vector<16x16xf32>
    %c0_27 = arith.constant 0 : index
    %c2_28 = arith.constant 2 : index
    %c0_29 = arith.constant 0 : index
    %c0_30 = arith.constant 0 : index
    %182 = vector.load %arg1[%c0_27, %c2_28, %c0_29, %c0_30] : memref<1x4x18x18xf32, #tpu.memory_space<vmem>>, vector<1x1x18x16xf32>
    %183 = vector.shape_cast %182 : vector<1x1x18x16xf32> to vector<18x16xf32>
    %184 = vector.extract_strided_slice %183 {offsets = [0, 0], sizes = [16, 16], strides = [1, 1]} : vector<18x16xf32> to vector<16x16xf32>
    %c4 = arith.constant 4 : index
    %185 = memref.load %arg2[%c4] : memref<72xf32, #tpu.memory_space<smem>>
    %186 = vector.broadcast %185 : f32 to vector<16x16xf32>
    %187 = arith.mulf %184, %186 : vector<16x16xf32>
    %188 = arith.addf %177, %187 : vector<16x16xf32>
    %c5 = arith.constant 5 : index
    %189 = memref.load %arg2[%c5] : memref<72xf32, #tpu.memory_space<smem>>
    %190 = vector.broadcast %189 : f32 to vector<16x16xf32>
    %191 = arith.mulf %184, %190 : vector<16x16xf32>
    %192 = arith.addf %181, %191 : vector<16x16xf32>
    %193 = vector.extract_strided_slice %183 {offsets = [1, 0], sizes = [16, 16], strides = [1, 1]} : vector<18x16xf32> to vector<16x16xf32>
    %c12 = arith.constant 12 : index
    %194 = memref.load %arg2[%c12] : memref<72xf32, #tpu.memory_space<smem>>
    %195 = vector.broadcast %194 : f32 to vector<16x16xf32>
    %196 = arith.mulf %193, %195 : vector<16x16xf32>
    %197 = arith.addf %188, %196 : vector<16x16xf32>
    %c13 = arith.constant 13 : index
    %198 = memref.load %arg2[%c13] : memref<72xf32, #tpu.memory_space<smem>>
    %199 = vector.broadcast %198 : f32 to vector<16x16xf32>
    %200 = arith.mulf %193, %199 : vector<16x16xf32>
    %201 = arith.addf %192, %200 : vector<16x16xf32>
    %202 = vector.extract_strided_slice %183 {offsets = [2, 0], sizes = [16, 16], strides = [1, 1]} : vector<18x16xf32> to vector<16x16xf32>
    %c20 = arith.constant 20 : index
    %203 = memref.load %arg2[%c20] : memref<72xf32, #tpu.memory_space<smem>>
    %204 = vector.broadcast %203 : f32 to vector<16x16xf32>
    %205 = arith.mulf %202, %204 : vector<16x16xf32>
    %206 = arith.addf %197, %205 : vector<16x16xf32>
    %c21 = arith.constant 21 : index
    %207 = memref.load %arg2[%c21] : memref<72xf32, #tpu.memory_space<smem>>
    %208 = vector.broadcast %207 : f32 to vector<16x16xf32>
    %209 = arith.mulf %202, %208 : vector<16x16xf32>
    %210 = arith.addf %201, %209 : vector<16x16xf32>
    %c0_31 = arith.constant 0 : index
    %c2_32 = arith.constant 2 : index
    %c0_33 = arith.constant 0 : index
    %c1_34 = arith.constant 1 : index
    %211 = vector.load %arg1[%c0_31, %c2_32, %c0_33, %c1_34] : memref<1x4x18x18xf32, #tpu.memory_space<vmem>>, vector<1x1x18x16xf32>
    %212 = vector.shape_cast %211 : vector<1x1x18x16xf32> to vector<18x16xf32>
    %213 = vector.extract_strided_slice %212 {offsets = [0, 0], sizes = [16, 16], strides = [1, 1]} : vector<18x16xf32> to vector<16x16xf32>
    %c28 = arith.constant 28 : index
    %214 = memref.load %arg2[%c28] : memref<72xf32, #tpu.memory_space<smem>>
    %215 = vector.broadcast %214 : f32 to vector<16x16xf32>
    %216 = arith.mulf %213, %215 : vector<16x16xf32>
    %217 = arith.addf %206, %216 : vector<16x16xf32>
    %c29 = arith.constant 29 : index
    %218 = memref.load %arg2[%c29] : memref<72xf32, #tpu.memory_space<smem>>
    %219 = vector.broadcast %218 : f32 to vector<16x16xf32>
    %220 = arith.mulf %213, %219 : vector<16x16xf32>
    %221 = arith.addf %210, %220 : vector<16x16xf32>
    %222 = vector.extract_strided_slice %212 {offsets = [1, 0], sizes = [16, 16], strides = [1, 1]} : vector<18x16xf32> to vector<16x16xf32>
    %c36 = arith.constant 36 : index
    %223 = memref.load %arg2[%c36] : memref<72xf32, #tpu.memory_space<smem>>
    %224 = vector.broadcast %223 : f32 to vector<16x16xf32>
    %225 = arith.mulf %222, %224 : vector<16x16xf32>
    %226 = arith.addf %217, %225 : vector<16x16xf32>
    %c37 = arith.constant 37 : index
    %227 = memref.load %arg2[%c37] : memref<72xf32, #tpu.memory_space<smem>>
    %228 = vector.broadcast %227 : f32 to vector<16x16xf32>
    %229 = arith.mulf %222, %228 : vector<16x16xf32>
    %230 = arith.addf %221, %229 : vector<16x16xf32>
    %231 = vector.extract_strided_slice %212 {offsets = [2, 0], sizes = [16, 16], strides = [1, 1]} : vector<18x16xf32> to vector<16x16xf32>
    %c44 = arith.constant 44 : index
    %232 = memref.load %arg2[%c44] : memref<72xf32, #tpu.memory_space<smem>>
    %233 = vector.broadcast %232 : f32 to vector<16x16xf32>
    %234 = arith.mulf %231, %233 : vector<16x16xf32>
    %235 = arith.addf %226, %234 : vector<16x16xf32>
    %c45 = arith.constant 45 : index
    %236 = memref.load %arg2[%c45] : memref<72xf32, #tpu.memory_space<smem>>
    %237 = vector.broadcast %236 : f32 to vector<16x16xf32>
    %238 = arith.mulf %231, %237 : vector<16x16xf32>
    %239 = arith.addf %230, %238 : vector<16x16xf32>
    %c0_35 = arith.constant 0 : index
    %c2_36 = arith.constant 2 : index
    %c0_37 = arith.constant 0 : index
    %c2_38 = arith.constant 2 : index
    %240 = vector.load %arg1[%c0_35, %c2_36, %c0_37, %c2_38] : memref<1x4x18x18xf32, #tpu.memory_space<vmem>>, vector<1x1x18x16xf32>
    %241 = vector.shape_cast %240 : vector<1x1x18x16xf32> to vector<18x16xf32>
    %242 = vector.extract_strided_slice %241 {offsets = [0, 0], sizes = [16, 16], strides = [1, 1]} : vector<18x16xf32> to vector<16x16xf32>
    %c52 = arith.constant 52 : index
    %243 = memref.load %arg2[%c52] : memref<72xf32, #tpu.memory_space<smem>>
    %244 = vector.broadcast %243 : f32 to vector<16x16xf32>
    %245 = arith.mulf %242, %244 : vector<16x16xf32>
    %246 = arith.addf %235, %245 : vector<16x16xf32>
    %c53 = arith.constant 53 : index
    %247 = memref.load %arg2[%c53] : memref<72xf32, #tpu.memory_space<smem>>
    %248 = vector.broadcast %247 : f32 to vector<16x16xf32>
    %249 = arith.mulf %242, %248 : vector<16x16xf32>
    %250 = arith.addf %239, %249 : vector<16x16xf32>
    %251 = vector.extract_strided_slice %241 {offsets = [1, 0], sizes = [16, 16], strides = [1, 1]} : vector<18x16xf32> to vector<16x16xf32>
    %c60 = arith.constant 60 : index
    %252 = memref.load %arg2[%c60] : memref<72xf32, #tpu.memory_space<smem>>
    %253 = vector.broadcast %252 : f32 to vector<16x16xf32>
    %254 = arith.mulf %251, %253 : vector<16x16xf32>
    %255 = arith.addf %246, %254 : vector<16x16xf32>
    %c61 = arith.constant 61 : index
    %256 = memref.load %arg2[%c61] : memref<72xf32, #tpu.memory_space<smem>>
    %257 = vector.broadcast %256 : f32 to vector<16x16xf32>
    %258 = arith.mulf %251, %257 : vector<16x16xf32>
    %259 = arith.addf %250, %258 : vector<16x16xf32>
    %260 = vector.extract_strided_slice %241 {offsets = [2, 0], sizes = [16, 16], strides = [1, 1]} : vector<18x16xf32> to vector<16x16xf32>
    %c68 = arith.constant 68 : index
    %261 = memref.load %arg2[%c68] : memref<72xf32, #tpu.memory_space<smem>>
    %262 = vector.broadcast %261 : f32 to vector<16x16xf32>
    %263 = arith.mulf %260, %262 : vector<16x16xf32>
    %264 = arith.addf %255, %263 : vector<16x16xf32>
    %c69 = arith.constant 69 : index
    %265 = memref.load %arg2[%c69] : memref<72xf32, #tpu.memory_space<smem>>
    %266 = vector.broadcast %265 : f32 to vector<16x16xf32>
    %267 = arith.mulf %260, %266 : vector<16x16xf32>
    %268 = arith.addf %259, %267 : vector<16x16xf32>
    %c0_39 = arith.constant 0 : index
    %c3_40 = arith.constant 3 : index
    %c0_41 = arith.constant 0 : index
    %c0_42 = arith.constant 0 : index
    %269 = vector.load %arg1[%c0_39, %c3_40, %c0_41, %c0_42] : memref<1x4x18x18xf32, #tpu.memory_space<vmem>>, vector<1x1x18x16xf32>
    %270 = vector.shape_cast %269 : vector<1x1x18x16xf32> to vector<18x16xf32>
    %271 = vector.extract_strided_slice %270 {offsets = [0, 0], sizes = [16, 16], strides = [1, 1]} : vector<18x16xf32> to vector<16x16xf32>
    %c6 = arith.constant 6 : index
    %272 = memref.load %arg2[%c6] : memref<72xf32, #tpu.memory_space<smem>>
    %273 = vector.broadcast %272 : f32 to vector<16x16xf32>
    %274 = arith.mulf %271, %273 : vector<16x16xf32>
    %275 = arith.addf %264, %274 : vector<16x16xf32>
    %c7 = arith.constant 7 : index
    %276 = memref.load %arg2[%c7] : memref<72xf32, #tpu.memory_space<smem>>
    %277 = vector.broadcast %276 : f32 to vector<16x16xf32>
    %278 = arith.mulf %271, %277 : vector<16x16xf32>
    %279 = arith.addf %268, %278 : vector<16x16xf32>
    %280 = vector.extract_strided_slice %270 {offsets = [1, 0], sizes = [16, 16], strides = [1, 1]} : vector<18x16xf32> to vector<16x16xf32>
    %c14 = arith.constant 14 : index
    %281 = memref.load %arg2[%c14] : memref<72xf32, #tpu.memory_space<smem>>
    %282 = vector.broadcast %281 : f32 to vector<16x16xf32>
    %283 = arith.mulf %280, %282 : vector<16x16xf32>
    %284 = arith.addf %275, %283 : vector<16x16xf32>
    %c15 = arith.constant 15 : index
    %285 = memref.load %arg2[%c15] : memref<72xf32, #tpu.memory_space<smem>>
    %286 = vector.broadcast %285 : f32 to vector<16x16xf32>
    %287 = arith.mulf %280, %286 : vector<16x16xf32>
    %288 = arith.addf %279, %287 : vector<16x16xf32>
    %289 = vector.extract_strided_slice %270 {offsets = [2, 0], sizes = [16, 16], strides = [1, 1]} : vector<18x16xf32> to vector<16x16xf32>
    %c22 = arith.constant 22 : index
    %290 = memref.load %arg2[%c22] : memref<72xf32, #tpu.memory_space<smem>>
    %291 = vector.broadcast %290 : f32 to vector<16x16xf32>
    %292 = arith.mulf %289, %291 : vector<16x16xf32>
    %293 = arith.addf %284, %292 : vector<16x16xf32>
    %c23 = arith.constant 23 : index
    %294 = memref.load %arg2[%c23] : memref<72xf32, #tpu.memory_space<smem>>
    %295 = vector.broadcast %294 : f32 to vector<16x16xf32>
    %296 = arith.mulf %289, %295 : vector<16x16xf32>
    %297 = arith.addf %288, %296 : vector<16x16xf32>
    %c0_43 = arith.constant 0 : index
    %c3_44 = arith.constant 3 : index
    %c0_45 = arith.constant 0 : index
    %c1_46 = arith.constant 1 : index
    %298 = vector.load %arg1[%c0_43, %c3_44, %c0_45, %c1_46] : memref<1x4x18x18xf32, #tpu.memory_space<vmem>>, vector<1x1x18x16xf32>
    %299 = vector.shape_cast %298 : vector<1x1x18x16xf32> to vector<18x16xf32>
    %300 = vector.extract_strided_slice %299 {offsets = [0, 0], sizes = [16, 16], strides = [1, 1]} : vector<18x16xf32> to vector<16x16xf32>
    %c30 = arith.constant 30 : index
    %301 = memref.load %arg2[%c30] : memref<72xf32, #tpu.memory_space<smem>>
    %302 = vector.broadcast %301 : f32 to vector<16x16xf32>
    %303 = arith.mulf %300, %302 : vector<16x16xf32>
    %304 = arith.addf %293, %303 : vector<16x16xf32>
    %c31 = arith.constant 31 : index
    %305 = memref.load %arg2[%c31] : memref<72xf32, #tpu.memory_space<smem>>
    %306 = vector.broadcast %305 : f32 to vector<16x16xf32>
    %307 = arith.mulf %300, %306 : vector<16x16xf32>
    %308 = arith.addf %297, %307 : vector<16x16xf32>
    %309 = vector.extract_strided_slice %299 {offsets = [1, 0], sizes = [16, 16], strides = [1, 1]} : vector<18x16xf32> to vector<16x16xf32>
    %c38 = arith.constant 38 : index
    %310 = memref.load %arg2[%c38] : memref<72xf32, #tpu.memory_space<smem>>
    %311 = vector.broadcast %310 : f32 to vector<16x16xf32>
    %312 = arith.mulf %309, %311 : vector<16x16xf32>
    %313 = arith.addf %304, %312 : vector<16x16xf32>
    %c39 = arith.constant 39 : index
    %314 = memref.load %arg2[%c39] : memref<72xf32, #tpu.memory_space<smem>>
    %315 = vector.broadcast %314 : f32 to vector<16x16xf32>
    %316 = arith.mulf %309, %315 : vector<16x16xf32>
    %317 = arith.addf %308, %316 : vector<16x16xf32>
    %318 = vector.extract_strided_slice %299 {offsets = [2, 0], sizes = [16, 16], strides = [1, 1]} : vector<18x16xf32> to vector<16x16xf32>
    %c46 = arith.constant 46 : index
    %319 = memref.load %arg2[%c46] : memref<72xf32, #tpu.memory_space<smem>>
    %320 = vector.broadcast %319 : f32 to vector<16x16xf32>
    %321 = arith.mulf %318, %320 : vector<16x16xf32>
    %322 = arith.addf %313, %321 : vector<16x16xf32>
    %c47 = arith.constant 47 : index
    %323 = memref.load %arg2[%c47] : memref<72xf32, #tpu.memory_space<smem>>
    %324 = vector.broadcast %323 : f32 to vector<16x16xf32>
    %325 = arith.mulf %318, %324 : vector<16x16xf32>
    %326 = arith.addf %317, %325 : vector<16x16xf32>
    %c0_47 = arith.constant 0 : index
    %c3_48 = arith.constant 3 : index
    %c0_49 = arith.constant 0 : index
    %c2_50 = arith.constant 2 : index
    %327 = vector.load %arg1[%c0_47, %c3_48, %c0_49, %c2_50] : memref<1x4x18x18xf32, #tpu.memory_space<vmem>>, vector<1x1x18x16xf32>
    %328 = vector.shape_cast %327 : vector<1x1x18x16xf32> to vector<18x16xf32>
    %329 = vector.extract_strided_slice %328 {offsets = [0, 0], sizes = [16, 16], strides = [1, 1]} : vector<18x16xf32> to vector<16x16xf32>
    %c54 = arith.constant 54 : index
    %330 = memref.load %arg2[%c54] : memref<72xf32, #tpu.memory_space<smem>>
    %331 = vector.broadcast %330 : f32 to vector<16x16xf32>
    %332 = arith.mulf %329, %331 : vector<16x16xf32>
    %333 = arith.addf %322, %332 : vector<16x16xf32>
    %c55 = arith.constant 55 : index
    %334 = memref.load %arg2[%c55] : memref<72xf32, #tpu.memory_space<smem>>
    %335 = vector.broadcast %334 : f32 to vector<16x16xf32>
    %336 = arith.mulf %329, %335 : vector<16x16xf32>
    %337 = arith.addf %326, %336 : vector<16x16xf32>
    %338 = vector.extract_strided_slice %328 {offsets = [1, 0], sizes = [16, 16], strides = [1, 1]} : vector<18x16xf32> to vector<16x16xf32>
    %c62 = arith.constant 62 : index
    %339 = memref.load %arg2[%c62] : memref<72xf32, #tpu.memory_space<smem>>
    %340 = vector.broadcast %339 : f32 to vector<16x16xf32>
    %341 = arith.mulf %338, %340 : vector<16x16xf32>
    %342 = arith.addf %333, %341 : vector<16x16xf32>
    %c63 = arith.constant 63 : index
    %343 = memref.load %arg2[%c63] : memref<72xf32, #tpu.memory_space<smem>>
    %344 = vector.broadcast %343 : f32 to vector<16x16xf32>
    %345 = arith.mulf %338, %344 : vector<16x16xf32>
    %346 = arith.addf %337, %345 : vector<16x16xf32>
    %347 = vector.extract_strided_slice %328 {offsets = [2, 0], sizes = [16, 16], strides = [1, 1]} : vector<18x16xf32> to vector<16x16xf32>
    %c70 = arith.constant 70 : index
    %348 = memref.load %arg2[%c70] : memref<72xf32, #tpu.memory_space<smem>>
    %349 = vector.broadcast %348 : f32 to vector<16x16xf32>
    %350 = arith.mulf %347, %349 : vector<16x16xf32>
    %351 = arith.addf %342, %350 : vector<16x16xf32>
    %c71 = arith.constant 71 : index
    %352 = memref.load %arg2[%c71] : memref<72xf32, #tpu.memory_space<smem>>
    %353 = vector.broadcast %352 : f32 to vector<16x16xf32>
    %354 = arith.mulf %347, %353 : vector<16x16xf32>
    %355 = arith.addf %346, %354 : vector<16x16xf32>
    %cst_51 = arith.constant 0.000000e+00 : f32
    %356 = vector.broadcast %cst_51 : f32 to vector<16x16xf32>
    %357 = arith.maximumf %351, %356 : vector<16x16xf32>
    %c0_52 = arith.constant 0 : index
    %c0_53 = arith.constant 0 : index
    %358 = vector.load %arg10[%c0_52, %c0_53] : memref<32x16xf32, #tpu.memory_space<vmem>>, vector<16x16xf32>
    tpu.vector_store %arg10[%c0_52, %c0_53], %357 {strides = array<i32>} : memref<32x16xf32, #tpu.memory_space<vmem>>, vector<16x16xf32>,
    %cst_54 = arith.constant 0.000000e+00 : f32
    %359 = vector.broadcast %cst_54 : f32 to vector<16x16xf32>
    %360 = arith.maximumf %355, %359 : vector<16x16xf32>
    %c16_55 = arith.constant 16 : index
    %c0_56 = arith.constant 0 : index
    %361 = vector.load %arg10[%c16_55, %c0_56] : memref<32x16xf32, #tpu.memory_space<vmem>>, vector<16x16xf32>
    tpu.vector_store %arg10[%c16_55, %c0_56], %360 {strides = array<i32>} : memref<32x16xf32, #tpu.memory_space<vmem>>, vector<16x16xf32>,
    %c0_57 = arith.constant 0 : index
    %c0_58 = arith.constant 0 : index
    %362 = tpu.strided_load %arg10[%c0_57, %c0_58] {strides = array<i32: 2, 1>} : memref<32x16xf32, #tpu.memory_space<vmem>>, vector<16x16xf32>
    %c1_59 = arith.constant 1 : index
    %c0_60 = arith.constant 0 : index
    %363 = tpu.strided_load %arg10[%c1_59, %c0_60] {strides = array<i32: 2, 1>} : memref<32x16xf32, #tpu.memory_space<vmem>>, vector<16x16xf32>
    %364 = arith.maximumf %362, %363 : vector<16x16xf32>
    %c0_61 = arith.constant 0 : index
    %c0_62 = arith.constant 0 : index
    %c0_63 = arith.constant 0 : index
    %365 = vector.load %arg6[%c0_61, %c0_62, %c0_63] : memref<2x16x8xf32, #tpu.memory_space<vmem>>, vector<1x16x8xf32>
    %366 = vector.shape_cast %365 : vector<1x16x8xf32> to vector<16x8xf32>
    %cst_64 = arith.constant dense<0.000000e+00> : vector<16x8xf32>
    %367 = tpu.matmul %364, %366, %cst_64 {dimension_numbers = #tpu.dot_dimension_numbers<[1], [0], [0], [1], [0, 0, 1, 1], [], []>} : vector<16x16xf32>, vector<16x8xf32>, vector<16x8xf32> -> vector<16x8xf32>
    %c1_65 = arith.constant 1 : index
    %c0_66 = arith.constant 0 : index
    %c0_67 = arith.constant 0 : index
    %368 = vector.load %arg6[%c1_65, %c0_66, %c0_67] : memref<2x16x8xf32, #tpu.memory_space<vmem>>, vector<1x16x8xf32>
    %369 = vector.shape_cast %368 : vector<1x16x8xf32> to vector<16x8xf32>
    %cst_68 = arith.constant dense<0.000000e+00> : vector<16x8xf32>
    %370 = tpu.matmul %364, %369, %cst_68 {dimension_numbers = #tpu.dot_dimension_numbers<[1], [0], [0], [1], [0, 0, 1, 1], [], []>} : vector<16x16xf32>, vector<16x8xf32>, vector<16x8xf32> -> vector<16x8xf32>
    %371 = arith.maximumf %367, %370 : vector<16x8xf32>
    %cst_69 = arith.constant 0.000000e+00 : f32
    %372 = vector.broadcast %cst_69 : f32 to vector<2x12x12xf32>
    %c0_70 = arith.constant 0 : index
    %c0_71 = arith.constant 0 : index
    %c0_72 = arith.constant 0 : index
    %373 = vector.load %arg11[%c0_70, %c0_71, %c0_72] : memref<2x12x12xf32, #tpu.memory_space<vmem>>, vector<2x12x12xf32>
    tpu.vector_store %arg11[%c0_70, %c0_71, %c0_72], %372 {strides = array<i32>} : memref<2x12x12xf32, #tpu.memory_space<vmem>>, vector<2x12x12xf32>,
    %374 = vector.extract_strided_slice %371 {offsets = [0, 0], sizes = [8, 8], strides = [1, 1]} : vector<16x8xf32> to vector<8x8xf32>
    %c0_73 = arith.constant 0 : index
    %c2_74 = arith.constant 2 : index
    %c2_75 = arith.constant 2 : index
    %375 = vector.load %arg11[%c0_73, %c2_74, %c2_75] : memref<2x12x12xf32, #tpu.memory_space<vmem>>, vector<1x8x8xf32>
    %376 = vector.shape_cast %375 : vector<1x8x8xf32> to vector<8x8xf32>
    %377 = vector.shape_cast %374 : vector<8x8xf32> to vector<1x8x8xf32>
    tpu.vector_store %arg11[%c0_73, %c2_74, %c2_75], %377 {strides = array<i32>} : memref<2x12x12xf32, #tpu.memory_space<vmem>>, vector<1x8x8xf32>,
    %378 = vector.extract_strided_slice %371 {offsets = [8, 0], sizes = [8, 8], strides = [1, 1]} : vector<16x8xf32> to vector<8x8xf32>
    %c1_76 = arith.constant 1 : index
    %c2_77 = arith.constant 2 : index
    %c2_78 = arith.constant 2 : index
    %379 = vector.load %arg11[%c1_76, %c2_77, %c2_78] : memref<2x12x12xf32, #tpu.memory_space<vmem>>, vector<1x8x8xf32>
    %380 = vector.shape_cast %379 : vector<1x8x8xf32> to vector<8x8xf32>
    %381 = vector.shape_cast %378 : vector<8x8xf32> to vector<1x8x8xf32>
    tpu.vector_store %arg11[%c1_76, %c2_77, %c2_78], %381 {strides = array<i32>} : memref<2x12x12xf32, #tpu.memory_space<vmem>>, vector<1x8x8xf32>,
    %cst_79 = arith.constant 0.000000e+00 : f32
    %382 = vector.broadcast %cst_79 : f32 to vector<8x8xf32>
    %c0_80 = arith.constant 0 : index
    %383 = memref.load %arg5[%c0_80] : memref<4xf32, #tpu.memory_space<smem>>
    %384 = vector.broadcast %383 : f32 to vector<8x8xf32>
    %385 = arith.addf %382, %384 : vector<8x8xf32>
    %cst_81 = arith.constant 0.000000e+00 : f32
    %386 = vector.broadcast %cst_81 : f32 to vector<8x8xf32>
    %c1_82 = arith.constant 1 : index
    %387 = memref.load %arg5[%c1_82] : memref<4xf32, #tpu.memory_space<smem>>
    %388 = vector.broadcast %387 : f32 to vector<8x8xf32>
    %389 = arith.addf %386, %388 : vector<8x8xf32>
    %cst_83 = arith.constant 0.000000e+00 : f32
    %390 = vector.broadcast %cst_83 : f32 to vector<8x8xf32>
    %c2_84 = arith.constant 2 : index
    %391 = memref.load %arg5[%c2_84] : memref<4xf32, #tpu.memory_space<smem>>
    %392 = vector.broadcast %391 : f32 to vector<8x8xf32>
    %393 = arith.addf %390, %392 : vector<8x8xf32>
    %cst_85 = arith.constant 0.000000e+00 : f32
    %394 = vector.broadcast %cst_85 : f32 to vector<8x8xf32>
    %c3_86 = arith.constant 3 : index
    %395 = memref.load %arg5[%c3_86] : memref<4xf32, #tpu.memory_space<smem>>
    %396 = vector.broadcast %395 : f32 to vector<8x8xf32>
    %397 = arith.addf %394, %396 : vector<8x8xf32>
    %c0_87 = arith.constant 0 : index
    %c0_88 = arith.constant 0 : index
    %c0_89 = arith.constant 0 : index
    %398 = vector.load %arg11[%c0_87, %c0_88, %c0_89] : memref<2x12x12xf32, #tpu.memory_space<vmem>>, vector<1x12x8xf32>
    %399 = vector.shape_cast %398 : vector<1x12x8xf32> to vector<12x8xf32>
    %400 = vector.extract_strided_slice %399 {offsets = [0, 0], sizes = [8, 8], strides = [1, 1]} : vector<12x8xf32> to vector<8x8xf32>
    %c0_90 = arith.constant 0 : index
    %401 = memref.load %arg4[%c0_90] : memref<200xf32, #tpu.memory_space<smem>>
    %402 = vector.broadcast %401 : f32 to vector<8x8xf32>
    %403 = arith.mulf %400, %402 : vector<8x8xf32>
    %404 = arith.addf %385, %403 : vector<8x8xf32>
    %c1_91 = arith.constant 1 : index
    %405 = memref.load %arg4[%c1_91] : memref<200xf32, #tpu.memory_space<smem>>
    %406 = vector.broadcast %405 : f32 to vector<8x8xf32>
    %407 = arith.mulf %400, %406 : vector<8x8xf32>
    %408 = arith.addf %389, %407 : vector<8x8xf32>
    %c2_92 = arith.constant 2 : index
    %409 = memref.load %arg4[%c2_92] : memref<200xf32, #tpu.memory_space<smem>>
    %410 = vector.broadcast %409 : f32 to vector<8x8xf32>
    %411 = arith.mulf %400, %410 : vector<8x8xf32>
    %412 = arith.addf %393, %411 : vector<8x8xf32>
    %c3_93 = arith.constant 3 : index
    %413 = memref.load %arg4[%c3_93] : memref<200xf32, #tpu.memory_space<smem>>
    %414 = vector.broadcast %413 : f32 to vector<8x8xf32>
    %415 = arith.mulf %400, %414 : vector<8x8xf32>
    %416 = arith.addf %397, %415 : vector<8x8xf32>
    %417 = vector.extract_strided_slice %399 {offsets = [1, 0], sizes = [8, 8], strides = [1, 1]} : vector<12x8xf32> to vector<8x8xf32>
    %c8_94 = arith.constant 8 : index
    %418 = memref.load %arg4[%c8_94] : memref<200xf32, #tpu.memory_space<smem>>
    %419 = vector.broadcast %418 : f32 to vector<8x8xf32>
    %420 = arith.mulf %417, %419 : vector<8x8xf32>
    %421 = arith.addf %404, %420 : vector<8x8xf32>
    %c9_95 = arith.constant 9 : index
    %422 = memref.load %arg4[%c9_95] : memref<200xf32, #tpu.memory_space<smem>>
    %423 = vector.broadcast %422 : f32 to vector<8x8xf32>
    %424 = arith.mulf %417, %423 : vector<8x8xf32>
    %425 = arith.addf %408, %424 : vector<8x8xf32>
    %c10_96 = arith.constant 10 : index
    %426 = memref.load %arg4[%c10_96] : memref<200xf32, #tpu.memory_space<smem>>
    %427 = vector.broadcast %426 : f32 to vector<8x8xf32>
    %428 = arith.mulf %417, %427 : vector<8x8xf32>
    %429 = arith.addf %412, %428 : vector<8x8xf32>
    %c11_97 = arith.constant 11 : index
    %430 = memref.load %arg4[%c11_97] : memref<200xf32, #tpu.memory_space<smem>>
    %431 = vector.broadcast %430 : f32 to vector<8x8xf32>
    %432 = arith.mulf %417, %431 : vector<8x8xf32>
    %433 = arith.addf %416, %432 : vector<8x8xf32>
    %434 = vector.extract_strided_slice %399 {offsets = [2, 0], sizes = [8, 8], strides = [1, 1]} : vector<12x8xf32> to vector<8x8xf32>
    %c16_98 = arith.constant 16 : index
    %435 = memref.load %arg4[%c16_98] : memref<200xf32, #tpu.memory_space<smem>>
    %436 = vector.broadcast %435 : f32 to vector<8x8xf32>
    %437 = arith.mulf %434, %436 : vector<8x8xf32>
    %438 = arith.addf %421, %437 : vector<8x8xf32>
    %c17_99 = arith.constant 17 : index
    %439 = memref.load %arg4[%c17_99] : memref<200xf32, #tpu.memory_space<smem>>
    %440 = vector.broadcast %439 : f32 to vector<8x8xf32>
    %441 = arith.mulf %434, %440 : vector<8x8xf32>
    %442 = arith.addf %425, %441 : vector<8x8xf32>
    %c18_100 = arith.constant 18 : index
    %443 = memref.load %arg4[%c18_100] : memref<200xf32, #tpu.memory_space<smem>>
    %444 = vector.broadcast %443 : f32 to vector<8x8xf32>
    %445 = arith.mulf %434, %444 : vector<8x8xf32>
    %446 = arith.addf %429, %445 : vector<8x8xf32>
    %c19_101 = arith.constant 19 : index
    %447 = memref.load %arg4[%c19_101] : memref<200xf32, #tpu.memory_space<smem>>
    %448 = vector.broadcast %447 : f32 to vector<8x8xf32>
    %449 = arith.mulf %434, %448 : vector<8x8xf32>
    %450 = arith.addf %433, %449 : vector<8x8xf32>
    %451 = vector.extract_strided_slice %399 {offsets = [3, 0], sizes = [8, 8], strides = [1, 1]} : vector<12x8xf32> to vector<8x8xf32>
    %c24_102 = arith.constant 24 : index
    %452 = memref.load %arg4[%c24_102] : memref<200xf32, #tpu.memory_space<smem>>
    %453 = vector.broadcast %452 : f32 to vector<8x8xf32>
    %454 = arith.mulf %451, %453 : vector<8x8xf32>
    %455 = arith.addf %438, %454 : vector<8x8xf32>
    %c25_103 = arith.constant 25 : index
    %456 = memref.load %arg4[%c25_103] : memref<200xf32, #tpu.memory_space<smem>>
    %457 = vector.broadcast %456 : f32 to vector<8x8xf32>
    %458 = arith.mulf %451, %457 : vector<8x8xf32>
    %459 = arith.addf %442, %458 : vector<8x8xf32>
    %c26_104 = arith.constant 26 : index
    %460 = memref.load %arg4[%c26_104] : memref<200xf32, #tpu.memory_space<smem>>
    %461 = vector.broadcast %460 : f32 to vector<8x8xf32>
    %462 = arith.mulf %451, %461 : vector<8x8xf32>
    %463 = arith.addf %446, %462 : vector<8x8xf32>
    %c27_105 = arith.constant 27 : index
    %464 = memref.load %arg4[%c27_105] : memref<200xf32, #tpu.memory_space<smem>>
    %465 = vector.broadcast %464 : f32 to vector<8x8xf32>
    %466 = arith.mulf %451, %465 : vector<8x8xf32>
    %467 = arith.addf %450, %466 : vector<8x8xf32>
    %468 = vector.extract_strided_slice %399 {offsets = [4, 0], sizes = [8, 8], strides = [1, 1]} : vector<12x8xf32> to vector<8x8xf32>
    %c32_106 = arith.constant 32 : index
    %469 = memref.load %arg4[%c32_106] : memref<200xf32, #tpu.memory_space<smem>>
    %470 = vector.broadcast %469 : f32 to vector<8x8xf32>
    %471 = arith.mulf %468, %470 : vector<8x8xf32>
    %472 = arith.addf %455, %471 : vector<8x8xf32>
    %c33_107 = arith.constant 33 : index
    %473 = memref.load %arg4[%c33_107] : memref<200xf32, #tpu.memory_space<smem>>
    %474 = vector.broadcast %473 : f32 to vector<8x8xf32>
    %475 = arith.mulf %468, %474 : vector<8x8xf32>
    %476 = arith.addf %459, %475 : vector<8x8xf32>
    %c34_108 = arith.constant 34 : index
    %477 = memref.load %arg4[%c34_108] : memref<200xf32, #tpu.memory_space<smem>>
    %478 = vector.broadcast %477 : f32 to vector<8x8xf32>
    %479 = arith.mulf %468, %478 : vector<8x8xf32>
    %480 = arith.addf %463, %479 : vector<8x8xf32>
    %c35_109 = arith.constant 35 : index
    %481 = memref.load %arg4[%c35_109] : memref<200xf32, #tpu.memory_space<smem>>
    %482 = vector.broadcast %481 : f32 to vector<8x8xf32>
    %483 = arith.mulf %468, %482 : vector<8x8xf32>
    %484 = arith.addf %467, %483 : vector<8x8xf32>
    %c0_110 = arith.constant 0 : index
    %c0_111 = arith.constant 0 : index
    %c1_112 = arith.constant 1 : index
    %485 = vector.load %arg11[%c0_110, %c0_111, %c1_112] : memref<2x12x12xf32, #tpu.memory_space<vmem>>, vector<1x12x8xf32>
    %486 = vector.shape_cast %485 : vector<1x12x8xf32> to vector<12x8xf32>
    %487 = vector.extract_strided_slice %486 {offsets = [0, 0], sizes = [8, 8], strides = [1, 1]} : vector<12x8xf32> to vector<8x8xf32>
    %c40_113 = arith.constant 40 : index
    %488 = memref.load %arg4[%c40_113] : memref<200xf32, #tpu.memory_space<smem>>
    %489 = vector.broadcast %488 : f32 to vector<8x8xf32>
    %490 = arith.mulf %487, %489 : vector<8x8xf32>
    %491 = arith.addf %472, %490 : vector<8x8xf32>
    %c41_114 = arith.constant 41 : index
    %492 = memref.load %arg4[%c41_114] : memref<200xf32, #tpu.memory_space<smem>>
    %493 = vector.broadcast %492 : f32 to vector<8x8xf32>
    %494 = arith.mulf %487, %493 : vector<8x8xf32>
    %495 = arith.addf %476, %494 : vector<8x8xf32>
    %c42_115 = arith.constant 42 : index
    %496 = memref.load %arg4[%c42_115] : memref<200xf32, #tpu.memory_space<smem>>
    %497 = vector.broadcast %496 : f32 to vector<8x8xf32>
    %498 = arith.mulf %487, %497 : vector<8x8xf32>
    %499 = arith.addf %480, %498 : vector<8x8xf32>
    %c43_116 = arith.constant 43 : index
    %500 = memref.load %arg4[%c43_116] : memref<200xf32, #tpu.memory_space<smem>>
    %501 = vector.broadcast %500 : f32 to vector<8x8xf32>
    %502 = arith.mulf %487, %501 : vector<8x8xf32>
    %503 = arith.addf %484, %502 : vector<8x8xf32>
    %504 = vector.extract_strided_slice %486 {offsets = [1, 0], sizes = [8, 8], strides = [1, 1]} : vector<12x8xf32> to vector<8x8xf32>
    %c48_117 = arith.constant 48 : index
    %505 = memref.load %arg4[%c48_117] : memref<200xf32, #tpu.memory_space<smem>>
    %506 = vector.broadcast %505 : f32 to vector<8x8xf32>
    %507 = arith.mulf %504, %506 : vector<8x8xf32>
    %508 = arith.addf %491, %507 : vector<8x8xf32>
    %c49_118 = arith.constant 49 : index
    %509 = memref.load %arg4[%c49_118] : memref<200xf32, #tpu.memory_space<smem>>
    %510 = vector.broadcast %509 : f32 to vector<8x8xf32>
    %511 = arith.mulf %504, %510 : vector<8x8xf32>
    %512 = arith.addf %495, %511 : vector<8x8xf32>
    %c50_119 = arith.constant 50 : index
    %513 = memref.load %arg4[%c50_119] : memref<200xf32, #tpu.memory_space<smem>>
    %514 = vector.broadcast %513 : f32 to vector<8x8xf32>
    %515 = arith.mulf %504, %514 : vector<8x8xf32>
    %516 = arith.addf %499, %515 : vector<8x8xf32>
    %c51_120 = arith.constant 51 : index
    %517 = memref.load %arg4[%c51_120] : memref<200xf32, #tpu.memory_space<smem>>
    %518 = vector.broadcast %517 : f32 to vector<8x8xf32>
    %519 = arith.mulf %504, %518 : vector<8x8xf32>
    %520 = arith.addf %503, %519 : vector<8x8xf32>
    %521 = vector.extract_strided_slice %486 {offsets = [2, 0], sizes = [8, 8], strides = [1, 1]} : vector<12x8xf32> to vector<8x8xf32>
    %c56_121 = arith.constant 56 : index
    %522 = memref.load %arg4[%c56_121] : memref<200xf32, #tpu.memory_space<smem>>
    %523 = vector.broadcast %522 : f32 to vector<8x8xf32>
    %524 = arith.mulf %521, %523 : vector<8x8xf32>
    %525 = arith.addf %508, %524 : vector<8x8xf32>
    %c57_122 = arith.constant 57 : index
    %526 = memref.load %arg4[%c57_122] : memref<200xf32, #tpu.memory_space<smem>>
    %527 = vector.broadcast %526 : f32 to vector<8x8xf32>
    %528 = arith.mulf %521, %527 : vector<8x8xf32>
    %529 = arith.addf %512, %528 : vector<8x8xf32>
    %c58_123 = arith.constant 58 : index
    %530 = memref.load %arg4[%c58_123] : memref<200xf32, #tpu.memory_space<smem>>
    %531 = vector.broadcast %530 : f32 to vector<8x8xf32>
    %532 = arith.mulf %521, %531 : vector<8x8xf32>
    %533 = arith.addf %516, %532 : vector<8x8xf32>
    %c59_124 = arith.constant 59 : index
    %534 = memref.load %arg4[%c59_124] : memref<200xf32, #tpu.memory_space<smem>>
    %535 = vector.broadcast %534 : f32 to vector<8x8xf32>
    %536 = arith.mulf %521, %535 : vector<8x8xf32>
    %537 = arith.addf %520, %536 : vector<8x8xf32>
    %538 = vector.extract_strided_slice %486 {offsets = [3, 0], sizes = [8, 8], strides = [1, 1]} : vector<12x8xf32> to vector<8x8xf32>
    %c64_125 = arith.constant 64 : index
    %539 = memref.load %arg4[%c64_125] : memref<200xf32, #tpu.memory_space<smem>>
    %540 = vector.broadcast %539 : f32 to vector<8x8xf32>
    %541 = arith.mulf %538, %540 : vector<8x8xf32>
    %542 = arith.addf %525, %541 : vector<8x8xf32>
    %c65_126 = arith.constant 65 : index
    %543 = memref.load %arg4[%c65_126] : memref<200xf32, #tpu.memory_space<smem>>
    %544 = vector.broadcast %543 : f32 to vector<8x8xf32>
    %545 = arith.mulf %538, %544 : vector<8x8xf32>
    %546 = arith.addf %529, %545 : vector<8x8xf32>
    %c66_127 = arith.constant 66 : index
    %547 = memref.load %arg4[%c66_127] : memref<200xf32, #tpu.memory_space<smem>>
    %548 = vector.broadcast %547 : f32 to vector<8x8xf32>
    %549 = arith.mulf %538, %548 : vector<8x8xf32>
    %550 = arith.addf %533, %549 : vector<8x8xf32>
    %c67_128 = arith.constant 67 : index
    %551 = memref.load %arg4[%c67_128] : memref<200xf32, #tpu.memory_space<smem>>
    %552 = vector.broadcast %551 : f32 to vector<8x8xf32>
    %553 = arith.mulf %538, %552 : vector<8x8xf32>
    %554 = arith.addf %537, %553 : vector<8x8xf32>
    %555 = vector.extract_strided_slice %486 {offsets = [4, 0], sizes = [8, 8], strides = [1, 1]} : vector<12x8xf32> to vector<8x8xf32>
    %c72 = arith.constant 72 : index
    %556 = memref.load %arg4[%c72] : memref<200xf32, #tpu.memory_space<smem>>
    %557 = vector.broadcast %556 : f32 to vector<8x8xf32>
    %558 = arith.mulf %555, %557 : vector<8x8xf32>
    %559 = arith.addf %542, %558 : vector<8x8xf32>
    %c73 = arith.constant 73 : index
    %560 = memref.load %arg4[%c73] : memref<200xf32, #tpu.memory_space<smem>>
    %561 = vector.broadcast %560 : f32 to vector<8x8xf32>
    %562 = arith.mulf %555, %561 : vector<8x8xf32>
    %563 = arith.addf %546, %562 : vector<8x8xf32>
    %c74 = arith.constant 74 : index
    %564 = memref.load %arg4[%c74] : memref<200xf32, #tpu.memory_space<smem>>
    %565 = vector.broadcast %564 : f32 to vector<8x8xf32>
    %566 = arith.mulf %555, %565 : vector<8x8xf32>
    %567 = arith.addf %550, %566 : vector<8x8xf32>
    %c75 = arith.constant 75 : index
    %568 = memref.load %arg4[%c75] : memref<200xf32, #tpu.memory_space<smem>>
    %569 = vector.broadcast %568 : f32 to vector<8x8xf32>
    %570 = arith.mulf %555, %569 : vector<8x8xf32>
    %571 = arith.addf %554, %570 : vector<8x8xf32>
    %c0_129 = arith.constant 0 : index
    %c0_130 = arith.constant 0 : index
    %c2_131 = arith.constant 2 : index
    %572 = vector.load %arg11[%c0_129, %c0_130, %c2_131] : memref<2x12x12xf32, #tpu.memory_space<vmem>>, vector<1x12x8xf32>
    %573 = vector.shape_cast %572 : vector<1x12x8xf32> to vector<12x8xf32>
    %574 = vector.extract_strided_slice %573 {offsets = [0, 0], sizes = [8, 8], strides = [1, 1]} : vector<12x8xf32> to vector<8x8xf32>
    %c80 = arith.constant 80 : index
    %575 = memref.load %arg4[%c80] : memref<200xf32, #tpu.memory_space<smem>>
    %576 = vector.broadcast %575 : f32 to vector<8x8xf32>
    %577 = arith.mulf %574, %576 : vector<8x8xf32>
    %578 = arith.addf %559, %577 : vector<8x8xf32>
    %c81 = arith.constant 81 : index
    %579 = memref.load %arg4[%c81] : memref<200xf32, #tpu.memory_space<smem>>
    %580 = vector.broadcast %579 : f32 to vector<8x8xf32>
    %581 = arith.mulf %574, %580 : vector<8x8xf32>
    %582 = arith.addf %563, %581 : vector<8x8xf32>
    %c82 = arith.constant 82 : index
    %583 = memref.load %arg4[%c82] : memref<200xf32, #tpu.memory_space<smem>>
    %584 = vector.broadcast %583 : f32 to vector<8x8xf32>
    %585 = arith.mulf %574, %584 : vector<8x8xf32>
    %586 = arith.addf %567, %585 : vector<8x8xf32>
    %c83 = arith.constant 83 : index
    %587 = memref.load %arg4[%c83] : memref<200xf32, #tpu.memory_space<smem>>
    %588 = vector.broadcast %587 : f32 to vector<8x8xf32>
    %589 = arith.mulf %574, %588 : vector<8x8xf32>
    %590 = arith.addf %571, %589 : vector<8x8xf32>
    %591 = vector.extract_strided_slice %573 {offsets = [1, 0], sizes = [8, 8], strides = [1, 1]} : vector<12x8xf32> to vector<8x8xf32>
    %c88 = arith.constant 88 : index
    %592 = memref.load %arg4[%c88] : memref<200xf32, #tpu.memory_space<smem>>
    %593 = vector.broadcast %592 : f32 to vector<8x8xf32>
    %594 = arith.mulf %591, %593 : vector<8x8xf32>
    %595 = arith.addf %578, %594 : vector<8x8xf32>
    %c89 = arith.constant 89 : index
    %596 = memref.load %arg4[%c89] : memref<200xf32, #tpu.memory_space<smem>>
    %597 = vector.broadcast %596 : f32 to vector<8x8xf32>
    %598 = arith.mulf %591, %597 : vector<8x8xf32>
    %599 = arith.addf %582, %598 : vector<8x8xf32>
    %c90 = arith.constant 90 : index
    %600 = memref.load %arg4[%c90] : memref<200xf32, #tpu.memory_space<smem>>
    %601 = vector.broadcast %600 : f32 to vector<8x8xf32>
    %602 = arith.mulf %591, %601 : vector<8x8xf32>
    %603 = arith.addf %586, %602 : vector<8x8xf32>
    %c91 = arith.constant 91 : index
    %604 = memref.load %arg4[%c91] : memref<200xf32, #tpu.memory_space<smem>>
    %605 = vector.broadcast %604 : f32 to vector<8x8xf32>
    %606 = arith.mulf %591, %605 : vector<8x8xf32>
    %607 = arith.addf %590, %606 : vector<8x8xf32>
    %608 = vector.extract_strided_slice %573 {offsets = [2, 0], sizes = [8, 8], strides = [1, 1]} : vector<12x8xf32> to vector<8x8xf32>
    %c96 = arith.constant 96 : index
    %609 = memref.load %arg4[%c96] : memref<200xf32, #tpu.memory_space<smem>>
    %610 = vector.broadcast %609 : f32 to vector<8x8xf32>
    %611 = arith.mulf %608, %610 : vector<8x8xf32>
    %612 = arith.addf %595, %611 : vector<8x8xf32>
    %c97 = arith.constant 97 : index
    %613 = memref.load %arg4[%c97] : memref<200xf32, #tpu.memory_space<smem>>
    %614 = vector.broadcast %613 : f32 to vector<8x8xf32>
    %615 = arith.mulf %608, %614 : vector<8x8xf32>
    %616 = arith.addf %599, %615 : vector<8x8xf32>
    %c98 = arith.constant 98 : index
    %617 = memref.load %arg4[%c98] : memref<200xf32, #tpu.memory_space<smem>>
    %618 = vector.broadcast %617 : f32 to vector<8x8xf32>
    %619 = arith.mulf %608, %618 : vector<8x8xf32>
    %620 = arith.addf %603, %619 : vector<8x8xf32>
    %c99 = arith.constant 99 : index
    %621 = memref.load %arg4[%c99] : memref<200xf32, #tpu.memory_space<smem>>
    %622 = vector.broadcast %621 : f32 to vector<8x8xf32>
    %623 = arith.mulf %608, %622 : vector<8x8xf32>
    %624 = arith.addf %607, %623 : vector<8x8xf32>
    %625 = vector.extract_strided_slice %573 {offsets = [3, 0], sizes = [8, 8], strides = [1, 1]} : vector<12x8xf32> to vector<8x8xf32>
    %c104 = arith.constant 104 : index
    %626 = memref.load %arg4[%c104] : memref<200xf32, #tpu.memory_space<smem>>
    %627 = vector.broadcast %626 : f32 to vector<8x8xf32>
    %628 = arith.mulf %625, %627 : vector<8x8xf32>
    %629 = arith.addf %612, %628 : vector<8x8xf32>
    %c105 = arith.constant 105 : index
    %630 = memref.load %arg4[%c105] : memref<200xf32, #tpu.memory_space<smem>>
    %631 = vector.broadcast %630 : f32 to vector<8x8xf32>
    %632 = arith.mulf %625, %631 : vector<8x8xf32>
    %633 = arith.addf %616, %632 : vector<8x8xf32>
    %c106 = arith.constant 106 : index
    %634 = memref.load %arg4[%c106] : memref<200xf32, #tpu.memory_space<smem>>
    %635 = vector.broadcast %634 : f32 to vector<8x8xf32>
    %636 = arith.mulf %625, %635 : vector<8x8xf32>
    %637 = arith.addf %620, %636 : vector<8x8xf32>
    %c107 = arith.constant 107 : index
    %638 = memref.load %arg4[%c107] : memref<200xf32, #tpu.memory_space<smem>>
    %639 = vector.broadcast %638 : f32 to vector<8x8xf32>
    %640 = arith.mulf %625, %639 : vector<8x8xf32>
    %641 = arith.addf %624, %640 : vector<8x8xf32>
    %642 = vector.extract_strided_slice %573 {offsets = [4, 0], sizes = [8, 8], strides = [1, 1]} : vector<12x8xf32> to vector<8x8xf32>
    %c112 = arith.constant 112 : index
    %643 = memref.load %arg4[%c112] : memref<200xf32, #tpu.memory_space<smem>>
    %644 = vector.broadcast %643 : f32 to vector<8x8xf32>
    %645 = arith.mulf %642, %644 : vector<8x8xf32>
    %646 = arith.addf %629, %645 : vector<8x8xf32>
    %c113 = arith.constant 113 : index
    %647 = memref.load %arg4[%c113] : memref<200xf32, #tpu.memory_space<smem>>
    %648 = vector.broadcast %647 : f32 to vector<8x8xf32>
    %649 = arith.mulf %642, %648 : vector<8x8xf32>
    %650 = arith.addf %633, %649 : vector<8x8xf32>
    %c114 = arith.constant 114 : index
    %651 = memref.load %arg4[%c114] : memref<200xf32, #tpu.memory_space<smem>>
    %652 = vector.broadcast %651 : f32 to vector<8x8xf32>
    %653 = arith.mulf %642, %652 : vector<8x8xf32>
    %654 = arith.addf %637, %653 : vector<8x8xf32>
    %c115 = arith.constant 115 : index
    %655 = memref.load %arg4[%c115] : memref<200xf32, #tpu.memory_space<smem>>
    %656 = vector.broadcast %655 : f32 to vector<8x8xf32>
    %657 = arith.mulf %642, %656 : vector<8x8xf32>
    %658 = arith.addf %641, %657 : vector<8x8xf32>
    %c0_132 = arith.constant 0 : index
    %c0_133 = arith.constant 0 : index
    %c3_134 = arith.constant 3 : index
    %659 = vector.load %arg11[%c0_132, %c0_133, %c3_134] : memref<2x12x12xf32, #tpu.memory_space<vmem>>, vector<1x12x8xf32>
    %660 = vector.shape_cast %659 : vector<1x12x8xf32> to vector<12x8xf32>
    %661 = vector.extract_strided_slice %660 {offsets = [0, 0], sizes = [8, 8], strides = [1, 1]} : vector<12x8xf32> to vector<8x8xf32>
    %c120 = arith.constant 120 : index
    %662 = memref.load %arg4[%c120] : memref<200xf32, #tpu.memory_space<smem>>
    %663 = vector.broadcast %662 : f32 to vector<8x8xf32>
    %664 = arith.mulf %661, %663 : vector<8x8xf32>
    %665 = arith.addf %646, %664 : vector<8x8xf32>
    %c121 = arith.constant 121 : index
    %666 = memref.load %arg4[%c121] : memref<200xf32, #tpu.memory_space<smem>>
    %667 = vector.broadcast %666 : f32 to vector<8x8xf32>
    %668 = arith.mulf %661, %667 : vector<8x8xf32>
    %669 = arith.addf %650, %668 : vector<8x8xf32>
    %c122 = arith.constant 122 : index
    %670 = memref.load %arg4[%c122] : memref<200xf32, #tpu.memory_space<smem>>
    %671 = vector.broadcast %670 : f32 to vector<8x8xf32>
    %672 = arith.mulf %661, %671 : vector<8x8xf32>
    %673 = arith.addf %654, %672 : vector<8x8xf32>
    %c123 = arith.constant 123 : index
    %674 = memref.load %arg4[%c123] : memref<200xf32, #tpu.memory_space<smem>>
    %675 = vector.broadcast %674 : f32 to vector<8x8xf32>
    %676 = arith.mulf %661, %675 : vector<8x8xf32>
    %677 = arith.addf %658, %676 : vector<8x8xf32>
    %678 = vector.extract_strided_slice %660 {offsets = [1, 0], sizes = [8, 8], strides = [1, 1]} : vector<12x8xf32> to vector<8x8xf32>
    %c128 = arith.constant 128 : index
    %679 = memref.load %arg4[%c128] : memref<200xf32, #tpu.memory_space<smem>>
    %680 = vector.broadcast %679 : f32 to vector<8x8xf32>
    %681 = arith.mulf %678, %680 : vector<8x8xf32>
    %682 = arith.addf %665, %681 : vector<8x8xf32>
    %c129 = arith.constant 129 : index
    %683 = memref.load %arg4[%c129] : memref<200xf32, #tpu.memory_space<smem>>
    %684 = vector.broadcast %683 : f32 to vector<8x8xf32>
    %685 = arith.mulf %678, %684 : vector<8x8xf32>
    %686 = arith.addf %669, %685 : vector<8x8xf32>
    %c130 = arith.constant 130 : index
    %687 = memref.load %arg4[%c130] : memref<200xf32, #tpu.memory_space<smem>>
    %688 = vector.broadcast %687 : f32 to vector<8x8xf32>
    %689 = arith.mulf %678, %688 : vector<8x8xf32>
    %690 = arith.addf %673, %689 : vector<8x8xf32>
    %c131 = arith.constant 131 : index
    %691 = memref.load %arg4[%c131] : memref<200xf32, #tpu.memory_space<smem>>
    %692 = vector.broadcast %691 : f32 to vector<8x8xf32>
    %693 = arith.mulf %678, %692 : vector<8x8xf32>
    %694 = arith.addf %677, %693 : vector<8x8xf32>
    %695 = vector.extract_strided_slice %660 {offsets = [2, 0], sizes = [8, 8], strides = [1, 1]} : vector<12x8xf32> to vector<8x8xf32>
    %c136 = arith.constant 136 : index
    %696 = memref.load %arg4[%c136] : memref<200xf32, #tpu.memory_space<smem>>
    %697 = vector.broadcast %696 : f32 to vector<8x8xf32>
    %698 = arith.mulf %695, %697 : vector<8x8xf32>
    %699 = arith.addf %682, %698 : vector<8x8xf32>
    %c137 = arith.constant 137 : index
    %700 = memref.load %arg4[%c137] : memref<200xf32, #tpu.memory_space<smem>>
    %701 = vector.broadcast %700 : f32 to vector<8x8xf32>
    %702 = arith.mulf %695, %701 : vector<8x8xf32>
    %703 = arith.addf %686, %702 : vector<8x8xf32>
    %c138 = arith.constant 138 : index
    %704 = memref.load %arg4[%c138] : memref<200xf32, #tpu.memory_space<smem>>
    %705 = vector.broadcast %704 : f32 to vector<8x8xf32>
    %706 = arith.mulf %695, %705 : vector<8x8xf32>
    %707 = arith.addf %690, %706 : vector<8x8xf32>
    %c139 = arith.constant 139 : index
    %708 = memref.load %arg4[%c139] : memref<200xf32, #tpu.memory_space<smem>>
    %709 = vector.broadcast %708 : f32 to vector<8x8xf32>
    %710 = arith.mulf %695, %709 : vector<8x8xf32>
    %711 = arith.addf %694, %710 : vector<8x8xf32>
    %712 = vector.extract_strided_slice %660 {offsets = [3, 0], sizes = [8, 8], strides = [1, 1]} : vector<12x8xf32> to vector<8x8xf32>
    %c144 = arith.constant 144 : index
    %713 = memref.load %arg4[%c144] : memref<200xf32, #tpu.memory_space<smem>>
    %714 = vector.broadcast %713 : f32 to vector<8x8xf32>
    %715 = arith.mulf %712, %714 : vector<8x8xf32>
    %716 = arith.addf %699, %715 : vector<8x8xf32>
    %c145 = arith.constant 145 : index
    %717 = memref.load %arg4[%c145] : memref<200xf32, #tpu.memory_space<smem>>
    %718 = vector.broadcast %717 : f32 to vector<8x8xf32>
    %719 = arith.mulf %712, %718 : vector<8x8xf32>
    %720 = arith.addf %703, %719 : vector<8x8xf32>
    %c146 = arith.constant 146 : index
    %721 = memref.load %arg4[%c146] : memref<200xf32, #tpu.memory_space<smem>>
    %722 = vector.broadcast %721 : f32 to vector<8x8xf32>
    %723 = arith.mulf %712, %722 : vector<8x8xf32>
    %724 = arith.addf %707, %723 : vector<8x8xf32>
    %c147 = arith.constant 147 : index
    %725 = memref.load %arg4[%c147] : memref<200xf32, #tpu.memory_space<smem>>
    %726 = vector.broadcast %725 : f32 to vector<8x8xf32>
    %727 = arith.mulf %712, %726 : vector<8x8xf32>
    %728 = arith.addf %711, %727 : vector<8x8xf32>
    %729 = vector.extract_strided_slice %660 {offsets = [4, 0], sizes = [8, 8], strides = [1, 1]} : vector<12x8xf32> to vector<8x8xf32>
    %c152 = arith.constant 152 : index
    %730 = memref.load %arg4[%c152] : memref<200xf32, #tpu.memory_space<smem>>
    %731 = vector.broadcast %730 : f32 to vector<8x8xf32>
    %732 = arith.mulf %729, %731 : vector<8x8xf32>
    %733 = arith.addf %716, %732 : vector<8x8xf32>
    %c153 = arith.constant 153 : index
    %734 = memref.load %arg4[%c153] : memref<200xf32, #tpu.memory_space<smem>>
    %735 = vector.broadcast %734 : f32 to vector<8x8xf32>
    %736 = arith.mulf %729, %735 : vector<8x8xf32>
    %737 = arith.addf %720, %736 : vector<8x8xf32>
    %c154 = arith.constant 154 : index
    %738 = memref.load %arg4[%c154] : memref<200xf32, #tpu.memory_space<smem>>
    %739 = vector.broadcast %738 : f32 to vector<8x8xf32>
    %740 = arith.mulf %729, %739 : vector<8x8xf32>
    %741 = arith.addf %724, %740 : vector<8x8xf32>
    %c155 = arith.constant 155 : index
    %742 = memref.load %arg4[%c155] : memref<200xf32, #tpu.memory_space<smem>>
    %743 = vector.broadcast %742 : f32 to vector<8x8xf32>
    %744 = arith.mulf %729, %743 : vector<8x8xf32>
    %745 = arith.addf %728, %744 : vector<8x8xf32>
    %c0_135 = arith.constant 0 : index
    %c0_136 = arith.constant 0 : index
    %c4_137 = arith.constant 4 : index
    %746 = vector.load %arg11[%c0_135, %c0_136, %c4_137] : memref<2x12x12xf32, #tpu.memory_space<vmem>>, vector<1x12x8xf32>
    %747 = vector.shape_cast %746 : vector<1x12x8xf32> to vector<12x8xf32>
    %748 = vector.extract_strided_slice %747 {offsets = [0, 0], sizes = [8, 8], strides = [1, 1]} : vector<12x8xf32> to vector<8x8xf32>
    %c160 = arith.constant 160 : index
    %749 = memref.load %arg4[%c160] : memref<200xf32, #tpu.memory_space<smem>>
    %750 = vector.broadcast %749 : f32 to vector<8x8xf32>
    %751 = arith.mulf %748, %750 : vector<8x8xf32>
    %752 = arith.addf %733, %751 : vector<8x8xf32>
    %c161 = arith.constant 161 : index
    %753 = memref.load %arg4[%c161] : memref<200xf32, #tpu.memory_space<smem>>
    %754 = vector.broadcast %753 : f32 to vector<8x8xf32>
    %755 = arith.mulf %748, %754 : vector<8x8xf32>
    %756 = arith.addf %737, %755 : vector<8x8xf32>
    %c162 = arith.constant 162 : index
    %757 = memref.load %arg4[%c162] : memref<200xf32, #tpu.memory_space<smem>>
    %758 = vector.broadcast %757 : f32 to vector<8x8xf32>
    %759 = arith.mulf %748, %758 : vector<8x8xf32>
    %760 = arith.addf %741, %759 : vector<8x8xf32>
    %c163 = arith.constant 163 : index
    %761 = memref.load %arg4[%c163] : memref<200xf32, #tpu.memory_space<smem>>
    %762 = vector.broadcast %761 : f32 to vector<8x8xf32>
    %763 = arith.mulf %748, %762 : vector<8x8xf32>
    %764 = arith.addf %745, %763 : vector<8x8xf32>
    %765 = vector.extract_strided_slice %747 {offsets = [1, 0], sizes = [8, 8], strides = [1, 1]} : vector<12x8xf32> to vector<8x8xf32>
    %c168 = arith.constant 168 : index
    %766 = memref.load %arg4[%c168] : memref<200xf32, #tpu.memory_space<smem>>
    %767 = vector.broadcast %766 : f32 to vector<8x8xf32>
    %768 = arith.mulf %765, %767 : vector<8x8xf32>
    %769 = arith.addf %752, %768 : vector<8x8xf32>
    %c169 = arith.constant 169 : index
    %770 = memref.load %arg4[%c169] : memref<200xf32, #tpu.memory_space<smem>>
    %771 = vector.broadcast %770 : f32 to vector<8x8xf32>
    %772 = arith.mulf %765, %771 : vector<8x8xf32>
    %773 = arith.addf %756, %772 : vector<8x8xf32>
    %c170 = arith.constant 170 : index
    %774 = memref.load %arg4[%c170] : memref<200xf32, #tpu.memory_space<smem>>
    %775 = vector.broadcast %774 : f32 to vector<8x8xf32>
    %776 = arith.mulf %765, %775 : vector<8x8xf32>
    %777 = arith.addf %760, %776 : vector<8x8xf32>
    %c171 = arith.constant 171 : index
    %778 = memref.load %arg4[%c171] : memref<200xf32, #tpu.memory_space<smem>>
    %779 = vector.broadcast %778 : f32 to vector<8x8xf32>
    %780 = arith.mulf %765, %779 : vector<8x8xf32>
    %781 = arith.addf %764, %780 : vector<8x8xf32>
    %782 = vector.extract_strided_slice %747 {offsets = [2, 0], sizes = [8, 8], strides = [1, 1]} : vector<12x8xf32> to vector<8x8xf32>
    %c176 = arith.constant 176 : index
    %783 = memref.load %arg4[%c176] : memref<200xf32, #tpu.memory_space<smem>>
    %784 = vector.broadcast %783 : f32 to vector<8x8xf32>
    %785 = arith.mulf %782, %784 : vector<8x8xf32>
    %786 = arith.addf %769, %785 : vector<8x8xf32>
    %c177 = arith.constant 177 : index
    %787 = memref.load %arg4[%c177] : memref<200xf32, #tpu.memory_space<smem>>
    %788 = vector.broadcast %787 : f32 to vector<8x8xf32>
    %789 = arith.mulf %782, %788 : vector<8x8xf32>
    %790 = arith.addf %773, %789 : vector<8x8xf32>
    %c178 = arith.constant 178 : index
    %791 = memref.load %arg4[%c178] : memref<200xf32, #tpu.memory_space<smem>>
    %792 = vector.broadcast %791 : f32 to vector<8x8xf32>
    %793 = arith.mulf %782, %792 : vector<8x8xf32>
    %794 = arith.addf %777, %793 : vector<8x8xf32>
    %c179 = arith.constant 179 : index
    %795 = memref.load %arg4[%c179] : memref<200xf32, #tpu.memory_space<smem>>
    %796 = vector.broadcast %795 : f32 to vector<8x8xf32>
    %797 = arith.mulf %782, %796 : vector<8x8xf32>
    %798 = arith.addf %781, %797 : vector<8x8xf32>
    %799 = vector.extract_strided_slice %747 {offsets = [3, 0], sizes = [8, 8], strides = [1, 1]} : vector<12x8xf32> to vector<8x8xf32>
    %c184 = arith.constant 184 : index
    %800 = memref.load %arg4[%c184] : memref<200xf32, #tpu.memory_space<smem>>
    %801 = vector.broadcast %800 : f32 to vector<8x8xf32>
    %802 = arith.mulf %799, %801 : vector<8x8xf32>
    %803 = arith.addf %786, %802 : vector<8x8xf32>
    %c185 = arith.constant 185 : index
    %804 = memref.load %arg4[%c185] : memref<200xf32, #tpu.memory_space<smem>>
    %805 = vector.broadcast %804 : f32 to vector<8x8xf32>
    %806 = arith.mulf %799, %805 : vector<8x8xf32>
    %807 = arith.addf %790, %806 : vector<8x8xf32>
    %c186 = arith.constant 186 : index
    %808 = memref.load %arg4[%c186] : memref<200xf32, #tpu.memory_space<smem>>
    %809 = vector.broadcast %808 : f32 to vector<8x8xf32>
    %810 = arith.mulf %799, %809 : vector<8x8xf32>
    %811 = arith.addf %794, %810 : vector<8x8xf32>
    %c187 = arith.constant 187 : index
    %812 = memref.load %arg4[%c187] : memref<200xf32, #tpu.memory_space<smem>>
    %813 = vector.broadcast %812 : f32 to vector<8x8xf32>
    %814 = arith.mulf %799, %813 : vector<8x8xf32>
    %815 = arith.addf %798, %814 : vector<8x8xf32>
    %816 = vector.extract_strided_slice %747 {offsets = [4, 0], sizes = [8, 8], strides = [1, 1]} : vector<12x8xf32> to vector<8x8xf32>
    %c192 = arith.constant 192 : index
    %817 = memref.load %arg4[%c192] : memref<200xf32, #tpu.memory_space<smem>>
    %818 = vector.broadcast %817 : f32 to vector<8x8xf32>
    %819 = arith.mulf %816, %818 : vector<8x8xf32>
    %820 = arith.addf %803, %819 : vector<8x8xf32>
    %c193 = arith.constant 193 : index
    %821 = memref.load %arg4[%c193] : memref<200xf32, #tpu.memory_space<smem>>
    %822 = vector.broadcast %821 : f32 to vector<8x8xf32>
    %823 = arith.mulf %816, %822 : vector<8x8xf32>
    %824 = arith.addf %807, %823 : vector<8x8xf32>
    %c194 = arith.constant 194 : index
    %825 = memref.load %arg4[%c194] : memref<200xf32, #tpu.memory_space<smem>>
    %826 = vector.broadcast %825 : f32 to vector<8x8xf32>
    %827 = arith.mulf %816, %826 : vector<8x8xf32>
    %828 = arith.addf %811, %827 : vector<8x8xf32>
    %c195 = arith.constant 195 : index
    %829 = memref.load %arg4[%c195] : memref<200xf32, #tpu.memory_space<smem>>
    %830 = vector.broadcast %829 : f32 to vector<8x8xf32>
    %831 = arith.mulf %816, %830 : vector<8x8xf32>
    %832 = arith.addf %815, %831 : vector<8x8xf32>
    %c1_138 = arith.constant 1 : index
    %c0_139 = arith.constant 0 : index
    %c0_140 = arith.constant 0 : index
    %833 = vector.load %arg11[%c1_138, %c0_139, %c0_140] : memref<2x12x12xf32, #tpu.memory_space<vmem>>, vector<1x12x8xf32>
    %834 = vector.shape_cast %833 : vector<1x12x8xf32> to vector<12x8xf32>
    %835 = vector.extract_strided_slice %834 {offsets = [0, 0], sizes = [8, 8], strides = [1, 1]} : vector<12x8xf32> to vector<8x8xf32>
    %c4_141 = arith.constant 4 : index
    %836 = memref.load %arg4[%c4_141] : memref<200xf32, #tpu.memory_space<smem>>
    %837 = vector.broadcast %836 : f32 to vector<8x8xf32>
    %838 = arith.mulf %835, %837 : vector<8x8xf32>
    %839 = arith.addf %820, %838 : vector<8x8xf32>
    %c5_142 = arith.constant 5 : index
    %840 = memref.load %arg4[%c5_142] : memref<200xf32, #tpu.memory_space<smem>>
    %841 = vector.broadcast %840 : f32 to vector<8x8xf32>
    %842 = arith.mulf %835, %841 : vector<8x8xf32>
    %843 = arith.addf %824, %842 : vector<8x8xf32>
    %c6_143 = arith.constant 6 : index
    %844 = memref.load %arg4[%c6_143] : memref<200xf32, #tpu.memory_space<smem>>
    %845 = vector.broadcast %844 : f32 to vector<8x8xf32>
    %846 = arith.mulf %835, %845 : vector<8x8xf32>
    %847 = arith.addf %828, %846 : vector<8x8xf32>
    %c7_144 = arith.constant 7 : index
    %848 = memref.load %arg4[%c7_144] : memref<200xf32, #tpu.memory_space<smem>>
    %849 = vector.broadcast %848 : f32 to vector<8x8xf32>
    %850 = arith.mulf %835, %849 : vector<8x8xf32>
    %851 = arith.addf %832, %850 : vector<8x8xf32>
    %852 = vector.extract_strided_slice %834 {offsets = [1, 0], sizes = [8, 8], strides = [1, 1]} : vector<12x8xf32> to vector<8x8xf32>
    %c12_145 = arith.constant 12 : index
    %853 = memref.load %arg4[%c12_145] : memref<200xf32, #tpu.memory_space<smem>>
    %854 = vector.broadcast %853 : f32 to vector<8x8xf32>
    %855 = arith.mulf %852, %854 : vector<8x8xf32>
    %856 = arith.addf %839, %855 : vector<8x8xf32>
    %c13_146 = arith.constant 13 : index
    %857 = memref.load %arg4[%c13_146] : memref<200xf32, #tpu.memory_space<smem>>
    %858 = vector.broadcast %857 : f32 to vector<8x8xf32>
    %859 = arith.mulf %852, %858 : vector<8x8xf32>
    %860 = arith.addf %843, %859 : vector<8x8xf32>
    %c14_147 = arith.constant 14 : index
    %861 = memref.load %arg4[%c14_147] : memref<200xf32, #tpu.memory_space<smem>>
    %862 = vector.broadcast %861 : f32 to vector<8x8xf32>
    %863 = arith.mulf %852, %862 : vector<8x8xf32>
    %864 = arith.addf %847, %863 : vector<8x8xf32>
    %c15_148 = arith.constant 15 : index
    %865 = memref.load %arg4[%c15_148] : memref<200xf32, #tpu.memory_space<smem>>
    %866 = vector.broadcast %865 : f32 to vector<8x8xf32>
    %867 = arith.mulf %852, %866 : vector<8x8xf32>
    %868 = arith.addf %851, %867 : vector<8x8xf32>
    %869 = vector.extract_strided_slice %834 {offsets = [2, 0], sizes = [8, 8], strides = [1, 1]} : vector<12x8xf32> to vector<8x8xf32>
    %c20_149 = arith.constant 20 : index
    %870 = memref.load %arg4[%c20_149] : memref<200xf32, #tpu.memory_space<smem>>
    %871 = vector.broadcast %870 : f32 to vector<8x8xf32>
    %872 = arith.mulf %869, %871 : vector<8x8xf32>
    %873 = arith.addf %856, %872 : vector<8x8xf32>
    %c21_150 = arith.constant 21 : index
    %874 = memref.load %arg4[%c21_150] : memref<200xf32, #tpu.memory_space<smem>>
    %875 = vector.broadcast %874 : f32 to vector<8x8xf32>
    %876 = arith.mulf %869, %875 : vector<8x8xf32>
    %877 = arith.addf %860, %876 : vector<8x8xf32>
    %c22_151 = arith.constant 22 : index
    %878 = memref.load %arg4[%c22_151] : memref<200xf32, #tpu.memory_space<smem>>
    %879 = vector.broadcast %878 : f32 to vector<8x8xf32>
    %880 = arith.mulf %869, %879 : vector<8x8xf32>
    %881 = arith.addf %864, %880 : vector<8x8xf32>
    %c23_152 = arith.constant 23 : index
    %882 = memref.load %arg4[%c23_152] : memref<200xf32, #tpu.memory_space<smem>>
    %883 = vector.broadcast %882 : f32 to vector<8x8xf32>
    %884 = arith.mulf %869, %883 : vector<8x8xf32>
    %885 = arith.addf %868, %884 : vector<8x8xf32>
    %886 = vector.extract_strided_slice %834 {offsets = [3, 0], sizes = [8, 8], strides = [1, 1]} : vector<12x8xf32> to vector<8x8xf32>
    %c28_153 = arith.constant 28 : index
    %887 = memref.load %arg4[%c28_153] : memref<200xf32, #tpu.memory_space<smem>>
    %888 = vector.broadcast %887 : f32 to vector<8x8xf32>
    %889 = arith.mulf %886, %888 : vector<8x8xf32>
    %890 = arith.addf %873, %889 : vector<8x8xf32>
    %c29_154 = arith.constant 29 : index
    %891 = memref.load %arg4[%c29_154] : memref<200xf32, #tpu.memory_space<smem>>
    %892 = vector.broadcast %891 : f32 to vector<8x8xf32>
    %893 = arith.mulf %886, %892 : vector<8x8xf32>
    %894 = arith.addf %877, %893 : vector<8x8xf32>
    %c30_155 = arith.constant 30 : index
    %895 = memref.load %arg4[%c30_155] : memref<200xf32, #tpu.memory_space<smem>>
    %896 = vector.broadcast %895 : f32 to vector<8x8xf32>
    %897 = arith.mulf %886, %896 : vector<8x8xf32>
    %898 = arith.addf %881, %897 : vector<8x8xf32>
    %c31_156 = arith.constant 31 : index
    %899 = memref.load %arg4[%c31_156] : memref<200xf32, #tpu.memory_space<smem>>
    %900 = vector.broadcast %899 : f32 to vector<8x8xf32>
    %901 = arith.mulf %886, %900 : vector<8x8xf32>
    %902 = arith.addf %885, %901 : vector<8x8xf32>
    %903 = vector.extract_strided_slice %834 {offsets = [4, 0], sizes = [8, 8], strides = [1, 1]} : vector<12x8xf32> to vector<8x8xf32>
    %c36_157 = arith.constant 36 : index
    %904 = memref.load %arg4[%c36_157] : memref<200xf32, #tpu.memory_space<smem>>
    %905 = vector.broadcast %904 : f32 to vector<8x8xf32>
    %906 = arith.mulf %903, %905 : vector<8x8xf32>
    %907 = arith.addf %890, %906 : vector<8x8xf32>
    %c37_158 = arith.constant 37 : index
    %908 = memref.load %arg4[%c37_158] : memref<200xf32, #tpu.memory_space<smem>>
    %909 = vector.broadcast %908 : f32 to vector<8x8xf32>
    %910 = arith.mulf %903, %909 : vector<8x8xf32>
    %911 = arith.addf %894, %910 : vector<8x8xf32>
    %c38_159 = arith.constant 38 : index
    %912 = memref.load %arg4[%c38_159] : memref<200xf32, #tpu.memory_space<smem>>
    %913 = vector.broadcast %912 : f32 to vector<8x8xf32>
    %914 = arith.mulf %903, %913 : vector<8x8xf32>
    %915 = arith.addf %898, %914 : vector<8x8xf32>
    %c39_160 = arith.constant 39 : index
    %916 = memref.load %arg4[%c39_160] : memref<200xf32, #tpu.memory_space<smem>>
    %917 = vector.broadcast %916 : f32 to vector<8x8xf32>
    %918 = arith.mulf %903, %917 : vector<8x8xf32>
    %919 = arith.addf %902, %918 : vector<8x8xf32>
    %c1_161 = arith.constant 1 : index
    %c0_162 = arith.constant 0 : index
    %c1_163 = arith.constant 1 : index
    %920 = vector.load %arg11[%c1_161, %c0_162, %c1_163] : memref<2x12x12xf32, #tpu.memory_space<vmem>>, vector<1x12x8xf32>
    %921 = vector.shape_cast %920 : vector<1x12x8xf32> to vector<12x8xf32>
    %922 = vector.extract_strided_slice %921 {offsets = [0, 0], sizes = [8, 8], strides = [1, 1]} : vector<12x8xf32> to vector<8x8xf32>
    %c44_164 = arith.constant 44 : index
    %923 = memref.load %arg4[%c44_164] : memref<200xf32, #tpu.memory_space<smem>>
    %924 = vector.broadcast %923 : f32 to vector<8x8xf32>
    %925 = arith.mulf %922, %924 : vector<8x8xf32>
    %926 = arith.addf %907, %925 : vector<8x8xf32>
    %c45_165 = arith.constant 45 : index
    %927 = memref.load %arg4[%c45_165] : memref<200xf32, #tpu.memory_space<smem>>
    %928 = vector.broadcast %927 : f32 to vector<8x8xf32>
    %929 = arith.mulf %922, %928 : vector<8x8xf32>
    %930 = arith.addf %911, %929 : vector<8x8xf32>
    %c46_166 = arith.constant 46 : index
    %931 = memref.load %arg4[%c46_166] : memref<200xf32, #tpu.memory_space<smem>>
    %932 = vector.broadcast %931 : f32 to vector<8x8xf32>
    %933 = arith.mulf %922, %932 : vector<8x8xf32>
    %934 = arith.addf %915, %933 : vector<8x8xf32>
    %c47_167 = arith.constant 47 : index
    %935 = memref.load %arg4[%c47_167] : memref<200xf32, #tpu.memory_space<smem>>
    %936 = vector.broadcast %935 : f32 to vector<8x8xf32>
    %937 = arith.mulf %922, %936 : vector<8x8xf32>
    %938 = arith.addf %919, %937 : vector<8x8xf32>
    %939 = vector.extract_strided_slice %921 {offsets = [1, 0], sizes = [8, 8], strides = [1, 1]} : vector<12x8xf32> to vector<8x8xf32>
    %c52_168 = arith.constant 52 : index
    %940 = memref.load %arg4[%c52_168] : memref<200xf32, #tpu.memory_space<smem>>
    %941 = vector.broadcast %940 : f32 to vector<8x8xf32>
    %942 = arith.mulf %939, %941 : vector<8x8xf32>
    %943 = arith.addf %926, %942 : vector<8x8xf32>
    %c53_169 = arith.constant 53 : index
    %944 = memref.load %arg4[%c53_169] : memref<200xf32, #tpu.memory_space<smem>>
    %945 = vector.broadcast %944 : f32 to vector<8x8xf32>
    %946 = arith.mulf %939, %945 : vector<8x8xf32>
    %947 = arith.addf %930, %946 : vector<8x8xf32>
    %c54_170 = arith.constant 54 : index
    %948 = memref.load %arg4[%c54_170] : memref<200xf32, #tpu.memory_space<smem>>
    %949 = vector.broadcast %948 : f32 to vector<8x8xf32>
    %950 = arith.mulf %939, %949 : vector<8x8xf32>
    %951 = arith.addf %934, %950 : vector<8x8xf32>
    %c55_171 = arith.constant 55 : index
    %952 = memref.load %arg4[%c55_171] : memref<200xf32, #tpu.memory_space<smem>>
    %953 = vector.broadcast %952 : f32 to vector<8x8xf32>
    %954 = arith.mulf %939, %953 : vector<8x8xf32>
    %955 = arith.addf %938, %954 : vector<8x8xf32>
    %956 = vector.extract_strided_slice %921 {offsets = [2, 0], sizes = [8, 8], strides = [1, 1]} : vector<12x8xf32> to vector<8x8xf32>
    %c60_172 = arith.constant 60 : index
    %957 = memref.load %arg4[%c60_172] : memref<200xf32, #tpu.memory_space<smem>>
    %958 = vector.broadcast %957 : f32 to vector<8x8xf32>
    %959 = arith.mulf %956, %958 : vector<8x8xf32>
    %960 = arith.addf %943, %959 : vector<8x8xf32>
    %c61_173 = arith.constant 61 : index
    %961 = memref.load %arg4[%c61_173] : memref<200xf32, #tpu.memory_space<smem>>
    %962 = vector.broadcast %961 : f32 to vector<8x8xf32>
    %963 = arith.mulf %956, %962 : vector<8x8xf32>
    %964 = arith.addf %947, %963 : vector<8x8xf32>
    %c62_174 = arith.constant 62 : index
    %965 = memref.load %arg4[%c62_174] : memref<200xf32, #tpu.memory_space<smem>>
    %966 = vector.broadcast %965 : f32 to vector<8x8xf32>
    %967 = arith.mulf %956, %966 : vector<8x8xf32>
    %968 = arith.addf %951, %967 : vector<8x8xf32>
    %c63_175 = arith.constant 63 : index
    %969 = memref.load %arg4[%c63_175] : memref<200xf32, #tpu.memory_space<smem>>
    %970 = vector.broadcast %969 : f32 to vector<8x8xf32>
    %971 = arith.mulf %956, %970 : vector<8x8xf32>
    %972 = arith.addf %955, %971 : vector<8x8xf32>
    %973 = vector.extract_strided_slice %921 {offsets = [3, 0], sizes = [8, 8], strides = [1, 1]} : vector<12x8xf32> to vector<8x8xf32>
    %c68_176 = arith.constant 68 : index
    %974 = memref.load %arg4[%c68_176] : memref<200xf32, #tpu.memory_space<smem>>
    %975 = vector.broadcast %974 : f32 to vector<8x8xf32>
    %976 = arith.mulf %973, %975 : vector<8x8xf32>
    %977 = arith.addf %960, %976 : vector<8x8xf32>
    %c69_177 = arith.constant 69 : index
    %978 = memref.load %arg4[%c69_177] : memref<200xf32, #tpu.memory_space<smem>>
    %979 = vector.broadcast %978 : f32 to vector<8x8xf32>
    %980 = arith.mulf %973, %979 : vector<8x8xf32>
    %981 = arith.addf %964, %980 : vector<8x8xf32>
    %c70_178 = arith.constant 70 : index
    %982 = memref.load %arg4[%c70_178] : memref<200xf32, #tpu.memory_space<smem>>
    %983 = vector.broadcast %982 : f32 to vector<8x8xf32>
    %984 = arith.mulf %973, %983 : vector<8x8xf32>
    %985 = arith.addf %968, %984 : vector<8x8xf32>
    %c71_179 = arith.constant 71 : index
    %986 = memref.load %arg4[%c71_179] : memref<200xf32, #tpu.memory_space<smem>>
    %987 = vector.broadcast %986 : f32 to vector<8x8xf32>
    %988 = arith.mulf %973, %987 : vector<8x8xf32>
    %989 = arith.addf %972, %988 : vector<8x8xf32>
    %990 = vector.extract_strided_slice %921 {offsets = [4, 0], sizes = [8, 8], strides = [1, 1]} : vector<12x8xf32> to vector<8x8xf32>
    %c76 = arith.constant 76 : index
    %991 = memref.load %arg4[%c76] : memref<200xf32, #tpu.memory_space<smem>>
    %992 = vector.broadcast %991 : f32 to vector<8x8xf32>
    %993 = arith.mulf %990, %992 : vector<8x8xf32>
    %994 = arith.addf %977, %993 : vector<8x8xf32>
    %c77 = arith.constant 77 : index
    %995 = memref.load %arg4[%c77] : memref<200xf32, #tpu.memory_space<smem>>
    %996 = vector.broadcast %995 : f32 to vector<8x8xf32>
    %997 = arith.mulf %990, %996 : vector<8x8xf32>
    %998 = arith.addf %981, %997 : vector<8x8xf32>
    %c78 = arith.constant 78 : index
    %999 = memref.load %arg4[%c78] : memref<200xf32, #tpu.memory_space<smem>>
    %1000 = vector.broadcast %999 : f32 to vector<8x8xf32>
    %1001 = arith.mulf %990, %1000 : vector<8x8xf32>
    %1002 = arith.addf %985, %1001 : vector<8x8xf32>
    %c79 = arith.constant 79 : index
    %1003 = memref.load %arg4[%c79] : memref<200xf32, #tpu.memory_space<smem>>
    %1004 = vector.broadcast %1003 : f32 to vector<8x8xf32>
    %1005 = arith.mulf %990, %1004 : vector<8x8xf32>
    %1006 = arith.addf %989, %1005 : vector<8x8xf32>
    %c1_180 = arith.constant 1 : index
    %c0_181 = arith.constant 0 : index
    %c2_182 = arith.constant 2 : index
    %1007 = vector.load %arg11[%c1_180, %c0_181, %c2_182] : memref<2x12x12xf32, #tpu.memory_space<vmem>>, vector<1x12x8xf32>
    %1008 = vector.shape_cast %1007 : vector<1x12x8xf32> to vector<12x8xf32>
    %1009 = vector.extract_strided_slice %1008 {offsets = [0, 0], sizes = [8, 8], strides = [1, 1]} : vector<12x8xf32> to vector<8x8xf32>
    %c84 = arith.constant 84 : index
    %1010 = memref.load %arg4[%c84] : memref<200xf32, #tpu.memory_space<smem>>
    %1011 = vector.broadcast %1010 : f32 to vector<8x8xf32>
    %1012 = arith.mulf %1009, %1011 : vector<8x8xf32>
    %1013 = arith.addf %994, %1012 : vector<8x8xf32>
    %c85 = arith.constant 85 : index
    %1014 = memref.load %arg4[%c85] : memref<200xf32, #tpu.memory_space<smem>>
    %1015 = vector.broadcast %1014 : f32 to vector<8x8xf32>
    %1016 = arith.mulf %1009, %1015 : vector<8x8xf32>
    %1017 = arith.addf %998, %1016 : vector<8x8xf32>
    %c86 = arith.constant 86 : index
    %1018 = memref.load %arg4[%c86] : memref<200xf32, #tpu.memory_space<smem>>
    %1019 = vector.broadcast %1018 : f32 to vector<8x8xf32>
    %1020 = arith.mulf %1009, %1019 : vector<8x8xf32>
    %1021 = arith.addf %1002, %1020 : vector<8x8xf32>
    %c87 = arith.constant 87 : index
    %1022 = memref.load %arg4[%c87] : memref<200xf32, #tpu.memory_space<smem>>
    %1023 = vector.broadcast %1022 : f32 to vector<8x8xf32>
    %1024 = arith.mulf %1009, %1023 : vector<8x8xf32>
    %1025 = arith.addf %1006, %1024 : vector<8x8xf32>
    %1026 = vector.extract_strided_slice %1008 {offsets = [1, 0], sizes = [8, 8], strides = [1, 1]} : vector<12x8xf32> to vector<8x8xf32>
    %c92 = arith.constant 92 : index
    %1027 = memref.load %arg4[%c92] : memref<200xf32, #tpu.memory_space<smem>>
    %1028 = vector.broadcast %1027 : f32 to vector<8x8xf32>
    %1029 = arith.mulf %1026, %1028 : vector<8x8xf32>
    %1030 = arith.addf %1013, %1029 : vector<8x8xf32>
    %c93 = arith.constant 93 : index
    %1031 = memref.load %arg4[%c93] : memref<200xf32, #tpu.memory_space<smem>>
    %1032 = vector.broadcast %1031 : f32 to vector<8x8xf32>
    %1033 = arith.mulf %1026, %1032 : vector<8x8xf32>
    %1034 = arith.addf %1017, %1033 : vector<8x8xf32>
    %c94 = arith.constant 94 : index
    %1035 = memref.load %arg4[%c94] : memref<200xf32, #tpu.memory_space<smem>>
    %1036 = vector.broadcast %1035 : f32 to vector<8x8xf32>
    %1037 = arith.mulf %1026, %1036 : vector<8x8xf32>
    %1038 = arith.addf %1021, %1037 : vector<8x8xf32>
    %c95 = arith.constant 95 : index
    %1039 = memref.load %arg4[%c95] : memref<200xf32, #tpu.memory_space<smem>>
    %1040 = vector.broadcast %1039 : f32 to vector<8x8xf32>
    %1041 = arith.mulf %1026, %1040 : vector<8x8xf32>
    %1042 = arith.addf %1025, %1041 : vector<8x8xf32>
    %1043 = vector.extract_strided_slice %1008 {offsets = [2, 0], sizes = [8, 8], strides = [1, 1]} : vector<12x8xf32> to vector<8x8xf32>
    %c100 = arith.constant 100 : index
    %1044 = memref.load %arg4[%c100] : memref<200xf32, #tpu.memory_space<smem>>
    %1045 = vector.broadcast %1044 : f32 to vector<8x8xf32>
    %1046 = arith.mulf %1043, %1045 : vector<8x8xf32>
    %1047 = arith.addf %1030, %1046 : vector<8x8xf32>
    %c101 = arith.constant 101 : index
    %1048 = memref.load %arg4[%c101] : memref<200xf32, #tpu.memory_space<smem>>
    %1049 = vector.broadcast %1048 : f32 to vector<8x8xf32>
    %1050 = arith.mulf %1043, %1049 : vector<8x8xf32>
    %1051 = arith.addf %1034, %1050 : vector<8x8xf32>
    %c102 = arith.constant 102 : index
    %1052 = memref.load %arg4[%c102] : memref<200xf32, #tpu.memory_space<smem>>
    %1053 = vector.broadcast %1052 : f32 to vector<8x8xf32>
    %1054 = arith.mulf %1043, %1053 : vector<8x8xf32>
    %1055 = arith.addf %1038, %1054 : vector<8x8xf32>
    %c103 = arith.constant 103 : index
    %1056 = memref.load %arg4[%c103] : memref<200xf32, #tpu.memory_space<smem>>
    %1057 = vector.broadcast %1056 : f32 to vector<8x8xf32>
    %1058 = arith.mulf %1043, %1057 : vector<8x8xf32>
    %1059 = arith.addf %1042, %1058 : vector<8x8xf32>
    %1060 = vector.extract_strided_slice %1008 {offsets = [3, 0], sizes = [8, 8], strides = [1, 1]} : vector<12x8xf32> to vector<8x8xf32>
    %c108 = arith.constant 108 : index
    %1061 = memref.load %arg4[%c108] : memref<200xf32, #tpu.memory_space<smem>>
    %1062 = vector.broadcast %1061 : f32 to vector<8x8xf32>
    %1063 = arith.mulf %1060, %1062 : vector<8x8xf32>
    %1064 = arith.addf %1047, %1063 : vector<8x8xf32>
    %c109 = arith.constant 109 : index
    %1065 = memref.load %arg4[%c109] : memref<200xf32, #tpu.memory_space<smem>>
    %1066 = vector.broadcast %1065 : f32 to vector<8x8xf32>
    %1067 = arith.mulf %1060, %1066 : vector<8x8xf32>
    %1068 = arith.addf %1051, %1067 : vector<8x8xf32>
    %c110 = arith.constant 110 : index
    %1069 = memref.load %arg4[%c110] : memref<200xf32, #tpu.memory_space<smem>>
    %1070 = vector.broadcast %1069 : f32 to vector<8x8xf32>
    %1071 = arith.mulf %1060, %1070 : vector<8x8xf32>
    %1072 = arith.addf %1055, %1071 : vector<8x8xf32>
    %c111 = arith.constant 111 : index
    %1073 = memref.load %arg4[%c111] : memref<200xf32, #tpu.memory_space<smem>>
    %1074 = vector.broadcast %1073 : f32 to vector<8x8xf32>
    %1075 = arith.mulf %1060, %1074 : vector<8x8xf32>
    %1076 = arith.addf %1059, %1075 : vector<8x8xf32>
    %1077 = vector.extract_strided_slice %1008 {offsets = [4, 0], sizes = [8, 8], strides = [1, 1]} : vector<12x8xf32> to vector<8x8xf32>
    %c116 = arith.constant 116 : index
    %1078 = memref.load %arg4[%c116] : memref<200xf32, #tpu.memory_space<smem>>
    %1079 = vector.broadcast %1078 : f32 to vector<8x8xf32>
    %1080 = arith.mulf %1077, %1079 : vector<8x8xf32>
    %1081 = arith.addf %1064, %1080 : vector<8x8xf32>
    %c117 = arith.constant 117 : index
    %1082 = memref.load %arg4[%c117] : memref<200xf32, #tpu.memory_space<smem>>
    %1083 = vector.broadcast %1082 : f32 to vector<8x8xf32>
    %1084 = arith.mulf %1077, %1083 : vector<8x8xf32>
    %1085 = arith.addf %1068, %1084 : vector<8x8xf32>
    %c118 = arith.constant 118 : index
    %1086 = memref.load %arg4[%c118] : memref<200xf32, #tpu.memory_space<smem>>
    %1087 = vector.broadcast %1086 : f32 to vector<8x8xf32>
    %1088 = arith.mulf %1077, %1087 : vector<8x8xf32>
    %1089 = arith.addf %1072, %1088 : vector<8x8xf32>
    %c119 = arith.constant 119 : index
    %1090 = memref.load %arg4[%c119] : memref<200xf32, #tpu.memory_space<smem>>
    %1091 = vector.broadcast %1090 : f32 to vector<8x8xf32>
    %1092 = arith.mulf %1077, %1091 : vector<8x8xf32>
    %1093 = arith.addf %1076, %1092 : vector<8x8xf32>
    %c1_183 = arith.constant 1 : index
    %c0_184 = arith.constant 0 : index
    %c3_185 = arith.constant 3 : index
    %1094 = vector.load %arg11[%c1_183, %c0_184, %c3_185] : memref<2x12x12xf32, #tpu.memory_space<vmem>>, vector<1x12x8xf32>
    %1095 = vector.shape_cast %1094 : vector<1x12x8xf32> to vector<12x8xf32>
    %1096 = vector.extract_strided_slice %1095 {offsets = [0, 0], sizes = [8, 8], strides = [1, 1]} : vector<12x8xf32> to vector<8x8xf32>
    %c124 = arith.constant 124 : index
    %1097 = memref.load %arg4[%c124] : memref<200xf32, #tpu.memory_space<smem>>
    %1098 = vector.broadcast %1097 : f32 to vector<8x8xf32>
    %1099 = arith.mulf %1096, %1098 : vector<8x8xf32>
    %1100 = arith.addf %1081, %1099 : vector<8x8xf32>
    %c125 = arith.constant 125 : index
    %1101 = memref.load %arg4[%c125] : memref<200xf32, #tpu.memory_space<smem>>
    %1102 = vector.broadcast %1101 : f32 to vector<8x8xf32>
    %1103 = arith.mulf %1096, %1102 : vector<8x8xf32>
    %1104 = arith.addf %1085, %1103 : vector<8x8xf32>
    %c126 = arith.constant 126 : index
    %1105 = memref.load %arg4[%c126] : memref<200xf32, #tpu.memory_space<smem>>
    %1106 = vector.broadcast %1105 : f32 to vector<8x8xf32>
    %1107 = arith.mulf %1096, %1106 : vector<8x8xf32>
    %1108 = arith.addf %1089, %1107 : vector<8x8xf32>
    %c127 = arith.constant 127 : index
    %1109 = memref.load %arg4[%c127] : memref<200xf32, #tpu.memory_space<smem>>
    %1110 = vector.broadcast %1109 : f32 to vector<8x8xf32>
    %1111 = arith.mulf %1096, %1110 : vector<8x8xf32>
    %1112 = arith.addf %1093, %1111 : vector<8x8xf32>
    %1113 = vector.extract_strided_slice %1095 {offsets = [1, 0], sizes = [8, 8], strides = [1, 1]} : vector<12x8xf32> to vector<8x8xf32>
    %c132 = arith.constant 132 : index
    %1114 = memref.load %arg4[%c132] : memref<200xf32, #tpu.memory_space<smem>>
    %1115 = vector.broadcast %1114 : f32 to vector<8x8xf32>
    %1116 = arith.mulf %1113, %1115 : vector<8x8xf32>
    %1117 = arith.addf %1100, %1116 : vector<8x8xf32>
    %c133 = arith.constant 133 : index
    %1118 = memref.load %arg4[%c133] : memref<200xf32, #tpu.memory_space<smem>>
    %1119 = vector.broadcast %1118 : f32 to vector<8x8xf32>
    %1120 = arith.mulf %1113, %1119 : vector<8x8xf32>
    %1121 = arith.addf %1104, %1120 : vector<8x8xf32>
    %c134 = arith.constant 134 : index
    %1122 = memref.load %arg4[%c134] : memref<200xf32, #tpu.memory_space<smem>>
    %1123 = vector.broadcast %1122 : f32 to vector<8x8xf32>
    %1124 = arith.mulf %1113, %1123 : vector<8x8xf32>
    %1125 = arith.addf %1108, %1124 : vector<8x8xf32>
    %c135 = arith.constant 135 : index
    %1126 = memref.load %arg4[%c135] : memref<200xf32, #tpu.memory_space<smem>>
    %1127 = vector.broadcast %1126 : f32 to vector<8x8xf32>
    %1128 = arith.mulf %1113, %1127 : vector<8x8xf32>
    %1129 = arith.addf %1112, %1128 : vector<8x8xf32>
    %1130 = vector.extract_strided_slice %1095 {offsets = [2, 0], sizes = [8, 8], strides = [1, 1]} : vector<12x8xf32> to vector<8x8xf32>
    %c140 = arith.constant 140 : index
    %1131 = memref.load %arg4[%c140] : memref<200xf32, #tpu.memory_space<smem>>
    %1132 = vector.broadcast %1131 : f32 to vector<8x8xf32>
    %1133 = arith.mulf %1130, %1132 : vector<8x8xf32>
    %1134 = arith.addf %1117, %1133 : vector<8x8xf32>
    %c141 = arith.constant 141 : index
    %1135 = memref.load %arg4[%c141] : memref<200xf32, #tpu.memory_space<smem>>
    %1136 = vector.broadcast %1135 : f32 to vector<8x8xf32>
    %1137 = arith.mulf %1130, %1136 : vector<8x8xf32>
    %1138 = arith.addf %1121, %1137 : vector<8x8xf32>
    %c142 = arith.constant 142 : index
    %1139 = memref.load %arg4[%c142] : memref<200xf32, #tpu.memory_space<smem>>
    %1140 = vector.broadcast %1139 : f32 to vector<8x8xf32>
    %1141 = arith.mulf %1130, %1140 : vector<8x8xf32>
    %1142 = arith.addf %1125, %1141 : vector<8x8xf32>
    %c143 = arith.constant 143 : index
    %1143 = memref.load %arg4[%c143] : memref<200xf32, #tpu.memory_space<smem>>
    %1144 = vector.broadcast %1143 : f32 to vector<8x8xf32>
    %1145 = arith.mulf %1130, %1144 : vector<8x8xf32>
    %1146 = arith.addf %1129, %1145 : vector<8x8xf32>
    %1147 = vector.extract_strided_slice %1095 {offsets = [3, 0], sizes = [8, 8], strides = [1, 1]} : vector<12x8xf32> to vector<8x8xf32>
    %c148 = arith.constant 148 : index
    %1148 = memref.load %arg4[%c148] : memref<200xf32, #tpu.memory_space<smem>>
    %1149 = vector.broadcast %1148 : f32 to vector<8x8xf32>
    %1150 = arith.mulf %1147, %1149 : vector<8x8xf32>
    %1151 = arith.addf %1134, %1150 : vector<8x8xf32>
    %c149 = arith.constant 149 : index
    %1152 = memref.load %arg4[%c149] : memref<200xf32, #tpu.memory_space<smem>>
    %1153 = vector.broadcast %1152 : f32 to vector<8x8xf32>
    %1154 = arith.mulf %1147, %1153 : vector<8x8xf32>
    %1155 = arith.addf %1138, %1154 : vector<8x8xf32>
    %c150 = arith.constant 150 : index
    %1156 = memref.load %arg4[%c150] : memref<200xf32, #tpu.memory_space<smem>>
    %1157 = vector.broadcast %1156 : f32 to vector<8x8xf32>
    %1158 = arith.mulf %1147, %1157 : vector<8x8xf32>
    %1159 = arith.addf %1142, %1158 : vector<8x8xf32>
    %c151 = arith.constant 151 : index
    %1160 = memref.load %arg4[%c151] : memref<200xf32, #tpu.memory_space<smem>>
    %1161 = vector.broadcast %1160 : f32 to vector<8x8xf32>
    %1162 = arith.mulf %1147, %1161 : vector<8x8xf32>
    %1163 = arith.addf %1146, %1162 : vector<8x8xf32>
    %1164 = vector.extract_strided_slice %1095 {offsets = [4, 0], sizes = [8, 8], strides = [1, 1]} : vector<12x8xf32> to vector<8x8xf32>
    %c156 = arith.constant 156 : index
    %1165 = memref.load %arg4[%c156] : memref<200xf32, #tpu.memory_space<smem>>
    %1166 = vector.broadcast %1165 : f32 to vector<8x8xf32>
    %1167 = arith.mulf %1164, %1166 : vector<8x8xf32>
    %1168 = arith.addf %1151, %1167 : vector<8x8xf32>
    %c157 = arith.constant 157 : index
    %1169 = memref.load %arg4[%c157] : memref<200xf32, #tpu.memory_space<smem>>
    %1170 = vector.broadcast %1169 : f32 to vector<8x8xf32>
    %1171 = arith.mulf %1164, %1170 : vector<8x8xf32>
    %1172 = arith.addf %1155, %1171 : vector<8x8xf32>
    %c158 = arith.constant 158 : index
    %1173 = memref.load %arg4[%c158] : memref<200xf32, #tpu.memory_space<smem>>
    %1174 = vector.broadcast %1173 : f32 to vector<8x8xf32>
    %1175 = arith.mulf %1164, %1174 : vector<8x8xf32>
    %1176 = arith.addf %1159, %1175 : vector<8x8xf32>
    %c159 = arith.constant 159 : index
    %1177 = memref.load %arg4[%c159] : memref<200xf32, #tpu.memory_space<smem>>
    %1178 = vector.broadcast %1177 : f32 to vector<8x8xf32>
    %1179 = arith.mulf %1164, %1178 : vector<8x8xf32>
    %1180 = arith.addf %1163, %1179 : vector<8x8xf32>
    %c1_186 = arith.constant 1 : index
    %c0_187 = arith.constant 0 : index
    %c4_188 = arith.constant 4 : index
    %1181 = vector.load %arg11[%c1_186, %c0_187, %c4_188] : memref<2x12x12xf32, #tpu.memory_space<vmem>>, vector<1x12x8xf32>
    %1182 = vector.shape_cast %1181 : vector<1x12x8xf32> to vector<12x8xf32>
    %1183 = vector.extract_strided_slice %1182 {offsets = [0, 0], sizes = [8, 8], strides = [1, 1]} : vector<12x8xf32> to vector<8x8xf32>
    %c164 = arith.constant 164 : index
    %1184 = memref.load %arg4[%c164] : memref<200xf32, #tpu.memory_space<smem>>
    %1185 = vector.broadcast %1184 : f32 to vector<8x8xf32>
    %1186 = arith.mulf %1183, %1185 : vector<8x8xf32>
    %1187 = arith.addf %1168, %1186 : vector<8x8xf32>
    %c165 = arith.constant 165 : index
    %1188 = memref.load %arg4[%c165] : memref<200xf32, #tpu.memory_space<smem>>
    %1189 = vector.broadcast %1188 : f32 to vector<8x8xf32>
    %1190 = arith.mulf %1183, %1189 : vector<8x8xf32>
    %1191 = arith.addf %1172, %1190 : vector<8x8xf32>
    %c166 = arith.constant 166 : index
    %1192 = memref.load %arg4[%c166] : memref<200xf32, #tpu.memory_space<smem>>
    %1193 = vector.broadcast %1192 : f32 to vector<8x8xf32>
    %1194 = arith.mulf %1183, %1193 : vector<8x8xf32>
    %1195 = arith.addf %1176, %1194 : vector<8x8xf32>
    %c167 = arith.constant 167 : index
    %1196 = memref.load %arg4[%c167] : memref<200xf32, #tpu.memory_space<smem>>
    %1197 = vector.broadcast %1196 : f32 to vector<8x8xf32>
    %1198 = arith.mulf %1183, %1197 : vector<8x8xf32>
    %1199 = arith.addf %1180, %1198 : vector<8x8xf32>
    %1200 = vector.extract_strided_slice %1182 {offsets = [1, 0], sizes = [8, 8], strides = [1, 1]} : vector<12x8xf32> to vector<8x8xf32>
    %c172 = arith.constant 172 : index
    %1201 = memref.load %arg4[%c172] : memref<200xf32, #tpu.memory_space<smem>>
    %1202 = vector.broadcast %1201 : f32 to vector<8x8xf32>
    %1203 = arith.mulf %1200, %1202 : vector<8x8xf32>
    %1204 = arith.addf %1187, %1203 : vector<8x8xf32>
    %c173 = arith.constant 173 : index
    %1205 = memref.load %arg4[%c173] : memref<200xf32, #tpu.memory_space<smem>>
    %1206 = vector.broadcast %1205 : f32 to vector<8x8xf32>
    %1207 = arith.mulf %1200, %1206 : vector<8x8xf32>
    %1208 = arith.addf %1191, %1207 : vector<8x8xf32>
    %c174 = arith.constant 174 : index
    %1209 = memref.load %arg4[%c174] : memref<200xf32, #tpu.memory_space<smem>>
    %1210 = vector.broadcast %1209 : f32 to vector<8x8xf32>
    %1211 = arith.mulf %1200, %1210 : vector<8x8xf32>
    %1212 = arith.addf %1195, %1211 : vector<8x8xf32>
    %c175 = arith.constant 175 : index
    %1213 = memref.load %arg4[%c175] : memref<200xf32, #tpu.memory_space<smem>>
    %1214 = vector.broadcast %1213 : f32 to vector<8x8xf32>
    %1215 = arith.mulf %1200, %1214 : vector<8x8xf32>
    %1216 = arith.addf %1199, %1215 : vector<8x8xf32>
    %1217 = vector.extract_strided_slice %1182 {offsets = [2, 0], sizes = [8, 8], strides = [1, 1]} : vector<12x8xf32> to vector<8x8xf32>
    %c180 = arith.constant 180 : index
    %1218 = memref.load %arg4[%c180] : memref<200xf32, #tpu.memory_space<smem>>
    %1219 = vector.broadcast %1218 : f32 to vector<8x8xf32>
    %1220 = arith.mulf %1217, %1219 : vector<8x8xf32>
    %1221 = arith.addf %1204, %1220 : vector<8x8xf32>
    %c181 = arith.constant 181 : index
    %1222 = memref.load %arg4[%c181] : memref<200xf32, #tpu.memory_space<smem>>
    %1223 = vector.broadcast %1222 : f32 to vector<8x8xf32>
    %1224 = arith.mulf %1217, %1223 : vector<8x8xf32>
    %1225 = arith.addf %1208, %1224 : vector<8x8xf32>
    %c182 = arith.constant 182 : index
    %1226 = memref.load %arg4[%c182] : memref<200xf32, #tpu.memory_space<smem>>
    %1227 = vector.broadcast %1226 : f32 to vector<8x8xf32>
    %1228 = arith.mulf %1217, %1227 : vector<8x8xf32>
    %1229 = arith.addf %1212, %1228 : vector<8x8xf32>
    %c183 = arith.constant 183 : index
    %1230 = memref.load %arg4[%c183] : memref<200xf32, #tpu.memory_space<smem>>
    %1231 = vector.broadcast %1230 : f32 to vector<8x8xf32>
    %1232 = arith.mulf %1217, %1231 : vector<8x8xf32>
    %1233 = arith.addf %1216, %1232 : vector<8x8xf32>
    %1234 = vector.extract_strided_slice %1182 {offsets = [3, 0], sizes = [8, 8], strides = [1, 1]} : vector<12x8xf32> to vector<8x8xf32>
    %c188 = arith.constant 188 : index
    %1235 = memref.load %arg4[%c188] : memref<200xf32, #tpu.memory_space<smem>>
    %1236 = vector.broadcast %1235 : f32 to vector<8x8xf32>
    %1237 = arith.mulf %1234, %1236 : vector<8x8xf32>
    %1238 = arith.addf %1221, %1237 : vector<8x8xf32>
    %c189 = arith.constant 189 : index
    %1239 = memref.load %arg4[%c189] : memref<200xf32, #tpu.memory_space<smem>>
    %1240 = vector.broadcast %1239 : f32 to vector<8x8xf32>
    %1241 = arith.mulf %1234, %1240 : vector<8x8xf32>
    %1242 = arith.addf %1225, %1241 : vector<8x8xf32>
    %c190 = arith.constant 190 : index
    %1243 = memref.load %arg4[%c190] : memref<200xf32, #tpu.memory_space<smem>>
    %1244 = vector.broadcast %1243 : f32 to vector<8x8xf32>
    %1245 = arith.mulf %1234, %1244 : vector<8x8xf32>
    %1246 = arith.addf %1229, %1245 : vector<8x8xf32>
    %c191 = arith.constant 191 : index
    %1247 = memref.load %arg4[%c191] : memref<200xf32, #tpu.memory_space<smem>>
    %1248 = vector.broadcast %1247 : f32 to vector<8x8xf32>
    %1249 = arith.mulf %1234, %1248 : vector<8x8xf32>
    %1250 = arith.addf %1233, %1249 : vector<8x8xf32>
    %1251 = vector.extract_strided_slice %1182 {offsets = [4, 0], sizes = [8, 8], strides = [1, 1]} : vector<12x8xf32> to vector<8x8xf32>
    %c196 = arith.constant 196 : index
    %1252 = memref.load %arg4[%c196] : memref<200xf32, #tpu.memory_space<smem>>
    %1253 = vector.broadcast %1252 : f32 to vector<8x8xf32>
    %1254 = arith.mulf %1251, %1253 : vector<8x8xf32>
    %1255 = arith.addf %1238, %1254 : vector<8x8xf32>
    %c197 = arith.constant 197 : index
    %1256 = memref.load %arg4[%c197] : memref<200xf32, #tpu.memory_space<smem>>
    %1257 = vector.broadcast %1256 : f32 to vector<8x8xf32>
    %1258 = arith.mulf %1251, %1257 : vector<8x8xf32>
    %1259 = arith.addf %1242, %1258 : vector<8x8xf32>
    %c198 = arith.constant 198 : index
    %1260 = memref.load %arg4[%c198] : memref<200xf32, #tpu.memory_space<smem>>
    %1261 = vector.broadcast %1260 : f32 to vector<8x8xf32>
    %1262 = arith.mulf %1251, %1261 : vector<8x8xf32>
    %1263 = arith.addf %1246, %1262 : vector<8x8xf32>
    %c199 = arith.constant 199 : index
    %1264 = memref.load %arg4[%c199] : memref<200xf32, #tpu.memory_space<smem>>
    %1265 = vector.broadcast %1264 : f32 to vector<8x8xf32>
    %1266 = arith.mulf %1251, %1265 : vector<8x8xf32>
    %1267 = arith.addf %1250, %1266 : vector<8x8xf32>
    %cst_189 = arith.constant 0.000000e+00 : f32
    %1268 = vector.broadcast %cst_189 : f32 to vector<8x8xf32>
    %1269 = arith.subf %1268, %1255 : vector<8x8xf32>
    %1270 = math.exp %1269 : vector<8x8xf32>
    %cst_190 = arith.constant 1.000000e+00 : f32
    %1271 = vector.broadcast %cst_190 : f32 to vector<8x8xf32>
    %1272 = arith.addf %1271, %1270 : vector<8x8xf32>
    %1273 = tpu.reciprocal %1272 {approx = true} : vector<8x8xf32> -> vector<8x8xf32>
    %1274 = arith.mulf %1272, %1273 : vector<8x8xf32>
    %cst_191 = arith.constant 2.000000e+00 : f32
    %1275 = vector.broadcast %cst_191 : f32 to vector<8x8xf32>
    %1276 = arith.subf %1275, %1274 : vector<8x8xf32>
    %1277 = arith.mulf %1273, %1276 : vector<8x8xf32>
    %cst_192 = arith.constant 0.000000e+00 : f32
    %1278 = vector.broadcast %cst_192 : f32 to vector<8x8xf32>
    %1279 = arith.subf %1278, %1259 : vector<8x8xf32>
    %1280 = math.exp %1279 : vector<8x8xf32>
    %cst_193 = arith.constant 1.000000e+00 : f32
    %1281 = vector.broadcast %cst_193 : f32 to vector<8x8xf32>
    %1282 = arith.addf %1281, %1280 : vector<8x8xf32>
    %1283 = tpu.reciprocal %1282 {approx = true} : vector<8x8xf32> -> vector<8x8xf32>
    %1284 = arith.mulf %1282, %1283 : vector<8x8xf32>
    %cst_194 = arith.constant 2.000000e+00 : f32
    %1285 = vector.broadcast %cst_194 : f32 to vector<8x8xf32>
    %1286 = arith.subf %1285, %1284 : vector<8x8xf32>
    %1287 = arith.mulf %1283, %1286 : vector<8x8xf32>
    %cst_195 = arith.constant 0.000000e+00 : f32
    %1288 = vector.broadcast %cst_195 : f32 to vector<8x8xf32>
    %1289 = arith.subf %1288, %1263 : vector<8x8xf32>
    %1290 = math.exp %1289 : vector<8x8xf32>
    %cst_196 = arith.constant 1.000000e+00 : f32
    %1291 = vector.broadcast %cst_196 : f32 to vector<8x8xf32>
    %1292 = arith.addf %1291, %1290 : vector<8x8xf32>
    %1293 = tpu.reciprocal %1292 {approx = true} : vector<8x8xf32> -> vector<8x8xf32>
    %1294 = arith.mulf %1292, %1293 : vector<8x8xf32>
    %cst_197 = arith.constant 2.000000e+00 : f32
    %1295 = vector.broadcast %cst_197 : f32 to vector<8x8xf32>
    %1296 = arith.subf %1295, %1294 : vector<8x8xf32>
    %1297 = arith.mulf %1293, %1296 : vector<8x8xf32>
    %cst_198 = arith.constant 0.000000e+00 : f32
    %1298 = vector.broadcast %cst_198 : f32 to vector<8x8xf32>
    %1299 = arith.subf %1298, %1267 : vector<8x8xf32>
    %1300 = math.exp %1299 : vector<8x8xf32>
    %cst_199 = arith.constant 1.000000e+00 : f32
    %1301 = vector.broadcast %cst_199 : f32 to vector<8x8xf32>
    %1302 = arith.addf %1301, %1300 : vector<8x8xf32>
    %1303 = tpu.reciprocal %1302 {approx = true} : vector<8x8xf32> -> vector<8x8xf32>
    %1304 = arith.mulf %1302, %1303 : vector<8x8xf32>
    %cst_200 = arith.constant 2.000000e+00 : f32
    %1305 = vector.broadcast %cst_200 : f32 to vector<8x8xf32>
    %1306 = arith.subf %1305, %1304 : vector<8x8xf32>
    %1307 = arith.mulf %1303, %1306 : vector<8x8xf32>
    %c0_201 = arith.constant 0 : index
    %c0_202 = arith.constant 0 : index
    %1308 = vector.load %arg8[%c0_201, %c0_202] : memref<1x128xf32, #tpu.memory_space<vmem>>, vector<1x128xf32>
    %1309 = vector.extract_strided_slice %1277 {offsets = [0, 0], sizes = [1, 8], strides = [1, 1]} : vector<8x8xf32> to vector<1x8xf32>
    %c0_203 = arith.constant 0 : index
    %c0_204 = arith.constant 0 : index
    %c0_205 = arith.constant 0 : index
    %c0_206 = arith.constant 0 : index
    %1310 = vector.load %arg7[%c0_203, %c0_204, %c0_205, %c0_206] : memref<8x4x8x128xf32, #tpu.memory_space<vmem>>, vector<1x1x8x128xf32>
    %1311 = vector.shape_cast %1310 : vector<1x1x8x128xf32> to vector<8x128xf32>
    %cst_207 = arith.constant dense<0.000000e+00> : vector<1x128xf32>
    %1312 = tpu.matmul %1309, %1311, %cst_207 {dimension_numbers = #tpu.dot_dimension_numbers<[1], [0], [0], [1], [0, 0, 1, 1], [], []>} : vector<1x8xf32>, vector<8x128xf32>, vector<1x128xf32> -> vector<1x128xf32>
    %1313 = arith.addf %1308, %1312 : vector<1x128xf32>
    %1314 = vector.extract_strided_slice %1277 {offsets = [1, 0], sizes = [1, 8], strides = [1, 1]} : vector<8x8xf32> to vector<1x8xf32>
    %c1_208 = arith.constant 1 : index
    %c0_209 = arith.constant 0 : index
    %c0_210 = arith.constant 0 : index
    %c0_211 = arith.constant 0 : index
    %1315 = vector.load %arg7[%c1_208, %c0_209, %c0_210, %c0_211] : memref<8x4x8x128xf32, #tpu.memory_space<vmem>>, vector<1x1x8x128xf32>
    %1316 = vector.shape_cast %1315 : vector<1x1x8x128xf32> to vector<8x128xf32>
    %cst_212 = arith.constant dense<0.000000e+00> : vector<1x128xf32>
    %1317 = tpu.matmul %1314, %1316, %cst_212 {dimension_numbers = #tpu.dot_dimension_numbers<[1], [0], [0], [1], [0, 0, 1, 1], [], []>} : vector<1x8xf32>, vector<8x128xf32>, vector<1x128xf32> -> vector<1x128xf32>
    %1318 = arith.addf %1313, %1317 : vector<1x128xf32>
    %1319 = vector.extract_strided_slice %1277 {offsets = [2, 0], sizes = [1, 8], strides = [1, 1]} : vector<8x8xf32> to vector<1x8xf32>
    %c2_213 = arith.constant 2 : index
    %c0_214 = arith.constant 0 : index
    %c0_215 = arith.constant 0 : index
    %c0_216 = arith.constant 0 : index
    %1320 = vector.load %arg7[%c2_213, %c0_214, %c0_215, %c0_216] : memref<8x4x8x128xf32, #tpu.memory_space<vmem>>, vector<1x1x8x128xf32>
    %1321 = vector.shape_cast %1320 : vector<1x1x8x128xf32> to vector<8x128xf32>
    %cst_217 = arith.constant dense<0.000000e+00> : vector<1x128xf32>
    %1322 = tpu.matmul %1319, %1321, %cst_217 {dimension_numbers = #tpu.dot_dimension_numbers<[1], [0], [0], [1], [0, 0, 1, 1], [], []>} : vector<1x8xf32>, vector<8x128xf32>, vector<1x128xf32> -> vector<1x128xf32>
    %1323 = arith.addf %1318, %1322 : vector<1x128xf32>
    %1324 = vector.extract_strided_slice %1277 {offsets = [3, 0], sizes = [1, 8], strides = [1, 1]} : vector<8x8xf32> to vector<1x8xf32>
    %c3_218 = arith.constant 3 : index
    %c0_219 = arith.constant 0 : index
    %c0_220 = arith.constant 0 : index
    %c0_221 = arith.constant 0 : index
    %1325 = vector.load %arg7[%c3_218, %c0_219, %c0_220, %c0_221] : memref<8x4x8x128xf32, #tpu.memory_space<vmem>>, vector<1x1x8x128xf32>
    %1326 = vector.shape_cast %1325 : vector<1x1x8x128xf32> to vector<8x128xf32>
    %cst_222 = arith.constant dense<0.000000e+00> : vector<1x128xf32>
    %1327 = tpu.matmul %1324, %1326, %cst_222 {dimension_numbers = #tpu.dot_dimension_numbers<[1], [0], [0], [1], [0, 0, 1, 1], [], []>} : vector<1x8xf32>, vector<8x128xf32>, vector<1x128xf32> -> vector<1x128xf32>
    %1328 = arith.addf %1323, %1327 : vector<1x128xf32>
    %1329 = vector.extract_strided_slice %1277 {offsets = [4, 0], sizes = [1, 8], strides = [1, 1]} : vector<8x8xf32> to vector<1x8xf32>
    %c4_223 = arith.constant 4 : index
    %c0_224 = arith.constant 0 : index
    %c0_225 = arith.constant 0 : index
    %c0_226 = arith.constant 0 : index
    %1330 = vector.load %arg7[%c4_223, %c0_224, %c0_225, %c0_226] : memref<8x4x8x128xf32, #tpu.memory_space<vmem>>, vector<1x1x8x128xf32>
    %1331 = vector.shape_cast %1330 : vector<1x1x8x128xf32> to vector<8x128xf32>
    %cst_227 = arith.constant dense<0.000000e+00> : vector<1x128xf32>
    %1332 = tpu.matmul %1329, %1331, %cst_227 {dimension_numbers = #tpu.dot_dimension_numbers<[1], [0], [0], [1], [0, 0, 1, 1], [], []>} : vector<1x8xf32>, vector<8x128xf32>, vector<1x128xf32> -> vector<1x128xf32>
    %1333 = arith.addf %1328, %1332 : vector<1x128xf32>
    %1334 = vector.extract_strided_slice %1277 {offsets = [5, 0], sizes = [1, 8], strides = [1, 1]} : vector<8x8xf32> to vector<1x8xf32>
    %c5_228 = arith.constant 5 : index
    %c0_229 = arith.constant 0 : index
    %c0_230 = arith.constant 0 : index
    %c0_231 = arith.constant 0 : index
    %1335 = vector.load %arg7[%c5_228, %c0_229, %c0_230, %c0_231] : memref<8x4x8x128xf32, #tpu.memory_space<vmem>>, vector<1x1x8x128xf32>
    %1336 = vector.shape_cast %1335 : vector<1x1x8x128xf32> to vector<8x128xf32>
    %cst_232 = arith.constant dense<0.000000e+00> : vector<1x128xf32>
    %1337 = tpu.matmul %1334, %1336, %cst_232 {dimension_numbers = #tpu.dot_dimension_numbers<[1], [0], [0], [1], [0, 0, 1, 1], [], []>} : vector<1x8xf32>, vector<8x128xf32>, vector<1x128xf32> -> vector<1x128xf32>
    %1338 = arith.addf %1333, %1337 : vector<1x128xf32>
    %1339 = vector.extract_strided_slice %1277 {offsets = [6, 0], sizes = [1, 8], strides = [1, 1]} : vector<8x8xf32> to vector<1x8xf32>
    %c6_233 = arith.constant 6 : index
    %c0_234 = arith.constant 0 : index
    %c0_235 = arith.constant 0 : index
    %c0_236 = arith.constant 0 : index
    %1340 = vector.load %arg7[%c6_233, %c0_234, %c0_235, %c0_236] : memref<8x4x8x128xf32, #tpu.memory_space<vmem>>, vector<1x1x8x128xf32>
    %1341 = vector.shape_cast %1340 : vector<1x1x8x128xf32> to vector<8x128xf32>
    %cst_237 = arith.constant dense<0.000000e+00> : vector<1x128xf32>
    %1342 = tpu.matmul %1339, %1341, %cst_237 {dimension_numbers = #tpu.dot_dimension_numbers<[1], [0], [0], [1], [0, 0, 1, 1], [], []>} : vector<1x8xf32>, vector<8x128xf32>, vector<1x128xf32> -> vector<1x128xf32>
    %1343 = arith.addf %1338, %1342 : vector<1x128xf32>
    %1344 = vector.extract_strided_slice %1277 {offsets = [7, 0], sizes = [1, 8], strides = [1, 1]} : vector<8x8xf32> to vector<1x8xf32>
    %c7_238 = arith.constant 7 : index
    %c0_239 = arith.constant 0 : index
    %c0_240 = arith.constant 0 : index
    %c0_241 = arith.constant 0 : index
    %1345 = vector.load %arg7[%c7_238, %c0_239, %c0_240, %c0_241] : memref<8x4x8x128xf32, #tpu.memory_space<vmem>>, vector<1x1x8x128xf32>
    %1346 = vector.shape_cast %1345 : vector<1x1x8x128xf32> to vector<8x128xf32>
    %cst_242 = arith.constant dense<0.000000e+00> : vector<1x128xf32>
    %1347 = tpu.matmul %1344, %1346, %cst_242 {dimension_numbers = #tpu.dot_dimension_numbers<[1], [0], [0], [1], [0, 0, 1, 1], [], []>} : vector<1x8xf32>, vector<8x128xf32>, vector<1x128xf32> -> vector<1x128xf32>
    %1348 = arith.addf %1343, %1347 : vector<1x128xf32>
    %1349 = vector.extract_strided_slice %1287 {offsets = [0, 0], sizes = [1, 8], strides = [1, 1]} : vector<8x8xf32> to vector<1x8xf32>
    %c0_243 = arith.constant 0 : index
    %c1_244 = arith.constant 1 : index
    %c0_245 = arith.constant 0 : index
    %c0_246 = arith.constant 0 : index
    %1350 = vector.load %arg7[%c0_243, %c1_244, %c0_245, %c0_246] : memref<8x4x8x128xf32, #tpu.memory_space<vmem>>, vector<1x1x8x128xf32>
    %1351 = vector.shape_cast %1350 : vector<1x1x8x128xf32> to vector<8x128xf32>
    %cst_247 = arith.constant dense<0.000000e+00> : vector<1x128xf32>
    %1352 = tpu.matmul %1349, %1351, %cst_247 {dimension_numbers = #tpu.dot_dimension_numbers<[1], [0], [0], [1], [0, 0, 1, 1], [], []>} : vector<1x8xf32>, vector<8x128xf32>, vector<1x128xf32> -> vector<1x128xf32>
    %1353 = arith.addf %1348, %1352 : vector<1x128xf32>
    %1354 = vector.extract_strided_slice %1287 {offsets = [1, 0], sizes = [1, 8], strides = [1, 1]} : vector<8x8xf32> to vector<1x8xf32>
    %c1_248 = arith.constant 1 : index
    %c1_249 = arith.constant 1 : index
    %c0_250 = arith.constant 0 : index
    %c0_251 = arith.constant 0 : index
    %1355 = vector.load %arg7[%c1_248, %c1_249, %c0_250, %c0_251] : memref<8x4x8x128xf32, #tpu.memory_space<vmem>>, vector<1x1x8x128xf32>
    %1356 = vector.shape_cast %1355 : vector<1x1x8x128xf32> to vector<8x128xf32>
    %cst_252 = arith.constant dense<0.000000e+00> : vector<1x128xf32>
    %1357 = tpu.matmul %1354, %1356, %cst_252 {dimension_numbers = #tpu.dot_dimension_numbers<[1], [0], [0], [1], [0, 0, 1, 1], [], []>} : vector<1x8xf32>, vector<8x128xf32>, vector<1x128xf32> -> vector<1x128xf32>
    %1358 = arith.addf %1353, %1357 : vector<1x128xf32>
    %1359 = vector.extract_strided_slice %1287 {offsets = [2, 0], sizes = [1, 8], strides = [1, 1]} : vector<8x8xf32> to vector<1x8xf32>
    %c2_253 = arith.constant 2 : index
    %c1_254 = arith.constant 1 : index
    %c0_255 = arith.constant 0 : index
    %c0_256 = arith.constant 0 : index
    %1360 = vector.load %arg7[%c2_253, %c1_254, %c0_255, %c0_256] : memref<8x4x8x128xf32, #tpu.memory_space<vmem>>, vector<1x1x8x128xf32>
    %1361 = vector.shape_cast %1360 : vector<1x1x8x128xf32> to vector<8x128xf32>
    %cst_257 = arith.constant dense<0.000000e+00> : vector<1x128xf32>
    %1362 = tpu.matmul %1359, %1361, %cst_257 {dimension_numbers = #tpu.dot_dimension_numbers<[1], [0], [0], [1], [0, 0, 1, 1], [], []>} : vector<1x8xf32>, vector<8x128xf32>, vector<1x128xf32> -> vector<1x128xf32>
    %1363 = arith.addf %1358, %1362 : vector<1x128xf32>
    %1364 = vector.extract_strided_slice %1287 {offsets = [3, 0], sizes = [1, 8], strides = [1, 1]} : vector<8x8xf32> to vector<1x8xf32>
    %c3_258 = arith.constant 3 : index
    %c1_259 = arith.constant 1 : index
    %c0_260 = arith.constant 0 : index
    %c0_261 = arith.constant 0 : index
    %1365 = vector.load %arg7[%c3_258, %c1_259, %c0_260, %c0_261] : memref<8x4x8x128xf32, #tpu.memory_space<vmem>>, vector<1x1x8x128xf32>
    %1366 = vector.shape_cast %1365 : vector<1x1x8x128xf32> to vector<8x128xf32>
    %cst_262 = arith.constant dense<0.000000e+00> : vector<1x128xf32>
    %1367 = tpu.matmul %1364, %1366, %cst_262 {dimension_numbers = #tpu.dot_dimension_numbers<[1], [0], [0], [1], [0, 0, 1, 1], [], []>} : vector<1x8xf32>, vector<8x128xf32>, vector<1x128xf32> -> vector<1x128xf32>
    %1368 = arith.addf %1363, %1367 : vector<1x128xf32>
    %1369 = vector.extract_strided_slice %1287 {offsets = [4, 0], sizes = [1, 8], strides = [1, 1]} : vector<8x8xf32> to vector<1x8xf32>
    %c4_263 = arith.constant 4 : index
    %c1_264 = arith.constant 1 : index
    %c0_265 = arith.constant 0 : index
    %c0_266 = arith.constant 0 : index
    %1370 = vector.load %arg7[%c4_263, %c1_264, %c0_265, %c0_266] : memref<8x4x8x128xf32, #tpu.memory_space<vmem>>, vector<1x1x8x128xf32>
    %1371 = vector.shape_cast %1370 : vector<1x1x8x128xf32> to vector<8x128xf32>
    %cst_267 = arith.constant dense<0.000000e+00> : vector<1x128xf32>
    %1372 = tpu.matmul %1369, %1371, %cst_267 {dimension_numbers = #tpu.dot_dimension_numbers<[1], [0], [0], [1], [0, 0, 1, 1], [], []>} : vector<1x8xf32>, vector<8x128xf32>, vector<1x128xf32> -> vector<1x128xf32>
    %1373 = arith.addf %1368, %1372 : vector<1x128xf32>
    %1374 = vector.extract_strided_slice %1287 {offsets = [5, 0], sizes = [1, 8], strides = [1, 1]} : vector<8x8xf32> to vector<1x8xf32>
    %c5_268 = arith.constant 5 : index
    %c1_269 = arith.constant 1 : index
    %c0_270 = arith.constant 0 : index
    %c0_271 = arith.constant 0 : index
    %1375 = vector.load %arg7[%c5_268, %c1_269, %c0_270, %c0_271] : memref<8x4x8x128xf32, #tpu.memory_space<vmem>>, vector<1x1x8x128xf32>
    %1376 = vector.shape_cast %1375 : vector<1x1x8x128xf32> to vector<8x128xf32>
    %cst_272 = arith.constant dense<0.000000e+00> : vector<1x128xf32>
    %1377 = tpu.matmul %1374, %1376, %cst_272 {dimension_numbers = #tpu.dot_dimension_numbers<[1], [0], [0], [1], [0, 0, 1, 1], [], []>} : vector<1x8xf32>, vector<8x128xf32>, vector<1x128xf32> -> vector<1x128xf32>
    %1378 = arith.addf %1373, %1377 : vector<1x128xf32>
    %1379 = vector.extract_strided_slice %1287 {offsets = [6, 0], sizes = [1, 8], strides = [1, 1]} : vector<8x8xf32> to vector<1x8xf32>
    %c6_273 = arith.constant 6 : index
    %c1_274 = arith.constant 1 : index
    %c0_275 = arith.constant 0 : index
    %c0_276 = arith.constant 0 : index
    %1380 = vector.load %arg7[%c6_273, %c1_274, %c0_275, %c0_276] : memref<8x4x8x128xf32, #tpu.memory_space<vmem>>, vector<1x1x8x128xf32>
    %1381 = vector.shape_cast %1380 : vector<1x1x8x128xf32> to vector<8x128xf32>
    %cst_277 = arith.constant dense<0.000000e+00> : vector<1x128xf32>
    %1382 = tpu.matmul %1379, %1381, %cst_277 {dimension_numbers = #tpu.dot_dimension_numbers<[1], [0], [0], [1], [0, 0, 1, 1], [], []>} : vector<1x8xf32>, vector<8x128xf32>, vector<1x128xf32> -> vector<1x128xf32>
    %1383 = arith.addf %1378, %1382 : vector<1x128xf32>
    %1384 = vector.extract_strided_slice %1287 {offsets = [7, 0], sizes = [1, 8], strides = [1, 1]} : vector<8x8xf32> to vector<1x8xf32>
    %c7_278 = arith.constant 7 : index
    %c1_279 = arith.constant 1 : index
    %c0_280 = arith.constant 0 : index
    %c0_281 = arith.constant 0 : index
    %1385 = vector.load %arg7[%c7_278, %c1_279, %c0_280, %c0_281] : memref<8x4x8x128xf32, #tpu.memory_space<vmem>>, vector<1x1x8x128xf32>
    %1386 = vector.shape_cast %1385 : vector<1x1x8x128xf32> to vector<8x128xf32>
    %cst_282 = arith.constant dense<0.000000e+00> : vector<1x128xf32>
    %1387 = tpu.matmul %1384, %1386, %cst_282 {dimension_numbers = #tpu.dot_dimension_numbers<[1], [0], [0], [1], [0, 0, 1, 1], [], []>} : vector<1x8xf32>, vector<8x128xf32>, vector<1x128xf32> -> vector<1x128xf32>
    %1388 = arith.addf %1383, %1387 : vector<1x128xf32>
    %1389 = vector.extract_strided_slice %1297 {offsets = [0, 0], sizes = [1, 8], strides = [1, 1]} : vector<8x8xf32> to vector<1x8xf32>
    %c0_283 = arith.constant 0 : index
    %c2_284 = arith.constant 2 : index
    %c0_285 = arith.constant 0 : index
    %c0_286 = arith.constant 0 : index
    %1390 = vector.load %arg7[%c0_283, %c2_284, %c0_285, %c0_286] : memref<8x4x8x128xf32, #tpu.memory_space<vmem>>, vector<1x1x8x128xf32>
    %1391 = vector.shape_cast %1390 : vector<1x1x8x128xf32> to vector<8x128xf32>
    %cst_287 = arith.constant dense<0.000000e+00> : vector<1x128xf32>
    %1392 = tpu.matmul %1389, %1391, %cst_287 {dimension_numbers = #tpu.dot_dimension_numbers<[1], [0], [0], [1], [0, 0, 1, 1], [], []>} : vector<1x8xf32>, vector<8x128xf32>, vector<1x128xf32> -> vector<1x128xf32>
    %1393 = arith.addf %1388, %1392 : vector<1x128xf32>
    %1394 = vector.extract_strided_slice %1297 {offsets = [1, 0], sizes = [1, 8], strides = [1, 1]} : vector<8x8xf32> to vector<1x8xf32>
    %c1_288 = arith.constant 1 : index
    %c2_289 = arith.constant 2 : index
    %c0_290 = arith.constant 0 : index
    %c0_291 = arith.constant 0 : index
    %1395 = vector.load %arg7[%c1_288, %c2_289, %c0_290, %c0_291] : memref<8x4x8x128xf32, #tpu.memory_space<vmem>>, vector<1x1x8x128xf32>
    %1396 = vector.shape_cast %1395 : vector<1x1x8x128xf32> to vector<8x128xf32>
    %cst_292 = arith.constant dense<0.000000e+00> : vector<1x128xf32>
    %1397 = tpu.matmul %1394, %1396, %cst_292 {dimension_numbers = #tpu.dot_dimension_numbers<[1], [0], [0], [1], [0, 0, 1, 1], [], []>} : vector<1x8xf32>, vector<8x128xf32>, vector<1x128xf32> -> vector<1x128xf32>
    %1398 = arith.addf %1393, %1397 : vector<1x128xf32>
    %1399 = vector.extract_strided_slice %1297 {offsets = [2, 0], sizes = [1, 8], strides = [1, 1]} : vector<8x8xf32> to vector<1x8xf32>
    %c2_293 = arith.constant 2 : index
    %c2_294 = arith.constant 2 : index
    %c0_295 = arith.constant 0 : index
    %c0_296 = arith.constant 0 : index
    %1400 = vector.load %arg7[%c2_293, %c2_294, %c0_295, %c0_296] : memref<8x4x8x128xf32, #tpu.memory_space<vmem>>, vector<1x1x8x128xf32>
    %1401 = vector.shape_cast %1400 : vector<1x1x8x128xf32> to vector<8x128xf32>
    %cst_297 = arith.constant dense<0.000000e+00> : vector<1x128xf32>
    %1402 = tpu.matmul %1399, %1401, %cst_297 {dimension_numbers = #tpu.dot_dimension_numbers<[1], [0], [0], [1], [0, 0, 1, 1], [], []>} : vector<1x8xf32>, vector<8x128xf32>, vector<1x128xf32> -> vector<1x128xf32>
    %1403 = arith.addf %1398, %1402 : vector<1x128xf32>
    %1404 = vector.extract_strided_slice %1297 {offsets = [3, 0], sizes = [1, 8], strides = [1, 1]} : vector<8x8xf32> to vector<1x8xf32>
    %c3_298 = arith.constant 3 : index
    %c2_299 = arith.constant 2 : index
    %c0_300 = arith.constant 0 : index
    %c0_301 = arith.constant 0 : index
    %1405 = vector.load %arg7[%c3_298, %c2_299, %c0_300, %c0_301] : memref<8x4x8x128xf32, #tpu.memory_space<vmem>>, vector<1x1x8x128xf32>
    %1406 = vector.shape_cast %1405 : vector<1x1x8x128xf32> to vector<8x128xf32>
    %cst_302 = arith.constant dense<0.000000e+00> : vector<1x128xf32>
    %1407 = tpu.matmul %1404, %1406, %cst_302 {dimension_numbers = #tpu.dot_dimension_numbers<[1], [0], [0], [1], [0, 0, 1, 1], [], []>} : vector<1x8xf32>, vector<8x128xf32>, vector<1x128xf32> -> vector<1x128xf32>
    %1408 = arith.addf %1403, %1407 : vector<1x128xf32>
    %1409 = vector.extract_strided_slice %1297 {offsets = [4, 0], sizes = [1, 8], strides = [1, 1]} : vector<8x8xf32> to vector<1x8xf32>
    %c4_303 = arith.constant 4 : index
    %c2_304 = arith.constant 2 : index
    %c0_305 = arith.constant 0 : index
    %c0_306 = arith.constant 0 : index
    %1410 = vector.load %arg7[%c4_303, %c2_304, %c0_305, %c0_306] : memref<8x4x8x128xf32, #tpu.memory_space<vmem>>, vector<1x1x8x128xf32>
    %1411 = vector.shape_cast %1410 : vector<1x1x8x128xf32> to vector<8x128xf32>
    %cst_307 = arith.constant dense<0.000000e+00> : vector<1x128xf32>
    %1412 = tpu.matmul %1409, %1411, %cst_307 {dimension_numbers = #tpu.dot_dimension_numbers<[1], [0], [0], [1], [0, 0, 1, 1], [], []>} : vector<1x8xf32>, vector<8x128xf32>, vector<1x128xf32> -> vector<1x128xf32>
    %1413 = arith.addf %1408, %1412 : vector<1x128xf32>
    %1414 = vector.extract_strided_slice %1297 {offsets = [5, 0], sizes = [1, 8], strides = [1, 1]} : vector<8x8xf32> to vector<1x8xf32>
    %c5_308 = arith.constant 5 : index
    %c2_309 = arith.constant 2 : index
    %c0_310 = arith.constant 0 : index
    %c0_311 = arith.constant 0 : index
    %1415 = vector.load %arg7[%c5_308, %c2_309, %c0_310, %c0_311] : memref<8x4x8x128xf32, #tpu.memory_space<vmem>>, vector<1x1x8x128xf32>
    %1416 = vector.shape_cast %1415 : vector<1x1x8x128xf32> to vector<8x128xf32>
    %cst_312 = arith.constant dense<0.000000e+00> : vector<1x128xf32>
    %1417 = tpu.matmul %1414, %1416, %cst_312 {dimension_numbers = #tpu.dot_dimension_numbers<[1], [0], [0], [1], [0, 0, 1, 1], [], []>} : vector<1x8xf32>, vector<8x128xf32>, vector<1x128xf32> -> vector<1x128xf32>
    %1418 = arith.addf %1413, %1417 : vector<1x128xf32>
    %1419 = vector.extract_strided_slice %1297 {offsets = [6, 0], sizes = [1, 8], strides = [1, 1]} : vector<8x8xf32> to vector<1x8xf32>
    %c6_313 = arith.constant 6 : index
    %c2_314 = arith.constant 2 : index
    %c0_315 = arith.constant 0 : index
    %c0_316 = arith.constant 0 : index
    %1420 = vector.load %arg7[%c6_313, %c2_314, %c0_315, %c0_316] : memref<8x4x8x128xf32, #tpu.memory_space<vmem>>, vector<1x1x8x128xf32>
    %1421 = vector.shape_cast %1420 : vector<1x1x8x128xf32> to vector<8x128xf32>
    %cst_317 = arith.constant dense<0.000000e+00> : vector<1x128xf32>
    %1422 = tpu.matmul %1419, %1421, %cst_317 {dimension_numbers = #tpu.dot_dimension_numbers<[1], [0], [0], [1], [0, 0, 1, 1], [], []>} : vector<1x8xf32>, vector<8x128xf32>, vector<1x128xf32> -> vector<1x128xf32>
    %1423 = arith.addf %1418, %1422 : vector<1x128xf32>
    %1424 = vector.extract_strided_slice %1297 {offsets = [7, 0], sizes = [1, 8], strides = [1, 1]} : vector<8x8xf32> to vector<1x8xf32>
    %c7_318 = arith.constant 7 : index
    %c2_319 = arith.constant 2 : index
    %c0_320 = arith.constant 0 : index
    %c0_321 = arith.constant 0 : index
    %1425 = vector.load %arg7[%c7_318, %c2_319, %c0_320, %c0_321] : memref<8x4x8x128xf32, #tpu.memory_space<vmem>>, vector<1x1x8x128xf32>
    %1426 = vector.shape_cast %1425 : vector<1x1x8x128xf32> to vector<8x128xf32>
    %cst_322 = arith.constant dense<0.000000e+00> : vector<1x128xf32>
    %1427 = tpu.matmul %1424, %1426, %cst_322 {dimension_numbers = #tpu.dot_dimension_numbers<[1], [0], [0], [1], [0, 0, 1, 1], [], []>} : vector<1x8xf32>, vector<8x128xf32>, vector<1x128xf32> -> vector<1x128xf32>
    %1428 = arith.addf %1423, %1427 : vector<1x128xf32>
    %1429 = vector.extract_strided_slice %1307 {offsets = [0, 0], sizes = [1, 8], strides = [1, 1]} : vector<8x8xf32> to vector<1x8xf32>
    %c0_323 = arith.constant 0 : index
    %c3_324 = arith.constant 3 : index
    %c0_325 = arith.constant 0 : index
    %c0_326 = arith.constant 0 : index
    %1430 = vector.load %arg7[%c0_323, %c3_324, %c0_325, %c0_326] : memref<8x4x8x128xf32, #tpu.memory_space<vmem>>, vector<1x1x8x128xf32>
    %1431 = vector.shape_cast %1430 : vector<1x1x8x128xf32> to vector<8x128xf32>
    %cst_327 = arith.constant dense<0.000000e+00> : vector<1x128xf32>
    %1432 = tpu.matmul %1429, %1431, %cst_327 {dimension_numbers = #tpu.dot_dimension_numbers<[1], [0], [0], [1], [0, 0, 1, 1], [], []>} : vector<1x8xf32>, vector<8x128xf32>, vector<1x128xf32> -> vector<1x128xf32>
    %1433 = arith.addf %1428, %1432 : vector<1x128xf32>
    %1434 = vector.extract_strided_slice %1307 {offsets = [1, 0], sizes = [1, 8], strides = [1, 1]} : vector<8x8xf32> to vector<1x8xf32>
    %c1_328 = arith.constant 1 : index
    %c3_329 = arith.constant 3 : index
    %c0_330 = arith.constant 0 : index
    %c0_331 = arith.constant 0 : index
    %1435 = vector.load %arg7[%c1_328, %c3_329, %c0_330, %c0_331] : memref<8x4x8x128xf32, #tpu.memory_space<vmem>>, vector<1x1x8x128xf32>
    %1436 = vector.shape_cast %1435 : vector<1x1x8x128xf32> to vector<8x128xf32>
    %cst_332 = arith.constant dense<0.000000e+00> : vector<1x128xf32>
    %1437 = tpu.matmul %1434, %1436, %cst_332 {dimension_numbers = #tpu.dot_dimension_numbers<[1], [0], [0], [1], [0, 0, 1, 1], [], []>} : vector<1x8xf32>, vector<8x128xf32>, vector<1x128xf32> -> vector<1x128xf32>
    %1438 = arith.addf %1433, %1437 : vector<1x128xf32>
    %1439 = vector.extract_strided_slice %1307 {offsets = [2, 0], sizes = [1, 8], strides = [1, 1]} : vector<8x8xf32> to vector<1x8xf32>
    %c2_333 = arith.constant 2 : index
    %c3_334 = arith.constant 3 : index
    %c0_335 = arith.constant 0 : index
    %c0_336 = arith.constant 0 : index
    %1440 = vector.load %arg7[%c2_333, %c3_334, %c0_335, %c0_336] : memref<8x4x8x128xf32, #tpu.memory_space<vmem>>, vector<1x1x8x128xf32>
    %1441 = vector.shape_cast %1440 : vector<1x1x8x128xf32> to vector<8x128xf32>
    %cst_337 = arith.constant dense<0.000000e+00> : vector<1x128xf32>
    %1442 = tpu.matmul %1439, %1441, %cst_337 {dimension_numbers = #tpu.dot_dimension_numbers<[1], [0], [0], [1], [0, 0, 1, 1], [], []>} : vector<1x8xf32>, vector<8x128xf32>, vector<1x128xf32> -> vector<1x128xf32>
    %1443 = arith.addf %1438, %1442 : vector<1x128xf32>
    %1444 = vector.extract_strided_slice %1307 {offsets = [3, 0], sizes = [1, 8], strides = [1, 1]} : vector<8x8xf32> to vector<1x8xf32>
    %c3_338 = arith.constant 3 : index
    %c3_339 = arith.constant 3 : index
    %c0_340 = arith.constant 0 : index
    %c0_341 = arith.constant 0 : index
    %1445 = vector.load %arg7[%c3_338, %c3_339, %c0_340, %c0_341] : memref<8x4x8x128xf32, #tpu.memory_space<vmem>>, vector<1x1x8x128xf32>
    %1446 = vector.shape_cast %1445 : vector<1x1x8x128xf32> to vector<8x128xf32>
    %cst_342 = arith.constant dense<0.000000e+00> : vector<1x128xf32>
    %1447 = tpu.matmul %1444, %1446, %cst_342 {dimension_numbers = #tpu.dot_dimension_numbers<[1], [0], [0], [1], [0, 0, 1, 1], [], []>} : vector<1x8xf32>, vector<8x128xf32>, vector<1x128xf32> -> vector<1x128xf32>
    %1448 = arith.addf %1443, %1447 : vector<1x128xf32>
    %1449 = vector.extract_strided_slice %1307 {offsets = [4, 0], sizes = [1, 8], strides = [1, 1]} : vector<8x8xf32> to vector<1x8xf32>
    %c4_343 = arith.constant 4 : index
    %c3_344 = arith.constant 3 : index
    %c0_345 = arith.constant 0 : index
    %c0_346 = arith.constant 0 : index
    %1450 = vector.load %arg7[%c4_343, %c3_344, %c0_345, %c0_346] : memref<8x4x8x128xf32, #tpu.memory_space<vmem>>, vector<1x1x8x128xf32>
    %1451 = vector.shape_cast %1450 : vector<1x1x8x128xf32> to vector<8x128xf32>
    %cst_347 = arith.constant dense<0.000000e+00> : vector<1x128xf32>
    %1452 = tpu.matmul %1449, %1451, %cst_347 {dimension_numbers = #tpu.dot_dimension_numbers<[1], [0], [0], [1], [0, 0, 1, 1], [], []>} : vector<1x8xf32>, vector<8x128xf32>, vector<1x128xf32> -> vector<1x128xf32>
    %1453 = arith.addf %1448, %1452 : vector<1x128xf32>
    %1454 = vector.extract_strided_slice %1307 {offsets = [5, 0], sizes = [1, 8], strides = [1, 1]} : vector<8x8xf32> to vector<1x8xf32>
    %c5_348 = arith.constant 5 : index
    %c3_349 = arith.constant 3 : index
    %c0_350 = arith.constant 0 : index
    %c0_351 = arith.constant 0 : index
    %1455 = vector.load %arg7[%c5_348, %c3_349, %c0_350, %c0_351] : memref<8x4x8x128xf32, #tpu.memory_space<vmem>>, vector<1x1x8x128xf32>
    %1456 = vector.shape_cast %1455 : vector<1x1x8x128xf32> to vector<8x128xf32>
    %cst_352 = arith.constant dense<0.000000e+00> : vector<1x128xf32>
    %1457 = tpu.matmul %1454, %1456, %cst_352 {dimension_numbers = #tpu.dot_dimension_numbers<[1], [0], [0], [1], [0, 0, 1, 1], [], []>} : vector<1x8xf32>, vector<8x128xf32>, vector<1x128xf32> -> vector<1x128xf32>
    %1458 = arith.addf %1453, %1457 : vector<1x128xf32>
    %1459 = vector.extract_strided_slice %1307 {offsets = [6, 0], sizes = [1, 8], strides = [1, 1]} : vector<8x8xf32> to vector<1x8xf32>
    %c6_353 = arith.constant 6 : index
    %c3_354 = arith.constant 3 : index
    %c0_355 = arith.constant 0 : index
    %c0_356 = arith.constant 0 : index
    %1460 = vector.load %arg7[%c6_353, %c3_354, %c0_355, %c0_356] : memref<8x4x8x128xf32, #tpu.memory_space<vmem>>, vector<1x1x8x128xf32>
    %1461 = vector.shape_cast %1460 : vector<1x1x8x128xf32> to vector<8x128xf32>
    %cst_357 = arith.constant dense<0.000000e+00> : vector<1x128xf32>
    %1462 = tpu.matmul %1459, %1461, %cst_357 {dimension_numbers = #tpu.dot_dimension_numbers<[1], [0], [0], [1], [0, 0, 1, 1], [], []>} : vector<1x8xf32>, vector<8x128xf32>, vector<1x128xf32> -> vector<1x128xf32>
    %1463 = arith.addf %1458, %1462 : vector<1x128xf32>
    %1464 = vector.extract_strided_slice %1307 {offsets = [7, 0], sizes = [1, 8], strides = [1, 1]} : vector<8x8xf32> to vector<1x8xf32>
    %c7_358 = arith.constant 7 : index
    %c3_359 = arith.constant 3 : index
    %c0_360 = arith.constant 0 : index
    %c0_361 = arith.constant 0 : index
    %1465 = vector.load %arg7[%c7_358, %c3_359, %c0_360, %c0_361] : memref<8x4x8x128xf32, #tpu.memory_space<vmem>>, vector<1x1x8x128xf32>
    %1466 = vector.shape_cast %1465 : vector<1x1x8x128xf32> to vector<8x128xf32>
    %cst_362 = arith.constant dense<0.000000e+00> : vector<1x128xf32>
    %1467 = tpu.matmul %1464, %1466, %cst_362 {dimension_numbers = #tpu.dot_dimension_numbers<[1], [0], [0], [1], [0, 0, 1, 1], [], []>} : vector<1x8xf32>, vector<8x128xf32>, vector<1x128xf32> -> vector<1x128xf32>
    %1468 = arith.addf %1463, %1467 : vector<1x128xf32>
    %c0_363 = arith.constant 0 : index
    %c0_364 = arith.constant 0 : index
    %c0_365 = arith.constant 0 : index
    %1469 = vector.load %arg9[%c0_363, %c0_364, %c0_365] : memref<1x1x128xf32, #tpu.memory_space<vmem>>, vector<1x1x128xf32>
    %1470 = vector.shape_cast %1469 : vector<1x1x128xf32> to vector<1x128xf32>
    %1471 = vector.shape_cast %1468 : vector<1x128xf32> to vector<1x1x128xf32>
    tpu.vector_store %arg9[%c0_363, %c0_364, %c0_365], %1471 {strides = array<i32>} : memref<1x1x128xf32, #tpu.memory_space<vmem>>, vector<1x1x128xf32>,
    return
  }
  func.func @transform_0(%arg0: i32) -> (i32, i32, i32, i32) {
    %c0_i32 = arith.constant 0 : i32
    %c0_i32_0 = arith.constant 0 : i32
    %c0_i32_1 = arith.constant 0 : i32
    %c0_i32_2 = arith.constant 0 : i32
    return %arg0, %c0_i32, %c0_i32_0, %c0_i32_1 : i32, i32, i32, i32
  }
  func.func @transform_1(%arg0: i32) -> i32 {
    %c0_i32 = arith.constant 0 : i32
    %c0_i32_0 = arith.constant 0 : i32
    return %c0_i32 : i32
  }
  func.func @transform_2(%arg0: i32) -> i32 {
    %c0_i32 = arith.constant 0 : i32
    %c0_i32_0 = arith.constant 0 : i32
    return %c0_i32 : i32
  }
  func.func @transform_3(%arg0: i32) -> i32 {
    %c0_i32 = arith.constant 0 : i32
    %c0_i32_0 = arith.constant 0 : i32
    return %c0_i32 : i32
  }
  func.func @transform_4(%arg0: i32) -> i32 {
    %c0_i32 = arith.constant 0 : i32
    %c0_i32_0 = arith.constant 0 : i32
    return %c0_i32 : i32
  }
  func.func @transform_5(%arg0: i32) -> (i32, i32, i32) {
    %c0_i32 = arith.constant 0 : i32
    %c0_i32_0 = arith.constant 0 : i32
    %c0_i32_1 = arith.constant 0 : i32
    %c0_i32_2 = arith.constant 0 : i32
    return %c0_i32, %c0_i32_0, %c0_i32_1 : i32, i32, i32
  }
  func.func @transform_6(%arg0: i32) -> (i32, i32, i32, i32) {
    %c0_i32 = arith.constant 0 : i32
    %c0_i32_0 = arith.constant 0 : i32
    %c0_i32_1 = arith.constant 0 : i32
    %c0_i32_2 = arith.constant 0 : i32
    %c0_i32_3 = arith.constant 0 : i32
    return %c0_i32, %c0_i32_0, %c0_i32_1, %c0_i32_2 : i32, i32, i32, i32
  }
  func.func @transform_7(%arg0: i32) -> (i32, i32) {
    %c0_i32 = arith.constant 0 : i32
    %c0_i32_0 = arith.constant 0 : i32
    %c0_i32_1 = arith.constant 0 : i32
    return %c0_i32, %c0_i32_0 : i32, i32
  }
  func.func @transform_8(%arg0: i32) -> (i32, i32, i32) {
    %c0_i32 = arith.constant 0 : i32
    %c0_i32_0 = arith.constant 0 : i32
    %c0_i32_1 = arith.constant 0 : i32
    return %arg0, %c0_i32, %c0_i32_0 : i32, i32, i32
  }
}

</mosaic_0001>

<bundles_post_ra>
// kernel: my_cnn_forward.1
= control target key start
LH: loop header
LB: loop body
LE: loop exit
PB: predicated region body
PF: predicated region fallthrough
CT: control target
= control target key end

     0   :  { %s10615_s0 = inlined_call_operand.vmem [shape: f32[2,4,18,18], index: 0, kind: input, shape index: {}]   ;;  %s10616_s1 = inlined_call_operand.vmem [shape: f32[72], index: 1, kind: input, shape index: {}]   ;;  %s10617_s2 = inlined_call_operand.vmem [shape: f32[2], index: 2, kind: input, shape index: {}]   ;;  %s10618_s3 = inlined_call_operand.vmem [shape: f32[200], index: 3, kind: input, shape index: {}]   ;;  %s10619_s4 = inlined_call_operand.vmem [shape: f32[4], index: 4, kind: input, shape index: {}]   ;;  %s10620_s5 = inlined_call_operand.vmem [shape: f32[2,16,8], index: 5, kind: input, shape index: {}]   ;;  %s10621_s6 = inlined_call_operand.vmem [shape: f32[8,4,8,128], index: 6, kind: input, shape index: {}]   ;;  %s10622_s7 = inlined_call_operand.vmem [shape: f32[1,128], index: 7, kind: input, shape index: {}]   ;;  %s10623_s8 = inlined_call_operand.hbm [shape: f32[2,1,128], index: 8, kind: output, shape index: {}]  }
   0x1   :  { %10655 = sst [smem:[#allocation69_spill]] %s10615_s0 }
   0x2   :  { %10656 = sst [smem:[#allocation70_spill]] %s10616_s1 }
   0x3   :  { %10657 = sst [smem:[#allocation71_spill]] %s10617_s2 }
   0x4   :  { %10658 = sst [smem:[#allocation72_spill]] %s10618_s3 }
   0x5   :  { %10659 = sst [smem:[#allocation73_spill]] %s10619_s4 }
   0x6   :  { %10660 = sst [smem:[#allocation74_spill]] %s10620_s5 }
   0x7   :  { %10661 = sst [smem:[#allocation75_spill]] %s10621_s6 }
   0x8   :  { %10662 = sst [smem:[#allocation76_spill]] %s10622_s7 }
   0x9   :  { %10663 = sst [smem:[#allocation77_spill]] %s10623_s8 }
   0xa   :  { %13 = vsyncpa [#allocation6], 0 }
   0xb   :  { %14 = vsyncpa [#allocation8], 0 }
   0xc   :  { %15 = vsyncpa [#allocation11], 0 }
   0xd   :  { %16 = vsyncpa [#allocation5], 0 }
   0xe   :  { %18 = vsyncpa [#allocation5 + $0x1], 0  ;;  %s7683_s27 = smov 0   ;;  %s7685_s28 = smov 0  }
   0xf   :  { %s7687_s29 = smov 0   ;;  %s7689_s30 = smov 0  }
  0x10 LB: > { %10664 = sst [smem:[#allocation17_spill]] %s7612_s27  ;;  %s7704_s9 = sadd.s32 4294967295, %s7624_s30   ;;  %s7624_s30 = sphi %s7689_s30, %s10860_s30   ;;  %s7620_s29 = sphi %s7687_s29, %s10863_s29   ;;  %s7616_s28 = sphi %s7685_s28, %s10862_s28   ;;  %s7612_s27 = sphi %s7683_s27, %s10861_s27  }
  0x11   : > { %10665 = sst [smem:[#allocation18_spill]] %s7616_s28  ;;  %s6690_s10 = sadd.s32 4294967294, %s7624_s30  }
  0x12   : > { %10666 = sst [smem:[#allocation19_spill]] %s7620_s29  ;;  %s7708_s11 = sadd.s32 1, %s7624_s30  }
  0x13   : > { %10667 = sst [smem:[#allocation20_spill]] %s7624_s30  ;;  %s204_s12 = sadd.s32 1, %s7620_s29 }
  0x14   : > { %10668 = sst [smem:[#allocation21_spill]] %s7704_s9  ;;  %s201_s13 = ssub.s32 %s7624_s30, %s7708_s11 }
  0x15   : > { %10669 = sst [smem:[#allocation22_spill]] %s7708_s11  ;;  %p214_p0 = scmp.ne.s32.totalorder %s7620_s29, %s7616_s28 }
  0x16   : > { %p202_p1 = scmp.eq.s32.totalorder %s201_s13, 0  ;;  %p215_p2 = scmp.eq.s32.totalorder %s7704_s9, 1 }
  0x17   : > { %p220_p3 = scmp.ne.s32.totalorder %s7616_s28, %s7612_s27  ;;  %p221_p4 = scmp.eq.s32.totalorder %s6690_s10, 1 }
  0x18   : > { %s7719_s14 = scalar_select %p202_p1, %s7620_s29, %s204_s12  }
  0x19   : > { %p7721_p5 = por %p215_p2, %p214_p0  ;;  %p7725_p6 = por %p221_p4, %p220_p3 }
  0x1a   : > { %10670 = sst [smem:[#allocation23_spill]] %s7719_s14  ;;  %p6691_p7 = scmp.ge.s32.totalorder %s7624_s30, 1 }
  0x1b   : > { %s10671_s15 = scalar_select %p7721_p5, 1, 0 }
  0x1c   : > { %s10673_s16 = scalar_select %p7725_p6, 1, 0 }
  0x1d   : > { %10672 = sst [smem:[#allocation24_spill]] %s10671_s15  ;;  %p228_p8 = scmp.lt.s32.totalorder %s7624_s30, 3 }
  0x1e   : > { %10674 = sst [smem:[#allocation25_spill]] %s10673_s16  ;;  %p10624_p9 = scmp.eq.s32.totalorder %s7704_s9, 0 }
  0x1f   : > { %p7732_p10 = pnand %p6691_p7, %p228_p8  ;;  %s10676_s2 = sld [smem:[#allocation71_spill]] }
  0x20   : > { %s10677_s1 = sld [smem:[#allocation70_spill]]  ;;  %s10679_s3 = sld [smem:[#allocation72_spill]] }
  0x21   : > { %s10675_s17 = scalar_select %p7732_p10, 1, 0 }
  0x22   : > { %p7393_p11 = pneg %p7732_p10  ;;  %s10680_s4 = sld [smem:[#allocation73_spill]] }
  0x24   : > { %p7746_p12 = pnand %p10624_p9, %p7393_p11 }
  0x25   : > { %s252_s20 = sshll.u32 %s10676_s2, 4  ;;  %s253_s20 = int_to_ptr.vmem [resolvable:$true] %s252_s20 }
  0x26   : > { %s241_s23 = sshll.u32 %s10677_s1, 4  ;;  %s263_s10 = sshll.u32 %s10679_s3, 4  ;;  %s242_s23 = int_to_ptr.vmem [resolvable:$true] %s241_s23  ;;  %s7753_s10 = int_to_ptr.vmem [resolvable:$true] %s263_s10 }
  0x27   : > { %s7490_s19 = scalar_lea.vmem %s253_s20, 16  ;;  %p7492_p0 = pneg %p7746_p12 }
  0x28   : > { %s274_s18 = sshll.u32 %s10680_s4, 4  ;;  %p7491_p13 = scmp.ne.s32.totalorder %s253_s20, %s7490_s19  ;;  %s275_s18 = int_to_ptr.vmem [resolvable:$true] %s274_s18 }
  0x29   : > { %p7498_p3 = scmp.lt.s32.totalorder %s253_s20, %s253_s20  ;;  %p7499_p4 = scmp.lt.s32.totalorder %s7490_s19, %s7490_s19 }
  0x2a   : > { %p7493_p1 = pnand %p7492_p0, %p7491_p13 }
  0x2b   : > { %p7500_p7 = por %p7499_p4, %p7498_p3 }
  0x2c   : > { %p7494_p2 = pneg %p7493_p1 }
  0x2e   : > { %p7501_p8 = pnand %p7500_p7, %p7494_p2 }
  0x30   : > { %7504 = shalt.err (!%p7501_p8)
}
  0x31   : > { %s7626_s21 = smov [#allocation7]   ;;  %s7505_s22 = scalar_lea.vmem %s242_s23, 16 }
  0x32   : > { %7399 = dma.vmem_to_smem (!%p7746_p12), %s253_s20, 16, %s7626_s21, [#allocation8]  }
  0x33   : > { %p7506_p11 = scmp.ne.s32.totalorder %s242_s23, %s7505_s22  ;;  %p7513_p5 = scmp.lt.s32.totalorder %s242_s23, %s242_s23 }
  0x34   : > { %p7514_p10 = scmp.lt.s32.totalorder %s7505_s22, %s7505_s22 }
  0x35   : > { %p7508_p9 = pnand %p7506_p11, %p7492_p0 }
  0x36   : > { %p7515_p13 = por %p7514_p10, %p7513_p5 }
  0x37   : > { %p7509_p6 = pneg %p7508_p9 }
  0x39   : > { %p7516_p1 = pnand %p7515_p13, %p7509_p6 }
  0x3b   : > { %7519 = shalt.err (!%p7516_p1)
}
  0x3c   : > { %s7627_s25 = smov [#allocation4]   ;;  %s7520_s20 = scalar_lea.vmem %s7753_s10, 32 }
  0x3d   : > { %7396 = dma.vmem_to_smem (!%p7746_p12), %s242_s23, 16, %s7627_s25, [#allocation6]  }
  0x3e   : > { %p7521_p2 = scmp.ne.s32.totalorder %s7753_s10, %s7520_s20  ;;  %p7528_p9 = scmp.lt.s32.totalorder %s7753_s10, %s7753_s10 }
  0x3f   : > { %p7529_p7 = scmp.lt.s32.totalorder %s7520_s20, %s7520_s20 }
  0x40   : > { %p7523_p3 = pnand %p7521_p2, %p7492_p0 }
  0x41   : > { %p7530_p5 = por %p7529_p7, %p7528_p9 }
  0x42   : > { %p7524_p4 = pneg %p7523_p3 }
  0x44   : > { %p7531_p6 = pnand %p7530_p5, %p7524_p4 }
  0x46   : > { %7534 = shalt.err (!%p7531_p6)
}
  0x47   : > { %s7628_s26 = smov [#allocation9]   ;;  %s7535_s13 = scalar_lea.vmem %s275_s18, 16 }
  0x48   : > { %7402 = dma.vmem_to_smem (!%p7746_p12), %s7753_s10, 32, %s7628_s26, [#allocation8]  }
  0x49   : > { %p7536_p10 = scmp.ne.s32.totalorder %s275_s18, %s7535_s13  ;;  %p7543_p13 = scmp.lt.s32.totalorder %s275_s18, %s275_s18 }
  0x4a   : > { %p7544_p1 = scmp.lt.s32.totalorder %s7535_s13, %s7535_s13 }
  0x4b   : > { %p7538_p8 = pnand %p7536_p10, %p7492_p0 }
  0x4c   : > { %p7545_p2 = por %p7544_p1, %p7543_p13 }
  0x4d   : > { %p7539_p11 = pneg %p7538_p8 }
  0x4f   : > { %p7546_p3 = pnand %p7545_p2, %p7539_p11 }
  0x51   : > { %7549 = shalt.err (!%p7546_p3)
}
  0x52   : > { %s7629_s19 = smov [#allocation10]   ;;  %p10681_p4 = scmp.ne.s32.totalorder %s10675_s17, 0 }
  0x53   : > { %7405 = dma.vmem_to_smem (!%p7746_p12), %s275_s18, 16, %s7629_s19, [#allocation11]  }
  0x54   : > { %304 = sbr.rel (%p10681_p4) target bundleno = 1541 (0x605), region = 52 }
  0x5b   : > { %p10682_p9 = scmp.eq.s32.totalorder %s7704_s9, 0 }
  0x5d   : > { %7595 = dma.done.wait (%p10682_p9), [#allocation6], 16   ;;  %p10683_p7 = pmov %p10682_p9 }
  0x5f   : > { %7597 = vsyncadd (%p10683_p7), [#allocation6], 4294967280  ;;  %p10684_p0 = pmov %p10683_p7 }
  0x61   : > { %7599 = dma.done.wait (%p10684_p0), [#allocation8], 48   ;;  %p10685_p5 = pmov %p10684_p0 }
  0x62   : > { %p10686_p6 = pmov %p10684_p0 }
  0x63   : > { %7601 = vsyncadd (%p10685_p5), [#allocation8], 4294967248 }
  0x64   : > { %7603 = dma.done.wait (%p10686_p6), [#allocation11], 16   ;;  %p10687_p12 = pmov %p10684_p0 }
  0x66   : > { %7605 = vsyncadd (%p10687_p12), [#allocation11], 4294967280 }
  0x67   : > { %322 = sfence }
  0x68   : > { %p350_p10 = scmp.lt.s32.totalorder %s7704_s9, 1  ;;  %s6710_s17 = sld [smem:[#allocation4 + $0x19]]  ;;  %vm384_vm0 = vcmask 1046528   ;;  %vm419_vm1 = vcmask 1045504   ;;  %vm1596_vm2 = vcmask 130048   ;;  %vm1775_vm3 = vcmask 97280  }
  0x69   : > { %s6709_s24 = sld [smem:[#allocation4 + $0x18]]  ;;  %s6712_s21 = sld [smem:[#allocation4 + $0x21]]  ;;  %vm1777_vm4 = vcmask 93184   ;;  %vm1785_vm5 = vcmask 80912   ;;  %vm1917_vm6 = vcmask 1044480   ;;  %vm1962_vm7 = vcmask 1043456  }
  0x6a   : > { %s351_s10 = scalar_select %p350_p10, %s7704_s9, 1  ;;  %vm7636_vm8 = vmmov 0   ;;  %vm4149_vm9 = vcmask 64512  }
  0x6b   : > { %s6711_s18 = sld [smem:[#allocation4 + $0x20]]  ;;  %s10688_s0 = sld [smem:[#allocation69_spill]] }
  0x6c   : > { %s7374_s22 = smul.u32 96, %s351_s10  ;;  %s6713_s25 = sld [smem:[#allocation4 + $0x28]] }
  0x6d   : > { %s6714_s23 = sld [smem:[#allocation4 + $0x29]]  ;;  %s10632_s13 = smov 127  }
  0x6e   : > { %v461_v2 = vstv %s6710_s17  ;;  %s6715_s19 = sld [smem:[#allocation4 + $0x30]]  ;;  %s6718_s10 = sld [smem:[#allocation4 + $0x39]] }
  0x6f   : > { %v447_v3 = vstv %s6709_s24  ;;  %v496_v10 = vstv %s6712_s21  ;;  %s6717_s17 = sld [smem:[#allocation4 + $0x38]]  ;;  %s6716_s24 = sld [smem:[#allocation4 + $0x31]] }
  0x70   : > { %s6720_s21 = sld [smem:[#allocation4 + $0x41]]  ;;  %s6733_s20 = sld [smem:[#allocation4 + $0x23]] }
  0x71   : > { %s7808_s12 = scalar_lea.vmem %s10688_s0, %s7374_s22  ;;  %v475_v9 = vstv %s6711_s18  ;;  %s6719_s18 = sld [smem:[#allocation4 + $0x40]] }
  0x72   : > { %v7811_v0 = vld [vmem:[%s7808_s12] sm:$0xff]  ;;  %v7814_v1 = vld [vmem:[%s7808_s12 + $0x8] sm:$0xff]  ;;  %v7819_v6 = vld [vmem:[%s7808_s12 + $0x10] sm:$0x3]  ;;  %v517_v14 = vstv %s6713_s25  ;;  %s10636_s22 = smov 126   ;;  %s6732_s25 = sld [smem:[#allocation4 + $0x22]] }
  0x73   : > { %v462_v4 = vmul.f32 %v461_v2, %v7811_v0  ;;  %v448_v5 = vmul.f32 %v447_v3, %v7811_v0  ;;  %v463_v7 = vmul.f32 %v461_v2, %v7814_v1  ;;  %v449_v8 = vmul.f32 %v447_v3, %v7814_v1  ;;  %s7874_s26 = sld [smem:[#allocation4 + $0x1a]]  ;;  %s10699_s5 = sld [smem:[#allocation74_spill]] }
  0x74   : > { %v477_v11 = vmul.f32 %v475_v9, %v7814_v1  ;;  %v478_v12 = vmul.f32 %v475_v9, %v7819_v6  ;;  %v476_v13 = vmul.f32 %v475_v9, %v7811_v0  ;;  %v498_v15 = vmul.f32 %v496_v10, %v7814_v1  ;;  %s9125_s0 = sld [smem:[#allocation9 + $0xb1]]  ;;  %s9138_s1 = sld [smem:[#allocation9]] }
  0x75   : > { %466 = vrot.lane.b32.xlu1 %v462_v4, %s10632_s13  ;;  %452 = vrot.lane.b32.xlu0 %v448_v5, %s10632_s13  ;;  %v499_v16 = vmul.f32 %v496_v10, %v7819_v6  ;;  %v497_v17 = vmul.f32 %v496_v10, %v7811_v0  ;;  %v519_v21 = vmul.f32 %v517_v14, %v7814_v1  ;;  %v538_v29 = vstv %s6714_s23  ;;  %s6734_s23 = sld [smem:[#allocation4 + $0x2a]]  ;;  %s10731_s2 = smov 125  }
  0x76   : > { %v483_v18 = vrot.slane %v477_v11, 1  ;;  %v485_v19 = vrot.slane %v478_v12, 1  ;;  %v482_v20 = vrot.slane %v476_v13, 1  ;;  %v504_v22 = vrot.slane %v498_v15, 1  ;;  %s9143_s3 = sld [smem:[#allocation9 + $0x96]]  ;;  %s9145_s4 = sld [smem:[#allocation9 + $0x8]] }
  0x77   : > { %v506_v23 = vrot.slane %v499_v16, 1  ;;  %v503_v24 = vrot.slane %v497_v17, 1  ;;  %v520_v25 = vmul.f32 %v517_v14, %v7819_v6  ;;  %v518_v28 = vmul.f32 %v517_v14, %v7811_v0  ;;  %s9177_s14 = sld [smem:[#allocation9 + $0x18]]  ;;  %s9192_s11 = sld [smem:[#allocation9 + $0x9]] }
  0x78   : > { %v486_v26 = vsel %vm384_vm0, %v483_v18, %v485_v19  ;;  %v484_v27 = vsel %vm384_vm0, %v482_v20, %v483_v18  ;;  %v525_v32 = vrot.slane %v519_v21, 2  ;;  %v540_v35 = vmul.f32 %v538_v29, %v7814_v1  ;;  %v7886_v19 = vld [vmem:[%s7808_s12 + $0x28] sm:$0x3]  ;;  %s9186_s29 = sld [smem:[#allocation9 + $0x20]]  ;;  %s9198_s16 = sld [smem:[#allocation10 + $0x1]] }
  0x79   : > { %468 = vrot.lane.b32.xlu1 %v463_v7, %s10632_s13  ;;  %454 = vrot.lane.b32.xlu0 %v449_v8, %s10632_s13  ;;  %v507_v30 = vsel %vm384_vm0, %v504_v22, %v506_v23  ;;  %v505_v31 = vsel %vm384_vm0, %v503_v24, %v504_v22  ;;  %v527_v33 = vrot.slane %v520_v25, 2  ;;  %v524_v34 = vrot.slane %v518_v28, 2  ;;  %s9201_s27 = sld [smem:[#allocation9 + $0x94]]  ;;  %s9211_s30 = sld [smem:[#allocation9 + $0x19]] }
  0x7a   : > { %v541_v36 = vmul.f32 %v538_v29, %v7819_v6  ;;  %v539_v37 = vmul.f32 %v538_v29, %v7811_v0  ;;  %v546_v40 = vrot.slane %v540_v35, 2  ;;  %v559_v45 = vstv %s6715_s19  ;;  %s7883_s19 = sld [smem:[#allocation4 + $0x1b]]  ;;  %s9222_s8 = sld [smem:[#allocation9 + $0x21]] }
  0x7b   : > { %v528_v38 = vsel %vm419_vm1, %v525_v32, %v527_v33  ;;  %v526_v39 = vsel %vm419_vm1, %v524_v34, %v525_v32  ;;  %v587_v46 = vstv %s6717_s17  ;;  %v561_v47 = vmul.f32 %v559_v45, %v7814_v1  ;;  %s7901_s17 = sld [smem:[#allocation4 + $0x2b]]  ;;  %s9232_s15 = sld [smem:[#allocation9 + $0xa6]] }
  0x7c   : > { %v548_v41 = vrot.slane %v541_v36, 2  ;;  %v545_v42 = vrot.slane %v539_v37, 2  ;;  %v560_v48 = vmul.f32 %v559_v45, %v7811_v0  ;;  %v573_v49 = vstv %s6716_s24  ;;  %s7904_s24 = sld [smem:[#allocation7 + $0x1]]  ;;  %s9234_s7 = sld [smem:[#allocation9 + $0xaa]] }
  0x7d   : > { %489 = vrot.lane.b32.xlu1 %v486_v26, %s10632_s13  ;;  %487 = vrot.lane.b32.xlu0 %v484_v27, %s10632_s13  ;;  %v608_v50 = vstv %s6718_s10  ;;  %v589_v51 = vmul.f32 %v587_v46, %v7814_v1  ;;  %v590_v52 = vmul.f32 %v587_v46, %v7819_v6  ;;  %v588_v53 = vmul.f32 %v587_v46, %v7811_v0  ;;  %v7893_v26 = vld [vmem:[%s7808_s12 + $0x20] sm:$0xff]  ;;  %s7906_s10 = sld [smem:[#allocation4 + $0x1]]  ;;  %s9251_s9 = sld [smem:[#allocation9 + $0x13]] }
  0x7e   : > { %v549_v43 = vsel %vm419_vm1, %v546_v40, %v548_v41  ;;  %v547_v44 = vsel %vm419_vm1, %v545_v42, %v546_v40  ;;  %v575_v54 = vmul.f32 %v573_v49, %v7814_v1  ;;  %v610_v55 = vmul.f32 %v608_v50, %v7814_v1  ;;  %v7896_v27 = vld [vmem:[%s7808_s12 + $0x18] sm:$0xff]  ;;  %s9259_s28 = sld [smem:[#allocation9 + $0xb6]]  ;;  %s9261_s6 = sld [smem:[#allocation9 + $0xb2]] }
  0x7f   : > { %v574_v56 = vmul.f32 %v573_v49, %v7811_v0  ;;  %v611_v57 = vmul.f32 %v608_v50, %v7819_v6  ;;  %v609_v58 = vmul.f32 %v608_v50, %v7811_v0  ;;  %v595_v59 = vrot.slane %v589_v51, 1 }
  0x80   : > { %v597_v60 = vrot.slane %v590_v52, 1  ;;  %v594_v61 = vrot.slane %v588_v53, 1  ;;  %v629_v62 = vstv %s6719_s18  ;;  %v616_v63 = vrot.slane %v610_v55, 1  ;;  %s7913_s18 = sld [smem:[#allocation4 + $0x9]] }
  0x81   : > { %510 = vrot.lane.b32.xlu1 %v507_v30, %s10632_s13  ;;  %508 = vrot.lane.b32.xlu0 %v505_v31, %s10632_s13  ;;  %v618_v2 = vrot.slane %v611_v57, 1  ;;  %v631_v3 = vmul.f32 %v629_v62, %v7814_v1  ;;  %v632_v4 = vmul.f32 %v629_v62, %v7819_v6  ;;  %v630_v5 = vmul.f32 %v629_v62, %v7811_v0 }
  0x82   : > { %v598_v7 = vsel %vm384_vm0, %v595_v59, %v597_v60  ;;  %v596_v8 = vsel %vm384_vm0, %v594_v61, %v595_v59  ;;  %v615_v9 = vrot.slane %v609_v58, 1  ;;  %v650_v10 = vstv %s6720_s21  ;;  %s7915_s21 = sld [smem:[#allocation4 + $0x11]] }
  0x83   : > { %v619_v11 = vsel %vm384_vm0, %v616_v63, %v618_v2  ;;  %v637_v12 = vrot.slane %v631_v3, 2  ;;  %v639_v13 = vrot.slane %v632_v4, 2  ;;  %v636_v14 = vrot.slane %v630_v5, 2 }
  0x84   : > { %v617_v15 = vsel %vm384_vm0, %v615_v9, %v616_v63  ;;  %v652_v16 = vmul.f32 %v650_v10, %v7814_v1  ;;  %v653_v17 = vmul.f32 %v650_v10, %v7819_v6  ;;  %v651_v18 = vmul.f32 %v650_v10, %v7811_v0 }
  0x85   : > { %531 = vrot.lane.b32.xlu1 %v528_v38, %s10632_s13  ;;  %529 = vrot.lane.b32.xlu0 %v526_v39, %s10632_s13  ;;  %v783_v20 = vstv %s6732_s25  ;;  %v640_v21 = vsel %vm419_vm1, %v637_v12, %v639_v13  ;;  %v638_v22 = vsel %vm419_vm1, %v636_v14, %v637_v12  ;;  %v804_v28 = vstv %s6733_s20  ;;  %s7919_s25 = sld [smem:[#allocation7]] }
  0x86   : > { %v658_v23 = vrot.slane %v652_v16, 2  ;;  %v660_v24 = vrot.slane %v653_v17, 2  ;;  %v657_v25 = vrot.slane %v651_v18, 2  ;;  %v785_v29 = vmul.f32 %v7893_v26, %v783_v20  ;;  %s7922_s20 = sld [smem:[#allocation4]] }
  0x87   : > { %v786_v30 = vmul.f32 %v7886_v19, %v783_v20  ;;  %v784_v31 = vmul.f32 %v7896_v27, %v783_v20  ;;  %v755_v32 = vstv %s7874_s26  ;;  %v806_v33 = vmul.f32 %v7893_v26, %v804_v28  ;;  %s7928_s26 = sld [smem:[#allocation4 + $0x8]] }
  0x88   : > { %v807_v34 = vmul.f32 %v7886_v19, %v804_v28  ;;  %v805_v35 = vmul.f32 %v7896_v27, %v804_v28  ;;  %v825_v36 = vstv %s6734_s23  ;;  %v661_v37 = vsel %vm419_vm1, %v658_v23, %v660_v24  ;;  %s7933_s23 = sld [smem:[#allocation4 + $0x10]] }
  0x89   : > { %552 = vrot.lane.b32.xlu1 %v549_v43, %s10632_s13  ;;  %550 = vrot.lane.b32.xlu0 %v547_v44, %s10632_s13  ;;  %v659_v38 = vsel %vm419_vm1, %v657_v25, %v658_v23  ;;  %v769_v39 = vstv %s7883_s19  ;;  %v791_v40 = vrot.slane %v785_v29, 1  ;;  %v793_v41 = vrot.slane %v786_v30, 1  ;;  %s7979_s19 = sld [smem:[#allocation4 + $0x32]] }
  0x8a   : > { %v790_v42 = vrot.slane %v784_v31, 1  ;;  %v757_v43 = vmul.f32 %v7893_v26, %v755_v32  ;;  %v7926_v44 = vmul.f32 %v7893_v26, %v825_v36  ;;  %v756_v45 = vmul.f32 %v7896_v27, %v755_v32 }
  0x8b   : > { %v812_v46 = vrot.slane %v806_v33, 1  ;;  %v771_v49 = vmul.f32 %v7893_v26, %v769_v39  ;;  %v770_v50 = vmul.f32 %v7896_v27, %v769_v39  ;;  %v794_v51 = vsel %vm384_vm0, %v791_v40, %v793_v41 }
  0x8c   : > { %v792_v52 = vsel %vm384_vm0, %v790_v42, %v791_v40  ;;  %v828_v53 = vmul.f32 %v7886_v19, %v825_v36  ;;  %v833_v55 = vrot.slane %v7926_v44, 2  ;;  %v359_v57 = vstv %s7904_s24  ;;  %s7992_s24 = sld [smem:[#allocation4 + $0x33]] }
  0x8d   : > { %566 = vrot.lane.b32.xlu1 %v561_v47, %s10636_s22  ;;  %564 = vrot.lane.b32.xlu0 %v560_v48, %s10636_s22  ;;  %v814_v47 = vrot.slane %v807_v34, 1  ;;  %v811_v48 = vrot.slane %v805_v35, 1  ;;  %v371_v58 = vstv %s7906_s10  ;;  %v395_v61 = vstv %s7913_s18  ;;  %s6739_s10 = sld [smem:[#allocation4 + $0x3b]]  ;;  %s6740_s18 = sld [smem:[#allocation4 + $0x42]] }
  0x8e   : > { %v430_v62 = vstv %s7915_s21  ;;  %v397_v63 = vmul.f32 %v395_v61, %v7814_v1  ;;  %v372_v3 = vmul.f32 %v371_v58, %v7811_v0  ;;  %v396_v4 = vmul.f32 %v395_v61, %v7811_v0  ;;  %s6741_s21 = sld [smem:[#allocation4 + $0x43]] }
  0x8f   : > { %v815_v59 = vsel %vm384_vm0, %v812_v46, %v814_v47  ;;  %v813_v60 = vsel %vm384_vm0, %v811_v48, %v812_v46  ;;  %v7953_v2 = vmul.f32 %v430_v62, %v7814_v1  ;;  %v835_v5 = vrot.slane %v828_v53, 2 }
  0x90   : > { %v365_v9 = vstv %s7922_s20  ;;  %v403_v10 = vrot.slane %v397_v63, 1  ;;  %v374_v12 = vadd.f32 %v372_v3, %v359_v57  ;;  %v402_v13 = vrot.slane %v396_v4, 1  ;;  %s6753_s20 = sld [smem:[#allocation4 + $0x24]] }
  0x91   : > { %580 = vrot.lane.b32.xlu1 %v575_v54, %s10636_s22  ;;  %578 = vrot.lane.b32.xlu0 %v574_v56, %s10636_s22  ;;  %v826_v54 = vmul.f32 %v7896_v27, %v825_v36  ;;  %v846_v56 = vstv %s7901_s17  ;;  %v412_v16 = vstv %s7933_s23  ;;  %v366_v17 = vmul.f32 %v365_v9, %v7811_v0  ;;  %s7985_s17 = sld [smem:[#allocation4 + $0x3a]]  ;;  %s6754_s23 = sld [smem:[#allocation4 + $0x25]] }
  0x92   : > { %v404_v18 = vsel %vm384_vm0, %v402_v13, %v403_v10  ;;  %v413_v28 = vmul.f32 %v412_v16, %v7811_v0  ;;  %v848_v33 = vmul.f32 %v7893_v26, %v846_v56  ;;  %v849_v34 = vmul.f32 %v7886_v19, %v846_v56 }
  0x93   : > { %v409_v23 = vadd.f32 %v404_v18, %v374_v12  ;;  %v832_v29 = vrot.slane %v826_v54, 2  ;;  %v398_v39 = vmul.f32 %v395_v61, %v7819_v6  ;;  %v836_v40 = vsel %vm419_vm1, %v833_v55, %v835_v5 }
  0x94   : > { %v420_v36 = vrot.slane %v413_v28, 2  ;;  %v433_v46 = vmul.f32 %v430_v62, %v7819_v6  ;;  %v854_v47 = vrot.slane %v848_v33, 2  ;;  %v856_v48 = vrot.slane %v849_v34, 2 }
  0x95   : > { %601 = vrot.lane.b32.xlu1 %v598_v7, %s10636_s22  ;;  %599 = vrot.lane.b32.xlu0 %v596_v8, %s10636_s22  ;;  %v431_v7 = vmul.f32 %v430_v62, %v7811_v0  ;;  %v356_v8 = vstv %s7919_s25  ;;  %v867_v63 = vstv %s7979_s19  ;;  %s6751_s25 = sld [smem:[#allocation4 + $0x1c]] }
  0x96   : > { %v368_v25 = vadd.f32 %v366_v17, %v356_v8  ;;  %v440_v53 = vrot.slane %v433_v46, 2  ;;  %v857_v61 = vsel %vm419_vm1, %v854_v47, %v856_v48  ;;  %v869_v5 = vmul.f32 %v7893_v26, %v867_v63  ;;  %s6755_s19 = sld [smem:[#allocation4 + $0x2c]] }
  0x97   : > { %v437_v14 = vrot.slane %v431_v7, 2  ;;  %v868_v7 = vmul.f32 %v7896_v27, %v867_v63  ;;  %v916_v13 = vstv %s6739_s10  ;;  %v958_v34 = vstv %s6741_s21  ;;  %s6760_s10 = sld [smem:[#allocation4 + $0x3d]]  ;;  %s6761_s21 = sld [smem:[#allocation4 + $0x44]] }
  0x98   : > { %v919_v17 = vmul.f32 %v7886_v19, %v916_v13  ;;  %v917_v18 = vmul.f32 %v7896_v27, %v916_v13 }
  0x99   : > { %622 = vrot.lane.b32.xlu1 %v619_v11, %s10636_s22  ;;  %620 = vrot.lane.b32.xlu0 %v617_v15, %s10636_s22  ;;  %v438_v11 = vrot.slane %v7953_v2, 2  ;;  %v377_v15 = vstv %s7928_s26  ;;  %s6752_s26 = sld [smem:[#allocation4 + $0x1d]] }
  0x9a   : > { %v379_v20 = vmul.f32 %v377_v15, %v7814_v1  ;;  %v380_v54 = vmul.f32 %v377_v15, %v7819_v6  ;;  %v926_v28 = vrot.slane %v919_v17, 1 }
  0x9b   : > { %v439_v24 = vsel %vm419_vm1, %v437_v14, %v438_v11  ;;  %v1063_v48 = vstv %s6751_s25  ;;  %s8091_s25 = sld [smem:[#allocation4 + $0x35]] }
  0x9c   : > { %v386_v30 = vrot.slane %v379_v20, 1  ;;  %v7976_v35 = vadd.f32 %v439_v24, %v409_v23  ;;  %v937_v20 = vstv %s6740_s18  ;;  %s6757_s18 = sld [smem:[#allocation4 + $0x34]] }
  0x9d   : > { %643 = vrot.lane.b32.xlu1 %v640_v21, %s10636_s22  ;;  %641 = vrot.lane.b32.xlu0 %v638_v22, %s10636_s22  ;;  %v414_v21 = vmul.f32 %v412_v16, %v7814_v1  ;;  %v378_v22 = vmul.f32 %v377_v15, %v7811_v0  ;;  %v939_v24 = vmul.f32 %v7893_v26, %v937_v20 }
  0x9e   : > { %v938_v33 = vmul.f32 %v7896_v27, %v937_v20 }
  0x9f   : > { %v421_v31 = vrot.slane %v414_v21, 2  ;;  %v385_v32 = vrot.slane %v378_v22, 1 }
  0xa1   : > { %664 = vrot.lane.b32.xlu1 %v661_v37, %s10636_s22  ;;  %662 = vrot.lane.b32.xlu0 %v659_v38, %s10636_s22  ;;  %v847_v37 = vmul.f32 %v7896_v27, %v846_v56  ;;  %v387_v0 = vsel %vm384_vm0, %v385_v32, %v386_v30  ;;  %v373_v38 = vmul.f32 %v371_v58, %v7814_v1 }
  0xa2   : > { %v392_v41 = vadd.f32 %v387_v0, %v368_v25  ;;  %v422_v42 = vsel %vm419_vm1, %v420_v36, %v421_v31  ;;  %v441_v58 = vsel %vm419_vm1, %v438_v11, %v440_v53  ;;  %v945_v0 = vrot.slane %v939_v24, 2 }
  0xa3   : > { %v375_v44 = vadd.f32 %v373_v38, %v359_v57  ;;  %v415_v57 = vmul.f32 %v412_v16, %v7819_v6  ;;  %v895_v6 = vstv %s7985_s17  ;;  %v918_v16 = vmul.f32 %v7893_v26, %v916_v13  ;;  %s6756_s17 = sld [smem:[#allocation4 + $0x2d]] }
  0xa4   : > { %v898_v11 = vmul.f32 %v7886_v19, %v895_v6  ;;  %v896_v12 = vmul.f32 %v7896_v27, %v895_v6 }
  0xa5   : > { %762 = vrot.lane.b32.xlu1 %v757_v43, %s10632_s13  ;;  %760 = vrot.lane.b32.xlu0 %v756_v45, %s10632_s13  ;;  %v834_v43 = vsel %vm419_vm1, %v832_v29, %v833_v55  ;;  %v405_v45 = vrot.slane %v398_v39, 1  ;;  %v924_v25 = vrot.slane %v918_v16, 1  ;;  %v923_v29 = vrot.slane %v917_v18, 1 }
  0xa6   : > { %v905_v22 = vrot.slane %v898_v11, 1  ;;  %v902_v23 = vrot.slane %v896_v12, 1  ;;  %v944_v39 = vrot.slane %v938_v33, 2 }
  0xa7   : > { %v927_v36 = vsel %vm384_vm0, %v924_v25, %v926_v28 }
  0xa9   : > { %776 = vrot.lane.b32.xlu1 %v771_v49, %s10632_s13  ;;  %774 = vrot.lane.b32.xlu0 %v770_v50, %s10632_s13  ;;  %v7994_v49 = vadd.f32 %v422_v42, %v392_v41  ;;  %v367_v50 = vmul.f32 %v365_v9, %v7814_v1  ;;  %v961_v41 = vmul.f32 %v7886_v19, %v958_v34  ;;  %v1154_v16 = vstv %s6756_s17  ;;  %s8140_s17 = sld [smem:[#allocation4 + $0x17]] }
  0xaa   : > { %v959_v42 = vmul.f32 %v7896_v27, %v958_v34 }
  0xab   : > { %v369_v56 = vadd.f32 %v367_v50, %v356_v8  ;;  %v881_v8 = vstv %s7992_s24  ;;  %v8054_v50 = vld [vmem:[%s7808_s12 + $0x30] sm:$0xff]  ;;  %s6759_s24 = sld [smem:[#allocation4 + $0x3c]] }
  0xac   : > { %v883_v14 = vmul.f32 %v7893_v26, %v881_v8  ;;  %v882_v15 = vmul.f32 %v7896_v27, %v881_v8  ;;  %v965_v46 = vrot.slane %v959_v42, 2 }
  0xad   : > { %797 = vrot.lane.b32.xlu1 %v794_v51, %s10632_s13  ;;  %795 = vrot.lane.b32.xlu0 %v792_v52, %s10632_s13  ;;  %v853_v51 = vrot.slane %v847_v37, 2  ;;  %v406_v52 = vsel %vm384_vm0, %v403_v10, %v405_v45  ;;  %v897_v10 = vmul.f32 %v7893_v26, %v895_v6  ;;  %v925_v37 = vsel %vm384_vm0, %v923_v29, %v924_v25 }
  0xae   : > { %v410_v55 = vadd.f32 %v406_v52, %v375_v44  ;;  %v946_v44 = vsel %vm419_vm1, %v944_v39, %v945_v0  ;;  %v1091_v52 = vstv %s6753_s20  ;;  %v1133_v6 = vstv %s6755_s19  ;;  %s8106_s20 = sld [smem:[#allocation4 + $0x45]]  ;;  %s8123_s19 = sld [smem:[#allocation4 + $0xf]] }
  0xaf   : > { %v855_v62 = vsel %vm419_vm1, %v853_v51, %v854_v47  ;;  %v903_v21 = vrot.slane %v897_v10, 1  ;;  %v8051_v47 = vld [vmem:[%s7808_s12 + $0x38] sm:$0xff]  ;;  %v8057_v51 = vld [vmem:[%s7808_s12 + $0x40] sm:$0x3]  ;;  %v1155_v25 = vmul.f32 %v8054_v50, %v1154_v16 }
  0xb0   : > { %v8003_v1 = vadd.f32 %v441_v58, %v410_v55  ;;  %v1065_v53 = vmul.f32 %v8051_v47, %v1063_v48  ;;  %v1077_v55 = vstv %s6752_s26  ;;  %v1092_v58 = vmul.f32 %v8054_v50, %v1091_v52  ;;  %s6768_s26 = sld [smem:[#allocation4 + $0xe]] }
  0xb1   : > { %818 = vrot.lane.b32.xlu1 %v815_v59, %s10632_s13  ;;  %816 = vrot.lane.b32.xlu0 %v813_v60, %s10632_s13  ;;  %v388_v59 = vrot.slane %v380_v54, 1  ;;  %v423_v60 = vrot.slane %v415_v57, 2  ;;  %v904_v32 = vsel %vm384_vm0, %v902_v23, %v903_v21  ;;  %v1064_v54 = vmul.f32 %v8054_v50, %v1063_v48 }
  0xb2   : > { %v1094_v57 = vmul.f32 %v8057_v51, %v1091_v52  ;;  %v1136_v12 = vmul.f32 %v8057_v51, %v1133_v6  ;;  %v1203_v33 = vstv %s6759_s24  ;;  %s8179_s24 = sld [smem:[#allocation4 + $0x1e]] }
  0xb3   : > { %v389_v2 = vsel %vm384_vm0, %v386_v30, %v388_v59  ;;  %v424_v4 = vsel %vm419_vm1, %v421_v31, %v423_v60  ;;  %v940_v30 = vmul.f32 %v7886_v19, %v937_v20  ;;  %v906_v31 = vsel %vm384_vm0, %v903_v21, %v905_v22 }
  0xb4   : > { %v393_v3 = vadd.f32 %v389_v2, %v369_v56  ;;  %v1093_v56 = vmul.f32 %v8051_v47, %v1091_v52  ;;  %v1112_v59 = vstv %s6754_s23  ;;  %v1079_v60 = vmul.f32 %v8051_v47, %v1077_v55  ;;  %s8114_s23 = sld [smem:[#allocation4 + $0x16]] }
  0xb5   : > { %839 = vrot.lane.b32.xlu1 %v836_v40, %s10632_s13  ;;  %837 = vrot.lane.b32.xlu0 %v834_v43, %s10632_s13  ;;  %v947_v38 = vrot.slane %v940_v30, 2  ;;  %v960_v40 = vmul.f32 %v7893_v26, %v958_v34  ;;  %v968_v26 = vrot.slane %v961_v41, 2  ;;  %v1115_v63 = vmul.f32 %v8057_v51, %v1112_v59 }
  0xb6   : > { %v8016_v9 = vadd.f32 %v424_v4, %v393_v3  ;;  %v1113_v2 = vmul.f32 %v8054_v50, %v1112_v59  ;;  %v1099_v3 = vrot.slane %v1093_v56, 1  ;;  %v1101_v4 = vrot.slane %v1094_v57, 1 }
  0xb7   : > { %v948_v43 = vsel %vm419_vm1, %v945_v0, %v947_v38  ;;  %v966_v45 = vrot.slane %v960_v40, 2  ;;  %v1122_v10 = vrot.slane %v1115_v63, 1  ;;  %v1143_v18 = vrot.slane %v1136_v12, 2 }
  0xb8   : > { %v1119_v11 = vrot.slane %v1113_v2, 1  ;;  %v1102_v13 = vsel %vm384_vm0, %v1099_v3, %v1101_v4  ;;  %v1156_v20 = vmul.f32 %v8051_v47, %v1154_v16  ;;  %v1157_v21 = vmul.f32 %v8057_v51, %v1154_v16 }
  0xb9   : > { %860 = vrot.lane.b32.xlu1 %v857_v61, %s10632_s13  ;;  %858 = vrot.lane.b32.xlu0 %v855_v62, %s10632_s13  ;;  %v969_v19 = vsel %vm419_vm1, %v966_v45, %v968_v26  ;;  %v967_v27 = vsel %vm419_vm1, %v965_v46, %v966_v45  ;;  %v1078_v61 = vmul.f32 %v8054_v50, %v1077_v55  ;;  %v1175_v0 = vstv %s6757_s18  ;;  %s8201_s18 = sld [smem:[#allocation4 + $0x1f]] }
  0xba   : > { %v1114_v62 = vmul.f32 %v8051_v47, %v1112_v59  ;;  %v1162_v28 = vrot.slane %v1156_v20, 2  ;;  %v1164_v29 = vrot.slane %v1157_v21, 2  ;;  %v1205_v38 = vmul.f32 %v8051_v47, %v1203_v33 }
  0xbb   : > { %v1206_v39 = vmul.f32 %v8057_v51, %v1203_v33  ;;  %v1204_v42 = vmul.f32 %v8054_v50, %v1203_v33  ;;  %v1245_v45 = vstv %s6761_s21  ;;  %v1177_v26 = vmul.f32 %v8051_v47, %v1175_v0  ;;  %s6775_s21 = sld [smem:[#allocation4 + $0x27]] }
  0xbc   : > { %v1120_v8 = vrot.slane %v1114_v62, 1  ;;  %v1165_v34 = vsel %vm419_vm1, %v1162_v28, %v1164_v29  ;;  %v1176_v46 = vmul.f32 %v8054_v50, %v1175_v0  ;;  %v8121_v55 = vmul.f32 %v8051_v47, %v1245_v45 }
  0xbd   : > { %874 = vrot.lane.b32.xlu1 %v869_v5, %s10636_s22  ;;  %872 = vrot.lane.b32.xlu0 %v868_v7, %s10636_s22  ;;  %v1098_v5 = vrot.slane %v1092_v58, 1  ;;  %v1135_v7 = vmul.f32 %v8051_v47, %v1133_v6  ;;  %v1213_v48 = vrot.slane %v1206_v39, 1  ;;  %v1210_v56 = vrot.slane %v1204_v42, 1 }
  0xbe   : > { %v1123_v22 = vsel %vm384_vm0, %v1120_v8, %v1122_v10  ;;  %v1121_v23 = vsel %vm384_vm0, %v1119_v11, %v1120_v8  ;;  %v1248_v2 = vmul.f32 %v8057_v51, %v1245_v45  ;;  %v1303_v4 = vstv %s6768_s26  ;;  %s6778_s26 = sld [smem:[#allocation4 + $0x36]] }
  0xbf   : > { %v1141_v17 = vrot.slane %v1135_v7, 2  ;;  %v1253_v8 = vrot.slane %v8121_v55, 2  ;;  %v1266_v16 = vstv %s8106_s20  ;;  %v1337_v20 = vstv %s8114_s23  ;;  %s6777_s20 = sld [smem:[#allocation4 + $0x2f]]  ;;  %s6780_s23 = sld [smem:[#allocation4 + $0x3e]] }
  0xc0   : > { %v1269_v0 = vmul.f32 %v8057_v51, %v1266_v16 }
  0xc1   : > { %888 = vrot.lane.b32.xlu1 %v883_v14, %s10636_s22  ;;  %886 = vrot.lane.b32.xlu0 %v882_v15, %s10636_s22  ;;  %v1100_v14 = vsel %vm384_vm0, %v1098_v5, %v1099_v3  ;;  %v1134_v15 = vmul.f32 %v8054_v50, %v1133_v6  ;;  %v1144_v30 = vsel %vm419_vm1, %v1141_v17, %v1143_v18  ;;  %v8135_v6 = vld [vmem:[%s7808_s12 + $0x48] sm:$0xff]  ;;  %v8138_v3 = vld [vmem:[%s7808_s12 + $0x58] sm:$0x3] }
  0xc2   : > { %10690 = vst [vmem:[#allocation27_spill] sm:$0xff] %v8135_v6  ;;  %v1306_v11 = vmul.f32 %v8138_v3, %v1303_v4  ;;  %v1304_v12 = vmul.f32 %v8135_v6, %v1303_v4 }
  0xc3   : > { %v1140_v24 = vrot.slane %v1134_v15, 2  ;;  %v1246_v15 = vmul.f32 %v8054_v50, %v1245_v45 }
  0xc4   : > { %v1313_v18 = vrot.slane %v1306_v11, 1  ;;  %v1310_v21 = vrot.slane %v1304_v12, 1 }
  0xc5   : > { %909 = vrot.lane.b32.xlu1 %v906_v31, %s10636_s22  ;;  %907 = vrot.lane.b32.xlu0 %v904_v32, %s10636_s22  ;;  %v1142_v31 = vsel %vm419_vm1, %v1140_v24, %v1141_v17  ;;  %v1161_v32 = vrot.slane %v1155_v25, 2  ;;  %v1338_v24 = vmul.f32 %v8135_v6, %v1337_v20  ;;  %v1320_v25 = vstv %s8123_s19  ;;  %s6779_s19 = sld [smem:[#allocation4 + $0x37]] }
  0xc7   : > { %v1344_v42 = vrot.slane %v1338_v24, 2 }
  0xc9   : > { %930 = vrot.lane.b32.xlu1 %v927_v36, %s10636_s22  ;;  %928 = vrot.lane.b32.xlu0 %v925_v37, %s10636_s22  ;;  %v1224_v36 = vstv %s6760_s10  ;;  %v1163_v37 = vsel %vm419_vm1, %v1161_v32, %v1162_v28  ;;  %s8187_s10 = sld [smem:[#allocation4 + $0x26]] }
  0xca   : > { %v1225_v52 = vmul.f32 %v8054_v50, %v1224_v36 }
  0xcc   : > { %v1231_v63 = vrot.slane %v1225_v52, 1 }
  0xcd   : > { %951 = vrot.lane.b32.xlu1 %v948_v43, %s10636_s22  ;;  %949 = vrot.lane.b32.xlu0 %v946_v44, %s10636_s22  ;;  %v1226_v43 = vmul.f32 %v8051_v47, %v1224_v36  ;;  %v1227_v44 = vmul.f32 %v8057_v51, %v1224_v36  ;;  %v1252_v36 = vrot.slane %v1246_v15, 2 }
  0xcf   : > { %v1232_v57 = vrot.slane %v1226_v43, 1  ;;  %v1234_v58 = vrot.slane %v1227_v44, 1  ;;  %v1323_v43 = vmul.f32 %v8138_v3, %v1320_v25  ;;  %v1267_v44 = vmul.f32 %v8054_v50, %v1266_v16 }
  0xd0   : > { %v1399_v24 = vstv %s8187_s10  ;;  %s6783_s10 = sld [smem:[#allocation4 + $0x47]] }
  0xd1   : > { %972 = vrot.lane.b32.xlu1 %v969_v19, %s10636_s22  ;;  %970 = vrot.lane.b32.xlu0 %v967_v27, %s10636_s22  ;;  %v1189_v19 = vstv %s8091_s25  ;;  %v1211_v27 = vrot.slane %v1205_v38, 1  ;;  %v1330_v55 = vrot.slane %v1323_v43, 1  ;;  %s6776_s25 = sld [smem:[#allocation4 + $0x2e]] }
  0xd2   : > { %v1191_v59 = vmul.f32 %v8051_v47, %v1189_v19 }
  0xd3   : > { %v1214_v62 = vsel %vm384_vm0, %v1211_v27, %v1213_v48 }
  0xd5   : > { %1070 = vrot.lane.b32.xlu1 %v1065_v53, %s10632_s13  ;;  %1068 = vrot.lane.b32.xlu0 %v1064_v54, %s10632_s13 }
  0xd9   : > { %1084 = vrot.lane.b32.xlu1 %v1079_v60, %s10632_s13  ;;  %1082 = vrot.lane.b32.xlu0 %v1078_v61, %s10632_s13  ;;  %v1190_v60 = vmul.f32 %v8054_v50, %v1189_v19  ;;  %v8130_v61 = vld [vmem:[%s7808_s12 + $0x50] sm:$0xff] }
  0xda   : > { %10689 = vst [vmem:[#allocation26_spill] sm:$0xff] %v8130_v61  ;;  %v1305_v10 = vmul.f32 %v8130_v61, %v1303_v4  ;;  %v1322_v33 = vmul.f32 %v8130_v61, %v1320_v25 }
  0xdc   : > { %v1311_v17 = vrot.slane %v1305_v10, 1  ;;  %v1328_v45 = vrot.slane %v1322_v33, 1  ;;  %v1276_v10 = vrot.slane %v1269_v0, 2  ;;  %v1385_v33 = vstv %s8201_s18  ;;  %s8515_s18 = sld [smem:[#allocation4 + $0x7]] }
  0xdd   : > { %1105 = vrot.lane.b32.xlu1 %v1102_v13, %s10632_s13  ;;  %1103 = vrot.lane.b32.xlu0 %v1100_v14, %s10632_s13  ;;  %v1212_v13 = vsel %vm384_vm0, %v1210_v56, %v1211_v27  ;;  %v1235_v14 = vsel %vm384_vm0, %v1232_v57, %v1234_v58  ;;  %v1254_v58 = vsel %vm419_vm1, %v1252_v36, %v1253_v8 }
  0xde   : > { %v8170_v32 = vsel %vm384_vm0, %v1310_v21, %v1311_v17  ;;  %v1371_v21 = vstv %s8179_s24  ;;  %v1401_v36 = vmul.f32 %v8130_v61, %v1399_v24  ;;  %v1400_v0 = vmul.f32 %v8135_v6, %v1399_v24  ;;  %s6782_s24 = sld [smem:[#allocation4 + $0x46]] }
  0xdf   : > { %10692 = vst [vmem:[#allocation29_spill] sm:$0xff] %v8170_v32 }
  0xe1   : > { %1126 = vrot.lane.b32.xlu1 %v1123_v22, %s10632_s13  ;;  %1124 = vrot.lane.b32.xlu0 %v1121_v23, %s10632_s13  ;;  %v1339_v22 = vmul.f32 %v8130_v61, %v1337_v20  ;;  %v1340_v23 = vmul.f32 %v8138_v3, %v1337_v20 }
  0xe3   : > { %v1345_v38 = vrot.slane %v1339_v22, 2  ;;  %v1347_v39 = vrot.slane %v1340_v23, 2 }
  0xe5   : > { %1147 = vrot.lane.b32.xlu1 %v1144_v30, %s10632_s13  ;;  %1145 = vrot.lane.b32.xlu0 %v1142_v31, %s10632_s13  ;;  %v1233_v30 = vsel %vm384_vm0, %v1231_v63, %v1232_v57  ;;  %v8167_v31 = vsel %vm384_vm0, %v1311_v17, %v1313_v18  ;;  %v8190_v48 = vsel %vm419_vm1, %v1345_v38, %v1347_v39 }
  0xe6   : > { %10691 = vst [vmem:[#allocation28_spill] sm:$0xff] %v8167_v31  ;;  %10693 = vst [vmem:[#allocation30_spill] sm:$0xff] %v8190_v48  ;;  %v8193_v52 = vsel %vm419_vm1, %v1344_v42, %v1345_v38  ;;  %v8204_v63 = vsel %vm384_vm0, %v1328_v45, %v1330_v55  ;;  %v1387_v42 = vmul.f32 %v8130_v61, %v1385_v33 }
  0xe7   : > { %v8099_v40 = vpop.permute.xlu1 %466  ;;  %v8101_v41 = vpop.permute.xlu0 %452  ;;  %10694 = vst [vmem:[#allocation31_spill] sm:$0xff] %v8193_v52  ;;  %10695 = vst [vmem:[#allocation32_spill] sm:$0xff] %v8204_v63  ;;  %v1574_v63 = vstv %s6783_s10  ;;  %s6766_s10 = sld [smem:[#allocation4 + $0x6]] }
  0xe9   : > { %1168 = vrot.lane.b32.xlu1 %v1165_v34, %s10632_s13  ;;  %1166 = vrot.lane.b32.xlu0 %v1163_v37, %s10632_s13  ;;  %v1255_v34 = vrot.slane %v1248_v2, 2  ;;  %v1268_v37 = vmul.f32 %v8051_v47, %v1266_v16 }
  0xeb   : > { %v8116_v53 = vpop.permute.xlu1 %468  ;;  %v8118_v54 = vpop.permute.xlu0 %454  ;;  %v1256_v57 = vsel %vm419_vm1, %v1253_v8, %v1255_v34  ;;  %v1273_v8 = vrot.slane %v1267_v44, 2  ;;  %v1420_v34 = vstv %s6775_s21  ;;  %v1386_v44 = vmul.f32 %v8135_v6, %v1385_v33  ;;  %s7633_s21 = smov 2  }
  0xec   : > { %v1422_v43 = vmul.f32 %v8130_v61, %v1420_v34 }
  0xed   : > { %1182 = vrot.lane.b32.xlu1 %v1177_v26, %s10636_s22  ;;  %1180 = vrot.lane.b32.xlu0 %v1176_v46, %s10636_s22  ;;  %v1354_v26 = vstv %s8140_s17  ;;  %v1321_v46 = vmul.f32 %v8135_v6, %v1320_v25  ;;  %v1373_v25 = vmul.f32 %v8130_v61, %v1371_v21  ;;  %s6781_s17 = sld [smem:[#allocation4 + $0x3f]] }
  0xee   : > { %v1356_v56 = vmul.f32 %v8130_v61, %v1354_v26  ;;  %v1355_v4 = vmul.f32 %v8135_v6, %v1354_v26 }
  0xef   : > { %v8142_v5 = vpop.permute.xlu1 %489  ;;  %v8144_v7 = vpop.permute.xlu0 %487 }
  0xf0   : > { %v1362_v2 = vrot.slane %v1356_v56, 2  ;;  %v1361_v15 = vrot.slane %v1355_v4, 2  ;;  %v1406_v56 = vrot.slane %v1400_v0, 1 }
  0xf1   : > { %1196 = vrot.lane.b32.xlu1 %v1191_v59, %s10636_s22  ;;  %1194 = vrot.lane.b32.xlu0 %v1190_v60, %s10636_s22  ;;  %v1357_v59 = vmul.f32 %v8138_v3, %v1354_v26  ;;  %v1327_v60 = vrot.slane %v1321_v46, 1  ;;  %v1421_v26 = vmul.f32 %v8135_v6, %v1420_v34  ;;  %v1407_v46 = vrot.slane %v1401_v36, 1 }
  0xf2   : > { %v8220_v17 = vsel %vm419_vm1, %v1361_v15, %v1362_v2 }
  0xf3   : > { %v8161_v28 = vpop.permute.xlu1 %510  ;;  %v8163_v29 = vpop.permute.xlu0 %508  ;;  %v1364_v11 = vrot.slane %v1357_v59, 2  ;;  %v8208_v12 = vsel %vm384_vm0, %v1327_v60, %v1328_v45  ;;  %10698 = vst [vmem:[#allocation35_spill] sm:$0xff] %v8220_v17  ;;  %v1423_v45 = vmul.f32 %v8138_v3, %v1420_v34  ;;  %v1428_v60 = vrot.slane %v1422_v43, 1 }
  0xf4   : > { %10696 = vst [vmem:[#allocation33_spill] sm:$0xff] %v8208_v12 }
  0xf5   : > { %1217 = vrot.lane.b32.xlu1 %v1214_v62, %s10636_s22  ;;  %1215 = vrot.lane.b32.xlu0 %v1212_v13, %s10636_s22  ;;  %v1274_v62 = vrot.slane %v1268_v37, 2  ;;  %v8215_v16 = vsel %vm419_vm1, %v1362_v2, %v1364_v11  ;;  %v1402_v37 = vmul.f32 %v8138_v3, %v1399_v24  ;;  %v1427_v2 = vrot.slane %v1421_v26, 1 }
  0xf6   : > { %10697 = vst [vmem:[#allocation34_spill] sm:$0xff] %v8215_v16  ;;  %v1408_v11 = vsel %vm384_vm0, %v1406_v56, %v1407_v46 }
  0xf7   : > { %v8183_v19 = vpop.permute.xlu1 %531  ;;  %v8185_v27 = vpop.permute.xlu0 %529  ;;  %v1277_v18 = vsel %vm419_vm1, %v1274_v62, %v1276_v10  ;;  %v1275_v20 = vsel %vm419_vm1, %v1273_v8, %v1274_v62  ;;  %v1409_v55 = vrot.slane %v1402_v37, 1  ;;  %v1430_v62 = vrot.slane %v1423_v45, 1 }
  0xf9   : > { %1238 = vrot.lane.b32.xlu1 %v1235_v14, %s10636_s22  ;;  %1236 = vrot.lane.b32.xlu0 %v1233_v30, %s10636_s22  ;;  %v1372_v30 = vmul.f32 %v8135_v6, %v1371_v21  ;;  %v1410_v8 = vsel %vm384_vm0, %v1407_v46, %v1409_v55  ;;  %v1462_v21 = vstv %s6777_s20  ;;  %v1431_v24 = vsel %vm384_vm0, %v1428_v60, %v1430_v62  ;;  %s8380_s20 = sld [smem:[#allocation4 + $0x13]] }
  0xfa   : > { %v1464_v36 = vmul.f32 %v8130_v61, %v1462_v21  ;;  %v1465_v37 = vmul.f32 %v8138_v3, %v1462_v21  ;;  %v1463_v0 = vmul.f32 %v8135_v6, %v1462_v21  ;;  %v1497_v21 = vstv %s6779_s19  ;;  %s6726_s19 = sld [smem:[#allocation4 + $0xa]] }
  0xfb   : > { %v8210_v13 = vpop.permute.xlu1 %552  ;;  %v8212_v14 = vpop.permute.xlu0 %550 }
  0xfc   : > { %v1470_v26 = vrot.slane %v1464_v36, 2  ;;  %v1472_v46 = vrot.slane %v1465_v37, 2  ;;  %v1469_v55 = vrot.slane %v1463_v0, 2  ;;  %v1499_v37 = vmul.f32 %v8130_v61, %v1497_v21 }
  0xfd   : > { %1259 = vrot.lane.b32.xlu1 %v1256_v57, %s10636_s22  ;;  %1257 = vrot.lane.b32.xlu0 %v1254_v58, %s10636_s22  ;;  %v1441_v57 = vstv %s6776_s25  ;;  %v1498_v0 = vmul.f32 %v8135_v6, %v1497_v21  ;;  %s8369_s25 = sld [smem:[#allocation4 + $0xb]] }
  0xfe   : > { %v1443_v4 = vmul.f32 %v8130_v61, %v1441_v57  ;;  %v1444_v10 = vmul.f32 %v8138_v3, %v1441_v57  ;;  %v1442_v15 = vmul.f32 %v8135_v6, %v1441_v57  ;;  %v1471_v62 = vsel %vm419_vm1, %v1469_v55, %v1470_v26 }
  0xff   : > { %v8225_v22 = vpop.permute.xlu1 %566  ;;  %v8227_v23 = vpop.permute.xlu0 %564 }
 0x100   : > { %v1451_v33 = vrot.slane %v1444_v10, 2  ;;  %v1448_v34 = vrot.slane %v1442_v15, 2 }
 0x101   : > { %1280 = vrot.lane.b32.xlu1 %v1277_v18, %s10636_s22  ;;  %1278 = vrot.lane.b32.xlu0 %v1275_v20, %s10636_s22 }
 0x103   : > { %v8238_v38 = vpop.permute.xlu1 %580  ;;  %v8240_v39 = vpop.permute.xlu0 %578 }
 0x105   : > { %1378 = vrot.lane.b32.xlu1 %v1373_v25, %s10632_s13  ;;  %1376 = vrot.lane.b32.xlu0 %v1372_v30, %s10632_s13  ;;  %v1429_v25 = vsel %vm384_vm0, %v1427_v2, %v1428_v60  ;;  %v1449_v30 = vrot.slane %v1443_v4, 2  ;;  %v1473_v60 = vsel %vm419_vm1, %v1470_v26, %v1472_v46  ;;  %v1483_v2 = vstv %s6778_s26  ;;  %s8341_s26 = sld [smem:[#allocation4 + $0x2]] }
 0x106   : > { %v1484_v15 = vmul.f32 %v8135_v6, %v1483_v2  ;;  %v1553_v46 = vstv %s6782_s24  ;;  %s8471_s24 = sld [smem:[#allocation4 + $0x15]] }
 0x107   : > { %v8249_v58 = vpop.permute.xlu1 %601  ;;  %v8251_v59 = vpop.permute.xlu0 %599  ;;  %v1450_v45 = vsel %vm419_vm1, %v1448_v34, %v1449_v30  ;;  %v1555_v21 = vmul.f32 %v8130_v61, %v1553_v46  ;;  %v1556_v16 = vmul.f32 %v8138_v3, %v1553_v46 }
 0x109   : > { %1392 = vrot.lane.b32.xlu1 %v1387_v42, %s10632_s13  ;;  %1390 = vrot.lane.b32.xlu0 %v1386_v44, %s10632_s13  ;;  %v1452_v44 = vsel %vm419_vm1, %v1449_v30, %v1451_v33  ;;  %v1532_v33 = vstv %s6781_s17  ;;  %s6728_s17 = sld [smem:[#allocation4 + $0x12]] }
 0x10a   : > { %v1533_v26 = vmul.f32 %v8135_v6, %v1532_v33 }
 0x10b   : > { %v8260_v18 = vpop.permute.xlu1 %622  ;;  %v8262_v20 = vpop.permute.xlu0 %620 }
 0x10c   : > { %v1539_v17 = vrot.slane %v1533_v26, 1 }
 0x10d   : > { %1413 = vrot.lane.b32.xlu1 %v1410_v8, %s10632_s13  ;;  %1411 = vrot.lane.b32.xlu0 %v1408_v11, %s10632_s13  ;;  %v1511_v8 = vstv %s6780_s23  ;;  %v1485_v11 = vmul.f32 %v8130_v61, %v1483_v2  ;;  %s8346_s23 = sld [smem:[#allocation4 + $0x3]] }
 0x10e   : > { %v1512_v30 = vmul.f32 %v8135_v6, %v1511_v8 }
 0x10f   : > { %v8271_v42 = vpop.permute.xlu1 %643  ;;  %v8273_v43 = vpop.permute.xlu0 %641 }
 0x111   : > { %1434 = vrot.lane.b32.xlu1 %v1431_v24, %s10632_s13  ;;  %1432 = vrot.lane.b32.xlu0 %v1429_v25, %s10632_s13  ;;  %v1513_v24 = vmul.f32 %v8130_v61, %v1511_v8  ;;  %v1514_v25 = vmul.f32 %v8138_v3, %v1511_v8 }
 0x113   : > { %v8279_v56 = vpop.permute.xlu1 %664  ;;  %v8281_v57 = vpop.permute.xlu0 %662  ;;  %v1519_v55 = vrot.slane %v1513_v24, 1 }
 0x115   : > { %1455 = vrot.lane.b32.xlu1 %v1452_v44, %s10632_s13  ;;  %1453 = vrot.lane.b32.xlu0 %v1450_v45, %s10632_s13  ;;  %v1534_v44 = vmul.f32 %v8130_v61, %v1532_v33  ;;  %v1535_v45 = vmul.f32 %v8138_v3, %v1532_v33 }
 0x117   : > { %v8287_v4 = vpop.permute.xlu1 %762  ;;  %v8289_v10 = vpop.permute.xlu0 %760 }
 0x119   : > { %1476 = vrot.lane.b32.xlu1 %v1473_v60, %s10632_s13  ;;  %1474 = vrot.lane.b32.xlu0 %v1471_v62, %s10632_s13  ;;  %v1521_v60 = vrot.slane %v1514_v25, 1  ;;  %v1518_v62 = vrot.slane %v1512_v30, 1  ;;  %v1554_v25 = vmul.f32 %v8135_v6, %v1553_v46  ;;  %v1577_v46 = vmul.f32 %v8138_v3, %v1574_v63 }
 0x11b   : > { %v8298_v34 = vpop.permute.xlu1 %776  ;;  %v8300_v36 = vpop.permute.xlu0 %774  ;;  %v1522_v33 = vsel %vm384_vm0, %v1519_v55, %v1521_v60  ;;  %v1520_v24 = vsel %vm384_vm0, %v1518_v62, %v1519_v55  ;;  %v1560_v26 = vrot.slane %v1554_v25, 2  ;;  %v1576_v55 = vmul.f32 %v8130_v61, %v1574_v63 }
 0x11c   : > { %v1575_v60 = vmul.f32 %v8135_v6, %v1574_v63 }
 0x11d   : > { %1490 = vrot.lane.b32.xlu1 %v1485_v11, %s10636_s22  ;;  %1488 = vrot.lane.b32.xlu0 %v1484_v15, %s10636_s22  ;;  %v1540_v11 = vrot.slane %v1534_v44, 1  ;;  %v1542_v15 = vrot.slane %v1535_v45, 1  ;;  %v1561_v44 = vrot.slane %v1555_v21, 2  ;;  %v1563_v45 = vrot.slane %v1556_v16, 2 }
 0x11e   : > { %v1582_v21 = vrot.slane %v1576_v55, 2 }
 0x11f   : > { %v8309_v2 = vpop.permute.xlu1 %797  ;;  %v8311_v8 = vpop.permute.xlu0 %795  ;;  %v1564_v3 = vsel %vm419_vm1, %v1561_v44, %v1563_v45  ;;  %v1562_v16 = vsel %vm419_vm1, %v1560_v26, %v1561_v44  ;;  %v6786_v44 = vld [vmem:[%s10699_s5 + $0x10] sm:$0xff]  ;;  %v6787_v45 = vld [vmem:[%s10699_s5 + $0x18] sm:$0xff] }
 0x121   : > { %1504 = vrot.lane.b32.xlu1 %v1499_v37, %s10636_s22  ;;  %1502 = vrot.lane.b32.xlu0 %v1498_v0, %s10636_s22  ;;  %v1543_v37 = vsel %vm384_vm0, %v1540_v11, %v1542_v15  ;;  %v1541_v0 = vsel %vm384_vm0, %v1539_v17, %v1540_v11  ;;  %v1613_v17 = vld [vmem:[%s10699_s5 + $0x8] sm:$0xff]  ;;  %v1584_v11 = vrot.slane %v1577_v46, 2  ;;  %v1581_v15 = vrot.slane %v1575_v60, 2 }
 0x122   : > { %v8367_v46 = vpack.c.bf16 %v6787_v45, %v6786_v44  ;;  %v458_v60 = vadd.f32 %v8101_v41, %v7994_v49  ;;  %v7478_v49 = vld [vmem:[%s7808_s12 + $0x20] sm:$0xff]  ;;  %v472_v44 = vadd.f32 %v8099_v40, %v7976_v35  ;;  %v473_v45 = vadd.f32 %v8116_v53, %v8003_v1 }
 0x123   : > { %v8320_v30 = vpop.permute.xlu1 %818  ;;  %v8322_v12 = vpop.permute.xlu0 %816 }
 0x124   : > { %10700 = vst [vmem:[#allocation36_spill] sm:$0xff] %v8367_v46  ;;  %v515_v35 = vadd.f32 %v8161_v28, %v473_v45  ;;  %v514_v40 = vadd.f32 %v8163_v29, %v472_v44  ;;  %v738_v29 = vstv %s8380_s20  ;;  %s6913_s20 = sld [smem:[#allocation9 + $0x2d]] }
 0x125   : > { %1525 = vrot.lane.b32.xlu1 %v1522_v33, %s10636_s22  ;;  %1523 = vrot.lane.b32.xlu0 %v1520_v24, %s10636_s22  ;;  %v1612_v33 = vld [vmem:[%s10699_s5] sm:$0xff]  ;;  %s9175_s5 = sld [smem:[#allocation9 + $0x80]] }
 0x126   : > { %v7304_v63 = vpack.c.bf16 %v1613_v17, %v1612_v33  ;;  %v459_v33 = vadd.f32 %v8118_v54, %v8016_v9  ;;  %v675_v17 = vstv %s8341_s26  ;;  %s6747_s26 = sld [smem:[#allocation4 + $0xc]] }
 0x127   : > { %v8331_v62 = vpop.permute.xlu1 %839  ;;  %v8333_v52 = vpop.permute.xlu0 %837  ;;  %v677_v41 = vmul.f32 %v7478_v49, %v675_v17 }
 0x128   : > { %7305 = vmatprep.subr.bf16.mxu1 %v7304_v63 }
 0x129   : > { %1546 = vrot.lane.b32.xlu1 %v1543_v37, %s10636_s22  ;;  %1544 = vrot.lane.b32.xlu0 %v1541_v0, %s10636_s22  ;;  %v1585_v37 = vsel %vm419_vm1, %v1582_v21, %v1584_v11  ;;  %v1583_v0 = vsel %vm419_vm1, %v1581_v15, %v1582_v21  ;;  %v494_v21 = vadd.f32 %v8142_v5, %v459_v33  ;;  %v687_v15 = vstv %s6726_s19  ;;  %v7480_v33 = vld [vmem:[%s7808_s12 + $0x28] sm:$0x3]  ;;  %s6749_s19 = sld [smem:[#allocation4 + $0x14]] }
 0x12a   : > { %7307 = vmatpush3.bf16.msra.mxu1 %v7304_v63  ;;  %v493_v11 = vadd.f32 %v8144_v7, %v458_v60  ;;  %v689_v60 = vmul.f32 %v7478_v49, %v687_v15  ;;  %v690_v48 = vmul.f32 %v7480_v33, %v687_v15 }
 0x12b   : > { %v8349_v24 = vpop.permute.xlu1 %860  ;;  %v8351_v25 = vpop.permute.xlu0 %858  ;;  %7309 = vmatprep.subr.bf16.mxu1 %v8367_v46  ;;  %v536_v46 = vadd.f32 %v8183_v19, %v494_v21  ;;  %v704_v21 = vstv %s8369_s25  ;;  %s6914_s25 = sld [smem:[#allocation9 + $0x2e]] }
 0x12c   : > { %v535_v5 = vadd.f32 %v8185_v27, %v493_v11  ;;  %v557_v11 = vadd.f32 %v8210_v13, %v515_v35  ;;  %v697_v28 = vrot.slane %v690_v48, 1 }
 0x12d   : > { %1567 = vrot.lane.b32.xlu1 %v1564_v3, %s10636_s22  ;;  %1565 = vrot.lane.b32.xlu0 %v1562_v16, %s10636_s22  ;;  %v681_v3 = vstv %s8346_s23  ;;  %v571_v1 = vadd.f32 %v8225_v22, %v536_v46  ;;  %s8442_s23 = sld [smem:[#allocation4 + $0x5]] }
 0x12e   : > { %v8390_v54 = vmul.f32 %v7478_v49, %v681_v3  ;;  %v570_v53 = vadd.f32 %v8227_v23, %v535_v5  ;;  %v585_v23 = vadd.f32 %v8238_v38, %v557_v11  ;;  %v707_v5 = vmul.f32 %v7480_v33, %v704_v21 }
 0x12f   : > { %v8363_v26 = vpop.permute.xlu1 %874  ;;  %v8365_v55 = vpop.permute.xlu0 %872  ;;  %v606_v6 = vadd.f32 %v8249_v58, %v571_v1  ;;  %v706_v58 = vmul.f32 %v7478_v49, %v704_v21  ;;  %v740_v1 = vmul.f32 %v7478_v49, %v738_v29 }
 0x130   : > { %v605_v61 = vadd.f32 %v8251_v59, %v570_v53  ;;  %v627_v48 = vadd.f32 %v8260_v18, %v585_v23 }
 0x131   : > { %1588 = vrot.lane.b32.xlu1 %v1585_v37, %s10636_s22  ;;  %1586 = vrot.lane.b32.xlu0 %v1583_v0, %s10636_s22  ;;  %v7479_v37 = vld [vmem:[%s7808_s12 + $0x18] sm:$0xff]  ;;  %v721_v0 = vstv %s6728_s17  ;;  %v648_v13 = vadd.f32 %v8271_v42, %v606_v6  ;;  %s8433_s12 = sld [smem:[#allocation4 + $0x4]]  ;;  %s6748_s17 = sld [smem:[#allocation4 + $0xd]] }
 0x132   : > { %v676_v9 = vmul.f32 %v7479_v37, %v675_v17  ;;  %v682_v7 = vmul.f32 %v7479_v37, %v681_v3  ;;  %v688_v32 = vmul.f32 %v7479_v37, %v687_v15  ;;  %v723_v19 = vmul.f32 %v7478_v49, %v721_v0 }
 0x133   : > { %v8382_v63 = vpop.permute.xlu1 %888  ;;  %v8384_v16 = vpop.permute.xlu0 %886  ;;  %v724_v27 = vmul.f32 %v7480_v33, %v721_v0  ;;  %v722_v3 = vmul.f32 %v7479_v37, %v721_v0  ;;  %v556_v15 = vadd.f32 %v8212_v14, %v514_v40  ;;  %v647_v14 = vadd.f32 %v8273_v43, %v605_v61 }
 0x134   : > { %10701 = vst [vmem:[#allocation37_spill] sm:$0xff] %v8384_v16  ;;  %v695_v16 = vrot.slane %v689_v60, 1  ;;  %v694_v45 = vrot.slane %v688_v32, 1  ;;  %v729_v0 = vrot.slane %v723_v19, 2  ;;  %v705_v59 = vmul.f32 %v7479_v37, %v704_v21 }
 0x135   : > { %v584_v46 = vadd.f32 %v8240_v39, %v556_v15  ;;  %v731_v60 = vrot.slane %v724_v27, 2  ;;  %v728_v35 = vrot.slane %v722_v3, 2  ;;  %v741_v39 = vmul.f32 %v7480_v33, %v738_v29 }
 0x136   : > { %v698_v40 = vsel %vm384_vm0, %v695_v16, %v697_v28  ;;  %v696_v38 = vsel %vm384_vm0, %v694_v45, %v695_v16  ;;  %v679_v61 = vadd.f32 %v677_v41, %v648_v13  ;;  %v678_v42 = vadd.f32 %v676_v9, %v647_v14 }
 0x137   : > { %v8399_v17 = vpop.permute.xlu1 %909  ;;  %v8401_v31 = vpop.permute.xlu0 %907  ;;  %v626_v32 = vadd.f32 %v8262_v20, %v584_v46  ;;  %v669_v43 = vadd.f32 %v8279_v56, %v627_v48  ;;  %v712_v19 = vrot.slane %v706_v58, 1  ;;  %v714_v20 = vrot.slane %v707_v5, 1 }
 0x138   : > { %v711_v27 = vrot.slane %v705_v59, 1  ;;  %v739_v3 = vmul.f32 %v7479_v37, %v738_v29  ;;  %v732_v21 = vsel %vm419_vm1, %v729_v0, %v731_v60  ;;  %v730_v16 = vsel %vm419_vm1, %v728_v35, %v729_v0 }
 0x139   : > { %v668_v18 = vadd.f32 %v8281_v57, %v626_v32  ;;  %v746_v49 = vrot.slane %v740_v1, 2  ;;  %v685_v56 = vadd.f32 %v8390_v54, %v669_v43  ;;  %v702_v57 = vadd.f32 %v698_v40, %v679_v61 }
 0x13a   : > { %v701_v9 = vadd.f32 %v696_v38, %v678_v42  ;;  %v715_v37 = vsel %vm384_vm0, %v712_v19, %v714_v20  ;;  %v748_v15 = vrot.slane %v741_v39, 2  ;;  %v713_v28 = vsel %vm384_vm0, %v711_v27, %v712_v19 }
 0x13b   : > { %v8413_v44 = vpop.permute.xlu1 %930  ;;  %v8415_v22 = vpop.permute.xlu0 %928  ;;  %v684_v41 = vadd.f32 %v682_v7, %v668_v18  ;;  %v745_v45 = vrot.slane %v739_v3, 2  ;;  %v736_v46 = vadd.f32 %v732_v21, %v702_v57  ;;  %v719_v54 = vadd.f32 %v715_v37, %v685_v56 }
 0x13c   : > { %v735_v13 = vadd.f32 %v730_v16, %v701_v9  ;;  %v749_v14 = vsel %vm419_vm1, %v746_v49, %v748_v15  ;;  %v983_v58 = vstv %s8433_s12  ;;  %v995_v5 = vstv %s6747_s26  ;;  %s6912_s12 = sld [smem:[#allocation9 + $0x2c]]  ;;  %s6933_s26 = sld [smem:[#allocation9 + $0x55]] }
 0x13d   : > { %v718_v7 = vadd.f32 %v713_v28, %v684_v41  ;;  %v747_v0 = vsel %vm419_vm1, %v745_v45, %v746_v49  ;;  %v767_v32 = vadd.f32 %v8287_v4, %v736_v46  ;;  %v753_v35 = vadd.f32 %v749_v14, %v719_v54  ;;  %v10702_v54 = vld [vmem:[#allocation37_spill] sm:$0xff] }
 0x13e   : > { %v766_v60 = vadd.f32 %v8289_v10, %v735_v13  ;;  %v989_v39 = vstv %s8442_s23  ;;  %v985_v61 = vmul.f32 %v8051_v47, %v983_v58  ;;  %v997_v42 = vmul.f32 %v8051_v47, %v995_v5  ;;  %s6953_s23 = sld [smem:[#allocation9 + $0x7d]] }
 0x13f   : > { %v8425_v53 = vpop.permute.xlu1 %951  ;;  %v8427_v6 = vpop.permute.xlu0 %949  ;;  %v752_v40 = vadd.f32 %v747_v0, %v718_v7  ;;  %v802_v38 = vadd.f32 %v8309_v2, %v767_v32  ;;  %v998_v43 = vmul.f32 %v8057_v51, %v995_v5  ;;  %v1029_v18 = vstv %s6749_s19  ;;  %s6934_s19 = sld [smem:[#allocation9 + $0x56]] }
 0x140   : > { %v801_v1 = vadd.f32 %v8311_v8, %v766_v60  ;;  %v781_v4 = vadd.f32 %v8298_v34, %v753_v35  ;;  %v984_v27 = vmul.f32 %v8054_v50, %v983_v58  ;;  %v991_v3 = vmul.f32 %v8051_v47, %v989_v39 }
 0x141   : > { %v780_v10 = vadd.f32 %v8300_v36, %v752_v40  ;;  %v844_v2 = vadd.f32 %v8331_v62, %v802_v38  ;;  %v996_v21 = vmul.f32 %v8054_v50, %v995_v5  ;;  %v1012_v16 = vstv %s6748_s17  ;;  %s6954_s17 = sld [smem:[#allocation9 + $0x7e]] }
 0x142   : > { %v843_v8 = vadd.f32 %v8333_v52, %v801_v1  ;;  %v823_v49 = vadd.f32 %v8320_v30, %v781_v4  ;;  %v1003_v62 = vrot.slane %v997_v42, 1  ;;  %v1005_v41 = vrot.slane %v998_v43, 1 }
 0x143   : > { %v8435_v33 = vpop.permute.xlu1 %972  ;;  %v8437_v11 = vpop.permute.xlu0 %970  ;;  %v822_v56 = vadd.f32 %v8322_v12, %v780_v10  ;;  %v879_v34 = vadd.f32 %v8363_v26, %v844_v2  ;;  %v1031_v52 = vmul.f32 %v8051_v47, %v1029_v18  ;;  %v1032_v57 = vmul.f32 %v8057_v51, %v1029_v18 }
 0x144   : > { %v878_v36 = vadd.f32 %v8365_v55, %v843_v8  ;;  %v865_v15 = vadd.f32 %v8349_v24, %v823_v49  ;;  %v1002_v28 = vrot.slane %v996_v21, 1  ;;  %v1030_v55 = vmul.f32 %v8054_v50, %v1029_v18 }
 0x145   : > { %v864_v30 = vadd.f32 %v8351_v25, %v822_v56  ;;  %v914_v12 = vadd.f32 %v8399_v17, %v879_v34  ;;  %v1014_v45 = vmul.f32 %v8051_v47, %v1012_v16  ;;  %v1015_v46 = vmul.f32 %v8057_v51, %v1012_v16 }
 0x146   : > { %v913_v26 = vadd.f32 %v8401_v31, %v878_v36  ;;  %v893_v13 = vadd.f32 %v8382_v63, %v865_v15  ;;  %v990_v17 = vmul.f32 %v8054_v50, %v989_v39  ;;  %v1037_v14 = vrot.slane %v1031_v52, 2 }
 0x147   : > { %v8444_v29 = vpop.permute.xlu1 %1070  ;;  %v8446_v23 = vpop.permute.xlu0 %1068  ;;  %v892_v7 = vadd.f32 %v10702_v54, %v864_v30  ;;  %v956_v24 = vadd.f32 %v8425_v53, %v914_v12  ;;  %v1039_v31 = vrot.slane %v1032_v57, 2  ;;  %v1013_v0 = vmul.f32 %v8054_v50, %v1012_v16 }
 0x148   : > { %v955_v25 = vadd.f32 %v8427_v6, %v913_v26  ;;  %v935_v32 = vadd.f32 %v8413_v44, %v893_v13  ;;  %v1006_v63 = vsel %vm384_vm0, %v1003_v62, %v1005_v41  ;;  %v1046_v35 = vstv %s8471_s24  ;;  %s6932_s24 = sld [smem:[#allocation9 + $0x54]] }
 0x149   : > { %v934_v60 = vadd.f32 %v8415_v22, %v892_v7  ;;  %v1004_v40 = vsel %vm384_vm0, %v1002_v28, %v1003_v62  ;;  %v1036_v53 = vrot.slane %v1030_v55, 2  ;;  %v1020_v38 = vrot.slane %v1014_v45, 1 }
 0x14a   : > { %v1022_v6 = vrot.slane %v1015_v46, 1  ;;  %v987_v1 = vadd.f32 %v985_v61, %v956_v24  ;;  %v986_v39 = vadd.f32 %v984_v27, %v955_v25  ;;  %v977_v42 = vadd.f32 %v8435_v33, %v935_v32 }
 0x14b   : > { %v8451_v59 = vpop.permute.xlu1 %1084  ;;  %v8453_v48 = vpop.permute.xlu0 %1082  ;;  %v976_v43 = vadd.f32 %v8437_v11, %v934_v60  ;;  %v1048_v18 = vmul.f32 %v8051_v47, %v1046_v35  ;;  %v1049_v44 = vmul.f32 %v8057_v51, %v1046_v35  ;;  %v1019_v4 = vrot.slane %v1013_v0, 1 }
 0x14c   : > { %v1047_v22 = vmul.f32 %v8054_v50, %v1046_v35  ;;  %v1040_v8 = vsel %vm419_vm1, %v1037_v14, %v1039_v31  ;;  %v1038_v21 = vsel %vm419_vm1, %v1036_v53, %v1037_v14  ;;  %v1023_v61 = vsel %vm384_vm0, %v1020_v38, %v1022_v6 }
 0x14d   : > { %v993_v27 = vadd.f32 %v991_v3, %v977_v42  ;;  %v992_v16 = vadd.f32 %v990_v17, %v976_v43  ;;  %v1010_v33 = vadd.f32 %v1006_v63, %v987_v1  ;;  %v1009_v49 = vadd.f32 %v1004_v40, %v986_v39  ;;  %v10703_v63 = vld [vmem:[#allocation26_spill] sm:$0xff] }
 0x14e   : > { %v1054_v11 = vrot.slane %v1048_v18, 2  ;;  %v1056_v56 = vrot.slane %v1049_v44, 2  ;;  %v1021_v47 = vsel %vm384_vm0, %v1019_v4, %v1020_v38  ;;  %v1053_v51 = vrot.slane %v1047_v22, 2 }
 0x14f   : > { %v8463_v19 = vpop.permute.xlu1 %1105  ;;  %v8465_v20 = vpop.permute.xlu0 %1103  ;;  %v1044_v50 = vadd.f32 %v1040_v8, %v1010_v33  ;;  %v1043_v62 = vadd.f32 %v1038_v21, %v1009_v49  ;;  %v1027_v41 = vadd.f32 %v1023_v61, %v993_v27  ;;  %v1026_v52 = vadd.f32 %v1021_v47, %v992_v16  ;;  %v10705_v21 = vld [vmem:[#allocation28_spill] sm:$0xff]  ;;  %v10706_v27 = vld [vmem:[#allocation29_spill] sm:$0xff]  ;;  %v10708_v47 = vld [vmem:[#allocation31_spill] sm:$0xff] }
 0x150   : > { %v1057_v57 = vsel %vm419_vm1, %v1054_v11, %v1056_v56  ;;  %v1055_v15 = vsel %vm419_vm1, %v1053_v51, %v1054_v11  ;;  %v1291_v7 = vstv %s6766_s10  ;;  %v10707_v11 = vld [vmem:[#allocation30_spill] sm:$0xff]  ;;  %s6973_s10 = sld [smem:[#allocation9 + $0xa5]] }
 0x151   : > { %v1075_v12 = vadd.f32 %v8444_v29, %v1044_v50  ;;  %v1074_v26 = vadd.f32 %v8446_v23, %v1043_v62  ;;  %v1061_v28 = vadd.f32 %v1057_v57, %v1027_v41  ;;  %v1060_v55 = vadd.f32 %v1055_v15, %v1026_v52  ;;  %v10709_v50 = vld [vmem:[#allocation32_spill] sm:$0xff]  ;;  %v10710_v41 = vld [vmem:[#allocation33_spill] sm:$0xff]  ;;  %v10711_v57 = vld [vmem:[#allocation34_spill] sm:$0xff] }
 0x152   : > { %v1293_v35 = vmul.f32 %v10703_v63, %v1291_v7 }
 0x153   : > { %v8482_v9 = vpop.permute.xlu1 %1126  ;;  %v8484_v37 = vpop.permute.xlu0 %1124  ;;  %v1110_v13 = vadd.f32 %v8463_v19, %v1075_v12  ;;  %v1109_v54 = vadd.f32 %v8465_v20, %v1074_v26  ;;  %v1089_v24 = vadd.f32 %v8451_v59, %v1061_v28  ;;  %v1088_v25 = vadd.f32 %v8453_v48, %v1060_v55  ;;  %v10704_v19 = vld [vmem:[#allocation27_spill] sm:$0xff] }
 0x154   : > { %v1292_v40 = vmul.f32 %v10704_v19, %v1291_v7  ;;  %v1297_v20 = vstv %s8515_s18  ;;  %s6814_s18 = sld [smem:[#allocation9 + $0x2a]] }
 0x155   : > { %v1131_v23 = vadd.f32 %v8482_v9, %v1089_v24  ;;  %v1130_v0 = vadd.f32 %v8484_v37, %v1088_v25  ;;  %v1299_v9 = vmul.f32 %v10703_v63, %v1297_v20  ;;  %v1298_v37 = vmul.f32 %v10704_v19, %v1297_v20 }
 0x157   : > { %v1148_v58 = vpop.permute.xlu1 %1147  ;;  %v1146_v5 = vpop.permute.xlu0 %1145 }
 0x158   : > { %v1152_v17 = vadd.f32 %v1148_v58, %v1110_v13  ;;  %v1151_v14 = vadd.f32 %v1146_v5, %v1109_v54 }
 0x15b   : > { %v1169_v10 = vpop.permute.xlu1 %1168  ;;  %v1167_v2 = vpop.permute.xlu0 %1166 }
 0x15c   : > { %v1173_v53 = vadd.f32 %v1169_v10, %v1131_v23  ;;  %v1172_v38 = vadd.f32 %v1167_v2, %v1130_v0 }
 0x15f   : > { %v1183_v34 = vpop.permute.xlu1 %1182  ;;  %v1181_v36 = vpop.permute.xlu0 %1180 }
 0x160   : > { %v1187_v32 = vadd.f32 %v1183_v34, %v1152_v17  ;;  %v1186_v60 = vadd.f32 %v1181_v36, %v1151_v14 }
 0x163   : > { %v1197_v3 = vpop.permute.xlu1 %1196  ;;  %v1195_v30 = vpop.permute.xlu0 %1194 }
 0x164   : > { %v1201_v5 = vadd.f32 %v1197_v3, %v1173_v53  ;;  %v1200_v1 = vadd.f32 %v1195_v30, %v1172_v38  ;;  %v10712_v3 = vld [vmem:[#allocation35_spill] sm:$0xff] }
 0x167   : > { %v1218_v45 = vpop.permute.xlu1 %1217  ;;  %v1216_v46 = vpop.permute.xlu0 %1215 }
 0x168   : > { %v1222_v59 = vadd.f32 %v1218_v45, %v1187_v32  ;;  %v1221_v6 = vadd.f32 %v1216_v46, %v1186_v60 }
 0x16b   : > { %v1239_v31 = vpop.permute.xlu1 %1238  ;;  %v1237_v29 = vpop.permute.xlu0 %1236 }
 0x16c   : > { %v1243_v43 = vadd.f32 %v1239_v31, %v1201_v5  ;;  %v1242_v18 = vadd.f32 %v1237_v29, %v1200_v1 }
 0x16f   : > { %v1260_v48 = vpop.permute.xlu1 %1259  ;;  %v1258_v58 = vpop.permute.xlu0 %1257 }
 0x170   : > { %v1264_v39 = vadd.f32 %v1260_v48, %v1222_v59  ;;  %v1263_v42 = vadd.f32 %v1258_v58, %v1221_v6 }
 0x172   : > { %v1295_v44 = vadd.f32 %v1293_v35, %v1264_v39  ;;  %v1294_v4 = vadd.f32 %v1292_v40, %v1263_v42 }
 0x173   : > { %v1281_v22 = vpop.permute.xlu1 %1280  ;;  %v1279_v8 = vpop.permute.xlu0 %1278 }
 0x174   : > { %v1285_v10 = vadd.f32 %v1281_v22, %v1243_v43  ;;  %v1284_v2 = vadd.f32 %v1279_v8, %v1242_v18  ;;  %v1318_v61 = vadd.f32 %v10705_v21, %v1295_v44  ;;  %v1317_v16 = vadd.f32 %v10706_v27, %v1294_v4 }
 0x176   : > { %v1301_v33 = vadd.f32 %v1299_v9, %v1285_v10  ;;  %v1300_v49 = vadd.f32 %v1298_v37, %v1284_v2  ;;  %v1352_v56 = vadd.f32 %v10707_v11, %v1318_v61  ;;  %v1351_v51 = vadd.f32 %v10708_v47, %v1317_v16 }
 0x177   : > { %v1379_v34 = vpop.permute.xlu1 %1378  ;;  %v1377_v36 = vpop.permute.xlu0 %1376 }
 0x178   : > { %v1335_v62 = vadd.f32 %v10709_v50, %v1301_v33  ;;  %v1334_v52 = vadd.f32 %v10710_v41, %v1300_v49  ;;  %v1383_v29 = vadd.f32 %v1379_v34, %v1352_v56  ;;  %v1382_v23 = vadd.f32 %v1377_v36, %v1351_v51  ;;  %v10713_v50 = vld [vmem:[#allocation36_spill] sm:$0xff] }
 0x17a   : > { %v1369_v15 = vadd.f32 %v10711_v57, %v1335_v62  ;;  %v1368_v30 = vadd.f32 %v10712_v3, %v1334_v52  ;;  %v10649_v62 = vmov 0.0  }
 0x17b   : > { %v1393_v12 = vpop.permute.xlu1 %1392  ;;  %v1391_v26 = vpop.permute.xlu0 %1390  ;;  %1779 = vst.msk [vmem:[#allocation3 + $0x10] sm:$0xff] %vm1775_vm3, %v10649_v62  ;;  %1776 = vst.msk [vmem:[#allocation3] sm:$0xff] %vm1775_vm3, %v10649_v62  ;;  %7219 = vmatprep.subr.mxu0 %v10649_v62 }
 0x17c   : > { %v1397_v35 = vadd.f32 %v1393_v12, %v1369_v15  ;;  %v1396_v19 = vadd.f32 %v1391_v26, %v1368_v30  ;;  %1780 = vst.msk [vmem:[#allocation3 + $0x18] sm:$0xf] %vm1777_vm4, %v10649_v62  ;;  %1778 = vst.msk [vmem:[#allocation3 + $0x8] sm:$0xf] %vm1777_vm4, %v10649_v62 }
 0x17f   : > { %v1414_v28 = vpop.permute.xlu1 %1413  ;;  %v1412_v55 = vpop.permute.xlu0 %1411 }
 0x180   : > { %v1418_v60 = vadd.f32 %v1414_v28, %v1383_v29  ;;  %v1417_v63 = vadd.f32 %v1412_v55, %v1382_v23  ;;  %v3172_v28 = vstv %s6914_s25  ;;  %v3164_v55 = vstv %s6913_s20  ;;  %s6812_s25 = sld [smem:[#allocation9 + $0x28]]  ;;  %s10638_s20 = smov 125  }
 0x181   : > { %v3652_v23 = vstv %s6954_s17  ;;  %s10634_s17 = smov 124  }
 0x183   : > { %v1435_v45 = vpop.permute.xlu1 %1434  ;;  %v1433_v46 = vpop.permute.xlu0 %1432 }
 0x184   : > { %v1439_v59 = vadd.f32 %v1435_v45, %v1397_v35  ;;  %v1438_v6 = vadd.f32 %v1433_v46, %v1396_v19  ;;  %v3884_v35 = vstv %s6973_s10  ;;  %v2018_v19 = vstv %s6814_s18  ;;  %s6852_s10 = sld [smem:[#allocation9 + $0x78]]  ;;  %s6873_s18 = sld [smem:[#allocation9 + $0xa1]] }
 0x187   : > { %v1456_v13 = vpop.permute.xlu1 %1455  ;;  %v1454_v54 = vpop.permute.xlu0 %1453 }
 0x188   : > { %v1460_v40 = vadd.f32 %v1456_v13, %v1418_v60  ;;  %v1459_v20 = vadd.f32 %v1454_v54, %v1417_v63  ;;  %v3156_v54 = vstv %s6912_s12  ;;  %s6833_s12 = sld [smem:[#allocation9 + $0x51]] }
 0x18b   : > { %v1477_v7 = vpop.permute.xlu1 %1476  ;;  %v1475_v24 = vpop.permute.xlu0 %1474 }
 0x18c   : > { %v1481_v5 = vadd.f32 %v1477_v7, %v1439_v59  ;;  %v1480_v1 = vadd.f32 %v1475_v24, %v1438_v6  ;;  %v3404_v7 = vstv %s6933_s26  ;;  %s6853_s26 = sld [smem:[#allocation9 + $0x79]] }
 0x18f   : > { %v1491_v25 = vpop.permute.xlu1 %1490  ;;  %v1489_v17 = vpop.permute.xlu0 %1488 }
 0x190   : > { %v1495_v48 = vadd.f32 %v1491_v25, %v1460_v40  ;;  %v1494_v58 = vadd.f32 %v1489_v17, %v1459_v20  ;;  %v3644_v17 = vstv %s6953_s23  ;;  %s6834_s23 = sld [smem:[#allocation9 + $0x52]] }
 0x193   : > { %v1505_v14 = vpop.permute.xlu1 %1504  ;;  %v1503_v31 = vpop.permute.xlu0 %1502 }
 0x194   : > { %v1509_v43 = vadd.f32 %v1505_v14, %v1481_v5  ;;  %v1508_v18 = vadd.f32 %v1503_v31, %v1480_v1  ;;  %v3412_v14 = vstv %s6934_s19  ;;  %s6854_s19 = sld [smem:[#allocation9 + $0x7a]] }
 0x197   : > { %v1526_v0 = vpop.permute.xlu1 %1525  ;;  %v1524_v32 = vpop.permute.xlu0 %1523 }
 0x198   : > { %v1530_v39 = vadd.f32 %v1526_v0, %v1495_v48  ;;  %v1529_v42 = vadd.f32 %v1524_v32, %v1494_v58  ;;  %v3396_v0 = vstv %s6932_s24  ;;  %v2250_v48 = vstv %s6833_s12  ;;  %s6832_s24 = sld [smem:[#allocation9 + $0x50]]  ;;  %s8587_s12 = sld [smem:[#allocation9 + $0xa2]] }
 0x199   : > { %v2490_v58 = vstv %s6853_s26  ;;  %s8589_s26 = sld [smem:[#allocation9 + $0x2b]] }
 0x19b   : > { %v1547_v53 = vpop.permute.xlu1 %1546  ;;  %v1545_v38 = vpop.permute.xlu0 %1544 }
 0x19c   : > { %v1551_v22 = vadd.f32 %v1547_v53, %v1509_v43  ;;  %v1550_v8 = vadd.f32 %v1545_v38, %v1508_v18  ;;  %v2002_v38 = vstv %s6812_s25  ;;  %s6917_s25 = sld [smem:[#allocation9 + $0x35]]  ;;  %v2482_v18 = vstv %s6852_s10 }
 0x19d   : > { %s8609_s10 = sld [smem:[#allocation9 + $0x5d]] }
 0x19e   : > { %v2242_v43 = vstv %s6832_s24  ;;  %s8607_s24 = sld [smem:[#allocation9 + $0x36]] }
 0x19f   : > { %v1568_v9 = vpop.permute.xlu1 %1567  ;;  %v1566_v37 = vpop.permute.xlu0 %1565 }
 0x1a0   : > { %v1572_v44 = vadd.f32 %v1568_v9, %v1530_v39  ;;  %v1571_v4 = vadd.f32 %v1566_v37, %v1529_v42  ;;  %v2258_v39 = vstv %s6834_s23  ;;  %v2498_v42 = vstv %s6854_s19  ;;  %s8593_s23 = sld [smem:[#allocation9 + $0x45]]  ;;  %s8597_s19 = sld [smem:[#allocation9 + $0x53]] }
 0x1a2   : > { %v1595_v10 = vmax.f32 %v1572_v44, 0.0  ;;  %v1594_v2 = vmax.f32 %v1571_v4, 0.0 }
 0x1a3   : > { %v1589_v21 = vpop.permute.xlu1 %1588  ;;  %v1587_v61 = vpop.permute.xlu0 %1586 }
 0x1a4   : > { %1598 = vst.msk [vmem:[#allocation2 + $0x8] sm:$0xff] %vm1596_vm2, %v1595_v10  ;;  %1597 = vst.msk [vmem:[#allocation2] sm:$0xff] %vm1596_vm2, %v1594_v2  ;;  %v1593_v27 = vadd.f32 %v1589_v21, %v1551_v22  ;;  %v1592_v16 = vadd.f32 %v1587_v61, %v1550_v8  ;;  %v2730_v22 = vstv %s6873_s18  ;;  %v3201_v2 = vstv %s6917_s25  ;;  %s10714_s18 = smov 124   ;;  %s8627_s25 = sld [smem:[#allocation9 + $0x65]] }
 0x1a6   : > { %v1600_v33 = vmax.f32 %v1593_v27, 0.0  ;;  %v1599_v49 = vmax.f32 %v1592_v16, 0.0  ;;  %v2738_v27 = vstv %s8587_s12  ;;  %v2026_v16 = vstv %s8589_s26  ;;  %s10715_s12 = smov 127   ;;  %s8650_s26 = sld [smem:[#allocation9 + $0x4e]] }
 0x1a8   : > { %1602 = vst.msk [vmem:[#allocation2 + $0x18] sm:$0xff] %vm1596_vm2, %v1600_v33  ;;  %1601 = vst.msk [vmem:[#allocation2 + $0x10] sm:$0xff] %vm1596_vm2, %v1599_v49 }
 0x1ab   : > { %v1603_v11 = vld [vmem:[#allocation2] ss:$2 sm:$0xff]  ;;  %v1607_v56 = vld [vmem:[#allocation2 + $0x1] ss:$2 sm:$0xff] }
 0x1ac   : > { %v1610_v47 = vmax.f32 %v1603_v11, %v1607_v56  ;;  %v3305_v56 = vstv %s8593_s23  ;;  %s8654_s23 = sld [smem:[#allocation9 + $0x34]] }
 0x1ae   : > { %7134 = vmatprep.mubr.msk.f32.mxu1 %vm1596_vm2, %v1610_v47 }
 0x1af   : > { %v1605_v51 = vld [vmem:[#allocation2 + $0x10] ss:$2 sm:$0xff]  ;;  %v1609_v34 = vld [vmem:[#allocation2 + $0x11] ss:$2 sm:$0xff] }
 0x1b0   : > { %v1611_v36 = vmax.f32 %v1605_v51, %v1609_v34  ;;  %v2266_v34 = vstv %s8597_s19  ;;  %s8656_s19 = sld [smem:[#allocation9 + $0x3c]] }
 0x1b2   : > { %7135 = vmatmul.mubr.msk.f32.vlgmr.msra.gmra.mrb[0].mxu1 %vm1596_vm2, %v1611_v36 }
 0x1b3   : > { %7311 = vmatpush3.bf16.msra.mxu1 %v10713_v50  ;;  %7141 = vmatprep.mubr.msk.f32.mxu1 %vm1596_vm2, %v1610_v47 }
 0x1b4   : > { %7144 = vmatprep.subr.mxu1 %v10649_v62 }
 0x1b6   : > { %7142 = vmatmul.mubr.msk.f32.vlgmr.msra.gmra.mrb[2].mxu1 %vm1596_vm2, %v1611_v36 }
 0x285   : > { %v7136_v41 = vpop.f32.mrb[0].mxu1 }
 0x286   : > { %v1686_v52 = vpop.f32.mrb[1].mxu1 }
 0x289   : > { %v7143_v57 = vpop.f32.mrb[2].mxu1 }
 0x28a   : > { %v1774_v15 = vmax.f32 %v7136_v41, %v7143_v57  ;;  %v1764_v3 = vpop.f32.mrb[3].mxu1 }
 0x28b   : > { %v1773_v30 = vmax.f32 %v1686_v52, %v1764_v3 }
 0x28c   : > { %1788 = vrot.lane.b32.xlu1 %v1774_v15, %s7633_s21 }
 0x28d   : > { %1782 = vrot.lane.b32.xlu0 %v1773_v30, %s7633_s21  ;;  %s6813_s21 = sld [smem:[#allocation9 + $0x29]]  ;;  %v3214_v30 = vstv %s8607_s24  ;;  %s8671_s24 = sld [smem:[#allocation9 + $0x75]] }
 0x293   : > { %v2010_v53 = vstv %s6813_s21  ;;  %s6872_s21 = sld [smem:[#allocation9 + $0xa0]] }
 0x299   : > { %v2722_v8 = vstv %s6872_s21  ;;  %s8621_s21 = sld [smem:[#allocation9 + $0x3e]] }
 0x2fe   : > { %v1789_v12 = vpop.permute.xlu1 %1788 }
 0x2ff   : > { %1792 = vst.msk [vmem:[#allocation3 + $0x12] sm:$0xff] %vm1785_vm5, %v1789_v12  ;;  %v1783_v26 = vpop.permute.xlu0 %1782 }
 0x300   : > { %1786 = vst.msk [vmem:[#allocation3 + $0x2] sm:$0xff] %vm1785_vm5, %v1783_v26 }
 0x306   : > { %v8553_v45 = vld [vmem:[#allocation3 + $0x10] sm:$0xff]  ;;  %v8603_v10 = vld [vmem:[#allocation3 + $0x18] sm:$0xf] }
 0x307   : > { %v3173_v46 = vmul.f32 %v3172_v28, %v8553_v45  ;;  %v3165_v13 = vmul.f32 %v3164_v55, %v8553_v45  ;;  %v3157_v24 = vmul.f32 %v3156_v54, %v8553_v45  ;;  %v3405_v25 = vmul.f32 %v3404_v7, %v8553_v45  ;;  %v8569_v63 = vld [vmem:[#allocation3] sm:$0xff] }
 0x308   : > { %v3645_v31 = vmul.f32 %v3644_v17, %v8553_v45  ;;  %v3413_v29 = vmul.f32 %v3412_v14, %v8553_v45  ;;  %v3653_v32 = vmul.f32 %v3652_v23, %v8553_v45  ;;  %v3397_v60 = vmul.f32 %v3396_v0, %v8553_v45 }
 0x309   : > { %3175 = vrot.lane.b32.xlu1 %v3173_v46, %s10632_s13  ;;  %3167 = vrot.lane.b32.xlu0 %v3165_v13, %s10632_s13  ;;  %v3885_v40 = vmul.f32 %v3884_v35, %v8553_v45  ;;  %v2019_v20 = vmul.f32 %v2018_v19, %v8569_v63  ;;  %v2011_v59 = vmul.f32 %v2010_v53, %v8569_v63  ;;  %v3441_v55 = vstv %s8609_s10  ;;  %s8678_s10 = sld [smem:[#allocation9 + $0x5e]] }
 0x30a   : > { %v2003_v6 = vmul.f32 %v2002_v38, %v8569_v63  ;;  %v2251_v5 = vmul.f32 %v2250_v48, %v8569_v63  ;;  %v2491_v1 = vmul.f32 %v2490_v58, %v8569_v63  ;;  %v2259_v9 = vmul.f32 %v2258_v39, %v8569_v63 }
 0x30b   : > { %v2499_v37 = vmul.f32 %v2498_v42, %v8569_v63  ;;  %v2243_v44 = vmul.f32 %v2242_v43, %v8569_v63  ;;  %v2483_v4 = vmul.f32 %v2482_v18, %v8569_v63  ;;  %v2731_v21 = vmul.f32 %v2730_v22, %v8569_v63 }
 0x30c   : > { %v2723_v61 = vmul.f32 %v2722_v8, %v8569_v63  ;;  %v3202_v33 = vmul.f32 %v3201_v2, %v8553_v45  ;;  %v3203_v49 = vmul.f32 %v3201_v2, %v8603_v10  ;;  %v2739_v47 = vmul.f32 %v2738_v27, %v8569_v63 }
 0x30d   : > { %3159 = vrot.lane.b32.xlu1 %v3157_v24, %s10632_s13  ;;  %3407 = vrot.lane.b32.xlu0 %v3405_v25, %s10636_s22  ;;  %v2027_v51 = vmul.f32 %v2026_v16, %v8569_v63  ;;  %v3306_v52 = vmul.f32 %v3305_v56, %v8553_v45  ;;  %v3307_v57 = vmul.f32 %v3305_v56, %v8603_v10  ;;  %v3266_v14 = vstv %s8621_s21  ;;  %s8684_s21 = sld [smem:[#allocation9 + $0x44]] }
 0x30e   : > { %v3206_v15 = vrot.slane %v3202_v33, 1  ;;  %v3207_v3 = vrot.slane %v3203_v49, 1  ;;  %v2267_v12 = vmul.f32 %v2266_v34, %v8569_v63  ;;  %v3215_v25 = vmul.f32 %v3214_v30, %v8553_v45 }
 0x30f   : > { %v3310_v54 = vrot.slane %v3306_v52, 3  ;;  %v3311_v7 = vrot.slane %v3307_v57, 3  ;;  %v3216_v17 = vmul.f32 %v3214_v30, %v8603_v10  ;;  %v3442_v23 = vmul.f32 %v3441_v55, %v8553_v45 }
 0x310   : > { %v3208_v24 = vsel %vm384_vm0, %v3206_v15, %v3207_v3  ;;  %v3493_v0 = vstv %s8627_s25  ;;  %v3443_v35 = vmul.f32 %v3441_v55, %v8603_v10  ;;  %v3267_v53 = vmul.f32 %v3266_v14, %v8553_v45  ;;  %s8686_s25 = sld [smem:[#allocation9 + $0x66]] }
 0x311   : > { %3647 = vrot.lane.b32.xlu1 %v3645_v31, %s10638_s20  ;;  %3415 = vrot.lane.b32.xlu0 %v3413_v29, %s10636_s22  ;;  %v3268_v38 = vmul.f32 %v3266_v14, %v8603_v10  ;;  %v3370_v18 = vstv %s8650_s26  ;;  %v3188_v22 = vstv %s8654_s23  ;;  %s8716_s26 = sld [smem:[#allocation9 + $0x4c]]  ;;  %s8720_s23 = sld [smem:[#allocation9 + $0x76]] }
 0x312   : > { %v3447_v58 = vrot.slane %v3443_v35, 1  ;;  %v3240_v8 = vstv %s8656_s19  ;;  %v3371_v49 = vmul.f32 %v3370_v18, %v8553_v45  ;;  %v3454_v30 = vstv %s8678_s10  ;;  %s8726_s19 = sld [smem:[#allocation9 + $0x8d]] }
 0x313   : > { %v3242_v3 = vmul.f32 %v3240_v8, %v8603_v10  ;;  %v3456_v14 = vmul.f32 %v3454_v30, %v8603_v10  ;;  %s8737_s10 = sld [smem:[#allocation9 + $0x95]] }
 0x314   : > { %v3375_v57 = vrot.slane %v3371_v49, 4 }
 0x315   : > { %3655 = vrot.lane.b32.xlu1 %v3653_v32, %s10638_s20  ;;  %3399 = vrot.lane.b32.xlu0 %v3397_v60, %s10636_s22  ;;  %v3312_v60 = vsel %vm1917_vm6, %v3310_v54, %v3311_v7 }
 0x316   : > { %v3506_v55 = vstv %s8686_s25  ;;  %s8755_s25 = sld [smem:[#allocation9 + $0x5c]] }
 0x317   : > { %v3507_v35 = vmul.f32 %v3506_v55, %v8553_v45 }
 0x319   : > { %3887 = vrot.lane.b32.xlu0 %v3885_v40, %s10634_s17  ;;  %2021 = vrot.lane.b32.xlu1 %v2019_v20, %s10632_s13  ;;  %s8599_s17 = sld [smem:[#allocation9 + $0x4d]]  ;;  %v3219_v40 = vrot.slane %v3215_v25, 1  ;;  %v3220_v20 = vrot.slane %v3216_v17, 1  ;;  %v3246_v25 = vrot.slane %v3242_v3, 2  ;;  %v3455_v17 = vmul.f32 %v3454_v30, %v8553_v45 }
 0x31b   : > { %v3221_v42 = vsel %vm384_vm0, %v3219_v40, %v3220_v20 }
 0x31d   : > { %2013 = vrot.lane.b32.xlu0 %v2011_v59, %s10632_s13  ;;  %2005 = vrot.lane.b32.xlu1 %v2003_v6, %s10632_s13  ;;  %s8591_s13 = sld [smem:[#allocation9 + $0x3d]]  ;;  %v3446_v6 = vrot.slane %v3442_v23, 1 }
 0x31f   : > { %v3357_v36 = vstv %s8599_s17  ;;  %s8642_s17 = sld [smem:[#allocation9 + $0x46]]  ;;  %v3448_v2 = vsel %vm384_vm0, %v3446_v6, %v3447_v58  ;;  %v3511_v58 = vrot.slane %v3507_v35, 2 }
 0x320   : > { %v3358_v26 = vmul.f32 %v3357_v36, %v8553_v45  ;;  %v3359_v28 = vmul.f32 %v3357_v36, %v8603_v10  ;;  %v3190_v36 = vmul.f32 %v3188_v22, %v8603_v10 }
 0x321   : > { %2253 = vrot.lane.b32.xlu0 %v2251_v5, %s10636_s22  ;;  %2493 = vrot.lane.b32.xlu1 %v2491_v1, %s10638_s20  ;;  %v3494_v5 = vmul.f32 %v3493_v0, %v8553_v45  ;;  %v3495_v1 = vmul.f32 %v3493_v0, %v8603_v10 }
 0x322   : > { %v3362_v31 = vrot.slane %v3358_v26, 4  ;;  %v3363_v29 = vrot.slane %v3359_v28, 4  ;;  %v3292_v28 = vstv %s8684_s21  ;;  %s8748_s21 = sld [smem:[#allocation9 + $0x8e]] }
 0x323   : > { %v3253_v11 = vstv %s8591_s13  ;;  %s8633_s13 = sld [smem:[#allocation9 + $0x6d]] }
 0x324   : > { %v3254_v50 = vmul.f32 %v3253_v11, %v8553_v45  ;;  %v3255_v41 = vmul.f32 %v3253_v11, %v8603_v10  ;;  %v3364_v59 = vsel %vm1962_vm7, %v3362_v31, %v3363_v29  ;;  %v3372_v11 = vmul.f32 %v3370_v18, %v8603_v10 }
 0x325   : > { %2261 = vrot.lane.b32.xlu0 %v2259_v9, %s10636_s22  ;;  %2501 = vrot.lane.b32.xlu1 %v2499_v37, %s10638_s20  ;;  %v3318_v48 = vstv %s8642_s17  ;;  %v3271_v9 = vrot.slane %v3267_v53, 2  ;;  %v3272_v37 = vrot.slane %v3268_v38, 2  ;;  %s8697_s17 = sld [smem:[#allocation9 + $0x6e]]  ;;  %v3293_v31 = vmul.f32 %v3292_v28, %v8553_v45 }
 0x326   : > { %v3258_v46 = vrot.slane %v3254_v50, 2  ;;  %v3259_v13 = vrot.slane %v3255_v41, 2  ;;  %v3241_v50 = vmul.f32 %v3240_v8, %v8553_v45  ;;  %v3597_v41 = vstv %s8671_s24  ;;  %s8728_s24 = sld [smem:[#allocation9 + $0x86]] }
 0x327   : > { %v3273_v16 = vsel %vm419_vm1, %v3271_v9, %v3272_v37  ;;  %v3376_v15 = vrot.slane %v3372_v11, 4  ;;  %v3598_v54 = vmul.f32 %v3597_v41, %v8553_v45  ;;  %v3599_v7 = vmul.f32 %v3597_v41, %v8603_v10 }
 0x328   : > { %v3260_v32 = vsel %vm419_vm1, %v3258_v46, %v3259_v13  ;;  %v3194_v46 = vrot.slane %v3190_v36, 1  ;;  %v3245_v13 = vrot.slane %v3241_v50, 2  ;;  %v3294_v29 = vmul.f32 %v3292_v28, %v8603_v10 }
 0x329   : > { %2245 = vrot.lane.b32.xlu0 %v2243_v44, %s10636_s22  ;;  %2485 = vrot.lane.b32.xlu1 %v2483_v4, %s10638_s20  ;;  %v3545_v19 = vstv %s8633_s13  ;;  %v3319_v44 = vmul.f32 %v3318_v48, %v8553_v45  ;;  %v3320_v4 = vmul.f32 %v3318_v48, %v8603_v10  ;;  %s8695_s13 = sld [smem:[#allocation9 + $0x85]]  ;;  %v3603_v20 = vrot.slane %v3599_v7, 4 }
 0x32a   : > { %v3546_v39 = vmul.f32 %v3545_v19, %v8553_v45  ;;  %v3547_v43 = vmul.f32 %v3545_v19, %v8603_v10  ;;  %v3508_v19 = vmul.f32 %v3506_v55, %v8603_v10  ;;  %v3247_v40 = vsel %vm419_vm1, %v3245_v13, %v3246_v25 }
 0x32b   : > { %v3323_v56 = vrot.slane %v3319_v44, 3  ;;  %v3558_v0 = vstv %s8697_s17  ;;  %v3459_v53 = vrot.slane %v3455_v17, 1  ;;  %v3460_v38 = vrot.slane %v3456_v14, 1  ;;  %s8767_s17 = sld [smem:[#allocation9 + $0x9d]]  ;;  %v8789_v14 = vld [vmem:[#allocation3 + $0x8] sm:$0xf] }
 0x32c   : > { %v3550_v27 = vrot.slane %v3546_v39, 3  ;;  %v3551_v33 = vrot.slane %v3547_v43, 3  ;;  %v3298_v6 = vrot.slane %v3294_v29, 3  ;;  %v3559_v39 = vmul.f32 %v3558_v0, %v8553_v45 }
 0x32d   : > { %2733 = vrot.lane.b32.xlu0 %v2731_v21, %s10714_s18  ;;  %2725 = vrot.lane.b32.xlu1 %v2723_v61, %s10714_s18  ;;  %v3498_v21 = vrot.slane %v3494_v5, 2  ;;  %v3499_v61 = vrot.slane %v3495_v1, 2  ;;  %v3512_v5 = vrot.slane %v3508_v19, 2  ;;  %v3461_v9 = vsel %vm384_vm0, %v3459_v53, %v3460_v38 }
 0x32e   : > { %v3552_v52 = vsel %vm1917_vm6, %v3550_v27, %v3551_v33  ;;  %v3560_v37 = vmul.f32 %v3558_v0, %v8603_v10  ;;  %v3344_v43 = vstv %s8716_s26  ;;  %v3610_v18 = vstv %s8720_s23  ;;  %s8769_s26 = sld [smem:[#allocation9 + $0x41]]  ;;  %s8779_s23 = sld [smem:[#allocation9 + $0x64]] }
 0x32f   : > { %v3500_v34 = vsel %vm419_vm1, %v3498_v21, %v3499_v61  ;;  %v3681_v23 = vstv %s8695_s13  ;;  %v3694_v8 = vstv %s8728_s24  ;;  %v3563_v61 = vrot.slane %v3559_v39, 3  ;;  %s8762_s13 = sld [smem:[#allocation9 + $0x31]]  ;;  %s8802_s24 = sld [smem:[#allocation9 + $0x6c]] }
 0x330   : > { %v3682_v48 = vmul.f32 %v3681_v23, %v8553_v45  ;;  %v3683_v1 = vmul.f32 %v3681_v23, %v8603_v10  ;;  %v3345_v27 = vmul.f32 %v3344_v43, %v8553_v45  ;;  %v3346_v33 = vmul.f32 %v3344_v43, %v8603_v10 }
 0x331   : > { %2741 = vrot.lane.b32.xlu0 %v2739_v47, %s10714_s18  ;;  %2029 = vrot.lane.b32.xlu1 %v2027_v51, %s10715_s12  ;;  %v3324_v47 = vrot.slane %v3320_v4, 3  ;;  %v3189_v51 = vmul.f32 %v3188_v22, %v8553_v45  ;;  %v3733_v22 = vstv %s8726_s19  ;;  %v3611_v49 = vmul.f32 %v3610_v18, %v8553_v45  ;;  %s8781_s19 = sld [smem:[#allocation9 + $0x32]] }
 0x332   : > { %v3686_v4 = vrot.slane %v3682_v48, 1  ;;  %v3687_v21 = vrot.slane %v3683_v1, 1  ;;  %v3612_v11 = vmul.f32 %v3610_v18, %v8603_v10  ;;  %v3349_v36 = vrot.slane %v3345_v27, 4 }
 0x333   : > { %v3193_v26 = vrot.slane %v3189_v51, 1  ;;  %v3785_v51 = vstv %s8737_s10  ;;  %v3695_v50 = vmul.f32 %v3694_v8, %v8553_v45  ;;  %v3696_v41 = vmul.f32 %v3694_v8, %v8603_v10  ;;  %s8806_s10 = sld [smem:[#allocation9 + $0x3a]] }
 0x334   : > { %v3616_v3 = vrot.slane %v3612_v11, 4  ;;  %v3746_v30 = vstv %s8748_s21  ;;  %v3786_v28 = vmul.f32 %v3785_v51, %v8553_v45  ;;  %v3787_v13 = vmul.f32 %v3785_v51, %v8603_v10  ;;  %s8812_s21 = sld [smem:[#allocation9 + $0xad]] }
 0x335   : > { %3209 = vrot.lane.b32.xlu0 %v3208_v24, %s10715_s12  ;;  %2269 = vrot.lane.b32.xlu1 %v2267_v12, %s10636_s22  ;;  %v3325_v12 = vsel %vm1917_vm6, %v3323_v56, %v3324_v47  ;;  %v3377_v24 = vsel %vm1962_vm7, %v3375_v57, %v3376_v15  ;;  %v3734_v56 = vmul.f32 %v3733_v22, %v8553_v45  ;;  %v3350_v57 = vrot.slane %v3346_v33, 4 }
 0x336   : > { %v3735_v47 = vmul.f32 %v3733_v22, %v8603_v10  ;;  %v3615_v15 = vrot.slane %v3611_v49, 4  ;;  %v3699_v55 = vrot.slane %v3695_v50, 1  ;;  %v3747_v25 = vmul.f32 %v3746_v30, %v8553_v45 }
 0x337   : > { %v3351_v7 = vsel %vm1962_vm7, %v3349_v36, %v3350_v57  ;;  %v3748_v17 = vmul.f32 %v3746_v30, %v8603_v10  ;;  %v3790_v23 = vrot.slane %v3786_v28, 3  ;;  %v3837_v0 = vstv %s8767_s17  ;;  %s8834_s17 = sld [smem:[#allocation9 + $0x4a]] }
 0x338   : > { %v3791_v35 = vrot.slane %v3787_v13, 3  ;;  %v3839_v48 = vmul.f32 %v3837_v0, %v8603_v10  ;;  %v3532_v11 = vstv %s8802_s24  ;;  %s8855_s24 = sld [smem:[#allocation9 + $0x5a]] }
 0x339   : > { %3261 = vrot.lane.b32.xlu0 %v3260_v32, %s10715_s12  ;;  %3313 = vrot.lane.b32.xlu1 %v3312_v60, %s10715_s12  ;;  %v3195_v32 = vsel %vm384_vm0, %v3193_v26, %v3194_v46  ;;  %v3602_v60 = vrot.slane %v3598_v54, 4  ;;  %v3739_v26 = vrot.slane %v3735_v47, 2  ;;  %v3700_v46 = vrot.slane %v3696_v41, 1 }
 0x33a   : > { %v3428_v54 = vstv %s8755_s25  ;;  %v3752_v53 = vrot.slane %v3748_v17, 2  ;;  %s8814_s25 = sld [smem:[#allocation9 + $0x69]]  ;;  %v3792_v1 = vsel %vm1917_vm6, %v3790_v23, %v3791_v35  ;;  %v3843_v22 = vrot.slane %v3839_v48, 4 }
 0x33b   : > { %v3429_v19 = vmul.f32 %v3428_v54, %v8553_v45  ;;  %v3533_v57 = vmul.f32 %v3532_v11, %v8553_v45 }
 0x33d   : > { %3365 = vrot.lane.b32.xlu0 %v3364_v59, %s10715_s12  ;;  %3222 = vrot.lane.b32.xlu1 %v3221_v42, %s10715_s12  ;;  %v3297_v59 = vrot.slane %v3293_v31, 3  ;;  %v3604_v42 = vsel %vm1962_vm7, %v3602_v60, %v3603_v20  ;;  %v2047_v31 = vstv %s8762_s13  ;;  %v3701_v60 = vsel %vm384_vm0, %v3699_v55, %v3700_v46  ;;  %s8823_s13 = sld [smem:[#allocation9 + $0x74]] }
 0x33e   : > { %v3751_v20 = vrot.slane %v3747_v25, 2  ;;  %v2048_v38 = vmul.f32 %v2047_v31, %v8569_v63  ;;  %v3433_v39 = vrot.slane %v3429_v19, 1  ;;  %v3537_v13 = vrot.slane %v3533_v57, 3 }
 0x33f   : > { %v3299_v44 = vsel %vm1917_vm6, %v3297_v59, %v3298_v6  ;;  %v2049_v59 = vmul.f32 %v2047_v31, %v8789_v14  ;;  %v3838_v6 = vmul.f32 %v3837_v0, %v8553_v45 }
 0x340   : > { %v2052_v18 = vrot.slane %v2048_v38, 1  ;;  %v2391_v36 = vstv %s8814_s25  ;;  %s8888_s25 = sld [smem:[#allocation9 + $0x59]] }
 0x341   : > { %3449 = vrot.lane.b32.xlu0 %v3448_v2, %s10636_s22  ;;  %3274 = vrot.lane.b32.xlu1 %v3273_v16, %s10715_s12  ;;  %v3513_v2 = vsel %vm419_vm1, %v3511_v58, %v3512_v5  ;;  %v3564_v16 = vrot.slane %v3560_v37, 3  ;;  %v3480_v58 = vstv %s8779_s23  ;;  %v2060_v5 = vstv %s8781_s19  ;;  %s8848_s23 = sld [smem:[#allocation9 + $0x38]]  ;;  %s8853_s19 = sld [smem:[#allocation9 + $0x39]] }
 0x342   : > { %v3753_v37 = vsel %vm419_vm1, %v3751_v20, %v3752_v53  ;;  %v3481_v8 = vmul.f32 %v3480_v58, %v8553_v45  ;;  %v2061_v27 = vmul.f32 %v2060_v5, %v8569_v63  ;;  %v2062_v49 = vmul.f32 %v2060_v5, %v8789_v14 }
 0x343   : > { %v3584_v55 = vstv %s8823_s13  ;;  %s8890_s13 = sld [smem:[#allocation9 + $0x89]] }
 0x344   : > { %v3485_v51 = vrot.slane %v3481_v8, 2  ;;  %v3586_v19 = vmul.f32 %v3584_v55, %v8603_v10 }
 0x345   : > { %3501 = vrot.lane.b32.xlu0 %v3500_v34, %s10636_s22  ;;  %3553 = vrot.lane.b32.xlu1 %v3552_v52, %s10636_s22  ;;  %v3688_v34 = vsel %vm384_vm0, %v3686_v4, %v3687_v21  ;;  %v3565_v52 = vsel %vm1917_vm6, %v3563_v61, %v3564_v16  ;;  %v3842_v4 = vrot.slane %v3838_v6, 4  ;;  %v3482_v61 = vmul.f32 %v3480_v58, %v8603_v10 }
 0x347   : > { %v3844_v47 = vsel %vm1962_vm7, %v3842_v4, %v3843_v22  ;;  %v3486_v41 = vrot.slane %v3482_v61, 2  ;;  %v2086_v6 = vstv %s8848_s23  ;;  %v2099_v5 = vstv %s8853_s19  ;;  %s8912_s23 = sld [smem:[#allocation9 + $0x42]]  ;;  %s8914_s19 = sld [smem:[#allocation9 + $0x58]] }
 0x348   : > { %v2088_v4 = vmul.f32 %v2086_v6, %v8789_v14  ;;  %v2100_v22 = vmul.f32 %v2099_v5, %v8569_v63 }
 0x349   : > { %3326 = vrot.lane.b32.xlu0 %v3325_v12, %s10715_s12  ;;  %3378 = vrot.lane.b32.xlu1 %v3377_v24, %s10715_s12  ;;  %v3738_v12 = vrot.slane %v3734_v56, 2  ;;  %v3617_v24 = vsel %vm1962_vm7, %v3615_v15, %v3616_v3  ;;  %v2112_v56 = vstv %s8806_s10  ;;  %v2066_v15 = vrot.slane %v2062_v49, 1  ;;  %s8865_s10 = sld [smem:[#allocation9 + $0x49]] }
 0x34a   : > { %v3534_v3 = vmul.f32 %v3532_v11, %v8603_v10  ;;  %v2113_v30 = vmul.f32 %v2112_v56, %v8569_v63  ;;  %v3487_v46 = vsel %vm419_vm1, %v3485_v51, %v3486_v41  ;;  %v2104_v51 = vrot.slane %v2100_v22, 2 }
 0x34b   : > { %v3740_v29 = vsel %vm419_vm1, %v3738_v12, %v3739_v26  ;;  %v2114_v12 = vmul.f32 %v2112_v56, %v8789_v14 }
 0x34c   : > { %v3538_v25 = vrot.slane %v3534_v3, 3  ;;  %v2117_v17 = vrot.slane %v2113_v30, 2 }
 0x34d   : > { %3196 = vrot.lane.b32.xlu0 %v3195_v32, %s10715_s12  ;;  %3248 = vrot.lane.b32.xlu1 %v3247_v40, %s10715_s12  ;;  %v2151_v32 = vstv %s8769_s26  ;;  %v3430_v40 = vmul.f32 %v3428_v54, %v8603_v10  ;;  %s8841_s26 = sld [smem:[#allocation9 + $0xb5]]  ;;  %v2392_v54 = vmul.f32 %v2391_v36, %v8569_v63  ;;  %v2118_v31 = vrot.slane %v2114_v12, 2 }
 0x34e   : > { %v3539_v20 = vsel %vm1917_vm6, %v3537_v13, %v3538_v25 }
 0x34f   : > { %v3434_v43 = vrot.slane %v3430_v40, 1  ;;  %v2119_v53 = vsel %vm419_vm1, %v2117_v17, %v2118_v31  ;;  %v2203_v8 = vstv %s8865_s10  ;;  %s8944_s10 = sld [smem:[#allocation9 + $0x99]] }
 0x351   : > { %3605 = vrot.lane.b32.xlu0 %v3604_v42, %s10636_s22  ;;  %3462 = vrot.lane.b32.xlu1 %v3461_v9, %s10636_s22  ;;  %v2152_v42 = vmul.f32 %v2151_v32, %v8569_v63  ;;  %v2153_v9 = vmul.f32 %v2151_v32, %v8789_v14  ;;  %v3435_v16 = vsel %vm384_vm0, %v3433_v39, %v3434_v43 }
 0x352   : > { %v3585_v32 = vmul.f32 %v3584_v55, %v8553_v45  ;;  %v2579_v55 = vstv %s8890_s13  ;;  %s8966_s13 = sld [smem:[#allocation9 + $0x40]] }
 0x353   : > { %v2157_v21 = vrot.slane %v2153_v9, 3  ;;  %v3973_v40 = vstv %s8841_s26  ;;  %s8898_s26 = sld [smem:[#allocation9 + $0x6a]] }
 0x354   : > { %v3589_v58 = vrot.slane %v3585_v32, 4  ;;  %v3974_v9 = vmul.f32 %v3973_v40, %v8553_v45 }
 0x355   : > { %3300 = vrot.lane.b32.xlu0 %v3299_v44, %s10715_s12  ;;  %3514 = vrot.lane.b32.xlu1 %v3513_v2, %s10636_s22  ;;  %v2053_v44 = vrot.slane %v2049_v59, 1  ;;  %v2156_v2 = vrot.slane %v2152_v42, 3  ;;  %v3590_v42 = vrot.slane %v3586_v19, 4 }
 0x357   : > { %v2054_v33 = vsel %vm384_vm0, %v2052_v18, %v2053_v44  ;;  %v2158_v50 = vsel %vm1917_vm6, %v2156_v2, %v2157_v21  ;;  %v2087_v44 = vmul.f32 %v2086_v6, %v8569_v63  ;;  %v3591_v61 = vsel %vm1962_vm7, %v3589_v58, %v3590_v42 }
 0x359   : > { %3689 = vrot.lane.b32.xlu0 %v3688_v34, %s10638_s20  ;;  %3566 = vrot.lane.b32.xlu1 %v3565_v52, %s10636_s22  ;;  %v3921_v34 = vstv %s8812_s21  ;;  %v2065_v52 = vrot.slane %v2061_v27, 1  ;;  %s8867_s21 = sld [smem:[#allocation9 + $0x48]]  ;;  %v3978_v27 = vrot.slane %v3974_v9, 2  ;;  %v2091_v56 = vrot.slane %v2087_v44, 2 }
 0x35a   : > { %v3922_v26 = vmul.f32 %v3921_v34, %v8553_v45  ;;  %v3923_v28 = vmul.f32 %v3921_v34, %v8603_v10  ;;  %v2101_v45 = vmul.f32 %v2099_v5, %v8789_v14 }
 0x35c   : > { %v3926_v23 = vrot.slane %v3922_v26, 1  ;;  %v3927_v0 = vrot.slane %v3923_v28, 1  ;;  %v2105_v34 = vrot.slane %v2101_v45, 2  ;;  %v2287_v28 = vstv %s8888_s25  ;;  %s8952_s25 = sld [smem:[#allocation9 + $0x68]] }
 0x35d   : > { %3352 = vrot.lane.b32.xlu0 %v3351_v7, %s10715_s12  ;;  %3618 = vrot.lane.b32.xlu1 %v3617_v24, %s10636_s22  ;;  %v2393_v7 = vmul.f32 %v2391_v36, %v8789_v14  ;;  %v2067_v24 = vsel %vm384_vm0, %v2065_v52, %v2066_v15  ;;  %v2204_v36 = vmul.f32 %v2203_v8, %v8569_v63 }
 0x35e   : > { %v3928_v48 = vsel %vm384_vm0, %v3926_v23, %v3927_v0  ;;  %v2288_v0 = vmul.f32 %v2287_v28, %v8569_v63  ;;  %v2289_v32 = vmul.f32 %v2287_v28, %v8789_v14 }
 0x35f   : > { %v2397_v35 = vrot.slane %v2393_v7, 3  ;;  %v2208_v13 = vrot.slane %v2204_v36, 4  ;;  %v2404_v7 = vstv %s8898_s26  ;;  %s8996_s26 = sld [smem:[#allocation9 + $0x81]] }
 0x360   : > { %v2405_v58 = vmul.f32 %v2404_v7, %v8569_v63  ;;  %v2406_v5 = vmul.f32 %v2404_v7, %v8789_v14 }
 0x361   : > { %3741 = vrot.lane.b32.xlu0 %v3740_v29, %s10638_s20  ;;  %3702 = vrot.lane.b32.xlu1 %v3701_v60, %s10638_s20  ;;  %v2216_v29 = vstv %s8834_s17  ;;  %v2396_v60 = vrot.slane %v2392_v54, 3  ;;  %s8896_s17 = sld [smem:[#allocation9 + $0x61]] }
 0x362   : > { %v2217_v38 = vmul.f32 %v2216_v29, %v8569_v63  ;;  %v2218_v59 = vmul.f32 %v2216_v29, %v8789_v14  ;;  %v2409_v45 = vrot.slane %v2405_v58, 3 }
 0x363   : > { %v2398_v39 = vsel %vm1917_vm6, %v2396_v60, %v2397_v35  ;;  %v2580_v60 = vmul.f32 %v2579_v55, %v8569_v63  ;;  %v2581_v35 = vmul.f32 %v2579_v55, %v8789_v14 }
 0x364   : > { %v2221_v43 = vrot.slane %v2217_v38, 4  ;;  %v2222_v18 = vrot.slane %v2218_v59, 4 }
 0x365   : > { %3793 = vrot.lane.b32.xlu0 %v3792_v1, %s10638_s20  ;;  %3754 = vrot.lane.b32.xlu1 %v3753_v37, %s10638_s20  ;;  %v2300_v1 = vstv %s8855_s24  ;;  %v3975_v37 = vmul.f32 %v3973_v40, %v8603_v10  ;;  %v2190_v10 = vstv %s8867_s21  ;;  %s8942_s24 = sld [smem:[#allocation9 + $0x30]]  ;;  %s8950_s21 = sld [smem:[#allocation9 + $0x71]]  ;;  %v2584_v42 = vrot.slane %v2580_v60, 2 }
 0x366   : > { %v2223_v49 = vsel %vm1962_vm7, %v2221_v43, %v2222_v18  ;;  %v2191_v3 = vmul.f32 %v2190_v10, %v8569_v63  ;;  %v2192_v30 = vmul.f32 %v2190_v10, %v8789_v14  ;;  %v2585_v9 = vrot.slane %v2581_v35, 2 }
 0x367   : > { %v3979_v11 = vrot.slane %v3975_v37, 2  ;;  %v2339_v54 = vstv %s8896_s17  ;;  %s8968_s17 = sld [smem:[#allocation9 + $0xa9]] }
 0x368   : > { %v2195_v29 = vrot.slane %v2191_v3, 4  ;;  %v2196_v23 = vrot.slane %v2192_v30, 4  ;;  %v2340_v19 = vmul.f32 %v2339_v54, %v8569_v63  ;;  %v2341_v40 = vmul.f32 %v2339_v54, %v8789_v14 }
 0x369   : > { %3436 = vrot.lane.b32.xlu0 %v3435_v16, %s10636_s22  ;;  %2055 = vrot.lane.b32.xlu1 %v2054_v33, %s10715_s12  ;;  %v2301_v16 = vmul.f32 %v2300_v1, %v8569_v63  ;;  %v2302_v33 = vmul.f32 %v2300_v1, %v8789_v14  ;;  %v3980_v12 = vsel %vm419_vm1, %v3978_v27, %v3979_v11  ;;  %v2292_v1 = vrot.slane %v2288_v0, 1 }
 0x36a   : > { %v2344_v37 = vrot.slane %v2340_v19, 2  ;;  %v2345_v43 = vrot.slane %v2341_v40, 2 }
 0x36b   : > { %v2305_v57 = vrot.slane %v2301_v16, 1  ;;  %v2306_v15 = vrot.slane %v2302_v33, 1  ;;  %v2586_v16 = vsel %vm419_vm1, %v2584_v42, %v2585_v9  ;;  %v2034_v33 = vstv %s8942_s24  ;;  %s9006_s24 = sld [smem:[#allocation9 + $0xb9]] }
 0x36c   : > { %v2346_v11 = vsel %vm419_vm1, %v2344_v37, %v2345_v43  ;;  %v2035_v30 = vmul.f32 %v2034_v33, %v8569_v63  ;;  %v2527_v43 = vstv %s8996_s26  ;;  %s9061_s26 = sld [smem:[#allocation9 + $0x90]] }
 0x36d   : > { %3845 = vrot.lane.b32.xlu0 %v3844_v47, %s10638_s20  ;;  %2159 = vrot.lane.b32.xlu1 %v2158_v50, %s10715_s12  ;;  %v2092_v47 = vrot.slane %v2088_v4, 2  ;;  %v2205_v50 = vmul.f32 %v2203_v8, %v8789_v14  ;;  %v2307_v17 = vsel %vm384_vm0, %v2305_v57, %v2306_v15  ;;  %v2410_v8 = vrot.slane %v2406_v5, 3 }
 0x36e   : > { %v2767_v54 = vstv %s8968_s17  ;;  %s9059_s17 = sld [smem:[#allocation9 + $0x60]] }
 0x36f   : > { %v2093_v26 = vsel %vm419_vm1, %v2091_v56, %v2092_v47  ;;  %v2209_v31 = vrot.slane %v2205_v50, 4  ;;  %v2443_v47 = vstv %s8950_s21  ;;  %v2411_v50 = vsel %vm1917_vm6, %v2409_v45, %v2410_v8  ;;  %s9034_s21 = sld [smem:[#allocation9 + $0x9a]] }
 0x370   : > { %v2444_v55 = vmul.f32 %v2443_v47, %v8569_v63  ;;  %v2769_v42 = vmul.f32 %v2767_v54, %v8789_v14 }
 0x371   : > { %3488 = vrot.lane.b32.xlu0 %v3487_v46, %s10636_s22  ;;  %2068 = vrot.lane.b32.xlu1 %v2067_v24, %s10715_s12  ;;  %v2106_v46 = vsel %vm419_vm1, %v2104_v51, %v2105_v34  ;;  %v2210_v6 = vsel %vm1962_vm7, %v2208_v13, %v2209_v31  ;;  %v2378_v51 = vstv %s8952_s25  ;;  %v2138_v13 = vstv %s8966_s13  ;;  %s9038_s25 = sld [smem:[#allocation9 + $0x72]]  ;;  %s9054_s13 = sld [smem:[#allocation9 + $0x88]] }
 0x372   : > { %v2380_v0 = vmul.f32 %v2378_v51, %v8789_v14  ;;  %v2448_v40 = vrot.slane %v2444_v55, 4 }
 0x375   : > { %3540 = vrot.lane.b32.xlu0 %v3539_v20, %s10636_s22  ;;  %2120 = vrot.lane.b32.xlu1 %v2119_v53, %s10715_s12  ;;  %v2164_v20 = vstv %s8912_s23  ;;  %v2274_v53 = vstv %s8914_s19  ;;  %s8998_s23 = sld [smem:[#allocation9 + $0x8a]] }
 0x376   : > { %v2165_v18 = vmul.f32 %v2164_v20, %v8569_v63  ;;  %v2166_v44 = vmul.f32 %v2164_v20, %v8789_v14  ;;  %v2275_v10 = vmul.f32 %v2274_v53, %v8569_v63  ;;  %s9004_s19 = sld [smem:[#allocation9 + $0x62]] }
 0x378   : > { %v2169_v56 = vrot.slane %v2165_v18, 3  ;;  %v2170_v57 = vrot.slane %v2166_v44, 3  ;;  %v2279_v15 = vrot.slane %v2275_v10, 1  ;;  %v2871_v10 = vstv %s9006_s24  ;;  %s9085_s24 = sld [smem:[#allocation9 + $0x82]] }
 0x379   : > { %3929 = vrot.lane.b32.xlu0 %v3928_v48, %s10714_s18  ;;  %2399 = vrot.lane.b32.xlu1 %v2398_v39, %s10636_s22  ;;  %v2197_v48 = vsel %vm1962_vm7, %v2195_v29, %v2196_v23  ;;  %v2293_v39 = vrot.slane %v2289_v32, 1  ;;  %v2379_v23 = vmul.f32 %v2378_v51, %v8569_v63  ;;  %v2039_v32 = vrot.slane %v2035_v30, 1 }
 0x37a   : > { %v2171_v31 = vsel %vm1917_vm6, %v2169_v56, %v2170_v57 }
 0x37b   : > { %v8900_v2 = vpop.permute.xlu1 %3175  ;;  %v8902_v21 = vpop.permute.xlu0 %3167  ;;  %v2294_v27 = vsel %vm384_vm0, %v2292_v1, %v2293_v39  ;;  %v2383_v5 = vrot.slane %v2379_v23, 3  ;;  %v2384_v1 = vrot.slane %v2380_v0, 3  ;;  %v2768_v39 = vmul.f32 %v2767_v54, %v8569_v63 }
 0x37c   : > { %10716 = vst [vmem:[#allocation37_spill] sm:$0xff] %v8900_v2  ;;  %10717 = vst [vmem:[#allocation26_spill] sm:$0xff] %v8902_v21  ;;  %v2592_v18 = vstv %s8998_s23  ;;  %v2352_v8 = vstv %s9004_s19  ;;  %s9071_s23 = sld [smem:[#allocation9 + $0x2]]  ;;  %v2696_v23 = vstv %s9034_s21  ;;  %s9096_s21 = sld [smem:[#allocation9 + $0x98]] }
 0x37d   : > { %3592 = vrot.lane.b32.xlu0 %v3591_v61, %s10636_s22  ;;  %2224 = vrot.lane.b32.xlu1 %v2223_v49, %s10715_s12  ;;  %v2276_v61 = vmul.f32 %v2274_v53, %v8789_v14  ;;  %v2683_v49 = vstv %s8944_s10  ;;  %v2139_v53 = vmul.f32 %v2138_v13, %v8569_v63  ;;  %s9020_s10 = sld [smem:[#allocation9 + $0x91]]  ;;  %s9076_s19 = sld [smem:[#allocation9 + $0xa]] }
 0x37e   : > { %v2685_v28 = vmul.f32 %v2683_v49, %v8789_v14 }
 0x37f   : > { %v8916_v41 = vpop.permute.xlu1 %3159  ;;  %v8918_v52 = vpop.permute.xlu0 %3407  ;;  %v2280_v3 = vrot.slane %v2276_v61, 1  ;;  %v2143_v44 = vrot.slane %v2139_v53, 3 }
 0x380   : > { %10718 = vst [vmem:[#allocation27_spill] sm:$0xff] %v8916_v41  ;;  %10719 = vst [vmem:[#allocation28_spill] sm:$0xff] %v8918_v52  ;;  %v2689_v19 = vrot.slane %v2685_v28, 4  ;;  %v2354_v28 = vmul.f32 %v2352_v8, %v8789_v14 }
 0x381   : > { %3981 = vrot.lane.b32.xlu0 %v3980_v12, %s10714_s18  ;;  %2094 = vrot.lane.b32.xlu1 %v2093_v26, %s10715_s12  ;;  %v2036_v12 = vmul.f32 %v2034_v33, %v8789_v14  ;;  %v2684_v26 = vmul.f32 %v2683_v49, %v8569_v63  ;;  %v2281_v29 = vsel %vm384_vm0, %v2279_v15, %v2280_v3  ;;  %v2772_v33 = vrot.slane %v2768_v39, 1 }
 0x382   : > { %v2773_v49 = vrot.slane %v2769_v42, 1  ;;  %v2698_v42 = vmul.f32 %v2696_v23, %v8789_v14 }
 0x383   : > { %v8931_v24 = vpop.permute.xlu1 %3647  ;;  %v8933_v25 = vpop.permute.xlu0 %3415  ;;  %v2040_v60 = vrot.slane %v2036_v12, 1  ;;  %v2688_v35 = vrot.slane %v2684_v26, 4  ;;  %v2631_v3 = vstv %s9020_s10  ;;  %s9091_s10 = sld [smem:[#allocation9 + $0x12]] }
 0x384   : > { %10720 = vst [vmem:[#allocation29_spill] sm:$0xff] %v8931_v24  ;;  %10721 = vst [vmem:[#allocation30_spill] sm:$0xff] %v8933_v25  ;;  %v2774_v26 = vsel %vm384_vm0, %v2772_v33, %v2773_v49 }
 0x385   : > { %2107 = vrot.lane.b32.xlu0 %v2106_v46, %s10715_s12  ;;  %2308 = vrot.lane.b32.xlu1 %v2307_v17, %s10636_s22  ;;  %v2445_v46 = vmul.f32 %v2443_v47, %v8789_v14  ;;  %v2041_v9 = vsel %vm384_vm0, %v2039_v32, %v2040_v60  ;;  %v2690_v37 = vsel %vm1962_vm7, %v2688_v35, %v2689_v19  ;;  %v2456_v60 = vstv %s9038_s25  ;;  %s9102_s25 = sld [smem:[#allocation9 + $0x70]] }
 0x386   : > { %v2529_v47 = vmul.f32 %v2527_v43, %v8789_v14 }
 0x387   : > { %v8954_v38 = vpop.permute.xlu1 %3655  ;;  %v8956_v59 = vpop.permute.xlu0 %3399  ;;  %v2449_v20 = vrot.slane %v2445_v46, 4  ;;  %v2873_v46 = vmul.f32 %v2871_v10, %v8789_v14 }
 0x388   : > { %10722 = vst [vmem:[#allocation31_spill] sm:$0xff] %v8954_v38  ;;  %10723 = vst [vmem:[#allocation32_spill] sm:$0xff] %v8956_v59  ;;  %v2533_v54 = vrot.slane %v2529_v47, 1 }
 0x389   : > { %2211 = vrot.lane.b32.xlu0 %v2210_v6, %s10715_s12  ;;  %2198 = vrot.lane.b32.xlu1 %v2197_v48, %s10715_s12  ;;  %v2140_v6 = vmul.f32 %v2138_v13, %v8789_v14  ;;  %v2877_v53 = vrot.slane %v2873_v46, 3 }
 0x38b   : > { %v8970_v4 = vpop.permute.xlu1 %2021  ;;  %v8972_v22 = vpop.permute.xlu0 %3887  ;;  %v2144_v45 = vrot.slane %v2140_v6, 3  ;;  %v2633_v6 = vmul.f32 %v2631_v3, %v8789_v14 }
 0x38c   : > { %10724 = vst [vmem:[#allocation33_spill] sm:$0xff] %v8972_v22 }
 0x38d   : > { %2295 = vrot.lane.b32.xlu0 %v2294_v27, %s10636_s22  ;;  %2587 = vrot.lane.b32.xlu1 %v2586_v16, %s10638_s20  ;;  %v2450_v27 = vsel %vm1962_vm7, %v2448_v40, %v2449_v20  ;;  %v2385_v16 = vsel %vm1917_vm6, %v2383_v5, %v2384_v1  ;;  %v2145_v57 = vsel %vm1917_vm6, %v2143_v44, %v2144_v45  ;;  %v2358_v40 = vrot.slane %v2354_v28, 2 }
 0x38e   : > { %v2618_v44 = vstv %s9061_s26  ;;  %v2637_v33 = vrot.slane %v2633_v6, 3  ;;  %s10728_s26 = smov 126   ;;  %v2430_v6 = vstv %s9102_s25  ;;  %s9170_s25 = sld [smem:[#allocation9 + $0x10]] }
 0x38f   : > { %v8985_v34 = vpop.permute.xlu1 %2005  ;;  %v8987_v36 = vpop.permute.xlu0 %2013 }
 0x391   : > { %2347 = vrot.lane.b32.xlu0 %v2346_v11, %s10636_s22  ;;  %2412 = vrot.lane.b32.xlu1 %v2411_v50, %s10636_s22  ;;  %v9046_v11 = vld [vmem:[#allocation3] sm:$0xff]  ;;  %v2594_v50 = vmul.f32 %v2592_v18, %v8789_v14 }
 0x392   : > { %v2528_v56 = vmul.f32 %v9046_v11, %v2527_v43  ;;  %v2593_v51 = vmul.f32 %v9046_v11, %v2592_v18  ;;  %v2353_v15 = vmul.f32 %v9046_v11, %v2352_v8  ;;  %v2872_v55 = vmul.f32 %v9046_v11, %v2871_v10 }
 0x393   : > { %v9008_v7 = vpop.permute.xlu1 %2493  ;;  %v9010_v17 = vpop.permute.xlu0 %2253  ;;  %v2632_v32 = vmul.f32 %v9046_v11, %v2631_v3  ;;  %v2697_v39 = vmul.f32 %v9046_v11, %v2696_v23  ;;  %v2458_v43 = vmul.f32 %v2456_v60, %v8789_v14  ;;  %v2326_v18 = vstv %s9059_s17  ;;  %s9117_s17 = sld [smem:[#allocation9 + $0x1a]] }
 0x394   : > { %v2532_v13 = vrot.slane %v2528_v56, 1  ;;  %v2357_v0 = vrot.slane %v2353_v15, 2  ;;  %v2876_v20 = vrot.slane %v2872_v55, 3  ;;  %v2702_v56 = vrot.slane %v2698_v42, 4 }
 0x395   : > { %2172 = vrot.lane.b32.xlu0 %v2171_v31, %s10715_s12  ;;  %2282 = vrot.lane.b32.xlu1 %v2281_v29, %s10636_s22  ;;  %v2597_v31 = vrot.slane %v2593_v51, 2  ;;  %v2598_v29 = vrot.slane %v2594_v50, 2  ;;  %v2701_v49 = vrot.slane %v2697_v39, 4  ;;  %v2462_v3 = vrot.slane %v2458_v43, 4 }
 0x396   : > { %v2534_v5 = vsel %vm384_vm0, %v2532_v13, %v2533_v54  ;;  %v2359_v10 = vsel %vm419_vm1, %v2357_v0, %v2358_v40  ;;  %v2328_v13 = vmul.f32 %v2326_v18, %v8789_v14  ;;  %v2619_v54 = vmul.f32 %v9046_v11, %v2618_v44 }
 0x397   : > { %v9022_v48 = vpop.permute.xlu1 %2501  ;;  %v9024_v58 = vpop.permute.xlu0 %2261  ;;  %v2599_v1 = vsel %vm419_vm1, %v2597_v31, %v2598_v29  ;;  %v2540_v31 = vstv %s9085_s24  ;;  %v2703_v29 = vsel %vm1962_vm7, %v2701_v49, %v2702_v56  ;;  %v2670_v40 = vstv %s9096_s21  ;;  %s9156_s24 = sld [smem:[#allocation9 + $0x92]]  ;;  %s9167_s21 = sld [smem:[#allocation9 + $0x9e]] }
 0x398   : > { %v2332_v42 = vrot.slane %v2328_v13, 2  ;;  %v2542_v43 = vmul.f32 %v2540_v31, %v8789_v14  ;;  %v2431_v56 = vmul.f32 %v9046_v11, %v2430_v6 }
 0x399   : > { %2042 = vrot.lane.b32.xlu0 %v2041_v9, %s10715_s12  ;;  %2691 = vrot.lane.b32.xlu1 %v2690_v37, %s10638_s20  ;;  %v2566_v9 = vstv %s9054_s13  ;;  %v2457_v37 = vmul.f32 %v9046_v11, %v2456_v60  ;;  %s9114_s13 = sld [smem:[#allocation10 + $0x2]] }
 0x39a   : > { %v2567_v47 = vmul.f32 %v9046_v11, %v2566_v9  ;;  %v2568_v51 = vmul.f32 %v2566_v9, %v8789_v14  ;;  %v2623_v9 = vrot.slane %v2619_v54, 3 }
 0x39b   : > { %v9040_v63 = vpop.permute.xlu1 %2485  ;;  %v9042_v61 = vpop.permute.xlu0 %2245  ;;  %v2461_v15 = vrot.slane %v2457_v37, 4  ;;  %v2541_v37 = vmul.f32 %v9046_v11, %v2540_v31 }
 0x39c   : > { %v2571_v23 = vrot.slane %v2567_v47, 2  ;;  %v2572_v0 = vrot.slane %v2568_v51, 2  ;;  %v2432_v47 = vmul.f32 %v2430_v6, %v8789_v14  ;;  %v2819_v51 = vstv %s9125_s0  ;;  %s9190_s0 = sld [smem:[#allocation9 + $0x1]] }
 0x39d   : > { %2451 = vrot.lane.b32.xlu0 %v2450_v27, %s10636_s22  ;;  %2386 = vrot.lane.b32.xlu1 %v2385_v16, %s10636_s22  ;;  %s9104_s22 = sld [smem:[#allocation9 + $0xa8]]  ;;  %v2878_v27 = vsel %vm1917_vm6, %v2876_v20, %v2877_v53  ;;  %v2636_v16 = vrot.slane %v2632_v32, 3  ;;  %v2620_v32 = vmul.f32 %v2618_v44, %v8789_v14  ;;  %v2463_v20 = vsel %vm1962_vm7, %v2461_v15, %v2462_v3 }
 0x39e   : > { %v2436_v6 = vrot.slane %v2432_v47, 4 }
 0x39f   : > { %v9063_v30 = vpop.permute.xlu1 %2725  ;;  %v9065_v12 = vpop.permute.xlu0 %2733  ;;  %v2638_v46 = vsel %vm1917_vm6, %v2636_v16, %v2637_v33  ;;  %v2624_v44 = vrot.slane %v2620_v32, 3 }
 0x3a1   : > { %2146 = vrot.lane.b32.xlu0 %v2145_v57, %s10715_s12  ;;  %2775 = vrot.lane.b32.xlu1 %v2774_v26, %s10714_s18  ;;  %v1846_v57 = vstv %s9076_s19  ;;  %v2327_v26 = vmul.f32 %v9046_v11, %v2326_v18  ;;  %v2573_v18 = vsel %vm419_vm1, %v2571_v23, %v2572_v0  ;;  %v2625_v31 = vsel %vm1917_vm6, %v2623_v9, %v2624_v44  ;;  %s9356_s19 = sld [smem:[#allocation9 + $0xc0]] }
 0x3a2   : > { %v2644_v44 = vstv %s9156_s24  ;;  %s9227_s24 = sld [smem:[#allocation9 + $0xc1]] }
 0x3a3   : > { %v9080_v35 = vpop.permute.xlu1 %2029  ;;  %v9082_v19 = vpop.permute.xlu0 %2741  ;;  %v2331_v53 = vrot.slane %v2327_v26, 2 }
 0x3a4   : > { %10725 = vst [vmem:[#allocation34_spill] sm:$0xff] %v9080_v35  ;;  %v10756_v35 = vstv %s9117_s17 }
 0x3a5   : > { %2535 = vrot.lane.b32.xlu0 %v2534_v5, %s10638_s20  ;;  %2600 = vrot.lane.b32.xlu1 %v2599_v1, %s10638_s20  ;;  %s9122_s20 = sld [smem:[#allocation9 + $0x22]]  ;;  %v2754_v5 = vstv %s9104_s22  ;;  %s9163_s22 = sld [smem:[#allocation10]]  ;;  %v2333_v26 = vsel %vm419_vm1, %v2331_v53, %v2332_v42  ;;  %v2435_v53 = vrot.slane %v2431_v56, 4  ;;  %v9215_v56 = vld [vmem:[#allocation3 + $0x10] sm:$0xff] }
 0x3a6   : > { %v2755_v13 = vmul.f32 %v9046_v11, %v2754_v5  ;;  %v2756_v54 = vmul.f32 %v2754_v5, %v8789_v14  ;;  %v2820_v5 = vmul.f32 %v9046_v11, %v2819_v51 }
 0x3a7   : > { %v9106_v45 = vpop.permute.xlu1 %2269  ;;  %v9108_v8 = vpop.permute.xlu0 %3209 }
 0x3a8   : > { %10726 = vst [vmem:[#allocation35_spill] sm:$0xff] %v9106_v45  ;;  %10727 = vst [vmem:[#allocation36_spill] sm:$0xff] %v9108_v8  ;;  %v2923_v50 = vstv %s9227_s24  ;;  %v1847_v45 = vmul.f32 %v9046_v11, %v1846_v57  ;;  %s9430_s24 = sld [smem:[#allocation9 + $0xa4]] }
 0x3a9   : > { %2360 = vrot.lane.b32.xlu0 %v2359_v10, %s10728_s26  ;;  %2879 = vrot.lane.b32.xlu1 %v2878_v27, %s10714_s18  ;;  %v2671_v10 = vmul.f32 %v9046_v11, %v2670_v40  ;;  %v2672_v27 = vmul.f32 %v2670_v40, %v8789_v14  ;;  %v3798_v40 = vstv %s9143_s3  ;;  %s9209_s3 = sld [smem:[#allocation9 + $0x11]]  ;;  %v2925_v16 = vmul.f32 %v2923_v50, %v8789_v14 }
 0x3aa   : > { %v3799_v47 = vmul.f32 %v9215_v56, %v3798_v40 }
 0x3ab   : > { %v9127_v28 = vpop.permute.xlu1 %3313  ;;  %v9129_v55 = vpop.permute.xlu0 %3261  ;;  %v2675_v23 = vrot.slane %v2671_v10, 4  ;;  %v2676_v0 = vrot.slane %v2672_v27, 4  ;;  %v2929_v60 = vrot.slane %v2925_v16, 4  ;;  %v10746_v16 = vstv %s9091_s10 }
 0x3ac   : > { %10729 = vst [vmem:[#allocation38_spill] sm:$0xff] %v9127_v28  ;;  %10730 = vst [vmem:[#allocation39_spill] sm:$0xff] %v9129_v55 }
 0x3ad   : > { %2639 = vrot.lane.b32.xlu0 %v2638_v46, %s10731_s2  ;;  %2704 = vrot.lane.b32.xlu1 %v2703_v29, %s10731_s2  ;;  %v2545_v46 = vrot.slane %v2541_v37, 1  ;;  %v2546_v29 = vrot.slane %v2542_v43, 1  ;;  %v2759_v37 = vrot.slane %v2755_v13, 1  ;;  %v2760_v43 = vrot.slane %v2756_v54, 1 }
 0x3ae   : > { %v2677_v27 = vsel %vm1962_vm7, %v2675_v23, %v2676_v0  ;;  %v3850_v54 = vstv %s9167_s21  ;;  %v2514_v23 = vstv %s9175_s5  ;;  %s9243_s5 = sld [smem:[#allocation9 + $0x3]] }
 0x3af   : > { %v9150_v1 = vpop.permute.xlu1 %3222  ;;  %v9152_v39 = vpop.permute.xlu0 %3365  ;;  %v2547_v10 = vsel %vm384_vm0, %v2545_v46, %v2546_v29  ;;  %v2824_v29 = vrot.slane %v2820_v5, 2  ;;  %v3803_v5 = vrot.slane %v3799_v47, 3  ;;  %s9249_s21 = sld [smem:[#allocation9 + $0xb]] }
 0x3b0   : > { %10732 = vst [vmem:[#allocation40_spill] sm:$0xff] %v9150_v1  ;;  %10733 = vst [vmem:[#allocation41_spill] sm:$0xff] %v9152_v39 }
 0x3b1   : > { %2464 = vrot.lane.b32.xlu0 %v2463_v20, %s10728_s26  ;;  %2574 = vrot.lane.b32.xlu1 %v2573_v18, %s10731_s2  ;;  %v2821_v18 = vmul.f32 %v2819_v51, %v8789_v14  ;;  %v3851_v51 = vmul.f32 %v9215_v56, %v3850_v54 }
 0x3b3   : > { %v9179_v15 = vpop.permute.xlu1 %3274  ;;  %v9181_v3 = vpop.permute.xlu0 %3449  ;;  %v3855_v20 = vrot.slane %v3851_v51, 4 }
 0x3b4   : > { %10734 = vst [vmem:[#allocation42_spill] sm:$0xff] %v9179_v15  ;;  %10735 = vst [vmem:[#allocation43_spill] sm:$0xff] %v9181_v3  ;;  %v10774_v15 = vstv %s9163_s22  ;;  %s9567_s22 = sld [smem:[#allocation9 + $0x5b]]  ;;  %v10779_v3 = vstv %s9209_s3 }
 0x3b5   : > { %2334 = vrot.lane.b32.xlu0 %v2333_v26, %s10728_s26  ;;  %2626 = vrot.lane.b32.xlu1 %v2625_v31, %s10731_s2  ;;  %v9218_v26 = vld [vmem:[#allocation3 + $0x18] sm:$0xf]  ;;  %v2437_v31 = vsel %vm1962_vm7, %v2435_v53, %v2436_v6  ;;  %v2645_v53 = vmul.f32 %v9046_v11, %v2644_v44  ;;  %v2646_v6 = vmul.f32 %v2644_v44, %v8789_v14  ;;  %v3772_v44 = vstv %s9201_s27  ;;  %s9275_s27 = sld [smem:[#allocation9 + $0x7b]] }
 0x3b6   : > { %v3800_v13 = vmul.f32 %v9218_v26, %v3798_v40  ;;  %v3852_v32 = vmul.f32 %v9218_v26, %v3850_v54 }
 0x3b7   : > { %v9203_v42 = vpop.permute.xlu1 %3553  ;;  %v9205_v9 = vpop.permute.xlu0 %3501  ;;  %v2649_v54 = vrot.slane %v2645_v53, 3  ;;  %v2924_v53 = vmul.f32 %v9046_v11, %v2923_v50 }
 0x3b8   : > { %10736 = vst [vmem:[#allocation44_spill] sm:$0xff] %v9203_v42  ;;  %10737 = vst [vmem:[#allocation45_spill] sm:$0xff] %v9205_v9  ;;  %v3804_v62 = vrot.slane %v3800_v13, 3  ;;  %v3856_v46 = vrot.slane %v3852_v32, 4 }
 0x3b9   : > { %2548 = vrot.lane.b32.xlu0 %v2547_v10, %s10731_s2  ;;  %2678 = vrot.lane.b32.xlu1 %v2677_v27, %s10731_s2  ;;  %v2761_v10 = vsel %vm384_vm0, %v2759_v37, %v2760_v43  ;;  %v2825_v27 = vrot.slane %v2821_v18, 2  ;;  %v2516_v37 = vmul.f32 %v2514_v23, %v8789_v14  ;;  %v2928_v33 = vrot.slane %v2924_v53, 4 }
 0x3ba   : > { %v3805_v43 = vsel %vm1917_vm6, %v3803_v5, %v3804_v62  ;;  %v2313_v55 = vstv %s9567_s22  ;;  %s9814_s22 = sld [smem:[#allocation9 + $0x3f]] }
 0x3bb   : > { %v9236_v0 = vpop.permute.xlu1 %3378  ;;  %v9238_v40 = vpop.permute.xlu0 %3326  ;;  %v2826_v18 = vsel %vm419_vm1, %v2824_v29, %v2825_v27  ;;  %v2780_v29 = vstv %s9234_s7  ;;  %v2520_v5 = vrot.slane %v2516_v37, 1  ;;  %s9297_s7 = sld [smem:[#allocation9 + $0xba]]  ;;  %v9302_v37 = vmul.f32 %v1846_v57, %v8789_v14 }
 0x3bc   : > { %10738 = vst [vmem:[#allocation46_spill] sm:$0xff] %v9236_v0  ;;  %10739 = vst [vmem:[#allocation47_spill] sm:$0xff] %v9238_v40  ;;  %v10755_v0 = vstv %s9114_s13  ;;  %s9414_s13 = sld [smem:[#allocation9 + $0x84]] }
 0x3bd   : > { %2438 = vrot.lane.b32.xlu0 %v2437_v31, %s10728_s26  ;;  %2762 = vrot.lane.b32.xlu1 %v2761_v10, %s10714_s18  ;;  %v2650_v31 = vrot.slane %v2646_v6, 3  ;;  %v2515_v10 = vmul.f32 %v9046_v11, %v2514_v23  ;;  %s9277_s26 = sld [smem:[#allocation9 + $0xb0]]  ;;  %v3892_v6 = vstv %s9232_s15  ;;  %v3774_v23 = vmul.f32 %v9218_v26, %v3772_v44 }
 0x3be   : > { %s9314_s15 = sld [smem:[#allocation9 + $0xb8]] }
 0x3bf   : > { %v9263_v47 = vpop.permute.xlu1 %3248  ;;  %v9265_v13 = vpop.permute.xlu0 %3196  ;;  %v2651_v51 = vsel %vm1917_vm6, %v2649_v54, %v2650_v31  ;;  %v2519_v27 = vrot.slane %v2515_v10, 1  ;;  %v3893_v31 = vmul.f32 %v9215_v56, %v3892_v6 }
 0x3c0   : > { %10740 = vst [vmem:[#allocation48_spill] sm:$0xff] %v9263_v47  ;;  %10741 = vst [vmem:[#allocation49_spill] sm:$0xff] %v9265_v13  ;;  %v10771_v13 = vstv %s9192_s11  ;;  %s9531_s11 = sld [smem:[#allocation9 + $0x4b]] }
 0x3c1   : > { %2827 = vrot.lane.b32.xlu0 %v2826_v18, %s10714_s18  ;;  %3806 = vrot.lane.b32.xlu1 %v3805_v43, %s10731_s2  ;;  %v3773_v43 = vmul.f32 %v9215_v56, %v3772_v44  ;;  %v3857_v18 = vsel %vm1962_vm7, %v3855_v20, %v3856_v46  ;;  %v3986_v46 = vstv %s9259_s28  ;;  %v2832_v44 = vstv %s9261_s6  ;;  %s9317_s6 = sld [smem:[#allocation9 + $0xc2]]  ;;  %s9322_s28 = sld [smem:[#allocation9 + $0x1b]] }
 0x3c2   : > { %v2521_v49 = vsel %vm384_vm0, %v2519_v27, %v2520_v5  ;;  %v3778_v20 = vrot.slane %v3774_v23, 3  ;;  %v9329_v23 = vld [vmem:[#allocation3 + $0x8] sm:$0xf]  ;;  %v3987_v57 = vmul.f32 %v9215_v56, %v3986_v46  ;;  %v3988_v27 = vmul.f32 %v9218_v26, %v3986_v46 }
 0x3c3   : > { %v9283_v62 = vpop.permute.xlu1 %3462  ;;  %v9285_v32 = vpop.permute.xlu0 %3605  ;;  %v3777_v10 = vrot.slane %v3773_v43, 3  ;;  %v2806_v6 = vstv %s9277_s26  ;;  %v9334_v53 = vmul.f32 %v9329_v23, %v10746_v16  ;;  %v10747_v5 = vstv %s9117_s17  ;;  %s9366_s26 = sld [smem:[#allocation10 + $0x3]] }
 0x3c4   : > { %10742 = vst [vmem:[#allocation50_spill] sm:$0xff] %v9283_v62  ;;  %10743 = vst [vmem:[#allocation51_spill] sm:$0xff] %v9285_v32  ;;  %v10750_v16 = vstv %s9122_s20  ;;  %v2930_v46 = vsel %vm1962_vm7, %v2928_v33, %v2929_v60  ;;  %v2884_v60 = vstv %s9297_s7  ;;  %s9423_s17 = sld [smem:[#allocation9 + $0x33]]  ;;  %v10772_v40 = vmov %v10771_v13 }
 0x3c5   : > { %2652 = vrot.lane.b32.xlu0 %v2651_v51, %s10731_s2  ;;  %3858 = vrot.lane.b32.xlu1 %v3857_v18, %s10731_s2  ;;  %v2781_v51 = vmul.f32 %v9046_v11, %v2780_v29  ;;  %v2782_v18 = vmul.f32 %v2780_v29, %v8789_v14  ;;  %v2506_v14 = vstv %s9275_s27  ;;  %v1852_v29 = vrot.slane %v9302_v37, 1  ;;  %s9450_s27 = sld [smem:[#allocation9 + $0xc5]]  ;;  %s9470_s7 = sld [smem:[#allocation9 + $0x3b]] }
 0x3c6   : > { %v9351_v22 = vmul.f32 %v9329_v23, %v10750_v16  ;;  %v3779_v59 = vsel %vm1917_vm6, %v3777_v10, %v3778_v20  ;;  %v2507_v33 = vmul.f32 %v9046_v11, %v2506_v14  ;;  %v3991_v20 = vrot.slane %v3987_v57, 2 }
 0x3c7   : > { %v9307_v54 = vpop.permute.xlu1 %3514  ;;  %v9309_v50 = vpop.permute.xlu0 %3300  ;;  %v2786_v38 = vrot.slane %v2782_v18, 1  ;;  %v10752_v18 = vstv %s9091_s10  ;;  %v2885_v47 = vmul.f32 %v9046_v11, %v2884_v60  ;;  %v2886_v14 = vmul.f32 %v9329_v23, %v2884_v60  ;;  %s9401_s10 = sld [smem:[#allocation9 + $0x7c]] }
 0x3c8   : > { %10744 = vst [vmem:[#allocation52_spill] sm:$0xff] %v9307_v54  ;;  %10745 = vst [vmem:[#allocation53_spill] sm:$0xff] %v9309_v50  ;;  %v2833_v54 = vmul.f32 %v9046_v11, %v2832_v44  ;;  %v9364_v25 = vmul.f32 %v9046_v11, %v10752_v18  ;;  %v2858_v18 = vstv %s9314_s15  ;;  %v2936_v57 = vstv %s9317_s6  ;;  %s9472_s15 = sld [smem:[#allocation9 + $0x8c]]  ;;  %s9621_s6 = sld [smem:[#allocation9 + $0x73]] }
 0x3c9   : > { %2522 = vrot.lane.b32.xlu0 %v2521_v49, %s10731_s2  ;;  %3895 = vrot.lane.b32.xlu1 %v3893_v31, %s10714_s18  ;;  %v9341_v49 = vmul.f32 %v9329_v23, %v10747_v5  ;;  %v2785_v31 = vrot.slane %v2781_v51, 1  ;;  %v2834_v5 = vmul.f32 %v9329_v23, %v2832_v44  ;;  %v1851_v51 = vrot.slane %v1847_v45, 1 }
 0x3ca   : > { %v3992_v45 = vrot.slane %v3988_v27, 2  ;;  %v2807_v44 = vmul.f32 %v9046_v11, %v2806_v6  ;;  %v2837_v16 = vrot.slane %v2833_v54, 2  ;;  %v2860_v60 = vmul.f32 %v9329_v23, %v2858_v18 }
 0x3cb   : > { %v9343_v43 = vpop.permute.xlu1 %3566  ;;  %v9345_v37 = vpop.permute.xlu0 %3689  ;;  %v2838_v50 = vrot.slane %v2834_v5, 2  ;;  %v1853_v54 = vsel %vm384_vm0, %v1851_v51, %v1852_v29  ;;  %v2889_v51 = vrot.slane %v2885_v47, 3 }
 0x3cc   : > { %10748 = vst [vmem:[#allocation54_spill] sm:$0xff] %v9343_v43  ;;  %10749 = vst [vmem:[#allocation55_spill] sm:$0xff] %v9345_v37  ;;  %v10751_v43 = vstv %s9071_s23  ;;  %v1936_v37 = vmul.f32 %v9046_v11, %v10756_v35  ;;  %s9396_s23 = sld [smem:[#allocation9 + $0xbd]] }
 0x3cd   : > { %v1817_v62 = vmul.f32 %v9046_v11, %v10751_v43  ;;  %3780 = vrot.lane.b32.xlu1 %v3779_v59, %s10731_s2  ;;  %2931 = vrot.lane.b32.xlu0 %v2930_v46, %s10714_s18  ;;  %v2787_v59 = vsel %vm384_vm0, %v2785_v31, %v2786_v38  ;;  %v2808_v46 = vmul.f32 %v9329_v23, %v2806_v6 }
 0x3ce   : > { %v3993_v6 = vsel %vm419_vm1, %v3991_v20, %v3992_v45  ;;  %v2839_v29 = vsel %vm419_vm1, %v2837_v16, %v2838_v50  ;;  %v2890_v20 = vrot.slane %v2886_v14, 3  ;;  %v2910_v45 = vstv %s9356_s19  ;;  %s9646_s19 = sld [smem:[#allocation9 + $0xb4]] }
 0x3cf   : > { %v9373_v10 = vpop.permute.xlu1 %3618  ;;  %v9375_v43 = vpop.permute.xlu0 %3352  ;;  %v1818_v27 = vadd.f32 %v1817_v62, %v10755_v0  ;;  %v2811_v0 = vrot.slane %v2807_v44, 2  ;;  %v2859_v62 = vmul.f32 %v9046_v11, %v2858_v18  ;;  %v2812_v5 = vrot.slane %v2808_v46, 2 }
 0x3d0   : > { %10753 = vst [vmem:[#allocation56_spill] sm:$0xff] %v9373_v10  ;;  %10754 = vst [vmem:[#allocation57_spill] sm:$0xff] %v9375_v43  ;;  %v10757_v10 = vstv %s9122_s20  ;;  %s9410_s20 = sld [smem:[#allocation9 + $0xc6]]  ;;  %v1896_v44 = vrot.slane %v9334_v53, 2  ;;  %v1895_v46 = vrot.slane %v9364_v25, 2  ;;  %v1940_v47 = vrot.slane %v1936_v37, 3 }
 0x3d1   : > { %v9391_v43 = vmul.f32 %v9046_v11, %v10757_v10  ;;  %2509 = vrot.lane.b32.xlu1 %v2507_v33, %s10731_s2  ;;  %2788 = vrot.lane.b32.xlu0 %v2787_v59, %s10714_s18  ;;  %v2937_v33 = vmul.f32 %v9046_v11, %v2936_v57  ;;  %v2938_v10 = vmul.f32 %v9329_v23, %v2936_v57  ;;  %v1941_v59 = vrot.slane %v9341_v49, 3 }
 0x3d2   : > { %v1855_v38 = vadd.f32 %v1853_v54, %v1818_v27  ;;  %v2863_v50 = vrot.slane %v2859_v62, 3  ;;  %v2864_v25 = vrot.slane %v2860_v60, 3  ;;  %v2813_v27 = vsel %vm419_vm1, %v2811_v0, %v2812_v5 }
 0x3d3   : > { %v9403_v35 = vpop.permute.xlu1 %3702  ;;  %v9405_v31 = vpop.permute.xlu0 %3741  ;;  %v2941_v49 = vrot.slane %v2937_v33, 4  ;;  %v2942_v14 = vrot.slane %v2938_v10, 4  ;;  %v2891_v54 = vsel %vm1917_vm6, %v2889_v51, %v2890_v20  ;;  %v2912_v62 = vmul.f32 %v9329_v23, %v2910_v45 }
 0x3d4   : > { %10758 = vst [vmem:[#allocation58_spill] sm:$0xff] %v9403_v35  ;;  %10759 = vst [vmem:[#allocation59_spill] sm:$0xff] %v9405_v31  ;;  %v10762_v18 = vstv %s9145_s4  ;;  %v10763_v33 = vstv %s9170_s25  ;;  %v4025_v0 = vstv %s9396_s23  ;;  %v9455_v51 = vsel %vm1917_vm6, %v1940_v47, %v1941_v59  ;;  %s9648_s23 = sld [smem:[#allocation9 + $0x83]] }
 0x3d5   : > { %3994 = vrot.lane.b32.xlu1 %v3993_v6, %s10714_s18  ;;  %2840 = vrot.lane.b32.xlu0 %v2839_v29, %s10714_s18  ;;  %v2911_v6 = vmul.f32 %v9046_v11, %v2910_v45  ;;  %v1897_v29 = vsel %vm419_vm1, %v1895_v46, %v1896_v44  ;;  %v9440_v60 = vmul.f32 %v9329_v23, %v10762_v18  ;;  %v10764_v20 = vstv %s9177_s14 }
 0x3d6   : > { %v9445_v10 = vmul.f32 %v9329_v23, %v10763_v33  ;;  %v9452_v5 = vadd.f32 %v1897_v29, %v1855_v38  ;;  %v9460_v45 = vmul.f32 %v9329_v23, %v10764_v20  ;;  %v3636_v44 = vstv %s9401_s10  ;;  %s9670_s10 = sld [smem:[#allocation9 + $0xbc]] }
 0x3d7   : > { %v9425_v16 = vpop.permute.xlu1 %3754  ;;  %v9427_v53 = vpop.permute.xlu0 %3793  ;;  %v2943_v38 = vsel %vm1962_vm7, %v2941_v49, %v2942_v14  ;;  %v4090_v29 = vstv %s9410_s20  ;;  %v2916_v59 = vrot.slane %v2912_v62, 4  ;;  %v4026_v47 = vmul.f32 %v9215_v56, %v4025_v0  ;;  %s9680_s20 = sld [smem:[#allocation9 + $0x93]] }
 0x3d8   : > { %10760 = vst [vmem:[#allocation60_spill] sm:$0xff] %v9425_v16  ;;  %10761 = vst [vmem:[#allocation61_spill] sm:$0xff] %v9427_v53  ;;  %v4027_v33 = vmul.f32 %v9218_v26, %v4025_v0  ;;  %v3668_v20 = vstv %s9414_s13  ;;  %v10767_v14 = vstv %s9138_s1  ;;  %v10768_v62 = vstv %s9145_s4  ;;  %s9509_s1 = sld [smem:[#allocation9 + $0x43]]  ;;  %s9521_s4 = sld [smem:[#allocation9 + $0xae]] }
 0x3d9   : > { %2814 = vrot.lane.b32.xlu1 %v2813_v27, %s10714_s18  ;;  %2892 = vrot.lane.b32.xlu0 %v2891_v54, %s10714_s18  ;;  %v2865_v27 = vsel %vm1917_vm6, %v2863_v50, %v2864_v25  ;;  %v2915_v54 = vrot.slane %v2911_v6, 4  ;;  %v10766_v25 = vstv %s9186_s29  ;;  %v1809_v6 = vmul.f32 %v9046_v11, %v10767_v14  ;;  %s10789_s13 = smov 126  }
 0x3da   : > { %v9482_v49 = vmul.f32 %v9329_v23, %v10766_v25  ;;  %v9492_v0 = vmul.f32 %v9046_v11, %v10768_v62  ;;  %v4091_v57 = vmul.f32 %v9215_v56, %v4090_v29  ;;  %v4092_v50 = vmul.f32 %v9218_v26, %v4090_v29 }
 0x3db   : > { %v9463_v46 = vpop.permute.xlu1 %2055  ;;  %v9465_v18 = vpop.permute.xlu0 %3436  ;;  %v2073_v37 = vstv %s9423_s17  ;;  %v3876_v14 = vstv %s9430_s24  ;;  %v3670_v35 = vmul.f32 %v9218_v26, %v3668_v20  ;;  %v10770_v62 = vstv %s9190_s0  ;;  %s9533_s0 = sld [smem:[#allocation9 + $0x9c]]  ;;  %s9711_s24 = sld [smem:[#allocation9 + $0x9b]] }
 0x3dc   : > { %10765 = vst [vmem:[#allocation62_spill] sm:$0xff] %v9465_v18  ;;  %v1813_v18 = vmul.f32 %v9046_v11, %v10770_v62  ;;  %v2917_v53 = vsel %vm1962_vm7, %v2915_v54, %v2916_v59  ;;  %v4030_v31 = vrot.slane %v4026_v47, 3  ;;  %v4031_v29 = vrot.slane %v4027_v33, 3  ;;  %s9705_s17 = sld [smem:[#allocation9 + $0xc4]] }
 0x3dd   : > { %2866 = vrot.lane.b32.xlu1 %v2865_v27, %s10714_s18  ;;  %2944 = vrot.lane.b32.xlu0 %v2943_v38, %s10714_s18  ;;  %v3637_v27 = vmul.f32 %v9215_v56, %v3636_v44  ;;  %v3669_v38 = vmul.f32 %v9215_v56, %v3668_v20  ;;  %v1837_v44 = vmul.f32 %v9329_v23, %v10772_v40  ;;  %v4077_v54 = vstv %s9450_s27  ;;  %s9740_s27 = sld [smem:[#allocation9 + $0xab]] }
 0x3de   : > { %v2074_v20 = vmul.f32 %v9046_v11, %v2073_v37  ;;  %v3877_v59 = vmul.f32 %v9215_v56, %v3876_v14  ;;  %v4095_v47 = vrot.slane %v4091_v57, 4  ;;  %v4096_v33 = vrot.slane %v4092_v50, 4 }
 0x3df   : > { %v9497_v25 = vpop.permute.xlu1 %2159  ;;  %v9499_v16 = vpop.permute.xlu0 %3845  ;;  %v3674_v24 = vrot.slane %v3670_v35, 1  ;;  %v3720_v41 = vstv %s9472_s15  ;;  %v9537_v57 = vadd.f32 %v1809_v6, %v10774_v15  ;;  %v4032_v50 = vsel %vm1917_vm6, %v4030_v31, %v4031_v29  ;;  %s9760_s15 = sld [smem:[#allocation9 + $0xbb]] }
 0x3e0   : > { %10769 = vst [vmem:[#allocation63_spill] sm:$0xff] %v9499_v16  ;;  %v1836_v16 = vmul.f32 %v9046_v11, %v10771_v13  ;;  %v2075_v13 = vmul.f32 %v9329_v23, %v2073_v37  ;;  %v4078_v37 = vmul.f32 %v9215_v56, %v4077_v54  ;;  %v4079_v14 = vmul.f32 %v9218_v26, %v4077_v54 }
 0x3e1   : > { %2918 = vrot.lane.b32.xlu1 %v2917_v53, %s10714_s18  ;;  %3639 = vrot.lane.b32.xlu0 %v3637_v27, %s10731_s2  ;;  %v3673_v53 = vrot.slane %v3669_v38, 1  ;;  %v2125_v27 = vstv %s9470_s7  ;;  %v1841_v38 = vrot.slane %v1837_v44, 1  ;;  %v10775_v35 = vstv %s9209_s3  ;;  %s9593_s3 = sld [smem:[#allocation9 + $0xac]]  ;;  %s9754_s7 = sld [smem:[#allocation9 + $0xc3]] }
 0x3e2   : > { %v9545_v32 = vmul.f32 %v9046_v11, %v10775_v35  ;;  %v2078_v1 = vrot.slane %v2074_v20, 1  ;;  %v2079_v15 = vrot.slane %v2075_v13, 1  ;;  %v2126_v31 = vmul.f32 %v9046_v11, %v2125_v27 }
 0x3e3   : > { %v9525_v62 = vpop.permute.xlu1 %2068  ;;  %v9527_v40 = vpop.permute.xlu0 %3488  ;;  %v2127_v6 = vmul.f32 %v9329_v23, %v2125_v27  ;;  %v3721_v29 = vmul.f32 %v9215_v56, %v3720_v41  ;;  %v10777_v54 = vstv %s9198_s16  ;;  %v4097_v20 = vsel %vm1962_vm7, %v4095_v47, %v4096_v33  ;;  %s9577_s16 = sld [smem:[#allocation9 + $0xbe]] }
 0x3e4   : > { %10773 = vst [vmem:[#allocation64_spill] sm:$0xff] %v9527_v40  ;;  %v1840_v40 = vrot.slane %v1836_v16, 1  ;;  %v10776_v16 = vstv %s9170_s25  ;;  %v1814_v35 = vadd.f32 %v1813_v18, %v10777_v54  ;;  %v3675_v13 = vsel %vm384_vm0, %v3673_v53, %v3674_v24  ;;  %s9588_s25 = sld [smem:[#allocation9 + $0x63]] }
 0x3e5   : > { %3879 = vrot.lane.b32.xlu1 %v3877_v59, %s10714_s18  ;;  %4033 = vrot.lane.b32.xlu0 %v4032_v50, %s10714_s18  ;;  %v9555_v44 = vmul.f32 %v9046_v11, %v10776_v16  ;;  %v4082_v50 = vrot.slane %v4078_v37, 4  ;;  %v4083_v2 = vrot.slane %v4079_v14, 4  ;;  %v3722_v27 = vmul.f32 %v9218_v26, %v3720_v41 }
 0x3e6   : > { %v2177_v9 = vstv %s9509_s1  ;;  %v1842_v16 = vsel %vm384_vm0, %v1840_v40, %v1841_v38  ;;  %v1881_v18 = vmul.f32 %v9329_v23, %v10779_v3  ;;  %v1884_v54 = vrot.slane %v9545_v32, 2  ;;  %s9764_s1 = sld [smem:[#allocation9 + $0x23]] }
 0x3e7   : > { %v9559_v59 = vpop.permute.xlu1 %2120  ;;  %v9561_v42 = vpop.permute.xlu0 %3540  ;;  %v3934_v24 = vstv %s9521_s4  ;;  %v2080_v41 = vsel %vm384_vm0, %v2078_v1, %v2079_v15  ;;  %v2130_v47 = vrot.slane %v2126_v31, 2  ;;  %v2131_v33 = vrot.slane %v2127_v6, 2  ;;  %s9771_s4 = sld [smem:[#allocation9 + $0x37]] }
 0x3e8   : > { %10778 = vst [vmem:[#allocation65_spill] sm:$0xff] %v9561_v42  ;;  %v3725_v40 = vrot.slane %v3721_v29, 2  ;;  %v2178_v32 = vmul.f32 %v9046_v11, %v2177_v9  ;;  %v2179_v37 = vmul.f32 %v9329_v23, %v2177_v9  ;;  %v2229_v14 = vstv %s9531_s11  ;;  %s9800_s11 = sld [smem:[#allocation9 + $0x47]] }
 0x3e9   : > { %4098 = vrot.lane.b32.xlu1 %v4097_v20, %s10714_s18  ;;  %3676 = vrot.lane.b32.xlu0 %v3675_v13, %s10731_s2  ;;  %v3824_v38 = vstv %s9533_s0  ;;  %v4084_v1 = vsel %vm1962_vm7, %v4082_v50, %v4083_v2  ;;  %v3726_v15 = vrot.slane %v3722_v27, 2  ;;  %v3935_v31 = vmul.f32 %v9215_v56, %v3934_v24  ;;  %s9808_s0 = sld [smem:[#allocation9 + $0x2f]] }
 0x3ea   : > { %v3936_v6 = vmul.f32 %v9218_v26, %v3934_v24  ;;  %v1885_v29 = vrot.slane %v1881_v18, 2  ;;  %v10781_v20 = vstv %s9211_s30  ;;  %v2230_v2 = vmul.f32 %v9046_v11, %v2229_v14  ;;  %s9617_s30 = sld [smem:[#allocation9 + $0x6b]] }
 0x3eb   : > { %v9580_v53 = vpop.permute.xlu1 %2399  ;;  %v9582_v3 = vpop.permute.xlu0 %3929  ;;  %v1925_v13 = vmul.f32 %v9046_v11, %v10781_v20  ;;  %v10782_v42 = vmov %v10781_v20  ;;  %v2231_v50 = vmul.f32 %v9329_v23, %v2229_v14  ;;  %v3825_v27 = vmul.f32 %v9215_v56, %v3824_v38 }
 0x3ec   : > { %10780 = vst [vmem:[#allocation66_spill] sm:$0xff] %v9582_v3  ;;  %v1926_v9 = vmul.f32 %v9329_v23, %v10782_v42  ;;  %v10783_v3 = vstv %s9222_s8  ;;  %v3826_v18 = vmul.f32 %v9218_v26, %v3824_v38  ;;  %v1844_v24 = vadd.f32 %v1842_v16, %v1814_v35 }
 0x3ed   : > { %v9604_v52 = vmul.f32 %v9046_v11, %v10783_v3  ;;  %2081 = vrot.lane.b32.xlu1 %v2080_v41, %s10715_s12  ;;  %4085 = vrot.lane.b32.xlu0 %v4084_v1, %s10714_s18  ;;  %v2132_v3 = vsel %vm419_vm1, %v2130_v47, %v2131_v33  ;;  %v2182_v41 = vrot.slane %v2178_v32, 3  ;;  %v2183_v39 = vrot.slane %v2179_v37, 3 }
 0x3ee   : > { %v3727_v1 = vsel %vm419_vm1, %v3725_v40, %v3726_v15  ;;  %v3939_v28 = vrot.slane %v3935_v31, 1  ;;  %v3940_v14 = vrot.slane %v3936_v6, 1  ;;  %v1886_v35 = vsel %vm419_vm1, %v1884_v54, %v1885_v29 }
 0x3ef   : > { %v9612_v20 = vpop.permute.xlu1 %2224  ;;  %v9614_v42 = vpop.permute.xlu0 %3592  ;;  %v1929_v16 = vrot.slane %v1925_v13, 3  ;;  %v1930_v38 = vrot.slane %v1926_v9, 3  ;;  %v4038_v47 = vstv %s9577_s16  ;;  %v2234_v33 = vrot.slane %v2230_v2, 4  ;;  %s9836_s16 = sld [smem:[#allocation9 + $0x4f]] }
 0x3f0   : > { %10784 = vst [vmem:[#allocation67_spill] sm:$0xff] %v9614_v42  ;;  %v2235_v32 = vrot.slane %v2231_v50, 4  ;;  %v3829_v40 = vrot.slane %v3825_v27, 4  ;;  %v3830_v37 = vrot.slane %v3826_v18, 4  ;;  %v2184_v6 = vsel %vm1917_vm6, %v2182_v41, %v2183_v39 }
 0x3f1   : > { %2133 = vrot.lane.b32.xlu1 %v2132_v3, %s10715_s12  ;;  %3728 = vrot.lane.b32.xlu0 %v3727_v1, %s10731_s2  ;;  %v2314_v54 = vmul.f32 %v9046_v11, %v2313_v55  ;;  %v2315_v29 = vmul.f32 %v9329_v23, %v2313_v55  ;;  %v2365_v13 = vstv %s9588_s25  ;;  %v3941_v9 = vsel %vm384_vm0, %v3939_v28, %v3940_v14  ;;  %s9848_s25 = sld [smem:[#allocation9 + $0x67]] }
 0x3f2   : > { %v4039_v3 = vmul.f32 %v9215_v56, %v4038_v47  ;;  %v4040_v2 = vmul.f32 %v9218_v26, %v4038_v47  ;;  %v3908_v50 = vstv %s9593_s3  ;;  %v1888_v18 = vadd.f32 %v1886_v35, %v1844_v24  ;;  %s9874_s3 = sld [smem:[#allocation9 + $0x5f]] }
 0x3f3   : > { %v9627_v15 = vpop.permute.xlu1 %2094  ;;  %v9629_v31 = vpop.permute.xlu0 %3981  ;;  %v1931_v1 = vsel %vm1917_vm6, %v1929_v16, %v1930_v38  ;;  %v10786_v42 = vstv %s9222_s8  ;;  %v2236_v28 = vsel %vm1962_vm7, %v2234_v33, %v2235_v32  ;;  %v3831_v55 = vsel %vm1962_vm7, %v3829_v40, %v3830_v37  ;;  %s9661_s8 = sld [smem:[#allocation9 + $0x8b]] }
 0x3f4   : > { %10785 = vst [vmem:[#allocation68_spill] sm:$0xff] %v9629_v31  ;;  %v1971_v39 = vmul.f32 %v9329_v23, %v10786_v42  ;;  %v2366_v24 = vmul.f32 %v9046_v11, %v2365_v13  ;;  %v2367_v41 = vmul.f32 %v9329_v23, %v2365_v13  ;;  %v2318_v35 = vrot.slane %v2314_v54, 1 }
 0x3f5   : > { %2185 = vrot.lane.b32.xlu1 %v2184_v6, %s10715_s12  ;;  %3942 = vrot.lane.b32.xlu0 %v3941_v9, %s10714_s18  ;;  %v3909_v16 = vmul.f32 %v9215_v56, %v3908_v50  ;;  %v3910_v38 = vmul.f32 %v9218_v26, %v3908_v50  ;;  %v2417_v47 = vstv %s9617_s30  ;;  %v2319_v6 = vrot.slane %v2315_v29, 1  ;;  %s9898_s30 = sld [smem:[#allocation9 + $0x6f]] }
 0x3f6   : > { %v4043_v33 = vrot.slane %v4039_v3, 3  ;;  %v4044_v32 = vrot.slane %v4040_v2, 3  ;;  %v2469_v40 = vstv %s9621_s6  ;;  %v1829_v37 = vrot.slane %v9492_v0, 1  ;;  %s9916_s6 = sld [smem:[#allocation9 + $0x87]] }
 0x3f7   : > { %v9654_v14 = vpop.permute.xlu1 %2308  ;;  %v9656_v42 = vpop.permute.xlu0 %2107  ;;  %v1933_v9 = vadd.f32 %v1931_v1, %v1888_v18  ;;  %v1974_v13 = vrot.slane %v9604_v52, 4  ;;  %v1975_v27 = vrot.slane %v1971_v39, 4  ;;  %v2370_v54 = vrot.slane %v2366_v24, 2  ;;  %v9676_v18 = vld [vmem:[#allocation3] sm:$0xff] }
 0x3f8   : > { %v2371_v50 = vrot.slane %v2367_v41, 2  ;;  %v2418_v31 = vmul.f32 %v9046_v11, %v2417_v47  ;;  %v2419_v29 = vmul.f32 %v9329_v23, %v2417_v47  ;;  %v3913_v52 = vrot.slane %v3909_v16, 1 }
 0x3f9   : > { %2237 = vrot.lane.b32.xlu1 %v2236_v28, %s10715_s12  ;;  %3832 = vrot.lane.b32.xlu0 %v3831_v55, %s10731_s2  ;;  %v3914_v2 = vrot.slane %v3910_v38, 1  ;;  %v2470_v1 = vmul.f32 %v9676_v18, %v2469_v40  ;;  %v2471_v39 = vmul.f32 %v9329_v23, %v2469_v40  ;;  %v1873_v11 = vrot.slane %v9555_v44, 2 }
 0x3fa   : > { %v10787_v28 = vstv %s9177_s14  ;;  %v2320_v24 = vsel %vm384_vm0, %v2318_v35, %v2319_v6  ;;  %v4045_v41 = vsel %vm1917_vm6, %v4043_v33, %v4044_v32  ;;  %v10788_v16 = vrot.slane %v9440_v60, 1  ;;  %s9697_s14 = sld [smem:[#allocation9 + $0xa3]] }
 0x3fb   : > { %v9672_v3 = vpop.permute.xlu1 %2198  ;;  %v9674_v0 = vpop.permute.xlu0 %2211  ;;  %v1913_v55 = vmul.f32 %v9676_v18, %v10787_v28  ;;  %v1976_v47 = vsel %vm1962_vm7, %v1974_v13, %v1975_v27  ;;  %v3960_v40 = vstv %s9646_s19  ;;  %v2553_v44 = vstv %s9648_s23  ;;  %s9928_s19 = sld [smem:[#allocation9 + $0x97]] }
 0x3fc   : > { %v1831_v38 = vsel %vm384_vm0, %v1829_v37, %v10788_v16  ;;  %v1978_v8 = vadd.f32 %v1976_v47, %v1933_v9  ;;  %v2372_v28 = vsel %vm419_vm1, %v2370_v54, %v2371_v50  ;;  %v2422_v21 = vrot.slane %v2418_v31, 3  ;;  %s9934_s23 = sld [smem:[#allocation9 + $0x8f]] }
 0x3fd   : > { %2321 = vrot.lane.b32.xlu1 %v2320_v24, %s10789_s13  ;;  %4046 = vrot.lane.b32.xlu0 %v4045_v41, %s10714_s18  ;;  %v2423_v35 = vrot.slane %v2419_v29, 3  ;;  %v3915_v27 = vsel %vm384_vm0, %v3913_v52, %v3914_v2  ;;  %v2474_v33 = vrot.slane %v2470_v1, 4  ;;  %v2475_v32 = vrot.slane %v2471_v39, 4 }
 0x3fe   : > { %v2605_v37 = vstv %s9661_s8  ;;  %v3961_v9 = vmul.f32 %v9215_v56, %v3960_v40  ;;  %v3962_v31 = vmul.f32 %v9218_v26, %v3960_v40  ;;  %v2554_v13 = vmul.f32 %v9676_v18, %v2553_v44  ;;  %s9945_s8 = sld [smem:[#allocation9 + $0x7f]] }
 0x3ff   : > { %v9699_v60 = vpop.permute.xlu1 %2587  ;;  %v9701_v6 = vpop.permute.xlu0 %2295  ;;  %v2555_v54 = vmul.f32 %v9329_v23, %v2553_v44  ;;  %v1964_v50 = vrot.slane %v9482_v49, 4  ;;  %v1833_v29 = vadd.f32 %v1831_v38, %v9537_v57  ;;  %v1918_v52 = vrot.slane %v1913_v55, 3 }
 0x400   : > { %v10790_v2 = vstv %s9186_s29  ;;  %v10791_v39 = vrot.slane %v9445_v10, 2  ;;  %v2016_v41 = vadd.f32 %v8987_v36, %v1978_v8  ;;  %v2424_v16 = vsel %vm1917_vm6, %v2422_v21, %v2423_v35  ;;  %s9734_s29 = sld [smem:[#allocation9 + $0xb3]] }
 0x401   : > { %v1958_v1 = vmul.f32 %v9676_v18, %v10790_v2  ;;  %2373 = vrot.lane.b32.xlu1 %v2372_v28, %s10789_s13  ;;  %3916 = vrot.lane.b32.xlu0 %v3915_v27, %s10714_s18  ;;  %v4012_v47 = vstv %s9670_s10  ;;  %v2476_v55 = vsel %vm1962_vm7, %v2474_v33, %v2475_v32  ;;  %v2606_v38 = vmul.f32 %v9676_v18, %v2605_v37  ;;  %s9971_s10 = sld [smem:[#allocation9 + $0x9f]] }
 0x402   : > { %v1875_v24 = vsel %vm419_vm1, %v1873_v11, %v10791_v39  ;;  %v2607_v44 = vmul.f32 %v9329_v23, %v2605_v37  ;;  %v2657_v28 = vstv %s9680_s20  ;;  %v3965_v10 = vrot.slane %v3961_v9, 2  ;;  %s9978_s20 = sld [smem:[#allocation9 + $0xd]] }
 0x403   : > { %v9726_v40 = vpop.permute.xlu1 %2412  ;;  %v9728_v57 = vpop.permute.xlu0 %2347  ;;  %v3966_v11 = vrot.slane %v3962_v31, 2  ;;  %v2558_v36 = vrot.slane %v2554_v13, 1  ;;  %v2559_v8 = vrot.slane %v2555_v54, 1  ;;  %v1877_v21 = vadd.f32 %v1875_v24, %v1833_v29 }
 0x404   : > { %v1963_v35 = vrot.slane %v1958_v1, 4  ;;  %v4013_v27 = vmul.f32 %v9215_v56, %v4012_v47  ;;  %v4014_v33 = vmul.f32 %v9218_v26, %v4012_v47  ;;  %v10792_v32 = vrot.slane %v9460_v45, 3 }
 0x405   : > { %2425 = vrot.lane.b32.xlu1 %v2424_v16, %s10789_s13  ;;  %2477 = vrot.lane.b32.xlu0 %v2476_v55, %s10789_s13  ;;  %v2058_v9 = vadd.f32 %v9463_v46, %v2016_v41  ;;  %v2746_v31 = vstv %s9697_s14  ;;  %v2658_v13 = vmul.f32 %v9676_v18, %v2657_v28  ;;  %v2610_v2 = vrot.slane %v2606_v38, 2  ;;  %s9992_s14 = sld [smem:[#allocation9 + $0x5]] }
 0x406   : > { %v1920_v37 = vsel %vm1917_vm6, %v1918_v52, %v10792_v32  ;;  %v2611_v1 = vrot.slane %v2607_v44, 2  ;;  %v2659_v39 = vmul.f32 %v9329_v23, %v2657_v28  ;;  %v4064_v24 = vstv %s9705_s17  ;;  %s9994_s17 = sld [smem:[#allocation9 + $0xb7]] }
 0x407   : > { %v9748_v54 = vpop.permute.xlu1 %2282  ;;  %v9750_v29 = vpop.permute.xlu0 %2172  ;;  %v2110_v45 = vadd.f32 %v9656_v42, %v2058_v9  ;;  %v3967_v52 = vsel %vm419_vm1, %v3965_v10, %v3966_v11  ;;  %v2560_v46 = vsel %vm384_vm0, %v2558_v36, %v2559_v8  ;;  %v2709_v41 = vstv %s9711_s24 }
 0x408   : > { %v1944_v16 = vadd.f32 %v9455_v51, %v9452_v5  ;;  %v1922_v47 = vadd.f32 %v1920_v37, %v1877_v21  ;;  %v4017_v55 = vrot.slane %v4013_v27, 3  ;;  %v4018_v42 = vrot.slane %v4014_v33, 3 }
 0x409   : > { %3968 = vrot.lane.b32.xlu1 %v3967_v52, %s10714_s18  ;;  %2561 = vrot.lane.b32.xlu0 %v2560_v46, %s10731_s2  ;;  %v2747_v38 = vmul.f32 %v9676_v18, %v2746_v31  ;;  %v2662_v44 = vrot.slane %v2658_v13, 3  ;;  %v4065_v28 = vmul.f32 %v9215_v56, %v4064_v24  ;;  %v4066_v10 = vmul.f32 %v9218_v26, %v4064_v24 }
 0x40a   : > { %v2663_v11 = vrot.slane %v2659_v39, 3  ;;  %v2710_v36 = vmul.f32 %v9676_v18, %v2709_v41  ;;  %v2711_v8 = vmul.f32 %v9329_v23, %v2709_v41  ;;  %v2845_v21 = vstv %s9734_s29  ;;  %s10852_s29 = sld [smem:[#allocation76_spill]] }
 0x40b   : > { %v9773_v5 = vpop.permute.xlu1 %2691  ;;  %v9775_v51 = vpop.permute.xlu0 %2042  ;;  %v10793_v27 = vrot.slane %v9351_v22, 4  ;;  %v10794_v33 = vrot.slane %v9391_v43, 4  ;;  %v1965_v26 = vsel %vm1962_vm7, %v1963_v35, %v1964_v50  ;;  %v2162_v32 = vadd.f32 %v9497_v25, %v2110_v45 }
 0x40c   : > { %v2612_v37 = vsel %vm419_vm1, %v2610_v2, %v2611_v1  ;;  %v9792_v31 = vadd.f32 %v1965_v26, %v1922_v47  ;;  %v4019_v22 = vsel %vm1917_vm6, %v4017_v55, %v4018_v42  ;;  %v2793_v43 = vstv %s9740_s27  ;;  %s10801_s27 = sld [smem:[#allocation75_spill]] }
 0x40d   : > { %v1987_v56 = vsel %vm1962_vm7, %v10794_v33, %v10793_v27  ;;  %2613 = vrot.lane.b32.xlu1 %v2612_v37, %s10731_s2  ;;  %2749 = vrot.lane.b32.xlu0 %v2747_v38, %s10714_s18  ;;  %v4069_v49 = vrot.slane %v4065_v28, 4  ;;  %v4070_v13 = vrot.slane %v4066_v10, 4  ;;  %v2846_v25 = vmul.f32 %v9676_v18, %v2845_v21 }
 0x40e   : > { %v9790_v9 = vadd.f32 %v1987_v56, %v1944_v16  ;;  %v2847_v50 = vmul.f32 %v9329_v23, %v2845_v21  ;;  %v2664_v1 = vsel %vm1917_vm6, %v2662_v44, %v2663_v11  ;;  %v2714_v39 = vrot.slane %v2710_v36, 4 }
 0x40f   : > { %v9802_v35 = vpop.permute.xlu1 %2386  ;;  %v9804_v2 = vpop.permute.xlu0 %2451  ;;  %v2715_v24 = vrot.slane %v2711_v8, 4  ;;  %v2949_v45 = vstv %s9754_s7  ;;  %v2214_v52 = vadd.f32 %v9674_v0, %v2162_v32  ;;  %v2794_v46 = vmul.f32 %v9676_v18, %v2793_v43 }
 0x410   : > { %v2795_v41 = vmul.f32 %v9329_v23, %v2793_v43  ;;  %v2897_v16 = vstv %s9760_s15  ;;  %v10795_v47 = vstv %s9249_s21  ;;  %v10796_v42 = vstv %s9251_s9  ;;  %s9890_s21 = sld [smem:[#allocation9 + $0x57]] }
 0x411   : > { %v9819_v55 = vmul.f32 %v9329_v23, %v10795_v47  ;;  %v9824_v38 = vmul.f32 %v9329_v23, %v10796_v42  ;;  %v10797_v44 = vstv %s9322_s28  ;;  %v1991_v0 = vstv %s9764_s1  ;;  %4020 = vrot.lane.b32.xlu1 %v4019_v22, %s10714_s18  ;;  %2665 = vrot.lane.b32.xlu0 %v2664_v1, %s10731_s2  ;;  %v9861_v1 = vld [vmem:[#allocation3 + $0x18] sm:$0xf]  ;;  %s10012_s15 = sld [smem:[#allocation9 + $0xaf]]  ;;  %s10180_s1 = sld [smem:[#allocation9 + $0x1c]] }
 0x412   : > { %v9829_v28 = vmul.f32 %v9329_v23, %v10797_v44  ;;  %v4071_v10 = vsel %vm1962_vm7, %v4069_v49, %v4070_v13  ;;  %v2850_v11 = vrot.slane %v2846_v25, 2  ;;  %v2851_v36 = vrot.slane %v2847_v50, 2  ;;  %v9858_v50 = vld [vmem:[#allocation3 + $0x10] sm:$0xff]  ;;  %s10802_s7 = smov %s10801_s27 }
 0x413   : > { %v3227_v8 = vstv %s9771_s4  ;;  %v9838_v21 = vpop.permute.xlu1 %2775  ;;  %v9840_v27 = vpop.permute.xlu0 %2146  ;;  %v2716_v33 = vsel %vm1962_vm7, %v2714_v39, %v2715_v24  ;;  %v2950_v56 = vmul.f32 %v9676_v18, %v2949_v45  ;;  %v2951_v26 = vmul.f32 %v9329_v23, %v2949_v45  ;;  %s10038_s4 = sld [smem:[#allocation9 + $0xc7]] }
 0x414   : > { %v2898_v32 = vmul.f32 %v9676_v18, %v2897_v16  ;;  %v2256_v37 = vadd.f32 %v9010_v17, %v2214_v52  ;;  %v2798_v22 = vrot.slane %v2794_v46, 1  ;;  %v2799_v43 = vrot.slane %v2795_v41, 1 }
 0x415   : > { %v2899_v49 = vmul.f32 %v9329_v23, %v2897_v16  ;;  %v9854_v25 = vmul.f32 %v9329_v23, %v1991_v0  ;;  %4072 = vrot.lane.b32.xlu1 %v4071_v10, %s10714_s18  ;;  %2717 = vrot.lane.b32.xlu0 %v2716_v33, %s10731_s2  ;;  %v3228_v17 = vmul.f32 %v9858_v50, %v3227_v8  ;;  %v10798_v24 = vstv %s9243_s5  ;;  %s9884_s5 = sld [smem:[#allocation9 + $0x77]] }
 0x416   : > { %v3229_v39 = vmul.f32 %v9861_v1, %v3227_v8  ;;  %v1821_v45 = vmul.f32 %v9676_v18, %v10798_v24  ;;  %v10799_v52 = vmov %v10795_v47  ;;  %v2852_v46 = vsel %vm419_vm1, %v2850_v11, %v2851_v36 }
 0x417   : > { %v9870_v23 = vmul.f32 %v9676_v18, %v10799_v52  ;;  %v3331_v41 = vstv %s9800_s11  ;;  %v9876_v16 = vpop.permute.xlu1 %2600  ;;  %v9878_v47 = vpop.permute.xlu0 %2535  ;;  %v2954_v42 = vrot.slane %v2950_v56, 4  ;;  %v2955_v44 = vrot.slane %v2951_v26, 4  ;;  %s10048_s11 = sld [smem:[#allocation9 + $0x25]] }
 0x418   : > { %v2902_v10 = vrot.slane %v2898_v32, 3  ;;  %v3180_v8 = vstv %s9808_s0  ;;  %v2298_v33 = vadd.f32 %v9701_v6, %v2256_v37  ;;  %v2800_v24 = vsel %vm384_vm0, %v2798_v22, %v2799_v43  ;;  %s10050_s0 = sld [smem:[#allocation9 + $0xbf]] }
 0x419   : > { %v2903_v52 = vrot.slane %v2899_v49, 3  ;;  %v3279_v13 = vstv %s9814_s22  ;;  %2853 = vrot.lane.b32.xlu1 %v2852_v46, %s10714_s18  ;;  %2801 = vrot.lane.b32.xlu0 %v2800_v24, %s10714_s18  ;;  %v3232_v11 = vrot.slane %v3228_v17, 1  ;;  %v3233_v36 = vrot.slane %v3229_v39, 1 }
 0x41a   : > { %v3332_v56 = vmul.f32 %v9858_v50, %v3331_v41  ;;  %v3333_v26 = vmul.f32 %v9861_v1, %v3331_v41  ;;  %v2024_v6 = vadd.f32 %v8970_v4, %v9790_v9  ;;  %v2008_v32 = vadd.f32 %v8985_v34, %v9792_v31 }
 0x41b   : > { %v2350_v37 = vadd.f32 %v9728_v57, %v2298_v33  ;;  %v3383_v22 = vstv %s9836_s16  ;;  %v9900_v43 = vpop.permute.xlu1 %2879  ;;  %v9902_v49 = vpop.permute.xlu0 %2360  ;;  %v2956_v17 = vsel %vm1962_vm7, %v2954_v42, %v2955_v44  ;;  %v3181_v39 = vmul.f32 %v9858_v50, %v3180_v8  ;;  %s10100_s16 = sld [smem:[#allocation9 + $0xe]] }
 0x41c   : > { %v3280_v46 = vmul.f32 %v9858_v50, %v3279_v13  ;;  %v3281_v4 = vmul.f32 %v9861_v1, %v3279_v13  ;;  %v2071_v34 = vadd.f32 %v9525_v62, %v2024_v6  ;;  %v2045_v57 = vadd.f32 %v9775_v51, %v2008_v32 }
 0x41d   : > { %v2904_v9 = vsel %vm1917_vm6, %v2902_v10, %v2903_v52  ;;  %v3519_v31 = vstv %s9848_s25  ;;  %2957 = vrot.lane.b32.xlu1 %v2956_v17, %s10714_s18  ;;  %v3234_v41 = vsel %vm384_vm0, %v3232_v11, %v3233_v36  ;;  %v3336_v42 = vrot.slane %v3332_v56, 3  ;;  %s10104_s25 = sld [smem:[#allocation9 + $0x16]] }
 0x41e   : > { %2905 = vrot.lane.b32.xlu0 %v2904_v9, %s10714_s18  ;;  %v3337_v44 = vrot.slane %v3333_v26, 3  ;;  %v3384_v8 = vmul.f32 %v9858_v50, %v3383_v22  ;;  %v2123_v62 = vadd.f32 %v9559_v59, %v2071_v34  ;;  %v2402_v51 = vadd.f32 %v9580_v53, %v2350_v37 }
 0x41f   : > { %v3385_v13 = vmul.f32 %v9861_v1, %v3383_v22  ;;  %v3467_v10 = vstv %s9874_s3  ;;  %v9922_v33 = vpop.permute.xlu1 %2704  ;;  %v9924_v24 = vpop.permute.xlu0 %2639  ;;  %v3284_v52 = vrot.slane %v3280_v46, 2  ;;  %v3285_v11 = vrot.slane %v3281_v4, 2  ;;  %s10129_s3 = sld [smem:[#allocation9 + $0x1e]] }
 0x420   : > { %v3520_v36 = vmul.f32 %v9858_v50, %v3519_v31  ;;  %v3521_v56 = vmul.f32 %v9861_v1, %v3519_v31  ;;  %v2175_v59 = vadd.f32 %v9750_v29, %v2123_v62  ;;  %v2454_v53 = vadd.f32 %v9804_v2, %v2402_v51 }
 0x421   : > { %v2097_v26 = vadd.f32 %v9627_v15, %v2045_v57  ;;  %v3623_v6 = vstv %s9884_s5  ;;  %v10800_v32 = vstv %s9366_s26  ;;  %3235 = vrot.lane.b32.xlu1 %v3234_v41, %s10715_s12  ;;  %v3420_v22 = vstv %s9890_s21  ;;  %s9965_s26 = sld [smem:[#allocation9 + $0xa7]]  ;;  %s10131_s5 = sld [smem:[#allocation9 + $0x26]] }
 0x422   : > { %v9938_v37 = vadd.f32 %v1821_v45, %v10800_v32  ;;  %3183 = vrot.lane.b32.xlu0 %v3181_v39, %s10715_s12  ;;  %v3468_v17 = vmul.f32 %v9858_v50, %v3467_v10  ;;  %v3469_v46 = vmul.f32 %v9861_v1, %v3467_v10  ;;  %v3388_v15 = vrot.slane %v3384_v8, 4  ;;  %s10160_s21 = sld [smem:[#allocation9 + $0x4]] }
 0x423   : > { %v2149_v29 = vadd.f32 %v9840_v27, %v2097_v26  ;;  %v3389_v2 = vrot.slane %v3385_v13, 4  ;;  %v3571_v4 = vstv %s9898_s30  ;;  %v9949_v34 = vpop.permute.xlu1 %2574  ;;  %v9951_v45 = vpop.permute.xlu0 %2464  ;;  %v3338_v57 = vsel %vm1917_vm6, %v3336_v42, %v3337_v44  ;;  %s10184_s30 = sld [smem:[#allocation9 + $0x24]] }
 0x424   : > { %v3524_v39 = vrot.slane %v3520_v36, 2  ;;  %v3525_v9 = vrot.slane %v3521_v56, 2  ;;  %v3624_v31 = vmul.f32 %v9858_v50, %v3623_v6  ;;  %v2227_v41 = vadd.f32 %v9612_v20, %v2175_v59 }
 0x425   : > { %v2496_v62 = vadd.f32 %v9008_v7, %v2454_v53  ;;  %v3286_v27 = vsel %vm419_vm1, %v3284_v52, %v3285_v11  ;;  %v3625_v8 = vmul.f32 %v9861_v1, %v3623_v6  ;;  %3339 = vrot.lane.b32.xlu1 %v3338_v57, %s10715_s12  ;;  %v3472_v51 = vrot.slane %v3468_v17, 1 }
 0x426   : > { %3287 = vrot.lane.b32.xlu0 %v3286_v27, %s10715_s12  ;;  %v3473_v13 = vrot.slane %v3469_v46, 1  ;;  %v9962_v42 = vmul.f32 %v9858_v50, %v3571_v4  ;;  %v3707_v44 = vstv %s9916_s6  ;;  %v2201_v7 = vadd.f32 %v9672_v3, %v2149_v29  ;;  %s6899_s6 = sld [smem:[#allocation9 + $0xf]] }
 0x427   : > { %v2538_v20 = vadd.f32 %v9878_v47, %v2496_v62  ;;  %v3421_v10 = vmul.f32 %v9858_v50, %v3420_v22  ;;  %v3390_v52 = vsel %vm1962_vm7, %v3388_v15, %v3389_v2  ;;  %v9973_v11 = vpop.permute.xlu1 %2626  ;;  %v2335_v36 = vpop.permute.xlu0 %2334  ;;  %v3526_v56 = vsel %vm419_vm1, %v3524_v39, %v3525_v9 }
 0x428   : > { %v3628_v59 = vrot.slane %v3624_v31, 4  ;;  %v3573_v53 = vmul.f32 %v9861_v1, %v3571_v4  ;;  %v3811_v26 = vstv %s9928_s19  ;;  %v2264_v3 = vadd.f32 %v9024_v58, %v2227_v41  ;;  %v7021_v4 = vld [vmem:[%s10801_s27 + $0xe8] sm:$0xff]  ;;  %s10295_s19 = sld [smem:[#allocation9 + $0x17]] }
 0x429   : > { %v3708_v47 = vmul.f32 %v9858_v50, %v3707_v44  ;;  %v3709_v6 = vmul.f32 %v9861_v1, %v3707_v44  ;;  %v3759_v32 = vstv %s9934_s23  ;;  %3423 = vrot.lane.b32.xlu1 %v3421_v10, %s10789_s13  ;;  %v3474_v22 = vsel %vm384_vm0, %v3472_v51, %v3473_v13  ;;  %7220 = vmatpush3.msra.mxu0 %v7021_v4  ;;  %s10297_s23 = sld [smem:[#allocation9 + $0x1f]] }
 0x42a   : > { %3391 = vrot.lane.b32.xlu0 %v3390_v52, %s10715_s12  ;;  %v3629_v17 = vrot.slane %v3625_v8, 4  ;;  %v3576_v46 = vrot.slane %v9962_v42, 3  ;;  %v3660_v29 = vstv %s9945_s8  ;;  %v2590_v15 = vadd.f32 %v9699_v60, %v2538_v20  ;;  %s10006_s12 = sld [smem:[#allocation9 + $0x15]]  ;;  %s10299_s8 = sld [smem:[#allocation9 + $0x7]] }
 0x42b   : > { %v2248_v2 = vadd.f32 %v9042_v61, %v2201_v7  ;;  %v3812_v58 = vmul.f32 %v9858_v50, %v3811_v26  ;;  %v9999_v57 = vpop.permute.xlu1 %2678  ;;  %v10001_v39 = vpop.permute.xlu0 %2548  ;;  %v3577_v9 = vrot.slane %v3573_v53, 3  ;;  %v3813_v60 = vmul.f32 %v9861_v1, %v3811_v26  ;;  %s10853_s27 = sld [smem:[#allocation24_spill]] }
 0x42c   : > { %v3760_v61 = vmul.f32 %v9858_v50, %v3759_v32  ;;  %v3761_v31 = vmul.f32 %v9861_v1, %v3759_v32  ;;  %v10803_v41 = vmov 0.0   ;;  %v2311_v62 = vadd.f32 %v9654_v14, %v2264_v3 }
 0x42d   : > { %7221 = vmatprep.mubr.msk.f32.mxu0 %vm7636_vm8, %v10803_v41  ;;  %v2642_v27 = vadd.f32 %v9924_v24, %v2590_v15  ;;  %v3712_v8 = vrot.slane %v3708_v47, 1  ;;  %v3713_v51 = vrot.slane %v3709_v6, 1  ;;  %7224 = vmatprep.subr.mxu0 %v10803_v41  ;;  %v10804_v13 = vstv %s9251_s9  ;;  %s10030_s9 = sld [smem:[#allocation9 + $0x1d]] }
 0x42e   : > { %7146 = vmatprep.mubr.msk.f32.mxu1 %vm7636_vm8, %v10803_v41  ;;  %v10020_v42 = vmul.f32 %v9676_v18, %v10804_v13  ;;  %3527 = vrot.lane.b32.xlu1 %v3526_v56, %s10789_s13  ;;  %v3630_v14 = vsel %vm1962_vm7, %v3628_v59, %v3629_v17  ;;  %v3661_v24 = vmul.f32 %v9858_v50, %v3660_v29  ;;  %v3900_v44 = vstv %s9965_s26  ;;  %s10301_s26 = sld [smem:[#allocation9 + $0x27]] }
 0x42f   : > { %3475 = vrot.lane.b32.xlu0 %v3474_v22, %s10789_s13  ;;  %v2363_v7 = vadd.f32 %v9902_v49, %v2311_v62  ;;  %v2285_v20 = vadd.f32 %v9748_v54, %v2248_v2  ;;  %v3816_v10 = vrot.slane %v3812_v58, 3  ;;  %v3863_v52 = vstv %s9971_s10  ;;  %v10032_v53 = vpop.permute.xlu1 %2762  ;;  %v2439_v26 = vpop.permute.xlu0 %2438  ;;  %v4148_v58 = vld [vmem:[%s10802_s7] sm:$0xff] }
 0x430   : > { %v3817_v3 = vrot.slane %v3813_v60, 3  ;;  %v3764_v56 = vrot.slane %v3760_v61, 2  ;;  %v3765_v47 = vrot.slane %v3761_v31, 2  ;;  %v2991_v6 = vstv %s9978_s20  ;;  %7145 = vmatpush3.msra.mxu1 %v4148_v58 }
 0x431   : > { %v2694_v59 = vadd.f32 %v9773_v5, %v2642_v27  ;;  %v2337_v32 = vadd.f32 %v2335_v36, %v2285_v20  ;;  %v3578_v49 = vsel %vm1917_vm6, %v3576_v46, %v3577_v9  ;;  %v3714_v54 = vsel %vm384_vm0, %v3712_v8, %v3713_v51  ;;  %7149 = vmatprep.subr.mxu1 %v10803_v41  ;;  %p10855_p11 = scmp.ne.s32.totalorder %s10853_s27, 0 }
 0x432   : > { %v1907_v22 = vrot.slane %v9824_v38, 2  ;;  %3631 = vrot.lane.b32.xlu1 %v3630_v14, %s10789_s13  ;;  %v10044_v17 = vmul.f32 %v9858_v50, %v3900_v44  ;;  %v3864_v5 = vmul.f32 %v9858_v50, %v3863_v52  ;;  %v3865_v36 = vmul.f32 %v9861_v1, %v3863_v52 }
 0x433   : > { %3579 = vrot.lane.b32.xlu0 %v3578_v49, %s10789_s13  ;;  %v2415_v46 = vadd.f32 %v9726_v40, %v2363_v7  ;;  %v2968_v29 = vstv %s9992_s14  ;;  %v10055_v15 = vmul.f32 %v9858_v50, %v2991_v6  ;;  %v3999_v2 = vstv %s9994_s17  ;;  %v10061_v4 = vpop.permute.xlu1 %3806  ;;  %v2828_v9 = vpop.permute.xlu0 %2827 }
 0x434   : > { %v3818_v60 = vsel %vm1917_vm6, %v3816_v10, %v3817_v3  ;;  %v3766_v61 = vsel %vm419_vm1, %v3764_v56, %v3765_v47  ;;  %v10066_v31 = vmul.f32 %v9861_v1, %v2991_v6  ;;  %v3035_v40 = vstv %s10006_s12 }
 0x435   : > { %v2467_v62 = vadd.f32 %v9951_v45, %v2415_v46  ;;  %v2389_v27 = vadd.f32 %v9802_v35, %v2337_v32  ;;  %v2736_v8 = vadd.f32 %v9065_v12, %v2694_v59  ;;  %v3947_v51 = vstv %s10012_s15 }
 0x436   : > { %3715 = vrot.lane.b32.xlu1 %v3714_v54, %s10731_s2  ;;  %v3868_v13 = vrot.slane %v3864_v5, 4  ;;  %v3869_v14 = vrot.slane %v3865_v36, 4  ;;  %v10077_v44 = vmul.f32 %v9858_v50, %v2968_v29  ;;  %v4000_v7 = vmul.f32 %v9858_v50, %v3999_v2 }
 0x437   : > { %3663 = vrot.lane.b32.xlu0 %v3661_v24, %s10731_s2  ;;  %v2441_v45 = vadd.f32 %v2439_v26, %v2389_v27  ;;  %v2996_v35 = vrot.slane %v10055_v15, 1  ;;  %v3079_v12 = vstv %s10030_s9  ;;  %v4001_v20 = vmul.f32 %v9861_v1, %v3999_v2  ;;  %v10083_v10 = vpop.permute.xlu1 %3858  ;;  %v2653_v52 = vpop.permute.xlu0 %2652 }
 0x438   : > { %v2997_v24 = vrot.slane %v10066_v31, 1  ;;  %v10087_v3 = vmul.f32 %v9858_v50, %v3035_v40  ;;  %v3948_v56 = vmul.f32 %v9858_v50, %v3947_v51  ;;  %v3949_v47 = vmul.f32 %v9861_v1, %v3947_v51 }
 0x439   : > { %v2504_v26 = vadd.f32 %v9022_v48, %v2467_v62  ;;  %v2778_v6 = vadd.f32 %v9838_v21, %v2736_v8  ;;  %v3037_v59 = vmul.f32 %v9861_v1, %v3035_v40  ;;  %v4103_v32 = vstv %s10038_s4 }
 0x43a   : > { %3819 = vrot.lane.b32.xlu1 %v3818_v60, %s10731_s2  ;;  %v3870_v49 = vsel %vm1962_vm7, %v3868_v13, %v3869_v14  ;;  %v3123_v54 = vstv %s10048_s11  ;;  %v4004_v5 = vrot.slane %v4000_v7, 2  ;;  %v4051_v36 = vstv %s10050_s0  ;;  %s10854_s0 = sld [smem:[#allocation77_spill]] }
 0x43b   : > { %3767 = vrot.lane.b32.xlu0 %v3766_v61, %s10731_s2  ;;  %v2551_v46 = vadd.f32 %v10001_v39, %v2504_v26  ;;  %v2830_v29 = vadd.f32 %v2828_v9, %v2778_v6  ;;  %v2488_v48 = vadd.f32 %v9040_v63, %v2441_v45  ;;  %v4005_v21 = vrot.slane %v4001_v20, 2  ;;  %v10106_v15 = vpop.permute.xlu1 %3895  ;;  %v2523_v2 = vpop.permute.xlu0 %2522 }
 0x43c   : > { %v3952_v58 = vrot.slane %v3948_v56, 1  ;;  %v3953_v60 = vrot.slane %v3949_v47, 1  ;;  %v4104_v61 = vmul.f32 %v9858_v50, %v4103_v32  ;;  %v4105_v31 = vmul.f32 %v9861_v1, %v4103_v32 }
 0x43d   : > { %v2525_v40 = vadd.f32 %v2523_v2, %v2488_v48  ;;  %v3080_v62 = vmul.f32 %v9858_v50, %v3079_v12  ;;  %v4052_v39 = vmul.f32 %v9858_v50, %v4051_v36  ;;  %v4053_v9 = vmul.f32 %v9861_v1, %v4051_v36 }
 0x43e   : > { %3903 = vrot.lane.b32.xlu1 %v10044_v17, %s10714_s18  ;;  %v3040_v63 = vrot.slane %v10087_v3, 2  ;;  %v3041_v27 = vrot.slane %v3037_v59, 2  ;;  %v3081_v8 = vmul.f32 %v9861_v1, %v3079_v12  ;;  %v3124_v51 = vmul.f32 %v9858_v50, %v3123_v54 }
 0x43f   : > { %3871 = vrot.lane.b32.xlu0 %v3870_v49, %s10731_s2  ;;  %v2603_v13 = vadd.f32 %v9876_v16, %v2551_v46  ;;  %v2577_v14 = vadd.f32 %v9949_v34, %v2525_v40  ;;  %v2882_v7 = vadd.f32 %v9900_v43, %v2830_v29  ;;  %v3125_v45 = vmul.f32 %v9861_v1, %v3123_v54  ;;  %v10123_v20 = vpop.permute.xlu1 %3780  ;;  %v2932_v17 = vpop.permute.xlu0 %2931  ;;  %s10127_s2 = sld [smem:[#allocation9 + $0x6]] }
 0x440   : > { %v4006_v56 = vsel %vm419_vm1, %v4004_v5, %v4005_v21  ;;  %v3954_v3 = vsel %vm384_vm0, %v3952_v58, %v3953_v60  ;;  %v4108_v12 = vrot.slane %v4104_v61, 4  ;;  %v4109_v47 = vrot.slane %v4105_v31, 4 }
 0x441   : > { %v2655_v16 = vadd.f32 %v2653_v52, %v2603_v13  ;;  %v2934_v34 = vadd.f32 %v2932_v17, %v2882_v7  ;;  %v4056_v26 = vrot.slane %v4052_v39, 3  ;;  %v4057_v6 = vrot.slane %v4053_v9, 3 }
 0x442   : > { %v10805_v43 = vstv %s9322_s28  ;;  %v2998_v32 = vsel %vm384_vm0, %v2996_v35, %v2997_v24  ;;  %v3084_v49 = vrot.slane %v3080_v62, 3  ;;  %4007 = vrot.lane.b32.xlu1 %v4006_v56, %s10714_s18  ;;  %v3002_v54 = vstv %s10100_s16  ;;  %s10152_s28 = sld [smem:[#allocation9 + $0xc]] }
 0x443   : > { %v10136_v59 = vmul.f32 %v9676_v18, %v10805_v43  ;;  %3955 = vrot.lane.b32.xlu0 %v3954_v3, %s10714_s18  ;;  %v2629_v52 = vadd.f32 %v9973_v11, %v2577_v14  ;;  %v3085_v5 = vrot.slane %v3081_v8, 3  ;;  %v2970_v36 = vadd.f32 %v10077_v44, %v2934_v34  ;;  %v10146_v2 = vpop.permute.xlu1 %2509  ;;  %v2789_v35 = vpop.permute.xlu0 %2788 }
 0x444   : > { %v3046_v46 = vstv %s10104_s25  ;;  %v3042_v29 = vsel %vm419_vm1, %v3040_v63, %v3041_v27  ;;  %v3128_v48 = vrot.slane %v3124_v51, 4  ;;  %v3129_v21 = vrot.slane %v3125_v45, 4  ;;  %s7637_s25 = smov [#allocation12]  }
 0x445   : > { %v4110_v24 = vsel %vm1962_vm7, %v4108_v12, %v4109_v47  ;;  %v2707_v58 = vadd.f32 %v9922_v33, %v2655_v16  ;;  %v3000_v60 = vadd.f32 %v2998_v32, %v2970_v36  ;;  %v4058_v61 = vsel %vm1917_vm6, %v4056_v26, %v4057_v6 }
 0x446   : > { %v3003_v11 = vmul.f32 %v9858_v50, %v3002_v54  ;;  %v1952_v44 = vrot.slane %v9829_v28, 3  ;;  %4111 = vrot.lane.b32.xlu1 %v4110_v24, %s10714_s18  ;;  %v3004_v31 = vmul.f32 %v9861_v1, %v3002_v54  ;;  %v3047_v40 = vmul.f32 %v9858_v50, %v3046_v46 }
 0x447   : > { %4059 = vrot.lane.b32.xlu0 %v4058_v61, %s10714_s18  ;;  %v3048_v33 = vmul.f32 %v9861_v1, %v3046_v46  ;;  %v1862_v62 = vrot.slane %v9870_v23, 1  ;;  %v10166_v39 = vmul.f32 %v9676_v18, %v1991_v0  ;;  %v3044_v9 = vadd.f32 %v3042_v29, %v3000_v60  ;;  %s10169_s18 = sld [smem:[#allocation9 + $0x14]]  ;;  %v10174_v13 = vpop.permute.xlu1 %3994  ;;  %v2841_v14 = vpop.permute.xlu0 %2840 }
 0x448   : > { %v2681_v63 = vadd.f32 %v9999_v57, %v2629_v52  ;;  %v1906_v27 = vrot.slane %v10020_v42, 2  ;;  %v3086_v8 = vsel %vm1917_vm6, %v3084_v49, %v3085_v5  ;;  %v3130_v51 = vsel %vm1962_vm7, %v3128_v48, %v3129_v21  ;;  %v10807_v52 = vld [vmem:[#allocation26_spill] sm:$0xff] }
 0x449   : > { %v2972_v7 = vstv %s10127_s2  ;;  %v3088_v23 = vadd.f32 %v3086_v8, %v3044_v9  ;;  %v2744_v45 = vadd.f32 %v9082_v19, %v2707_v58  ;;  %v3090_v18 = vstv %s10129_s3  ;;  %s7554_s2 = sshll.u32 %s7637_s25, 4  ;;  %s7555_s2 = int_to_ptr.vmem [resolvable:$false] %s7554_s2 }
 0x44a   : > { %v3134_v0 = vstv %s10131_s5  ;;  %v3007_v57 = vrot.slane %v3003_v11, 1  ;;  %v3008_v17 = vrot.slane %v3004_v31, 1  ;;  %v3051_v56 = vrot.slane %v3047_v40, 2  ;;  %s7556_s3 = scalar_lea.vmem %s7555_s2, 32 }
 0x44b   : > { %v3052_v3 = vrot.slane %v3048_v33, 2  ;;  %v1951_v12 = vrot.slane %v10136_v59, 3  ;;  %v3132_v47 = vadd.f32 %v3130_v51, %v3088_v23  ;;  %v2791_v16 = vadd.f32 %v2789_v35, %v2744_v45  ;;  %v2815_v6 = vpop.permute.xlu1 %2814  ;;  %v2893_v43 = vpop.permute.xlu0 %2892  ;;  %v10808_v35 = vld [vmem:[#allocation36_spill] sm:$0xff] }
 0x44c   : > { %v2728_v34 = vadd.f32 %v9063_v30, %v2681_v63  ;;  %v10806_v19 = vrot.slane %v9819_v55, 1  ;;  %v2973_v32 = vmul.f32 %v9858_v50, %v2972_v7  ;;  %v3091_v49 = vmul.f32 %v9858_v50, %v3090_v18  ;;  %v10809_v63 = vld [vmem:[#allocation39_spill] sm:$0xff] }
 0x44d   : > { %v3092_v54 = vmul.f32 %v9861_v1, %v3090_v18  ;;  %v3170_v5 = vadd.f32 %v10807_v52, %v3132_v47  ;;  %v2843_v36 = vadd.f32 %v2841_v14, %v2791_v16  ;;  %v3135_v30 = vmul.f32 %v9858_v50, %v3134_v0 }
 0x44e   : > { %v1864_v26 = vsel %vm384_vm0, %v1862_v62, %v10806_v19  ;;  %v2980_v46 = vstv %s10152_s28  ;;  %v3009_v29 = vsel %vm384_vm0, %v3007_v57, %v3008_v17  ;;  %v3053_v55 = vsel %vm419_vm1, %v3051_v56, %v3052_v3 }
 0x44f   : > { %v3136_v48 = vmul.f32 %v9861_v1, %v3134_v0  ;;  %v2964_v21 = vstv %s10160_s21  ;;  %v3212_v24 = vadd.f32 %v10808_v35, %v3170_v5  ;;  %v2765_v58 = vadd.f32 %v10032_v53, %v2728_v34  ;;  %v2867_v11 = vpop.permute.xlu1 %2866  ;;  %v2945_v33 = vpop.permute.xlu0 %2944  ;;  %v10810_v0 = vld [vmem:[#allocation38_spill] sm:$0xff] }
 0x450   : > { %v2895_v60 = vadd.f32 %v2893_v43, %v2843_v36  ;;  %v3024_v61 = vstv %s10169_s18  ;;  %v3095_v31 = vrot.slane %v3091_v49, 3  ;;  %v3096_v40 = vrot.slane %v3092_v54, 3  ;;  %v10811_v49 = vld [vmem:[#allocation41_spill] sm:$0xff] }
 0x451   : > { %v2981_v62 = vmul.f32 %v9858_v50, %v2980_v46  ;;  %v2982_v9 = vmul.f32 %v9861_v1, %v2980_v46  ;;  %v3264_v8 = vadd.f32 %v10809_v63, %v3212_v24  ;;  %v2817_v51 = vadd.f32 %v2815_v6, %v2765_v58  ;;  %v10812_v24 = vld [vmem:[#allocation28_spill] sm:$0xff] }
 0x452   : > { %v2947_v14 = vadd.f32 %v2945_v33, %v2895_v60  ;;  %v3068_v7 = vstv %s10180_s1  ;;  %v3139_v23 = vrot.slane %v3135_v30, 4  ;;  %v3140_v45 = vrot.slane %v3136_v48, 4 }
 0x453   : > { %v3025_v53 = vmul.f32 %v9858_v50, %v3024_v61  ;;  %v3026_v18 = vmul.f32 %v9861_v1, %v3024_v61  ;;  %v3316_v57 = vadd.f32 %v10810_v0, %v3264_v8  ;;  %v2869_v17 = vadd.f32 %v2867_v11, %v2817_v51  ;;  %v2919_v6 = vpop.permute.xlu1 %2918  ;;  %v10212_v43 = vpop.permute.xlu0 %3639  ;;  %v10814_v0 = vld [vmem:[#allocation45_spill] sm:$0xff] }
 0x454   : > { %v2974_v56 = vadd.f32 %v2973_v32, %v2947_v14  ;;  %v3112_v3 = vstv %s10184_s30  ;;  %v2985_v47 = vrot.slane %v2981_v62, 1  ;;  %v2986_v16 = vrot.slane %v2982_v9, 1 }
 0x455   : > { %v3069_v34 = vmul.f32 %v9858_v50, %v3068_v7  ;;  %v3070_v19 = vmul.f32 %v9861_v1, %v3068_v7  ;;  %v3368_v54 = vadd.f32 %v10811_v49, %v3316_v57  ;;  %v2965_v5 = vmul.f32 %v9858_v50, %v2964_v21 }
 0x456   : > { %v3011_v52 = vadd.f32 %v3009_v29, %v2974_v56  ;;  %v2921_v36 = vadd.f32 %v2919_v6, %v2869_v17  ;;  %v3029_v30 = vrot.slane %v3025_v53, 2  ;;  %v3030_v46 = vrot.slane %v3026_v18, 2  ;;  %v10817_v6 = vld [vmem:[#allocation40_spill] sm:$0xff] }
 0x457   : > { %v3113_v32 = vmul.f32 %v9858_v50, %v3112_v3  ;;  %v3114_v48 = vmul.f32 %v9861_v1, %v3112_v3  ;;  %v1866_v35 = vadd.f32 %v1864_v26, %v9938_v37  ;;  %v3410_v58 = vadd.f32 %v10812_v24, %v3368_v54  ;;  %v10222_v21 = vpop.permute.xlu1 %3879  ;;  %v10224_v9 = vpop.permute.xlu0 %4033  ;;  %v10816_v3 = vld [vmem:[#allocation44_spill] sm:$0xff]  ;;  %v10823_v24 = vld [vmem:[#allocation49_spill] sm:$0xff] }
 0x458   : > { %v3055_v60 = vadd.f32 %v3053_v55, %v3011_v52  ;;  %v2966_v61 = vadd.f32 %v2965_v5, %v2921_v36  ;;  %v3097_v11 = vsel %vm1917_vm6, %v3095_v31, %v3096_v40  ;;  %v2987_v33 = vsel %vm384_vm0, %v2985_v47, %v2986_v16  ;;  %v10813_v55 = vld [vmem:[#allocation43_spill] sm:$0xff] }
 0x459   : > { %v3073_v29 = vrot.slane %v3069_v34, 3  ;;  %v3074_v62 = vrot.slane %v3070_v19, 3  ;;  %v1908_v37 = vsel %vm419_vm1, %v1906_v27, %v1907_v22  ;;  %v3452_v8 = vadd.f32 %v10813_v55, %v3410_v58  ;;  %v10815_v27 = vld [vmem:[#allocation37_spill] sm:$0xff]  ;;  %v10818_v52 = vld [vmem:[#allocation51_spill] sm:$0xff] }
 0x45a   : > { %v3099_v26 = vadd.f32 %v3097_v11, %v3055_v60  ;;  %v2989_v63 = vadd.f32 %v2987_v33, %v2966_v61  ;;  %v3141_v31 = vsel %vm1962_vm7, %v3139_v23, %v3140_v45  ;;  %v3031_v40 = vsel %vm419_vm1, %v3029_v30, %v3030_v46  ;;  %v10819_v46 = vld [vmem:[#allocation42_spill] sm:$0xff]  ;;  %v10824_v60 = vld [vmem:[#allocation55_spill] sm:$0xff] }
 0x45b   : > { %v3117_v51 = vrot.slane %v3113_v32, 4  ;;  %v3118_v14 = vrot.slane %v3114_v48, 4  ;;  %v1910_v7 = vadd.f32 %v1908_v37, %v1866_v35  ;;  %v3504_v57 = vadd.f32 %v10814_v0, %v3452_v8  ;;  %v10236_v42 = vpop.permute.xlu1 %4098  ;;  %v10238_v22 = vpop.permute.xlu0 %3676  ;;  %v10820_v32 = vld [vmem:[#allocation27_spill] sm:$0xff]  ;;  %v10821_v48 = vld [vmem:[#allocation29_spill] sm:$0xff]  ;;  %v10826_v37 = vld [vmem:[#allocation46_spill] sm:$0xff] }
 0x45c   : > { %v3143_v53 = vadd.f32 %v3141_v31, %v3099_v26  ;;  %v3033_v18 = vadd.f32 %v3031_v40, %v2989_v63  ;;  %v3075_v38 = vsel %vm1917_vm6, %v3073_v29, %v3074_v62  ;;  %v1997_v45 = vrot.slane %v9854_v25, 4  ;;  %v10825_v29 = vld [vmem:[#allocation34_spill] sm:$0xff]  ;;  %v10827_v63 = vld [vmem:[#allocation48_spill] sm:$0xff]  ;;  %v10828_v8 = vld [vmem:[#allocation59_spill] sm:$0xff] }
 0x45d   : > { %v3556_v23 = vadd.f32 %v10816_v3, %v3504_v57  ;;  %v1953_v47 = vsel %vm1917_vm6, %v1951_v12, %v1952_v44  ;;  %v1996_v16 = vrot.slane %v10166_v39, 4  ;;  %v3119_v34 = vsel %vm1962_vm7, %v3117_v51, %v3118_v14  ;;  %v10822_v39 = vld [vmem:[#allocation47_spill] sm:$0xff]  ;;  %v10829_v40 = vld [vmem:[#allocation53_spill] sm:$0xff] }
 0x45e   : > { %v3178_v17 = vadd.f32 %v10815_v27, %v3143_v53  ;;  %v3077_v56 = vadd.f32 %v3075_v38, %v3033_v18  ;;  %v1955_v19 = vadd.f32 %v1953_v47, %v1910_v7  ;;  %v10830_v14 = vld [vmem:[#allocation61_spill] sm:$0xff]  ;;  %v10831_v18 = vld [vmem:[#allocation30_spill] sm:$0xff] }
 0x45f   : > { %v3608_v5 = vadd.f32 %v10818_v52, %v3556_v23  ;;  %v2082_v36 = vpop.permute.xlu1 %2081  ;;  %v4086_v30 = vpop.permute.xlu0 %4085  ;;  %v1998_v44 = vsel %vm1962_vm7, %v1996_v16, %v1997_v45  ;;  %v10832_v27 = vld [vmem:[#allocation57_spill] sm:$0xff]  ;;  %v10834_v45 = vld [vmem:[#allocation50_spill] sm:$0xff]  ;;  %v10835_v16 = vld [vmem:[#allocation32_spill] sm:$0xff] }
 0x460   : > { %v3225_v49 = vadd.f32 %v10817_v6, %v3178_v17  ;;  %v3121_v54 = vadd.f32 %v3119_v34, %v3077_v56  ;;  %v2000_v12 = vadd.f32 %v1998_v44, %v1955_v19  ;;  %v10833_v56 = vld [vmem:[#allocation63_spill] sm:$0xff]  ;;  %v10836_v19 = vld [vmem:[#allocation33_spill] sm:$0xff] }
 0x461   : > { %v3650_v59 = vadd.f32 %v10821_v48, %v3608_v5  ;;  %v10840_v48 = vld [vmem:[#allocation54_spill] sm:$0xff] }
 0x462   : > { %v3277_v25 = vadd.f32 %v10819_v46, %v3225_v49  ;;  %v3162_v28 = vadd.f32 %v10820_v32, %v3121_v54  ;;  %v2032_v62 = vadd.f32 %v10825_v29, %v2000_v12  ;;  %v10837_v54 = vld [vmem:[#allocation52_spill] sm:$0xff]  ;;  %v10838_v46 = vld [vmem:[#allocation62_spill] sm:$0xff]  ;;  %v10844_v29 = vld [vmem:[#allocation65_spill] sm:$0xff] }
 0x463   : > { %v3692_v61 = vadd.f32 %v10824_v60, %v3650_v59  ;;  %v2134_v11 = vpop.permute.xlu1 %2133  ;;  %v3729_v33 = vpop.permute.xlu0 %3728  ;;  %v10839_v32 = vld [vmem:[#allocation66_spill] sm:$0xff]  ;;  %v10841_v12 = vld [vmem:[#allocation64_spill] sm:$0xff] }
 0x464   : > { %v3329_v35 = vadd.f32 %v10822_v39, %v3277_v25  ;;  %v3199_v58 = vadd.f32 %v10823_v24, %v3162_v28  ;;  %v2084_v53 = vadd.f32 %v2082_v36, %v2032_v62 }
 0x465   : > { %v3744_v31 = vadd.f32 %v10828_v8, %v3692_v61 }
 0x466   : > { %v3381_v26 = vadd.f32 %v10826_v37, %v3329_v35  ;;  %v3251_v55 = vadd.f32 %v10827_v63, %v3199_v58  ;;  %v2136_v23 = vadd.f32 %v2134_v11, %v2084_v53  ;;  %v10842_v35 = vld [vmem:[#allocation68_spill] sm:$0xff] }
 0x467   : > { %v3796_v7 = vadd.f32 %v10830_v14, %v3744_v31  ;;  %v2186_v57 = vpop.permute.xlu1 %2185  ;;  %v3943_v38 = vpop.permute.xlu0 %3942  ;;  %v10843_v58 = vld [vmem:[#allocation56_spill] sm:$0xff]  ;;  %v10847_v31 = vld [vmem:[#allocation67_spill] sm:$0xff]  ;;  %v10848_v14 = vld [vmem:[#allocation58_spill] sm:$0xff] }
 0x468   : > { %v3303_v51 = vadd.f32 %v10829_v40, %v3251_v55  ;;  %v3418_v0 = vadd.f32 %v10831_v18, %v3381_v26  ;;  %v2188_v49 = vadd.f32 %v2186_v57, %v2136_v23  ;;  %v10845_v26 = vld [vmem:[#allocation31_spill] sm:$0xff] }
 0x469   : > { %v3848_v3 = vadd.f32 %v10833_v56, %v3796_v7  ;;  %v10846_v55 = vld [vmem:[#allocation35_spill] sm:$0xff] }
 0x46a   : > { %v3355_v17 = vadd.f32 %v10832_v27, %v3303_v51  ;;  %v3465_v47 = vadd.f32 %v10834_v45, %v3418_v0  ;;  %v10849_v27 = vld [vmem:[#allocation60_spill] sm:$0xff] }
 0x46b   : > { %v3890_v6 = vadd.f32 %v10836_v19, %v3848_v3  ;;  %v2238_v5 = vpop.permute.xlu1 %2237  ;;  %v3833_v36 = vpop.permute.xlu0 %3832 }
 0x46c   : > { %v3402_v34 = vadd.f32 %v10835_v16, %v3355_v17  ;;  %v3517_v52 = vadd.f32 %v10837_v54, %v3465_v47  ;;  %v2240_v44 = vadd.f32 %v2238_v5, %v2188_v49 }
 0x46d   : > { %v3932_v28 = vadd.f32 %v10839_v32, %v3890_v6 }
 0x46e   : > { %v3439_v25 = vadd.f32 %v10838_v46, %v3402_v34  ;;  %v3569_v59 = vadd.f32 %v10840_v48, %v3517_v52  ;;  %v2272_v8 = vadd.f32 %v10846_v55, %v2240_v44 }
 0x46f   : > { %v3984_v24 = vadd.f32 %v10842_v35, %v3932_v28  ;;  %v2322_v61 = vpop.permute.xlu1 %2321  ;;  %v4047_v11 = vpop.permute.xlu0 %4046 }
 0x470   : > { %v3491_v39 = vadd.f32 %v10841_v12, %v3439_v25  ;;  %v3621_v60 = vadd.f32 %v10843_v58, %v3569_v59  ;;  %v2324_v56 = vadd.f32 %v2322_v61, %v2272_v8  ;;  %v3057_v8 = vstv %s10295_s19  ;;  %s10850_s19 = sld [smem:[#allocation18_spill]] }
 0x471   : > { %v4036_v37 = vadd.f32 %v10224_v9, %v3984_v24 }
 0x472   : > { %v3543_v62 = vadd.f32 %v10844_v29, %v3491_v39  ;;  %v3658_v63 = vadd.f32 %v10845_v26, %v3621_v60  ;;  %v3013_v60 = vstv %s6899_s6 }
 0x473   : > { %v4088_v51 = vadd.f32 %v4086_v30, %v4036_v37  ;;  %v2374_v53 = vpop.permute.xlu1 %2373  ;;  %v3917_v18 = vpop.permute.xlu0 %3916  ;;  %v3014_v37 = vmul.f32 %v9858_v50, %v3013_v60  ;;  %v3015_v55 = vmul.f32 %v9861_v1, %v3013_v60 }
 0x474   : > { %v3595_v40 = vadd.f32 %v10847_v31, %v3543_v62  ;;  %v3705_v7 = vadd.f32 %v10848_v14, %v3658_v63  ;;  %v2376_v45 = vadd.f32 %v2374_v53, %v2324_v56 }
 0x475   : > { %v4123_v57 = vsub.f32 0.0, %v4088_v51  ;;  %v3019_v56 = vrot.slane %v3015_v55, 1  ;;  %v7025_v55 = vld [vmem:[%s10802_s7 + $0x30] sm:$0xff] }
 0x476   : > { %v3642_v0 = vadd.f32 %v10212_v43, %v3595_v40  ;;  %v3757_v17 = vadd.f32 %v10849_v27, %v3705_v7  ;;  %v3101_v40 = vstv %s10297_s23  ;;  %v2976_v7 = vstv %s10299_s8  ;;  %s348_s14 = sand.u32 1, %s10850_s19  }
 0x477   : > { %v4124_v9 = vmul.f32 1.442695, %v4123_v57  ;;  %v2426_v47 = vpop.permute.xlu1 %2425  ;;  %v2478_v16 = vpop.permute.xlu0 %2477  ;;  %v3145_v57 = vstv %s10301_s26  ;;  %s10851_s26 = sld [smem:[#allocation21_spill]]  ;;  %s349_s15 = scalar_lea.vmem [#allocation12], %s348_s14 }
 0x478   : > { %v3679_v3 = vadd.f32 %v10238_v22, %v3642_v0  ;;  %v3809_v23 = vadd.f32 %v10061_v4, %v3757_v17  ;;  %v2428_v19 = vadd.f32 %v2426_v47, %v2376_v45  ;;  %v3059_v0 = vmul.f32 %v9861_v1, %v3057_v8  ;;  %v7489_v45 = vld [vmem:[#allocation3 + $0x18] sm:$0xf]  ;;  %s6594_s9 = sshll.u32 %s349_s15, 4  ;;  %s6582_s22 = scalar_lea.sflag [#allocation5], %s348_s14  ;;  %s10575_s9 = int_to_ptr.vmem [resolvable:$true] %s6594_s9 }
 0x479   : > { %7462 = vpow2.f32 %v4124_v9  ;;  %v3018_v17 = vrot.slane %v3014_v37, 1  ;;  %v7488_v9 = vld [vmem:[#allocation3 + $0x10] sm:$0xff]  ;;  %v3103_v47 = vmul.f32 %v7489_v45, %v3101_v40  ;;  %s7550_s16 = scalar_lea.vmem %s10575_s9, 16  ;;  %p7557_p2 = scmp.lt.s32.totalorder %s10575_s9, %s7555_s2 }
 0x47a   : > { %v3731_v30 = vadd.f32 %v3729_v33, %v3679_v3  ;;  %v3861_v34 = vadd.f32 %v10083_v10, %v3809_v23  ;;  %v2480_v49 = vadd.f32 %v2478_v16, %v2428_v19  ;;  %v3102_v23 = vmul.f32 %v7488_v9, %v3101_v40  ;;  %p7551_p8 = scmp.ne.s32.totalorder %s10575_s9, %s7550_s16  ;;  %p7558_p3 = scmp.lt.s32.totalorder %s7556_s3, %s7550_s16 }
 0x47b   : > { %v3969_v54 = vpop.permute.xlu1 %3968  ;;  %v2562_v52 = vpop.permute.xlu0 %2561 }
 0x47c   : > { %v3898_v6 = vadd.f32 %v10106_v15, %v3861_v34  ;;  %v3783_v43 = vadd.f32 %v10123_v20, %v3731_v30  ;;  %v2512_v46 = vadd.f32 %v10146_v2, %v2480_v49  ;;  %v2977_v34 = vmul.f32 %v7488_v9, %v2976_v7  ;;  %p7552_p13 = pnand %p7551_p8, %p10855_p11  ;;  %p7559_p4 = por %p7558_p3, %p7557_p2 }
 0x47d   : > { %s7055_s12 = sshll.u32 %s10851_s26, 4 }
 0x47e   : > { %v3945_v5 = vadd.f32 %v3943_v38, %v3898_v6  ;;  %v3835_v22 = vadd.f32 %v3833_v36, %v3783_v43  ;;  %v2564_v48 = vadd.f32 %v2562_v52, %v2512_v46  ;;  %v3146_v6 = vmul.f32 %v7488_v9, %v3145_v57  ;;  %s10573_s13 = scalar_lea.hbm %s10854_s0, %s7055_s12  ;;  %p7553_p1 = pneg %p7552_p13 }
 0x47f   : > { %v2614_v32 = vpop.permute.xlu1 %2613  ;;  %v2750_v33 = vpop.permute.xlu0 %2749  ;;  %v3147_v52 = vmul.f32 %v7489_v45, %v3145_v57  ;;  %v6993_v57 = vld [vmem:[%s10802_s7 + $0x20] sm:$0xff] }
 0x480   : > { %v3997_v4 = vadd.f32 %v10174_v13, %v3945_v5  ;;  %v3882_v25 = vadd.f32 %v10222_v21, %v3835_v22  ;;  %v2616_v39 = vadd.f32 %v2614_v32, %v2564_v48  ;;  %v3020_v22 = vsel %vm384_vm0, %v3018_v17, %v3019_v56  ;;  %p7560_p9 = pnand %p7559_p4, %p7553_p1 }
 0x481   : > { %v3150_v48 = vrot.slane %v3146_v6, 4 }
 0x482   : > { %v4049_v28 = vadd.f32 %v4047_v11, %v3997_v4  ;;  %v3919_v10 = vadd.f32 %v3917_v18, %v3882_v25  ;;  %v3058_v18 = vmul.f32 %v9858_v50, %v3057_v8  ;;  %v3063_v50 = vrot.slane %v3059_v0, 2 }
 0x483   : > { %v7463_v15 = vpop.eup %7462  ;;  %v4021_v12 = vpop.permute.xlu1 %4020  ;;  %v3106_v4 = vrot.slane %v3102_v23, 3  ;;  %v3107_v25 = vrot.slane %v3103_v47, 3 }
 0x484   : > { %v4101_v20 = vadd.f32 %v10236_v42, %v4049_v28  ;;  %v3971_v59 = vadd.f32 %v3969_v54, %v3919_v10  ;;  %v4126_v44 = vadd.f32 1.0, %v7463_v15  ;;  %v2666_v38 = vpop.permute.xlu0 %2665  ;;  %v3062_v54 = vrot.slane %v3058_v18, 2  ;;  %v7023_v28 = vld [vmem:[%s10802_s7 + $0x10] sm:$0xff] }
 0x485   : > { %v2668_v21 = vadd.f32 %v2666_v38, %v2616_v39  ;;  %v3151_v15 = vrot.slane %v3147_v52, 4 }
 0x486   : > { %v4131_v36 = vsub.f32 0.0, %v4101_v20  ;;  %7464 = vrcp.f32 %v4126_v44  ;;  %v4023_v13 = vadd.f32 %v4021_v12, %v3971_v59  ;;  %v3064_v10 = vsel %vm419_vm1, %v3062_v54, %v3063_v50 }
 0x487   : > { %v4073_v35 = vpop.permute.xlu1 %4072 }
 0x488   : > { %v4132_v2 = vmul.f32 1.442695, %v4131_v36  ;;  %v2718_v24 = vpop.permute.xlu0 %2717  ;;  %v4075_v42 = vadd.f32 %v4073_v35, %v4023_v13  ;;  %v3108_v36 = vsel %vm1917_vm6, %v3106_v4, %v3107_v25 }
 0x489   : > { %v2720_v58 = vadd.f32 %v2718_v24, %v2668_v21 }
 0x48a   : > { %7466 = vpow2.f32 %v4132_v2  ;;  %v4115_v61 = vsub.f32 0.0, %v4075_v42  ;;  %v3152_v2 = vsel %vm1962_vm7, %v3150_v48, %v3151_v15 }
 0x48b   : > { %v2752_v11 = vadd.f32 %v2750_v33, %v2720_v58  ;;  %v2854_v29 = vpop.permute.xlu1 %2853 }
 0x48c   : > { %v2802_v62 = vpop.permute.xlu0 %2801  ;;  %v4116_v26 = vmul.f32 1.442695, %v4115_v61 }
 0x48d   : > { %v2804_v63 = vadd.f32 %v2802_v62, %v2752_v11 }
 0x48e   : > { %7468 = vpow2.f32 %v4116_v26 }
 0x48f   : > { %v2856_v31 = vadd.f32 %v2854_v29, %v2804_v63  ;;  %v2958_v14 = vpop.permute.xlu1 %2957 }
 0x490   : > { %v7465_v51 = vpop.eup %7464  ;;  %v2906_v53 = vpop.permute.xlu0 %2905 }
 0x491   : > { %v4128_v27 = vmul.f32 %v7465_v51, %v4126_v44  ;;  %v2908_v3 = vadd.f32 %v2906_v53, %v2856_v31 }
 0x493   : > { %v4129_v30 = vsub.f32 2.0, %v4128_v27  ;;  %v2960_v19 = vadd.f32 %v2958_v14, %v2908_v3  ;;  %v3236_v49 = vpop.permute.xlu1 %3235  ;;  %v7027_v3 = vld [vmem:[%s10802_s7 + $0x50] sm:$0xff] }
 0x494   : > { %v7467_v16 = vpop.eup %7466  ;;  %v3184_v1 = vpop.permute.xlu0 %3183 }
 0x495   : > { %v4134_v43 = vadd.f32 1.0, %v7467_v16  ;;  %v10311_v5 = vmul.f32 %v7465_v51, %v4129_v30  ;;  %v2978_v46 = vadd.f32 %v2977_v34, %v2960_v19  ;;  %v6995_v34 = vld [vmem:[%s10802_s7 + $0x40] sm:$0xff] }
 0x497   : > { %7470 = vrcp.f32 %v4134_v43  ;;  %v3022_v32 = vadd.f32 %v3020_v22, %v2978_v46  ;;  %v5290_v33 = vrot.slane %v10311_v5, 7  ;;  %v3340_v20 = vpop.permute.xlu1 %3339  ;;  %v6997_v46 = vld [vmem:[%s10802_s7 + $0x60] sm:$0xff] }
 0x498   : > { %v3288_v59 = vpop.permute.xlu0 %3287  ;;  %v7469_v44 = vpop.eup %7468 }
 0x499   : > { %v3066_v12 = vadd.f32 %v3064_v10, %v3022_v32  ;;  %7222 = vmatmul.mubr.msk.f32.vlgmr.msra.gmra.mrb[0].mxu0 %vm4149_vm9, %v5290_v33  ;;  %v4118_v38 = vadd.f32 1.0, %v7469_v44  ;;  %v7031_v33 = vld [vmem:[%s10802_s7 + $0x90] sm:$0xff]  ;;  %v6999_v44 = vld [vmem:[%s10802_s7 + $0x80] sm:$0xff] }
 0x49a   : > { %7225 = vmatpush3.msra.mxu0 %v7023_v28  ;;  %7226 = vmatprep.mubr.msk.f32.mxu0 %vm7636_vm8, %v10803_v41 }
 0x49b   : > { %v3110_v39 = vadd.f32 %v3108_v36, %v3066_v12  ;;  %7229 = vmatprep.subr.mxu0 %v10803_v41  ;;  %7472 = vrcp.f32 %v4118_v38  ;;  %v3424_v13 = vpop.permute.xlu1 %3423 }
 0x49c   : > { %v3392_v21 = vpop.permute.xlu0 %3391 }
 0x49d   : > { %v3154_v35 = vadd.f32 %v3152_v2, %v3110_v39  ;;  %v7033_v39 = vld [vmem:[%s10802_s7 + $0xb0] sm:$0xff] }
 0x49f   : > { %v3186_v24 = vadd.f32 %v3184_v1, %v3154_v35  ;;  %v7001_v35 = vld [vmem:[%s10802_s7 + $0xa0] sm:$0xff] }
 0x4a0   : > { %v3528_v58 = vpop.permute.xlu1 %3527 }
 0x4a1   : > { %v7471_v42 = vpop.eup %7470  ;;  %v3476_v60 = vpop.permute.xlu0 %3475  ;;  %v3238_v11 = vadd.f32 %v3236_v49, %v3186_v24 }
 0x4a2   : > { %v4136_v61 = vmul.f32 %v7471_v42, %v4134_v43  ;;  %v7029_v43 = vld [vmem:[%s10802_s7 + $0x70] sm:$0xff] }
 0x4a3   : > { %v3290_v62 = vadd.f32 %v3288_v59, %v3238_v11 }
 0x4a4   : > { %v4137_v29 = vsub.f32 2.0, %v4136_v61  ;;  %v3632_v31 = vpop.permute.xlu1 %3631 }
 0x4a5   : > { %v3580_v37 = vpop.permute.xlu0 %3579  ;;  %v3342_v63 = vadd.f32 %v3340_v20, %v3290_v62  ;;  %v7473_v8 = vpop.eup %7472 }
 0x4a6   : > { %v10325_v26 = vmul.f32 %v7471_v42, %v4137_v29  ;;  %v4120_v40 = vmul.f32 %v7473_v8, %v4118_v38  ;;  %v7035_v42 = vld [vmem:[%s10802_s7 + $0xd0] sm:$0xff] }
 0x4a7   : > { %v3394_v51 = vadd.f32 %v3392_v21, %v3342_v63  ;;  %v7037_v29 = vld [vmem:[%s10802_s7 + $0xf0] sm:$0xff]  ;;  %v7005_v63 = vld [vmem:[%s10802_s7 + $0xe0] sm:$0xff] }
 0x4a8   : > { %7227 = vmatmul.mubr.msk.f32.vlgmr.msra.gmra.mrb[0].mxu0 %vm4149_vm9, %v10325_v26  ;;  %v4121_v14 = vsub.f32 2.0, %v4120_v40  ;;  %v3716_v27 = vpop.permute.xlu1 %3715  ;;  %v5442_v56 = vrot.slane %v10325_v26, 1  ;;  %v5518_v6 = vrot.slane %v10325_v26, 2  ;;  %v5594_v32 = vrot.slane %v10325_v26, 3 }
 0x4a9   : > { %7230 = vmatpush3.msra.mxu0 %v7025_v55  ;;  %7231 = vmatprep.mubr.msk.f32.mxu0 %vm7636_vm8, %v10803_v41  ;;  %v3426_v7 = vadd.f32 %v3424_v13, %v3394_v51  ;;  %v3664_v53 = vpop.permute.xlu0 %3663  ;;  %v5670_v36 = vrot.slane %v10325_v26, 4  ;;  %v5746_v24 = vrot.slane %v10325_v26, 5  ;;  %v5822_v11 = vrot.slane %v10325_v26, 6  ;;  %v7007_v51 = vld [vmem:[%s10802_s7 + $0x8] sm:$0xff] }
 0x4aa   : > { %7234 = vmatprep.subr.mxu0 %v10803_v41  ;;  %v10335_v18 = vmul.f32 %v7473_v8, %v4121_v14  ;;  %v5898_v55 = vrot.slane %v10325_v26, 7  ;;  %v7039_v8 = vld [vmem:[%s10802_s7 + $0x18] sm:$0xff] }
 0x4ab   : > { %v3478_v0 = vadd.f32 %v3476_v60, %v3426_v7  ;;  %v7003_v60 = vld [vmem:[%s10802_s7 + $0xc0] sm:$0xff] }
 0x4ac   : > { %7147 = vmatmul.mubr.msk.f32.vlgmr.msra.gmra.mrb[4].mxu1 %vm4149_vm9, %v10335_v18  ;;  %v3820_v47 = vpop.permute.xlu1 %3819  ;;  %v4226_v30 = vrot.slane %v10335_v18, 1  ;;  %v4302_v22 = vrot.slane %v10335_v18, 2  ;;  %v4378_v59 = vrot.slane %v10335_v18, 3  ;;  %v4454_v21 = vrot.slane %v10335_v18, 4 }
 0x4ad   : > { %v3530_v17 = vadd.f32 %v3528_v58, %v3478_v0  ;;  %7150 = vmatpush3.msra.mxu1 %v6993_v57  ;;  %7151 = vmatprep.mubr.msk.f32.mxu1 %vm7636_vm8, %v10803_v41  ;;  %v3768_v23 = vpop.permute.xlu0 %3767  ;;  %v4530_v58 = vrot.slane %v10335_v18, 5  ;;  %v4682_v40 = vrot.slane %v10335_v18, 7  ;;  %v7043_v57 = vld [vmem:[%s10802_s7 + $0x58] sm:$0xff] }
 0x4ae   : > { %7154 = vmatprep.subr.mxu1 %v10803_v41 }
 0x4af   : > { %v3582_v9 = vadd.f32 %v3580_v37, %v3530_v17  ;;  %v4606_v37 = vrot.slane %v10335_v18, 6  ;;  %v7009_v18 = vld [vmem:[%s10802_s7 + $0x28] sm:$0xff] }
 0x4b0   : > { %7232 = vmatmul.mubr.msk.f32.vlgmr.msra.gmra.mrb[0].mxu0 %vm4149_vm9, %v5442_v56  ;;  %v3904_v50 = vpop.permute.xlu1 %3903  ;;  %v7011_v17 = vld [vmem:[%s10802_s7 + $0x48] sm:$0xff] }
 0x4b1   : > { %7235 = vmatpush3.msra.mxu0 %v7027_v3  ;;  %7236 = vmatprep.mubr.msk.f32.mxu0 %vm7636_vm8, %v10803_v41  ;;  %v3634_v45 = vadd.f32 %v3632_v31, %v3582_v9  ;;  %v3872_v49 = vpop.permute.xlu0 %3871  ;;  %v7045_v3 = vld [vmem:[%s10802_s7 + $0x78] sm:$0xff]  ;;  %v4910_v9 = vrot.slane %v10311_v5, 2 }
 0x4b2   : > { %7239 = vmatprep.subr.mxu0 %v10803_v41 }
 0x4b3   : > { %v3666_v16 = vadd.f32 %v3664_v53, %v3634_v45  ;;  %v7041_v53 = vld [vmem:[%s10802_s7 + $0x38] sm:$0xff] }
 0x4b4   : > { %7152 = vmatmul.mubr.msk.f32.vlgmr.msra.gmra.mrb[4].mxu1 %vm4149_vm9, %v4226_v30  ;;  %v4008_v28 = vpop.permute.xlu1 %4007  ;;  %v7015_v30 = vld [vmem:[%s10802_s7 + $0x88] sm:$0xff] }
 0x4b5   : > { %v3718_v19 = vadd.f32 %v3716_v27, %v3666_v16  ;;  %7155 = vmatpush3.msra.mxu1 %v6995_v34  ;;  %7156 = vmatprep.mubr.msk.f32.mxu1 %vm7636_vm8, %v10803_v41  ;;  %v3956_v4 = vpop.permute.xlu0 %3955  ;;  %v4834_v27 = vrot.slane %v10311_v5, 1  ;;  %v4986_v16 = vrot.slane %v10311_v5, 3 }
 0x4b6   : > { %7159 = vmatprep.subr.mxu1 %v10803_v41 }
 0x4b7   : > { %v3770_v54 = vadd.f32 %v3768_v23, %v3718_v19  ;;  %v7013_v23 = vld [vmem:[%s10802_s7 + $0x68] sm:$0xff]  ;;  %v7049_v19 = vld [vmem:[%s10802_s7 + $0xb8] sm:$0xff] }
 0x4b8   : > { %7237 = vmatmul.mubr.msk.f32.vlgmr.msra.gmra.mrb[0].mxu0 %vm4149_vm9, %v5518_v6  ;;  %v4112_v12 = vpop.permute.xlu1 %4111  ;;  %v5062_v6 = vrot.slane %v10311_v5, 4 }
 0x4b9   : > { %7240 = vmatpush3.msra.mxu0 %v7029_v43  ;;  %7241 = vmatprep.mubr.msk.f32.mxu0 %vm7636_vm8, %v10803_v41  ;;  %v3822_v52 = vadd.f32 %v3820_v47, %v3770_v54  ;;  %v4060_v15 = vpop.permute.xlu0 %4059  ;;  %v7047_v47 = vld [vmem:[%s10802_s7 + $0x98] sm:$0xff]  ;;  %v7017_v43 = vld [vmem:[%s10802_s7 + $0xa8] sm:$0xff] }
 0x4ba   : > { %7244 = vmatprep.subr.mxu0 %v10803_v41  ;;  %v7051_v54 = vld [vmem:[%s10802_s7 + $0xd8] sm:$0xff] }
 0x4bb   : > { %v3874_v1 = vadd.f32 %v3872_v49, %v3822_v52  ;;  %v7019_v52 = vld [vmem:[%s10802_s7 + $0xc8] sm:$0xff] }
 0x4bc   : > { %7157 = vmatmul.mubr.msk.f32.vlgmr.msra.gmra.mrb[4].mxu1 %vm4149_vm9, %v4302_v22  ;;  %v7053_v22 = vld [vmem:[%s10802_s7 + $0xf8] sm:$0xff] }
 0x4bd   : > { %v3906_v25 = vadd.f32 %v3904_v50, %v3874_v1  ;;  %7160 = vmatpush3.msra.mxu1 %v6997_v46  ;;  %7161 = vmatprep.mubr.msk.f32.mxu1 %vm7636_vm8, %v10803_v41  ;;  %v5138_v50 = vrot.slane %v10311_v5, 5  ;;  %v5214_v46 = vrot.slane %v10311_v5, 6 }
 0x4be   : > { %7164 = vmatprep.subr.mxu1 %v10803_v41 }
 0x4bf   : > { %v3958_v10 = vadd.f32 %v3956_v4, %v3906_v25  ;;  %v4147_v25 = vld [vmem:[%s10852_s29] sm:$0x1] }
 0x4c0   : > { %7242 = vmatmul.mubr.msk.f32.vlgmr.msra.gmra.mrb[0].mxu0 %vm4149_vm9, %v5594_v32 }
 0x4c1   : > { %7245 = vmatpush3.msra.mxu0 %v7031_v33  ;;  %7246 = vmatprep.mubr.msk.f32.mxu0 %vm7636_vm8, %v10803_v41  ;;  %v4010_v48 = vadd.f32 %v4008_v28, %v3958_v10 }
 0x4c2   : > { %7249 = vmatprep.subr.mxu0 %v10803_v41 }
 0x4c3   : > { %v4062_v20 = vadd.f32 %v4060_v15, %v4010_v48 }
 0x4c4   : > { %7162 = vmatmul.mubr.msk.f32.vlgmr.msra.gmra.mrb[4].mxu1 %vm4149_vm9, %v4378_v59 }
 0x4c5   : > { %v4114_v38 = vadd.f32 %v4112_v12, %v4062_v20  ;;  %7165 = vmatpush3.msra.mxu1 %v6999_v44  ;;  %7166 = vmatprep.mubr.msk.f32.mxu1 %vm7636_vm8, %v10803_v41 }
 0x4c6   : > { %7169 = vmatprep.subr.mxu1 %v10803_v41 }
 0x4c7   : > { %v4139_v2 = vsub.f32 0.0, %v4114_v38 }
 0x4c8   : > { %7247 = vmatmul.mubr.msk.f32.vlgmr.msra.gmra.mrb[0].mxu0 %vm4149_vm9, %v5670_v36 }
 0x4c9   : > { %7250 = vmatpush3.msra.mxu0 %v7033_v39  ;;  %7251 = vmatprep.mubr.msk.f32.mxu0 %vm7636_vm8, %v10803_v41  ;;  %v4140_v13 = vmul.f32 1.442695, %v4139_v2 }
 0x4ca   : > { %7254 = vmatprep.subr.mxu0 %v10803_v41 }
 0x4cb   : > { %7474 = vpow2.f32 %v4140_v13 }
 0x4cc   : > { %7167 = vmatmul.mubr.msk.f32.vlgmr.msra.gmra.mrb[4].mxu1 %vm4149_vm9, %v4454_v21 }
 0x4cd   : > { %7170 = vmatpush3.msra.mxu1 %v7001_v35  ;;  %7171 = vmatprep.mubr.msk.f32.mxu1 %vm7636_vm8, %v10803_v41 }
 0x4ce   : > { %7174 = vmatprep.subr.mxu1 %v10803_v41 }
 0x4d0   : > { %7252 = vmatmul.mubr.msk.f32.vlgmr.msra.gmra.mrb[0].mxu0 %vm4149_vm9, %v5746_v24 }
 0x4d1   : > { %7255 = vmatpush3.msra.mxu0 %v7035_v42  ;;  %7256 = vmatprep.mubr.msk.f32.mxu0 %vm7636_vm8, %v10803_v41 }
 0x4d2   : > { %7259 = vmatprep.subr.mxu0 %v10803_v41 }
 0x4d4   : > { %7172 = vmatmul.mubr.msk.f32.vlgmr.msra.gmra.mrb[4].mxu1 %vm4149_vm9, %v4530_v58 }
 0x4d5   : > { %v7475_v61 = vpop.eup %7474  ;;  %7175 = vmatpush3.msra.mxu1 %v7003_v60  ;;  %7176 = vmatprep.mubr.msk.f32.mxu1 %vm7636_vm8, %v10803_v41 }
 0x4d6   : > { %v4142_v62 = vadd.f32 1.0, %v7475_v61  ;;  %7179 = vmatprep.subr.mxu1 %v10803_v41 }
 0x4d8   : > { %7257 = vmatmul.mubr.msk.f32.vlgmr.msra.gmra.mrb[0].mxu0 %vm4149_vm9, %v5822_v11  ;;  %7476 = vrcp.f32 %v4142_v62 }
 0x4d9   : > { %7260 = vmatpush3.msra.mxu0 %v7037_v29  ;;  %7261 = vmatprep.mubr.msk.f32.mxu0 %vm7636_vm8, %v10803_v41 }
 0x4da   : > { %7264 = vmatprep.subr.mxu0 %v10803_v41 }
 0x4dc   : > { %7177 = vmatmul.mubr.msk.f32.vlgmr.msra.gmra.mrb[4].mxu1 %vm4149_vm9, %v4606_v37 }
 0x4dd   : > { %7180 = vmatpush3.msra.mxu1 %v7005_v63  ;;  %7181 = vmatprep.mubr.msk.f32.mxu1 %vm7636_vm8, %v10803_v41 }
 0x4de   : > { %7184 = vmatprep.subr.mxu1 %v10803_v41 }
 0x4e0   : > { %7262 = vmatmul.mubr.msk.f32.vlgmr.msra.gmra.mrb[0].mxu0 %vm4149_vm9, %v5898_v55 }
 0x4e1   : > { %7265 = vmatpush3.msra.mxu0 %v7039_v8  ;;  %7266 = vmatprep.mubr.msk.f32.mxu0 %vm7636_vm8, %v10803_v41 }
 0x4e2   : > { %7269 = vmatprep.subr.mxu0 %v10803_v41  ;;  %v7477_v31 = vpop.eup %7476 }
 0x4e3   : > { %v4144_v26 = vmul.f32 %v7477_v31, %v4142_v62 }
 0x4e4   : > { %7182 = vmatmul.mubr.msk.f32.vlgmr.msra.gmra.mrb[4].mxu1 %vm4149_vm9, %v4682_v40 }
 0x4e5   : > { %v4145_v14 = vsub.f32 2.0, %v4144_v26  ;;  %7185 = vmatpush3.msra.mxu1 %v7007_v51  ;;  %7186 = vmatprep.mubr.msk.f32.mxu1 %vm7636_vm8, %v10803_v41 }
 0x4e6   : > { %7189 = vmatprep.subr.mxu1 %v10803_v41 }
 0x4e7   : > { %v10456_v7 = vmul.f32 %v7477_v31, %v4145_v14 }
 0x4e9   : > { %7267 = vmatmul.mubr.msk.f32.vlgmr.msra.gmra.mrb[0].mxu0 %vm4149_vm9, %v10456_v7  ;;  %v6050_v0 = vrot.slane %v10456_v7, 1  ;;  %v6126_v56 = vrot.slane %v10456_v7, 2  ;;  %v6202_v45 = vrot.slane %v10456_v7, 3  ;;  %v6278_v34 = vrot.slane %v10456_v7, 4 }
 0x4ea   : > { %7270 = vmatpush3.msra.mxu0 %v7041_v53  ;;  %7271 = vmatprep.mubr.msk.f32.mxu0 %vm7636_vm8, %v10803_v41  ;;  %v6354_v49 = vrot.slane %v10456_v7, 5  ;;  %v6430_v1 = vrot.slane %v10456_v7, 6  ;;  %v6506_v4 = vrot.slane %v10456_v7, 7 }
 0x4eb   : > { %7274 = vmatprep.subr.mxu0 %v10803_v41 }
 0x4ec   : > { %7187 = vmatmul.mubr.msk.f32.vlgmr.msra.gmra.mrb[4].mxu1 %vm4149_vm9, %v10311_v5 }
 0x4ed   : > { %7190 = vmatpush3.msra.mxu1 %v7009_v18  ;;  %7191 = vmatprep.mubr.msk.f32.mxu1 %vm7636_vm8, %v10803_v41 }
 0x4ee   : > { %7194 = vmatprep.subr.mxu1 %v10803_v41 }
 0x4f1   : > { %7272 = vmatmul.mubr.msk.f32.vlgmr.msra.gmra.mrb[0].mxu0 %vm4149_vm9, %v6050_v0 }
 0x4f2   : > { %7275 = vmatpush3.msra.mxu0 %v7043_v57  ;;  %7276 = vmatprep.mubr.msk.f32.mxu0 %vm7636_vm8, %v10803_v41 }
 0x4f3   : > { %7279 = vmatprep.subr.mxu0 %v10803_v41 }
 0x4f4   : > { %7192 = vmatmul.mubr.msk.f32.vlgmr.msra.gmra.mrb[4].mxu1 %vm4149_vm9, %v4834_v27 }
 0x4f5   : > { %7195 = vmatpush3.msra.mxu1 %v7011_v17  ;;  %7196 = vmatprep.mubr.msk.f32.mxu1 %vm7636_vm8, %v10803_v41 }
 0x4f6   : > { %7199 = vmatprep.subr.mxu1 %v10803_v41 }
 0x4f9   : > { %7277 = vmatmul.mubr.msk.f32.vlgmr.msra.gmra.mrb[0].mxu0 %vm4149_vm9, %v6126_v56 }
 0x4fa   : > { %7280 = vmatpush3.msra.mxu0 %v7045_v3  ;;  %7281 = vmatprep.mubr.msk.f32.mxu0 %vm7636_vm8, %v10803_v41 }
 0x4fb   : > { %7284 = vmatprep.subr.mxu0 %v10803_v41 }
 0x4fc   : > { %7197 = vmatmul.mubr.msk.f32.vlgmr.msra.gmra.mrb[4].mxu1 %vm4149_vm9, %v4910_v9 }
 0x4fd   : > { %7200 = vmatpush3.msra.mxu1 %v7013_v23  ;;  %7201 = vmatprep.mubr.msk.f32.mxu1 %vm7636_vm8, %v10803_v41 }
 0x4fe   : > { %7204 = vmatprep.subr.mxu1 %v10803_v41 }
 0x501   : > { %7282 = vmatmul.mubr.msk.f32.vlgmr.msra.gmra.mrb[0].mxu0 %vm4149_vm9, %v6202_v45 }
 0x502   : > { %7285 = vmatpush3.msra.mxu0 %v7047_v47  ;;  %7286 = vmatprep.mubr.msk.f32.mxu0 %vm7636_vm8, %v10803_v41 }
 0x503   : > { %7289 = vmatprep.subr.mxu0 %v10803_v41 }
 0x504   : > { %7202 = vmatmul.mubr.msk.f32.vlgmr.msra.gmra.mrb[4].mxu1 %vm4149_vm9, %v4986_v16 }
 0x505   : > { %7205 = vmatpush3.msra.mxu1 %v7015_v30  ;;  %7206 = vmatprep.mubr.msk.f32.mxu1 %vm7636_vm8, %v10803_v41 }
 0x506   : > { %7209 = vmatprep.subr.mxu1 %v10803_v41 }
 0x509   : > { %7287 = vmatmul.mubr.msk.f32.vlgmr.msra.gmra.mrb[0].mxu0 %vm4149_vm9, %v6278_v34 }
 0x50a   : > { %7290 = vmatpush3.msra.mxu0 %v7049_v19  ;;  %7291 = vmatprep.mubr.msk.f32.mxu0 %vm7636_vm8, %v10803_v41 }
 0x50b   : > { %7294 = vmatprep.subr.mxu0 %v10803_v41 }
 0x50c   : > { %7207 = vmatmul.mubr.msk.f32.vlgmr.msra.gmra.mrb[4].mxu1 %vm4149_vm9, %v5062_v6 }
 0x50d   : > { %7210 = vmatpush3.msra.mxu1 %v7017_v43  ;;  %7211 = vmatprep.mubr.msk.f32.mxu1 %vm7636_vm8, %v10803_v41 }
 0x50e   : > { %7214 = vmatprep.subr.mxu1 %v10803_v41 }
 0x511   : > { %7292 = vmatmul.mubr.msk.f32.vlgmr.msra.gmra.mrb[0].mxu0 %vm4149_vm9, %v6354_v49 }
 0x512   : > { %7295 = vmatpush3.msra.mxu0 %v7051_v54  ;;  %7296 = vmatprep.mubr.msk.f32.mxu0 %vm7636_vm8, %v10803_v41 }
 0x513   : > { %7299 = vmatprep.subr.mxu0 %v10803_v41 }
 0x514   : > { %7212 = vmatmul.mubr.msk.f32.vlgmr.msra.gmra.mrb[4].mxu1 %vm4149_vm9, %v5138_v50 }
 0x515   : > { %7215 = vmatpush3.msra.mxu1 %v7019_v52  ;;  %7216 = vmatprep.mubr.msk.f32.mxu1 %vm7636_vm8, %v10803_v41 }
 0x519   : > { %7297 = vmatmul.mubr.msk.f32.vlgmr.msra.gmra.mrb[0].mxu0 %vm4149_vm9, %v6430_v1 }
 0x51a   : > { %7300 = vmatpush3.msra.mxu0 %v7053_v22  ;;  %7301 = vmatprep.mubr.msk.f32.mxu0 %vm7636_vm8, %v10803_v41 }
 0x51c   : > { %7217 = vmatmul.mubr.msk.f32.vlgmr.msra.gmra.mrb[4].mxu1 %vm4149_vm9, %v5214_v46 }
 0x521   : > { %7302 = vmatmul.mubr.msk.f32.vlgmr.msra.gmra.mrb[0].mxu0 %vm4149_vm9, %v6506_v4 }
 0x5ef   : > { %v5283_v32 = vpop.f32.mrb[4].mxu1 }
 0x5f0   : > { %v7218_v33 = vpop.f32.mrb[5].mxu1  ;;  %v7312_v41 = vadd.f32 %v5283_v32, %v4147_v25 }
 0x5f4   : > { %v6575_v28 = vpop.f32.mrb[0].mxu0 }
 0x5f5   : > { %v7313_v5 = vadd.f32 %v7312_v41, %v6575_v28  ;;  %v7303_v10 = vpop.f32.mrb[1].mxu0 }
 0x5f7   : > { %6580 = vst [vmem:[%s349_s15] sm:$0x1] %v7313_v5 }
 0x5f8   : > { %7563 = shalt.err (!%p7560_p9)
}
 0x5f9   : > { %s7564_s5 = scalar_lea.hbm %s10573_s13, 16  ;;  %s7568_s18 = scalar_lea.hbm %s10854_s0, 32 }
 0x5fa   : > { %p7565_p7 = scmp.ne.s32.totalorder %s10573_s13, %s7564_s5  ;;  %p7569_p6 = scmp.lt.u32.totalorder %s10573_s13, %s10854_s0 }
 0x5fb   : > { %p7570_p12 = scmp.lt.u32.totalorder %s7568_s18, %s7564_s5  ;;  %p7572_p8 = scmp.lt.u32.totalorder %s7564_s5, %s10573_s13 }
 0x5fc   : > { %p7566_p0 = pnand %p7565_p7, %p10855_p11 }
 0x5fd   : > { %p7571_p10 = por %p7570_p12, %p7569_p6 }
 0x5fe   : > { %p7567_p5 = pneg %p7566_p0 }
 0x5ff   : > { %p7573_p13 = por %p7572_p8, %p7571_p10 }
 0x601   : > { %p7574_p1 = pnand %p7573_p13, %p7567_p5 }
 0x603   : > { %7577 = shalt.err (!%p7574_p1)
}
 0x604   : > { %7391 = dma.vmem_to_hbm [thread:$0]  (%p10855_p11), %s10575_s9, 16, %s10573_s13, %s6582_s22  }
 0x605 PF: > { %s10856_s6 = sld [smem:[#allocation20_spill]]  ;;  %s10857_s19 = sld [smem:[#allocation17_spill]] }
 0x606   : > { %s10858_s23 = sld [smem:[#allocation25_spill]] }
 0x60b   : > { %p7418_p2 = scmp.ge.s32.totalorder %s10856_s6, 2  ;;  %s6606_s8 = sand.u32 1, %s10857_s19  }
 0x60c   : > { %p10859_p3 = scmp.ne.s32.totalorder %s10858_s23, 0  ;;  %s6607_s26 = scalar_lea.sflag [#allocation5], %s6606_s8 }
 0x60e   : > { %p7407_p4 = pnand %p7418_p2, %p10859_p3 }
 0x610   : > { %7607 = dma.done.wait (!%p7407_p4), %s6607_s26, 16  }
 0x611   : > { %7609 = vsyncadd (!%p7407_p4), %s6607_s26, 4294967280  ;;  %s10860_s30 = sld [smem:[#allocation22_spill]]  ;;  %s10861_s27 = sld [smem:[#allocation18_spill]] }
 0x612   : > { %s10862_s28 = sld [smem:[#allocation19_spill]]  ;;  %s10863_s29 = sld [smem:[#allocation23_spill]] }
 0x617   : > { %p21_p9 = scmp.ge.s32.totalorder %s10860_s30, 4  }
 0x619   :  { %23 = sbr.rel (!%p21_p9) target bundleno = 16 (0x10), region = 143 }
 0x620   :  { %6611 = vsyncpa [#allocation5], 1 }
 0x621   :  { %6613 = vsyncpa [#allocation5 + $0x1], 1 }
 0x622   :  { %6614 = vsyncpa [#allocation6], 1 }
 0x623   :  { %6616 = vsyncpa [#allocation6 + $0x1], 1 }
 0x624   :  { %6617 = vsyncpa [#allocation8], 1 }
 0x625   :  { %6618 = vsyncpa [#allocation11], 1 }

</bundles_post_ra>
